<compile_context>
chip_gen: v7x
topology: tpu7x:2x2x1
jax: 0.10.0
libtpu: 0.0.40
codegen_flags: <defaults>
</compile_context>

<pallas_src>
import jax
import jax.numpy as jnp
import numpy as np
from jax import lax
from jax.experimental import pallas as pl
from jax.experimental.pallas import tpu as pltpu


def _round_up(v, m):
    return (v + m - 1) // m * m


def _pick_h2_tile(h_out, n_batch, max_y_rows=120):
    """Largest divisor T2 of h_out giving >=4 grid steps within a row budget."""
    fallback = None
    for d in range(h_out, 0, -1):
        if h_out % d:
            continue
        if 3 * d > max_y_rows:
            continue
        if fallback is None:
            fallback = d                       # largest VMEM-feasible tile
        if n_batch * (h_out // d) >= 4:        # enough steps for pipelining /
            return d                           # 2 TCs per chip on v7x
    return fallback if fallback is not None else 1


def _make_kernel(h, w, t2, w_out, wy):
    """Build the per-(batch, h-tile) kernel. h, w: original spatial dims."""
    rows_y = 3 * t2            # rows of the padded-y frame this tile produces

    def kernel(x_ref, w1_ref, w2_ref, w11_ref, p_ref, o_ref):
        cdt = x_ref.dtype                       # bf16 MXU operand dtype
        cp = x_ref.shape[-1]                    # padded input channels (128k)
        dp = o_ref.shape[-1]                    # padded output channels (128k)

        xt = x_ref[0, 0]                        # (rows_y + 2, wxp, cp)

        # ---- conv1 (3x3, stride 1, pad 1): 9 accumulating MXU dots ----------
        # ye[i, m, :] = conv1 output at (y_row = 3*r0 - 1 + i, y_col = m - 1),
        # i.e. conv1 evaluated directly on the zero-padded-y coordinate frame
        # that the stride-3 conv2 consumes.
        acc1 = jnp.zeros((rows_y * wy, dp), jnp.float32)
        for kh in range(3):
            for kw in range(3):
                tap = xt[kh:kh + rows_y, kw:kw + wy, :].reshape(rows_y * wy, cp)
                acc1 = acc1 + jnp.dot(tap, w1_ref[kh, kw],
                                      preferred_element_type=jnp.float32)

        # bn1 (eval running stats) + conv1 bias folded to one affine, then
        # LeakyReLU(0.01); dropout is eval-mode identity.
        ye = acc1 * p_ref[0:1, :] + p_ref[1:2, :]
        ye = jnp.maximum(ye, 0.01 * ye).reshape(rows_y, wy, dp)

        # Zero the positions that are conv2's zero-padding of y (they must be
        # exactly 0, not conv1 evaluated on padded x).
        r0 = pl.program_id(1) * t2
        y_row = 3 * r0 - 1 + lax.broadcasted_iota(jnp.int32, (rows_y, wy, dp), 0)
        y_col = lax.broadcasted_iota(jnp.int32, (rows_y, wy, dp), 1) - 1
        valid = (y_row >= 0) & (y_row < h) & (y_col >= 0) & (y_col < w)
        ye = jnp.where(valid, ye, 0.0).astype(cdt)

        # ---- conv2(ye) + conv11(x), both 3x3/stride 3/pad 1: 6 dots ---------
        # Residual add is fused by accumulating both convs into one f32 acc.
        xs = xt[1:1 + rows_y, 1:1 + wy, :]      # x in the same padded frame
        yr = ye.reshape(t2, 3, wy, dp)          # split rows by output row
        xr = xs.reshape(t2, 3, wy, cp)
        acc2 = jnp.zeros((t2 * w_out, dp), jnp.float32)
        for kh in range(3):
            acc2 = acc2 + jnp.dot(yr[:, kh].reshape(t2 * w_out, 3 * dp),
                                  w2_ref[kh],
                                  preferred_element_type=jnp.float32)
            acc2 = acc2 + jnp.dot(xr[:, kh].reshape(t2 * w_out, 3 * cp),
                                  w11_ref[kh],
                                  preferred_element_type=jnp.float32)
        out = acc2 + p_ref[2:3, :]              # conv2 + conv11 biases
        o_ref[0, 0] = out.reshape(t2, w_out, dp).astype(o_ref.dtype)

    return kernel


# ----------------------------------------------------------------------------
# Wrapper: layout / weight preprocessing + pallas_call plumbing.
# ----------------------------------------------------------------------------
def resnet_block_forward(x_nchw, params):
    n, cin, h, w = x_nchw.shape
    d = params["w1"].shape[0]
    h_out = (h - 1) // 3 + 1
    w_out = (w - 1) // 3 + 1

    cp = _round_up(cin, 128)        # lane-dense MXU contraction operands
    dp = _round_up(d, 128)          # lane-dense output stores

    t2 = _pick_h2_tile(h_out, n)    # output rows per h-tile (divides h_out)
    nt = h_out // t2
    rows_y = 3 * t2
    r_in = rows_y + 2               # x rows per tile incl. 1-row conv1 halo
    wy = 3 * w_out                  # width of the padded-y frame conv2 reads
    wxp = _round_up(wy + 2, 8)      # sublane-aligned padded x width

    # channels-last bf16, spatially pre-padded with real zeros (2 rows/cols on
    # the leading side; padded to 3*h_out rows / wxp cols), channels padded.
    xq = jnp.transpose(x_nchw, (0, 2, 3, 1)).astype(jnp.bfloat16)
    bot = max(0, 3 * h_out - h)
    xq = jnp.pad(xq, ((0, 0), (2, bot), (2, wxp - w - 2), (0, cp - cin)))
    # overlapping halo tiles materialized once (disjoint BlockSpec blocks;
    # only duplicates 2 rows per tile in HBM).
    x_tiles = jnp.stack(
        [xq[:, 3 * t2 * t: 3 * t2 * t + r_in] for t in range(nt)], axis=1)
    # (n, nt, r_in, wxp, cp)

    def conv_w_taps(wt, ip, op):    # (O,I,3,3) -> (3,3,ip,op) bf16, zero padded
        o_, i_ = wt.shape[0], wt.shape[1]
        wm = jnp.transpose(wt, (2, 3, 1, 0))
        wm = jnp.pad(wm, ((0, 0), (0, 0), (0, ip - i_), (0, op - o_)))
        return wm.astype(jnp.bfloat16)

    def conv_w_kh(wt, ip, op):      # (O,I,3,3) -> (3, 3*ip, op), rows=(kw, cin)
        return conv_w_taps(wt, ip, op).reshape(3, 3 * ip, op)

    w1m = conv_w_taps(params["w1"], cp, dp)
    w2m = conv_w_kh(params["w2"], dp, dp)
    w11m = conv_w_kh(params["w11"], cp, dp)

    # fold bn1 (eval running stats) + conv1 bias into one affine; merge all
    # per-channel vectors into a single resident (8, dp) f32 operand.
    inv_std = params["bn1_gamma"] / jnp.sqrt(params["bn1_var"] + params["bn1_eps"])
    b1 = (params["b1"] - params["bn1_mean"]) * inv_std + params["bn1_beta"]
    b23 = params["b2"] + params["b11"]
    pmat = jnp.zeros((8, dp), jnp.float32)
    pmat = pmat.at[0, :d].set(inv_std.astype(jnp.float32))
    pmat = pmat.at[1, :d].set(b1.astype(jnp.float32))
    pmat = pmat.at[2, :d].set(b23.astype(jnp.float32))

    kernel = _make_kernel(h, w, t2, w_out, wy)

    out_tiles = pl.pallas_call(
        kernel,
        out_shape=jax.ShapeDtypeStruct((n, nt, t2, w_out, dp), jnp.bfloat16),
        grid_spec=pltpu.PrefetchScalarGridSpec(
            num_scalar_prefetch=0,
            grid=(n, nt),
            in_specs=[
                pl.BlockSpec((1, 1, r_in, wxp, cp),
                             lambda b, t: (b, t, 0, 0, 0)),
                pl.BlockSpec(w1m.shape, lambda b, t: (0, 0, 0, 0)),
                pl.BlockSpec(w2m.shape, lambda b, t: (0, 0, 0)),
                pl.BlockSpec(w11m.shape, lambda b, t: (0, 0, 0)),
                pl.BlockSpec(pmat.shape, lambda b, t: (0, 0)),
            ],
            out_specs=pl.BlockSpec((1, 1, t2, w_out, dp),
                                   lambda b, t: (b, t, 0, 0, 0)),
        ),
        compiler_params=pltpu.CompilerParams(
            dimension_semantics=("parallel", "parallel"),
            vmem_limit_bytes=32 * 1024 * 1024,   # within v5e/v6e/v7x budgets
        ),
    )(x_tiles, w1m, w2m, w11m, pmat)

    out = out_tiles.reshape(n, h_out, w_out, dp)[..., :d]   # drop channel pad
    out = jnp.transpose(out, (0, 3, 1, 2))                  # NCHW, still bf16
    return out.astype(jnp.float32)


# ----------------------------------------------------------------------------
# Pure-JAX reference (PyTorch NCHW semantics, f32, eval-mode BN/dropout).
# ----------------------------------------------------------------------------
def reference_nchw(x, params):
    eps = params["bn1_eps"]

    def conv(v, wt, b, stride, pad):
        out = lax.conv_general_dilated(
            v, wt, (stride, stride), [(pad, pad), (pad, pad)],
            dimension_numbers=("NCHW", "OIHW", "NCHW"),
            precision=lax.Precision.HIGHEST)
        return out + b.reshape(1, -1, 1, 1)

    prev_mp = conv(x, params["w11"], params["b11"], 3, 1)
    out = conv(x, params["w1"], params["b1"], 1, 1)
    inv = (params["bn1_gamma"] / jnp.sqrt(params["bn1_var"] + eps)).reshape(1, -1, 1, 1)
    out = (out - params["bn1_mean"].reshape(1, -1, 1, 1)) * inv \
        + params["bn1_beta"].reshape(1, -1, 1, 1)
    out = jnp.where(out > 0, out, 0.01 * out)   # LeakyReLU(0.01)
    # dropout: eval-mode identity
    out = conv(out, params["w2"], params["b2"], 3, 1)
    return out + prev_mp


if __name__ == "__main__":
    N, IN_DEPTH, DEPTH, H, W = 2, 4, 8, 16, 16

    key = jax.random.PRNGKey(0)
    ks = jax.random.split(key, 11)
    x = jax.random.normal(ks[0], (N, IN_DEPTH, H, W), jnp.float32)
    params = {
        "w1": 0.1 * jax.random.normal(ks[1], (DEPTH, IN_DEPTH, 3, 3), jnp.float32),
        "b1": 0.1 * jax.random.normal(ks[2], (DEPTH,), jnp.float32),
        "w2": 0.1 * jax.random.normal(ks[3], (DEPTH, DEPTH, 3, 3), jnp.float32),
        "b2": 0.1 * jax.random.normal(ks[4], (DEPTH,), jnp.float32),
        "w11": 0.1 * jax.random.normal(ks[5], (DEPTH, IN_DEPTH, 3, 3), jnp.float32),
        "b11": 0.1 * jax.random.normal(ks[6], (DEPTH,), jnp.float32),
        "bn1_gamma": 1.0 + 0.1 * jax.random.normal(ks[7], (DEPTH,), jnp.float32),
        "bn1_beta": 0.1 * jax.random.normal(ks[8], (DEPTH,), jnp.float32),
        "bn1_mean": 0.1 * jax.random.normal(ks[9], (DEPTH,), jnp.float32),
        "bn1_var": 0.5 + jnp.abs(jax.random.normal(ks[10], (DEPTH,), jnp.float32)),
        "bn1_eps": 1e-5,
    }

    out = jax.block_until_ready(resnet_block_forward(x, params))
    ref = jax.block_until_ready(reference_nchw(x, params))

    np.testing.assert_allclose(np.asarray(out), np.asarray(ref),
                               rtol=3e-2, atol=3e-2)
    print("KERNEL_OK")
</pallas_src>

<mosaic_0001>
module attributes {stable_mosaic.version = 11 : i64} {
  func.func @kernel(%arg0: i32, %arg1: i32, %arg2: memref<1x1x11x24x128xbf16, #tpu.memory_space<vmem>>, %arg3: memref<3x3x128x128xbf16, #tpu.memory_space<vmem>>, %arg4: memref<3x384x128xbf16, #tpu.memory_space<vmem>>, %arg5: memref<3x384x128xbf16, #tpu.memory_space<vmem>>, %arg6: memref<8x128xf32, #tpu.memory_space<vmem>>, %arg7: memref<1x1x3x6x128xbf16, #tpu.memory_space<vmem>>) attributes {dimension_semantics = [#tpu.dimension_semantics<parallel>, #tpu.dimension_semantics<parallel>], iteration_bounds = array<i64: 2, 2>, scalar_prefetch = 0 : i64, scratch_operands = 0 : i64, tpu.core_type = #tpu.core_type<tc>, window_params = [{transform_indices = @transform_0, window_bounds = array<i64: 1, 1, 11, 24, 128>}, {pipeline_mode = #tpu.pipeline_mode<synchronous>, transform_indices = @transform_1, window_bounds = array<i64: 3, 3, 128, 128>}, {pipeline_mode = #tpu.pipeline_mode<synchronous>, transform_indices = @transform_2, window_bounds = array<i64: 3, 384, 128>}, {pipeline_mode = #tpu.pipeline_mode<synchronous>, transform_indices = @transform_3, window_bounds = array<i64: 3, 384, 128>}, {pipeline_mode = #tpu.pipeline_mode<synchronous>, transform_indices = @transform_4, window_bounds = array<i64: 8, 128>}, {transform_indices = @transform_5, window_bounds = array<i64: 1, 1, 3, 6, 128>}]} {
    %c0 = arith.constant 0 : index
    %c0_0 = arith.constant 0 : index
    %c0_1 = arith.constant 0 : index
    %c0_2 = arith.constant 0 : index
    %c0_3 = arith.constant 0 : index
    %0 = vector.load %arg2[%c0, %c0_0, %c0_1, %c0_2, %c0_3] : memref<1x1x11x24x128xbf16, #tpu.memory_space<vmem>>, vector<1x1x11x24x128xbf16>
    %1 = vector.shape_cast %0 : vector<1x1x11x24x128xbf16> to vector<11x24x128xbf16>
    %cst = arith.constant 0.000000e+00 : f32
    %2 = vector.broadcast %cst : f32 to vector<162x128xf32>
    %3 = vector.extract_strided_slice %1 {offsets = [0, 0, 0], sizes = [9, 18, 128], strides = [1, 1, 1]} : vector<11x24x128xbf16> to vector<9x18x128xbf16>
    %4 = vector.shape_cast %3 : vector<9x18x128xbf16> to vector<162x128xbf16>
    %c0_4 = arith.constant 0 : index
    %c0_5 = arith.constant 0 : index
    %c0_6 = arith.constant 0 : index
    %c0_7 = arith.constant 0 : index
    %5 = vector.load %arg3[%c0_4, %c0_5, %c0_6, %c0_7] : memref<3x3x128x128xbf16, #tpu.memory_space<vmem>>, vector<1x1x128x128xbf16>
    %6 = vector.shape_cast %5 : vector<1x1x128x128xbf16> to vector<128x128xbf16>
    %cst_8 = arith.constant dense<0.000000e+00> : vector<162x128xf32>
    %7 = tpu.matmul %4, %6, %cst_8 {dimension_numbers = #tpu.dot_dimension_numbers<[1], [0], [0], [1], [0, 0, 1, 1], [], []>} : vector<162x128xbf16>, vector<128x128xbf16>, vector<162x128xf32> -> vector<162x128xf32>
    %8 = arith.addf %2, %7 : vector<162x128xf32>
    %9 = vector.extract_strided_slice %1 {offsets = [0, 1, 0], sizes = [9, 18, 128], strides = [1, 1, 1]} : vector<11x24x128xbf16> to vector<9x18x128xbf16>
    %10 = vector.shape_cast %9 : vector<9x18x128xbf16> to vector<162x128xbf16>
    %c0_9 = arith.constant 0 : index
    %c1 = arith.constant 1 : index
    %c0_10 = arith.constant 0 : index
    %c0_11 = arith.constant 0 : index
    %11 = vector.load %arg3[%c0_9, %c1, %c0_10, %c0_11] : memref<3x3x128x128xbf16, #tpu.memory_space<vmem>>, vector<1x1x128x128xbf16>
    %12 = vector.shape_cast %11 : vector<1x1x128x128xbf16> to vector<128x128xbf16>
    %cst_12 = arith.constant dense<0.000000e+00> : vector<162x128xf32>
    %13 = tpu.matmul %10, %12, %cst_12 {dimension_numbers = #tpu.dot_dimension_numbers<[1], [0], [0], [1], [0, 0, 1, 1], [], []>} : vector<162x128xbf16>, vector<128x128xbf16>, vector<162x128xf32> -> vector<162x128xf32>
    %14 = arith.addf %8, %13 : vector<162x128xf32>
    %15 = vector.extract_strided_slice %1 {offsets = [0, 2, 0], sizes = [9, 18, 128], strides = [1, 1, 1]} : vector<11x24x128xbf16> to vector<9x18x128xbf16>
    %16 = vector.shape_cast %15 : vector<9x18x128xbf16> to vector<162x128xbf16>
    %c0_13 = arith.constant 0 : index
    %c2 = arith.constant 2 : index
    %c0_14 = arith.constant 0 : index
    %c0_15 = arith.constant 0 : index
    %17 = vector.load %arg3[%c0_13, %c2, %c0_14, %c0_15] : memref<3x3x128x128xbf16, #tpu.memory_space<vmem>>, vector<1x1x128x128xbf16>
    %18 = vector.shape_cast %17 : vector<1x1x128x128xbf16> to vector<128x128xbf16>
    %cst_16 = arith.constant dense<0.000000e+00> : vector<162x128xf32>
    %19 = tpu.matmul %16, %18, %cst_16 {dimension_numbers = #tpu.dot_dimension_numbers<[1], [0], [0], [1], [0, 0, 1, 1], [], []>} : vector<162x128xbf16>, vector<128x128xbf16>, vector<162x128xf32> -> vector<162x128xf32>
    %20 = arith.addf %14, %19 : vector<162x128xf32>
    %21 = vector.extract_strided_slice %1 {offsets = [1, 0, 0], sizes = [9, 18, 128], strides = [1, 1, 1]} : vector<11x24x128xbf16> to vector<9x18x128xbf16>
    %22 = vector.shape_cast %21 : vector<9x18x128xbf16> to vector<162x128xbf16>
    %c1_17 = arith.constant 1 : index
    %c0_18 = arith.constant 0 : index
    %c0_19 = arith.constant 0 : index
    %c0_20 = arith.constant 0 : index
    %23 = vector.load %arg3[%c1_17, %c0_18, %c0_19, %c0_20] : memref<3x3x128x128xbf16, #tpu.memory_space<vmem>>, vector<1x1x128x128xbf16>
    %24 = vector.shape_cast %23 : vector<1x1x128x128xbf16> to vector<128x128xbf16>
    %cst_21 = arith.constant dense<0.000000e+00> : vector<162x128xf32>
    %25 = tpu.matmul %22, %24, %cst_21 {dimension_numbers = #tpu.dot_dimension_numbers<[1], [0], [0], [1], [0, 0, 1, 1], [], []>} : vector<162x128xbf16>, vector<128x128xbf16>, vector<162x128xf32> -> vector<162x128xf32>
    %26 = arith.addf %20, %25 : vector<162x128xf32>
    %27 = vector.extract_strided_slice %1 {offsets = [1, 1, 0], sizes = [9, 18, 128], strides = [1, 1, 1]} : vector<11x24x128xbf16> to vector<9x18x128xbf16>
    %28 = vector.shape_cast %27 : vector<9x18x128xbf16> to vector<162x128xbf16>
    %c1_22 = arith.constant 1 : index
    %c1_23 = arith.constant 1 : index
    %c0_24 = arith.constant 0 : index
    %c0_25 = arith.constant 0 : index
    %29 = vector.load %arg3[%c1_22, %c1_23, %c0_24, %c0_25] : memref<3x3x128x128xbf16, #tpu.memory_space<vmem>>, vector<1x1x128x128xbf16>
    %30 = vector.shape_cast %29 : vector<1x1x128x128xbf16> to vector<128x128xbf16>
    %cst_26 = arith.constant dense<0.000000e+00> : vector<162x128xf32>
    %31 = tpu.matmul %28, %30, %cst_26 {dimension_numbers = #tpu.dot_dimension_numbers<[1], [0], [0], [1], [0, 0, 1, 1], [], []>} : vector<162x128xbf16>, vector<128x128xbf16>, vector<162x128xf32> -> vector<162x128xf32>
    %32 = arith.addf %26, %31 : vector<162x128xf32>
    %33 = vector.extract_strided_slice %1 {offsets = [1, 2, 0], sizes = [9, 18, 128], strides = [1, 1, 1]} : vector<11x24x128xbf16> to vector<9x18x128xbf16>
    %34 = vector.shape_cast %33 : vector<9x18x128xbf16> to vector<162x128xbf16>
    %c1_27 = arith.constant 1 : index
    %c2_28 = arith.constant 2 : index
    %c0_29 = arith.constant 0 : index
    %c0_30 = arith.constant 0 : index
    %35 = vector.load %arg3[%c1_27, %c2_28, %c0_29, %c0_30] : memref<3x3x128x128xbf16, #tpu.memory_space<vmem>>, vector<1x1x128x128xbf16>
    %36 = vector.shape_cast %35 : vector<1x1x128x128xbf16> to vector<128x128xbf16>
    %cst_31 = arith.constant dense<0.000000e+00> : vector<162x128xf32>
    %37 = tpu.matmul %34, %36, %cst_31 {dimension_numbers = #tpu.dot_dimension_numbers<[1], [0], [0], [1], [0, 0, 1, 1], [], []>} : vector<162x128xbf16>, vector<128x128xbf16>, vector<162x128xf32> -> vector<162x128xf32>
    %38 = arith.addf %32, %37 : vector<162x128xf32>
    %39 = vector.extract_strided_slice %1 {offsets = [2, 0, 0], sizes = [9, 18, 128], strides = [1, 1, 1]} : vector<11x24x128xbf16> to vector<9x18x128xbf16>
    %40 = vector.shape_cast %39 : vector<9x18x128xbf16> to vector<162x128xbf16>
    %c2_32 = arith.constant 2 : index
    %c0_33 = arith.constant 0 : index
    %c0_34 = arith.constant 0 : index
    %c0_35 = arith.constant 0 : index
    %41 = vector.load %arg3[%c2_32, %c0_33, %c0_34, %c0_35] : memref<3x3x128x128xbf16, #tpu.memory_space<vmem>>, vector<1x1x128x128xbf16>
    %42 = vector.shape_cast %41 : vector<1x1x128x128xbf16> to vector<128x128xbf16>
    %cst_36 = arith.constant dense<0.000000e+00> : vector<162x128xf32>
    %43 = tpu.matmul %40, %42, %cst_36 {dimension_numbers = #tpu.dot_dimension_numbers<[1], [0], [0], [1], [0, 0, 1, 1], [], []>} : vector<162x128xbf16>, vector<128x128xbf16>, vector<162x128xf32> -> vector<162x128xf32>
    %44 = arith.addf %38, %43 : vector<162x128xf32>
    %45 = vector.extract_strided_slice %1 {offsets = [2, 1, 0], sizes = [9, 18, 128], strides = [1, 1, 1]} : vector<11x24x128xbf16> to vector<9x18x128xbf16>
    %46 = vector.shape_cast %45 : vector<9x18x128xbf16> to vector<162x128xbf16>
    %c2_37 = arith.constant 2 : index
    %c1_38 = arith.constant 1 : index
    %c0_39 = arith.constant 0 : index
    %c0_40 = arith.constant 0 : index
    %47 = vector.load %arg3[%c2_37, %c1_38, %c0_39, %c0_40] : memref<3x3x128x128xbf16, #tpu.memory_space<vmem>>, vector<1x1x128x128xbf16>
    %48 = vector.shape_cast %47 : vector<1x1x128x128xbf16> to vector<128x128xbf16>
    %cst_41 = arith.constant dense<0.000000e+00> : vector<162x128xf32>
    %49 = tpu.matmul %46, %48, %cst_41 {dimension_numbers = #tpu.dot_dimension_numbers<[1], [0], [0], [1], [0, 0, 1, 1], [], []>} : vector<162x128xbf16>, vector<128x128xbf16>, vector<162x128xf32> -> vector<162x128xf32>
    %50 = arith.addf %44, %49 : vector<162x128xf32>
    %51 = vector.extract_strided_slice %1 {offsets = [2, 2, 0], sizes = [9, 18, 128], strides = [1, 1, 1]} : vector<11x24x128xbf16> to vector<9x18x128xbf16>
    %52 = vector.shape_cast %51 : vector<9x18x128xbf16> to vector<162x128xbf16>
    %c2_42 = arith.constant 2 : index
    %c2_43 = arith.constant 2 : index
    %c0_44 = arith.constant 0 : index
    %c0_45 = arith.constant 0 : index
    %53 = vector.load %arg3[%c2_42, %c2_43, %c0_44, %c0_45] : memref<3x3x128x128xbf16, #tpu.memory_space<vmem>>, vector<1x1x128x128xbf16>
    %54 = vector.shape_cast %53 : vector<1x1x128x128xbf16> to vector<128x128xbf16>
    %cst_46 = arith.constant dense<0.000000e+00> : vector<162x128xf32>
    %55 = tpu.matmul %52, %54, %cst_46 {dimension_numbers = #tpu.dot_dimension_numbers<[1], [0], [0], [1], [0, 0, 1, 1], [], []>} : vector<162x128xbf16>, vector<128x128xbf16>, vector<162x128xf32> -> vector<162x128xf32>
    %56 = arith.addf %50, %55 : vector<162x128xf32>
    %c0_47 = arith.constant 0 : index
    %c0_48 = arith.constant 0 : index
    %57 = vector.load %arg6[%c0_47, %c0_48] : memref<8x128xf32, #tpu.memory_space<vmem>>, vector<1x128xf32>
    %58 = vector.broadcast %57 : vector<1x128xf32> to vector<162x128xf32>
    %59 = arith.mulf %56, %58 : vector<162x128xf32>
    %c1_49 = arith.constant 1 : index
    %c0_50 = arith.constant 0 : index
    %60 = vector.load %arg6[%c1_49, %c0_50] : memref<8x128xf32, #tpu.memory_space<vmem>>, vector<1x128xf32>
    %61 = vector.broadcast %60 : vector<1x128xf32> to vector<162x128xf32>
    %62 = arith.addf %59, %61 : vector<162x128xf32>
    %cst_51 = arith.constant 0.00999999977 : f32
    %63 = vector.broadcast %cst_51 : f32 to vector<162x128xf32>
    %64 = arith.mulf %63, %62 : vector<162x128xf32>
    %65 = arith.maximumf %62, %64 : vector<162x128xf32>
    %66 = vector.shape_cast %65 : vector<162x128xf32> to vector<9x18x128xf32>
    %c3_i32 = arith.constant 3 : i32
    %67 = arith.muli %arg1, %c3_i32 : i32
    %c3_i32_52 = arith.constant 3 : i32
    %68 = arith.muli %c3_i32_52, %67 : i32
    %c1_i32 = arith.constant 1 : i32
    %69 = arith.subi %68, %c1_i32 : i32
    %70 = tpu.iota {dimensions = array<i32: 0>} : vector<9x18x128xi32>
    %71 = vector.broadcast %69 : i32 to vector<9x18x128xi32>
    %72 = arith.addi %71, %70 : vector<9x18x128xi32>
    %73 = tpu.iota {dimensions = array<i32: 1>} : vector<9x18x128xi32>
    %c1_i32_53 = arith.constant 1 : i32
    %74 = vector.broadcast %c1_i32_53 : i32 to vector<9x18x128xi32>
    %75 = arith.subi %73, %74 : vector<9x18x128xi32>
    %c0_i32 = arith.constant 0 : i32
    %76 = vector.broadcast %c0_i32 : i32 to vector<9x18x128xi32>
    %77 = arith.cmpi sge, %72, %76 : vector<9x18x128xi32>
    %c16_i32 = arith.constant 16 : i32
    %78 = vector.broadcast %c16_i32 : i32 to vector<9x18x128xi32>
    %79 = arith.cmpi slt, %72, %78 : vector<9x18x128xi32>
    %80 = arith.andi %77, %79 : vector<9x18x128xi1>
    %c0_i32_54 = arith.constant 0 : i32
    %81 = vector.broadcast %c0_i32_54 : i32 to vector<9x18x128xi32>
    %82 = arith.cmpi sge, %75, %81 : vector<9x18x128xi32>
    %83 = arith.andi %80, %82 : vector<9x18x128xi1>
    %c16_i32_55 = arith.constant 16 : i32
    %84 = vector.broadcast %c16_i32_55 : i32 to vector<9x18x128xi32>
    %85 = arith.cmpi slt, %75, %84 : vector<9x18x128xi32>
    %86 = arith.andi %83, %85 : vector<9x18x128xi1>
    %cst_56 = arith.constant 0.000000e+00 : f32
    %87 = vector.broadcast %cst_56 : f32 to vector<9x18x128xf32>
    %88 = arith.select %86, %66, %87 : vector<9x18x128xi1>, vector<9x18x128xf32>
    %89 = arith.truncf %88 : vector<9x18x128xf32> to vector<9x18x128xbf16>
    %90 = vector.extract_strided_slice %1 {offsets = [1, 1, 0], sizes = [9, 18, 128], strides = [1, 1, 1]} : vector<11x24x128xbf16> to vector<9x18x128xbf16>
    %91 = vector.shape_cast %89 : vector<9x18x128xbf16> to vector<3x3x18x128xbf16>
    %92 = vector.shape_cast %90 : vector<9x18x128xbf16> to vector<3x3x18x128xbf16>
    %cst_57 = arith.constant 0.000000e+00 : f32
    %93 = vector.broadcast %cst_57 : f32 to vector<18x128xf32>
    %94 = vector.extract_strided_slice %91 {offsets = [0, 0, 0, 0], sizes = [3, 1, 18, 128], strides = [1, 1, 1, 1]} : vector<3x3x18x128xbf16> to vector<3x1x18x128xbf16>
    %95 = vector.shape_cast %94 : vector<3x1x18x128xbf16> to vector<3x18x128xbf16>
    %96 = vector.shape_cast %95 : vector<3x18x128xbf16> to vector<18x384xbf16>
    %c0_58 = arith.constant 0 : index
    %c0_59 = arith.constant 0 : index
    %c0_60 = arith.constant 0 : index
    %97 = vector.load %arg4[%c0_58, %c0_59, %c0_60] : memref<3x384x128xbf16, #tpu.memory_space<vmem>>, vector<1x384x128xbf16>
    %98 = vector.shape_cast %97 : vector<1x384x128xbf16> to vector<384x128xbf16>
    %cst_61 = arith.constant dense<0.000000e+00> : vector<18x128xf32>
    %99 = tpu.matmul %96, %98, %cst_61 {dimension_numbers = #tpu.dot_dimension_numbers<[1], [0], [0], [1], [0, 0, 1, 1], [], []>} : vector<18x384xbf16>, vector<384x128xbf16>, vector<18x128xf32> -> vector<18x128xf32>
    %100 = arith.addf %93, %99 : vector<18x128xf32>
    %101 = vector.extract_strided_slice %92 {offsets = [0, 0, 0, 0], sizes = [3, 1, 18, 128], strides = [1, 1, 1, 1]} : vector<3x3x18x128xbf16> to vector<3x1x18x128xbf16>
    %102 = vector.shape_cast %101 : vector<3x1x18x128xbf16> to vector<3x18x128xbf16>
    %103 = vector.shape_cast %102 : vector<3x18x128xbf16> to vector<18x384xbf16>
    %c0_62 = arith.constant 0 : index
    %c0_63 = arith.constant 0 : index
    %c0_64 = arith.constant 0 : index
    %104 = vector.load %arg5[%c0_62, %c0_63, %c0_64] : memref<3x384x128xbf16, #tpu.memory_space<vmem>>, vector<1x384x128xbf16>
    %105 = vector.shape_cast %104 : vector<1x384x128xbf16> to vector<384x128xbf16>
    %cst_65 = arith.constant dense<0.000000e+00> : vector<18x128xf32>
    %106 = tpu.matmul %103, %105, %cst_65 {dimension_numbers = #tpu.dot_dimension_numbers<[1], [0], [0], [1], [0, 0, 1, 1], [], []>} : vector<18x384xbf16>, vector<384x128xbf16>, vector<18x128xf32> -> vector<18x128xf32>
    %107 = arith.addf %100, %106 : vector<18x128xf32>
    %108 = vector.extract_strided_slice %91 {offsets = [0, 1, 0, 0], sizes = [3, 1, 18, 128], strides = [1, 1, 1, 1]} : vector<3x3x18x128xbf16> to vector<3x1x18x128xbf16>
    %109 = vector.shape_cast %108 : vector<3x1x18x128xbf16> to vector<3x18x128xbf16>
    %110 = vector.shape_cast %109 : vector<3x18x128xbf16> to vector<18x384xbf16>
    %c1_66 = arith.constant 1 : index
    %c0_67 = arith.constant 0 : index
    %c0_68 = arith.constant 0 : index
    %111 = vector.load %arg4[%c1_66, %c0_67, %c0_68] : memref<3x384x128xbf16, #tpu.memory_space<vmem>>, vector<1x384x128xbf16>
    %112 = vector.shape_cast %111 : vector<1x384x128xbf16> to vector<384x128xbf16>
    %cst_69 = arith.constant dense<0.000000e+00> : vector<18x128xf32>
    %113 = tpu.matmul %110, %112, %cst_69 {dimension_numbers = #tpu.dot_dimension_numbers<[1], [0], [0], [1], [0, 0, 1, 1], [], []>} : vector<18x384xbf16>, vector<384x128xbf16>, vector<18x128xf32> -> vector<18x128xf32>
    %114 = arith.addf %107, %113 : vector<18x128xf32>
    %115 = vector.extract_strided_slice %92 {offsets = [0, 1, 0, 0], sizes = [3, 1, 18, 128], strides = [1, 1, 1, 1]} : vector<3x3x18x128xbf16> to vector<3x1x18x128xbf16>
    %116 = vector.shape_cast %115 : vector<3x1x18x128xbf16> to vector<3x18x128xbf16>
    %117 = vector.shape_cast %116 : vector<3x18x128xbf16> to vector<18x384xbf16>
    %c1_70 = arith.constant 1 : index
    %c0_71 = arith.constant 0 : index
    %c0_72 = arith.constant 0 : index
    %118 = vector.load %arg5[%c1_70, %c0_71, %c0_72] : memref<3x384x128xbf16, #tpu.memory_space<vmem>>, vector<1x384x128xbf16>
    %119 = vector.shape_cast %118 : vector<1x384x128xbf16> to vector<384x128xbf16>
    %cst_73 = arith.constant dense<0.000000e+00> : vector<18x128xf32>
    %120 = tpu.matmul %117, %119, %cst_73 {dimension_numbers = #tpu.dot_dimension_numbers<[1], [0], [0], [1], [0, 0, 1, 1], [], []>} : vector<18x384xbf16>, vector<384x128xbf16>, vector<18x128xf32> -> vector<18x128xf32>
    %121 = arith.addf %114, %120 : vector<18x128xf32>
    %122 = vector.extract_strided_slice %91 {offsets = [0, 2, 0, 0], sizes = [3, 1, 18, 128], strides = [1, 1, 1, 1]} : vector<3x3x18x128xbf16> to vector<3x1x18x128xbf16>
    %123 = vector.shape_cast %122 : vector<3x1x18x128xbf16> to vector<3x18x128xbf16>
    %124 = vector.shape_cast %123 : vector<3x18x128xbf16> to vector<18x384xbf16>
    %c2_74 = arith.constant 2 : index
    %c0_75 = arith.constant 0 : index
    %c0_76 = arith.constant 0 : index
    %125 = vector.load %arg4[%c2_74, %c0_75, %c0_76] : memref<3x384x128xbf16, #tpu.memory_space<vmem>>, vector<1x384x128xbf16>
    %126 = vector.shape_cast %125 : vector<1x384x128xbf16> to vector<384x128xbf16>
    %cst_77 = arith.constant dense<0.000000e+00> : vector<18x128xf32>
    %127 = tpu.matmul %124, %126, %cst_77 {dimension_numbers = #tpu.dot_dimension_numbers<[1], [0], [0], [1], [0, 0, 1, 1], [], []>} : vector<18x384xbf16>, vector<384x128xbf16>, vector<18x128xf32> -> vector<18x128xf32>
    %128 = arith.addf %121, %127 : vector<18x128xf32>
    %129 = vector.extract_strided_slice %92 {offsets = [0, 2, 0, 0], sizes = [3, 1, 18, 128], strides = [1, 1, 1, 1]} : vector<3x3x18x128xbf16> to vector<3x1x18x128xbf16>
    %130 = vector.shape_cast %129 : vector<3x1x18x128xbf16> to vector<3x18x128xbf16>
    %131 = vector.shape_cast %130 : vector<3x18x128xbf16> to vector<18x384xbf16>
    %c2_78 = arith.constant 2 : index
    %c0_79 = arith.constant 0 : index
    %c0_80 = arith.constant 0 : index
    %132 = vector.load %arg5[%c2_78, %c0_79, %c0_80] : memref<3x384x128xbf16, #tpu.memory_space<vmem>>, vector<1x384x128xbf16>
    %133 = vector.shape_cast %132 : vector<1x384x128xbf16> to vector<384x128xbf16>
    %cst_81 = arith.constant dense<0.000000e+00> : vector<18x128xf32>
    %134 = tpu.matmul %131, %133, %cst_81 {dimension_numbers = #tpu.dot_dimension_numbers<[1], [0], [0], [1], [0, 0, 1, 1], [], []>} : vector<18x384xbf16>, vector<384x128xbf16>, vector<18x128xf32> -> vector<18x128xf32>
    %135 = arith.addf %128, %134 : vector<18x128xf32>
    %c2_82 = arith.constant 2 : index
    %c0_83 = arith.constant 0 : index
    %136 = vector.load %arg6[%c2_82, %c0_83] : memref<8x128xf32, #tpu.memory_space<vmem>>, vector<1x128xf32>
    %137 = vector.broadcast %136 : vector<1x128xf32> to vector<18x128xf32>
    %138 = arith.addf %135, %137 : vector<18x128xf32>
    %139 = vector.shape_cast %138 : vector<18x128xf32> to vector<3x6x128xf32>
    %140 = arith.truncf %139 : vector<3x6x128xf32> to vector<3x6x128xbf16>
    %c0_84 = arith.constant 0 : index
    %c0_85 = arith.constant 0 : index
    %c0_86 = arith.constant 0 : index
    %c0_87 = arith.constant 0 : index
    %c0_88 = arith.constant 0 : index
    %141 = vector.load %arg7[%c0_84, %c0_85, %c0_86, %c0_87, %c0_88] : memref<1x1x3x6x128xbf16, #tpu.memory_space<vmem>>, vector<1x1x3x6x128xbf16>
    %142 = vector.shape_cast %141 : vector<1x1x3x6x128xbf16> to vector<3x6x128xbf16>
    %143 = vector.shape_cast %140 : vector<3x6x128xbf16> to vector<1x1x3x6x128xbf16>
    tpu.vector_store %arg7[%c0_84, %c0_85, %c0_86, %c0_87, %c0_88], %143 {strides = array<i32>} : memref<1x1x3x6x128xbf16, #tpu.memory_space<vmem>>, vector<1x1x3x6x128xbf16>,
    return
  }
  func.func @transform_0(%arg0: i32, %arg1: i32) -> (i32, i32, i32, i32, i32) {
    %c0_i32 = arith.constant 0 : i32
    %c0_i32_0 = arith.constant 0 : i32
    %c0_i32_1 = arith.constant 0 : i32
    %c0_i32_2 = arith.constant 0 : i32
    return %arg0, %arg1, %c0_i32, %c0_i32_0, %c0_i32_1 : i32, i32, i32, i32, i32
  }
  func.func @transform_1(%arg0: i32, %arg1: i32) -> (i32, i32, i32, i32) {
    %c0_i32 = arith.constant 0 : i32
    %c0_i32_0 = arith.constant 0 : i32
    %c0_i32_1 = arith.constant 0 : i32
    %c0_i32_2 = arith.constant 0 : i32
    %c0_i32_3 = arith.constant 0 : i32
    return %c0_i32, %c0_i32_0, %c0_i32_1, %c0_i32_2 : i32, i32, i32, i32
  }
  func.func @transform_2(%arg0: i32, %arg1: i32) -> (i32, i32, i32) {
    %c0_i32 = arith.constant 0 : i32
    %c0_i32_0 = arith.constant 0 : i32
    %c0_i32_1 = arith.constant 0 : i32
    %c0_i32_2 = arith.constant 0 : i32
    return %c0_i32, %c0_i32_0, %c0_i32_1 : i32, i32, i32
  }
  func.func @transform_3(%arg0: i32, %arg1: i32) -> (i32, i32, i32) {
    %c0_i32 = arith.constant 0 : i32
    %c0_i32_0 = arith.constant 0 : i32
    %c0_i32_1 = arith.constant 0 : i32
    %c0_i32_2 = arith.constant 0 : i32
    return %c0_i32, %c0_i32_0, %c0_i32_1 : i32, i32, i32
  }
  func.func @transform_4(%arg0: i32, %arg1: i32) -> (i32, i32) {
    %c0_i32 = arith.constant 0 : i32
    %c0_i32_0 = arith.constant 0 : i32
    %c0_i32_1 = arith.constant 0 : i32
    return %c0_i32, %c0_i32_0 : i32, i32
  }
  func.func @transform_5(%arg0: i32, %arg1: i32) -> (i32, i32, i32, i32, i32) {
    %c0_i32 = arith.constant 0 : i32
    %c0_i32_0 = arith.constant 0 : i32
    %c0_i32_1 = arith.constant 0 : i32
    %c0_i32_2 = arith.constant 0 : i32
    return %arg0, %arg1, %c0_i32, %c0_i32_0, %c0_i32_1 : i32, i32, i32, i32, i32
  }
}

</mosaic_0001>

<bundles_post_ra>
// kernel: tpu_custom_call.1
= control target key start
LH: loop header
LB: loop body
LE: loop exit
PB: predicated region body
PF: predicated region fallthrough
CT: control target
= control target key end

     0   :  { %s18176_s0 = inlined_call_operand.hbm [shape: bf16[2,2,11,24,128], index: 0, kind: input, shape index: {}]   ;;  %s18177_s1 = inlined_call_operand.hbm [shape: bf16[3,3,128,128], index: 1, kind: input, shape index: {}]   ;;  %s18178_s2 = inlined_call_operand.hbm [shape: bf16[3,384,128], index: 2, kind: input, shape index: {}]   ;;  %s18179_s3 = inlined_call_operand.hbm [shape: bf16[3,384,128], index: 3, kind: input, shape index: {}]   ;;  %s18180_s4 = inlined_call_operand.vmem [shape: f32[8,128], index: 4, kind: input, shape index: {}]   ;;  %s18181_s5 = inlined_call_operand.vmem [shape: bf16[2,2,3,6,128], index: 5, kind: output, shape index: {}]  }
   0x1   :  { %18555 = sst [smem:[#allocation193_spill]] %s18177_s1 }
   0x2   :  { %18556 = sst [smem:[#allocation194_spill]] %s18178_s2 }
   0x3   :  { %18557 = sst [smem:[#allocation195_spill]] %s18181_s5 }
   0x4   :  { %10 = vsyncpa [#allocation3], 0 }
   0x5   :  { %12 = vsyncpa [#allocation3 + $0x1], 0 }
   0x6   :  { %13 = vsyncpa [#allocation5], 0 }
   0x7   :  { %14 = vsyncpa [#allocation8], 0  ;;  %s13316_s18 = smov 0   ;;  %s13318_s19 = smov 0  }
   0x8   :  { %s13320_s20 = smov 0   ;;  %s13322_s21 = smov 0  }
   0x9   :  { %s13324_s22 = smov 0   ;;  %s13326_s23 = smov 0  }
   0xa   :  { %s13328_s24 = smov 0   ;;  %s13330_s25 = smov 0  }
   0xb LB: > { %s10922_s26 = sadd.s32 4294967295, %s13274_s25   ;;  %p54_p0 = scmp.ne.s32.totalorder %s13250_s19, %s13246_s18  ;;  %s13274_s25 = sphi %s13330_s25, %s20_s25   ;;  %s13270_s24 = sphi %s13328_s24, %s19371_s24   ;;  %s13266_s23 = sphi %s13326_s23, %s19370_s23   ;;  %s13262_s22 = sphi %s13324_s22, %s19369_s22   ;;  %s13258_s21 = sphi %s13322_s21, %s19368_s21   ;;  %s13254_s20 = sphi %s13320_s20, %s19367_s20   ;;  %s13250_s19 = sphi %s13318_s19, %s19366_s19   ;;  %s13246_s18 = sphi %s13316_s18, %s19365_s18  }
   0xc   : > { %p13356_p1 = scmp.eq.s32.totalorder %s10922_s26, 0  ;;  %p10924_p2 = scmp.ge.s32.totalorder %s13274_s25, 1 }
   0xd   : > { %p177_p3 = scmp.lt.s32.totalorder %s13274_s25, 5  ;;  %s13276_s30 = smov [#allocation4]  }
   0xe   : > { %s18558_s27 = scalar_select %p13356_p1, 1, 0 }
   0xf   : > { %p13364_p4 = por %p13356_p1, %p54_p0  ;;  %p13368_p5 = pnand %p10924_p2, %p177_p3 }
  0x10   : > { %s189_s6 = sshll.u32 %s13276_s30, 4  ;;  %s13277_s8 = smov [#allocation6]   ;;  %s13372_s6 = int_to_ptr.vmem [resolvable:$true] %s189_s6 }
  0x11   : > { %s18559_s28 = scalar_select %p13364_p4, 1, 0 }
  0x12   : > { %s18560_s29 = scalar_select %p13368_p5, 1, 0 }
  0x13   : > { %p12729_p6 = pneg %p13368_p5  ;;  %s202_s9 = sshll.u32 %s13277_s8, 4  ;;  %s13382_s9 = int_to_ptr.vmem [resolvable:$true] %s202_s9 }
  0x14   : > { %s13278_s10 = smov [#allocation7]   ;;  %s18562_s1 = sld [smem:[#allocation193_spill]] }
  0x15   : > { %p13378_p7 = pnand %p12729_p6, %p13356_p1  ;;  %s13384_s11 = sshll.u32 %s13278_s10, 4  ;;  %s216_s11 = int_to_ptr.vmem [resolvable:$true] %s13384_s11 }
  0x17   : > { %p13394_p9 = pneg %p13378_p7 }
  0x1a   : > { %s13086_s14 = scalar_lea.hbm %s18562_s1, 9216 }
  0x1b   : > { %p13087_p8 = scmp.ne.s32.totalorder %s18562_s1, %s13086_s14  ;;  %p13093_p12 = scmp.lt.u32.totalorder %s13086_s14, %s18562_s1 }
  0x1d   : > { %p13089_p10 = pnand %p13394_p9, %p13087_p8 }
  0x1f   : > { %p13090_p11 = pneg %p13089_p10 }
  0x21   : > { %p13095_p13 = pnand %p13093_p12, %p13090_p11 }
  0x23   : > { %13098 = shalt.err (!%p13095_p13)
}
  0x24   : > { %s13099_s30 = scalar_lea.vmem %s13372_s6, 9216  ;;  %p13107_p6 = scmp.lt.s32.totalorder %s13372_s6, %s13372_s6 }
  0x25   : > { %p13100_p0 = scmp.ne.s32.totalorder %s13372_s6, %s13099_s30  ;;  %p13108_p1 = scmp.lt.s32.totalorder %s13099_s30, %s13099_s30 }
  0x27   : > { %p13102_p2 = pnand %p13100_p0, %p13394_p9  ;;  %p13109_p8 = por %p13108_p1, %p13107_p6 }
  0x29   : > { %p13103_p3 = pneg %p13102_p2 }
  0x2b   : > { %p13110_p10 = pnand %p13109_p8, %p13103_p3 }
  0x2d   : > { %13113 = shalt.err (!%p13110_p10)
}
  0x2e   : > { %s18186_s8 = smov 64   ;;  %s18187_s10 = smov 4  }
  0x2f   : > { %12732 = dma.hbm_to_vmem [thread:$0]  (!%p13378_p7), %s18562_s1, 9216, %s13372_s6, [#allocation5], %s18186_s8, %s18186_s8, %s18187_s10  }
  0x30   : > { %s18564_s2 = sld [smem:[#allocation194_spill]] }
  0x36   : > { %s13114_s16 = scalar_lea.hbm %s18564_s2, 9216 }
  0x37   : > { %p13115_p1 = scmp.ne.s32.totalorder %s18564_s2, %s13114_s16  ;;  %p13121_p13 = scmp.lt.u32.totalorder %s13114_s16, %s18564_s2 }
  0x39   : > { %p13117_p11 = pnand %p13115_p1, %p13394_p9 }
  0x3b   : > { %p13118_p12 = pneg %p13117_p11 }
  0x3d   : > { %p13123_p0 = pnand %p13121_p13, %p13118_p12 }
  0x3f   : > { %13126 = shalt.err (!%p13123_p0)
}
  0x40   : > { %s13127_s6 = scalar_lea.vmem %s13382_s9, 9216  ;;  %p13135_p8 = scmp.lt.s32.totalorder %s13382_s9, %s13382_s9 }
  0x41   : > { %p13128_p2 = scmp.ne.s32.totalorder %s13382_s9, %s13127_s6  ;;  %p13136_p10 = scmp.lt.s32.totalorder %s13127_s6, %s13127_s6 }
  0x43   : > { %p13130_p3 = pnand %p13128_p2, %p13394_p9  ;;  %p13137_p1 = por %p13136_p10, %p13135_p8 }
  0x45   : > { %p13131_p6 = pneg %p13130_p3 }
  0x47   : > { %p13138_p11 = pnand %p13137_p1, %p13131_p6 }
  0x49   : > { %13141 = shalt.err (!%p13138_p11)
}
  0x4a   : > { %12735 = dma.hbm_to_vmem [thread:$0]  (!%p13378_p7), %s18564_s2, 9216, %s13382_s9, [#allocation5], %s18186_s8, %s18186_s8, %s18187_s10  }
  0x4b   : > { %s13142_s15 = scalar_lea.hbm %s18179_s3, 9216 }
  0x4c   : > { %p13143_p12 = scmp.ne.s32.totalorder %s18179_s3, %s13142_s15  ;;  %p13149_p2 = scmp.lt.u32.totalorder %s13142_s15, %s18179_s3 }
  0x4e   : > { %p13145_p13 = pnand %p13143_p12, %p13394_p9 }
  0x50   : > { %p13146_p0 = pneg %p13145_p13 }
  0x52   : > { %p13151_p3 = pnand %p13149_p2, %p13146_p0 }
  0x54   : > { %13154 = shalt.err (!%p13151_p3)
}
  0x55   : > { %s13155_s6 = scalar_lea.vmem %s216_s11, 9216  ;;  %p13163_p1 = scmp.lt.s32.totalorder %s216_s11, %s216_s11 }
  0x56   : > { %p13156_p6 = scmp.ne.s32.totalorder %s216_s11, %s13155_s6  ;;  %p13164_p11 = scmp.lt.s32.totalorder %s13155_s6, %s13155_s6 }
  0x58   : > { %p13158_p8 = pnand %p13156_p6, %p13394_p9  ;;  %p13165_p4 = por %p13164_p11, %p13163_p1 }
  0x5a   : > { %p13159_p10 = pneg %p13158_p8 }
  0x5c   : > { %p13166_p5 = pnand %p13165_p4, %p13159_p10 }
  0x5e   : > { %13169 = shalt.err (!%p13166_p5)
}
  0x5f   : > { %12738 = dma.hbm_to_vmem [thread:$0]  (!%p13378_p7), %s18179_s3, 9216, %s216_s11, [#allocation8], %s18186_s8, %s18186_s8, %s18187_s10  }
  0x60   : > { %s29_s17 = sadd.s32 1, %s13266_s23  ;;  %s32_s7 = sadd.s32 1, %s13270_s24 }
  0x61   : > { %p30_p4 = scmp.ge.s32.totalorder %s29_s17, 2  ;;  %s41_s12 = sadd.s32 1, %s13254_s20 }
  0x62   : > { %p48_p5 = scmp.ne.s32.totalorder %s13254_s20, %s13250_s19  ;;  %p49_p9 = scmp.eq.s32.totalorder %s13274_s25, 0 }
  0x63   : > { %s19373_s17 = smov (%p30_p4, %s29_s17), 0  ;;  %s19375_s7 = smov (!%p30_p4, %s32_s7), %s13270_s24 }
  0x64   : > { %s37_s13 = ssub.s32 %s13266_s23, %s19373_s17  ;;  %p34_p12 = scmp.ge.s32.totalorder %s19375_s7, 2 }
  0x65   : > { %p12746_p13 = scmp.lt.s32.totalorder %s13274_s25, 4  ;;  %p50_p0 = por %p49_p9, %p48_p5 }
  0x66   : > { %s232_s14 = sand.u32 1, %s13254_s20   ;;  %s19377_s7 = smov (%p34_p12, %s19375_s7), 0 }
  0x67   : > { %s12709_s11 = smul.u32 132, %s232_s14  ;;  %s36_s15 = ssub.s32 %s13270_s24, %s19377_s7 }
  0x68   : > { %s12710_s16 = smul.u32 33, %s13266_s23  ;;  %s38_s18 = sor.u32 %s37_s13, %s36_s15 }
  0x69   : > { %p39_p7 = scmp.eq.s32.totalorder %s38_s18, 0  ;;  %s12711_s26 = smul.u32 66, %s13270_s24 }
  0x6a   : > { %s236_s30 = scalar_lea.vmem [#allocation2], %s12709_s11  ;;  %p13485_p2 = pnand %p12746_p13, %p50_p0 }
  0x6b   : > { %s245_s6 = sshll.u32 %s236_s30, 4  ;;  %s242_s8 = sadd.s32 %s12711_s26, %s12710_s16  ;;  %s13492_s6 = int_to_ptr.vmem [resolvable:$true] %s245_s6 }
  0x6c   : > { %s13490_s5 = scalar_select %p39_p7, %s13254_s20, %s41_s12  }
  0x6d   : > { %s10929_s10 = sshll.u32 %s242_s8, 6  ;;  %s13499_s11 = scalar_lea.sflag [#allocation3], %s232_s14 }
  0x6e   : > { %s13497_s13 = scalar_lea.hbm %s18176_s0, %s10929_s10  ;;  %p13172_p6 = pneg %p13485_p2 }
  0x6f   : > { %s13170_s15 = scalar_lea.hbm %s13497_s13, 2112  ;;  %s13175_s1 = scalar_lea.hbm %s18176_s0, 8448 }
  0x70   : > { %p13171_p3 = scmp.ne.s32.totalorder %s13497_s13, %s13170_s15  ;;  %p13176_p1 = scmp.lt.u32.totalorder %s13497_s13, %s18176_s0 }
  0x71   : > { %p13177_p11 = scmp.lt.u32.totalorder %s13175_s1, %s13170_s15  ;;  %p13179_p5 = scmp.lt.u32.totalorder %s13170_s15, %s13497_s13 }
  0x72   : > { %p13173_p8 = pnand %p13172_p6, %p13171_p3 }
  0x73   : > { %p13178_p4 = por %p13177_p11, %p13176_p1 }
  0x74   : > { %p13174_p10 = pneg %p13173_p8 }
  0x75   : > { %p13180_p9 = por %p13179_p5, %p13178_p4 }
  0x77   : > { %p13181_p12 = pnand %p13180_p9, %p13174_p10 }
  0x79   : > { %13184 = shalt.err (!%p13181_p12)
}
  0x7a   : > { %s13185_s14 = scalar_lea.vmem %s13492_s6, 2112  ;;  %s13281_s16 = smov [#allocation2]  }
  0x7b   : > { %p13186_p13 = scmp.ne.s32.totalorder %s13492_s6, %s13185_s14  ;;  %s13190_s18 = sshll.u32 %s13281_s16, 4  ;;  %s13191_s18 = int_to_ptr.vmem [resolvable:$false] %s13190_s18 }
  0x7c   : > { %s13192_s26 = scalar_lea.vmem %s13191_s18, 4224  ;;  %p13193_p3 = scmp.lt.s32.totalorder %s13492_s6, %s13191_s18 }
  0x7d   : > { %p13188_p0 = pnand %p13186_p13, %p13172_p6  ;;  %p13194_p8 = scmp.lt.s32.totalorder %s13192_s26, %s13185_s14 }
  0x7f   : > { %p13189_p7 = pneg %p13188_p0  ;;  %p13195_p1 = por %p13194_p8, %p13193_p3 }
  0x81   : > { %p13196_p11 = pnand %p13195_p1, %p13189_p7 }
  0x83   : > { %13199 = shalt.err (!%p13196_p11)
}
  0x84   : > { %s18566_s30 = smov 4   ;;  %s18567_s15 = smov 64  }
  0x85   : > { %12742 = dma.hbm_to_vmem [thread:$0]  (!%p13485_p2), %s13497_s13, 2112, %s13492_s6, %s13499_s11, %s18567_s15, %s18567_s15, %s18566_s30  }
  0x86   : > { %p18568_p6 = scmp.ne.s32.totalorder %s18560_s29, 0 }
  0x88   : > { %257 = sbr.rel (%p18568_p6) target bundleno = 1559 (0x617), region = 40 }
  0x8f   : > { %s259_s8 = sand.u32 1, %s13250_s19   ;;  %p18569_p10 = scmp.ne.s32.totalorder %s18559_s28, 0 }
  0x90   : > { %s12712_s12 = smul.u32 132, %s259_s8  ;;  %s260_s1 = scalar_lea.sflag [#allocation3], %s259_s8 }
  0x92   : > { %s13533_s2 = scalar_lea.vmem [#allocation2], %s12712_s12 }
  0x93   : > { %13233 = dma.done.wait (%p18569_p10), %s260_s1, 2112  }
  0x94   : > { %13235 = vsyncadd (%p18569_p10), %s260_s1, 4294965184  ;;  %p18570_p4 = scmp.ne.s32.totalorder %s18558_s27, 0 }
  0x96   : > { %13237 = dma.done.wait (%p18570_p4), [#allocation5], 18432  }
  0x97   : > { %13239 = vsyncadd (%p18570_p4), [#allocation5], 4294948864 }
  0x98   : > { %13241 = dma.done.wait (%p18570_p4), [#allocation8], 9216  }
  0x99   : > { %13243 = vsyncadd (%p18570_p4), [#allocation8], 4294958080  ;;  %v18189_v0 = vmov 0.0   ;;  %vm13283_vm0 = vmmov 0   ;;  %v13284_v1 = vmov 1966171168   ;;  %v387_v3 = vlaneseq }
  0x9a   : > { %11824 = vmatprep.subr.bf16.mxu0 %v18189_v0  ;;  %11840 = vmatprep.mubr.msk.bf16.mxu0 %vm13283_vm0, %v18189_v0  ;;  %v385_v2 = vunpack.c.l.s4 %v13284_v1  ;;  %v12823_v4 = vld [vmem:[#allocation4 + $0x80] sm:$0xff]   ;;  %v12824_v7 = vld [vmem:[#allocation4 + $0x88] sm:$0xff]   ;;  %v12825_v9 = vld [vmem:[#allocation4 + $0x90] sm:$0xff]   ;;  %vm18530_vm1 = vsmask.f32 7424  ;;  %s7466_s9 = smul.u32 9, %s13258_s21 }
  0x9b   : > { %11704 = vmatprep.subr.bf16.mxu1 %v18189_v0  ;;  %11720 = vmatprep.mubr.msk.bf16.mxu1 %vm13283_vm0, %v18189_v0  ;;  %v13553_v6 = vshrl.u32 %v387_v3, 7  ;;  %v10935_v10 = vld.sshfl [vmem:[%s13533_s2] sm:$0x33 pattern:$0x75316420]  ;;  %v12827_v31 = vld [vmem:[#allocation4 + $0xa0] sm:$0xff]  }
  0x9c   : > { %v386_v5 = vunpack.c.0.s8 %v385_v2  ;;  %11825 = vmatpush3.bf16.msra.mxu0 %v12823_v4  ;;  %v10936_v11 = vld.sshfl [vmem:[%s13533_s2 + $0x4] sm:$0x33 pattern:$0x75316420]  ;;  %v383_v12 = vcombine.high %v10935_v10, %v10935_v10  ;;  %v319_v20 = vld [vmem:[%s13533_s2 + $0xc] sm:$0xf] }
  0x9d   : > { %18571 = vst [vmem:[#allocation12_spill] sm:$0xff] %v13553_v6  ;;  %11826 = vmatprep.subr.bf16.mxu0 %v18189_v0  ;;  %v12826_v14 = vld [vmem:[#allocation4 + $0x98] sm:$0xff]   ;;  %v10937_v15 = vld.sshfl [vmem:[%s13533_s2 + $0x8] sm:$0x33 pattern:$0x75316420]  ;;  %v407_v16 = vcombine.high %v10936_v11, %v10936_v11 }
  0x9e   : > { %v13557_v8 = vsub.s32 %v386_v5, %v13553_v6  ;;  %v950_v21 = vcombine.high %v10937_v15, %v10937_v15  ;;  %v320_v25 = vld [vmem:[%s13533_s2 + $0x10] sm:$0xf]  ;;  %v321_v53 = vld [vmem:[%s13533_s2 + $0x14] sm:$0xf]  ;;  %v322_v57 = vld [vmem:[%s13533_s2 + $0x18] sm:$0xf] }
  0x9f   : > { %v11140_v45 = vcombine.low %v319_v20, %v320_v25  ;;  %v12828_v46 = vld [vmem:[#allocation4 + $0xa8] sm:$0xff]   ;;  %v323_v58 = vld [vmem:[%s13533_s2 + $0x1c] sm:$0xf]  ;;  %vm1022_vm2 = vsmask.f32 256  ;;  %s11136_s13 = sadd.s32 4294967295, %s7466_s9 }
  0xa0   : > { %11827 = vmatpush3.bf16.msra.mxu0 %v12824_v7  ;;  %v13563_v13 = vrot.slane %v10935_v10, %v13557_v8  ;;  %v13567_v17 = vrot.slane %v10936_v11, %v13557_v8  ;;  %v13571_v18 = vrot.slane %v383_v12, %v13557_v8  ;;  %v13579_v22 = vrot.slane %v407_v16, %v13557_v8  ;;  %v12829_v59 = vld [vmem:[#allocation4 + $0xb0] sm:$0xff]   ;;  %v13644_v61 = vld.sshfl [vmem:[%s13533_s2 + $0x20] sm:$0x33 pattern:$0x75316420]  ;;  %p306_p2 = scmp.lt.s32.totalorder %s13262_s22, 1 }
  0xa1   : > { %11828 = vmatprep.subr.bf16.mxu0 %v18189_v0  ;;  %v13586_v24 = vrot.slane %v10937_v15, %v13557_v8  ;;  %v444_v26 = vrot.slane %v319_v20, %v13557_v8  ;;  %v468_v29 = vrot.slane %v320_v25, %v13557_v8  ;;  %v13598_v30 = vrot.slane %v950_v21, %v13557_v8  ;;  %v12830_v15 = vld [vmem:[#allocation4 + $0xb8] sm:$0xff]   ;;  %p308_p5 = scmp.lt.s32.totalorder %s13258_s21, 1  ;;  %s19364_s1 = sld [smem:[#allocation195_spill]] }
  0xa2   : > { %18572 = vst [vmem:[#allocation13_spill] sm:$0xff] %v13563_v13  ;;  %18573 = vst [vmem:[#allocation14_spill] sm:$0xff] %v13567_v17  ;;  %v13575_v19 = vcombine.high %v13563_v13, %v13563_v13  ;;  %v13583_v23 = vcombine.high %v13567_v17, %v13567_v17  ;;  %v13592_v27 = vcombine.high %v13571_v18, %v13571_v18  ;;  %v8207_v60 = vshll.u32 %v11140_v45, 16  ;;  %s19379_s22 = smov (!%p306_p2, %s13262_s22), 1 }
  0xa3   : > { %18574 = vst [vmem:[#allocation15_spill] sm:$0xff] %v13571_v18  ;;  %18576 = vst [vmem:[#allocation17_spill] sm:$0xff] %v13579_v22  ;;  %v13602_v32 = vcombine.high %v13579_v22, %v13579_v22  ;;  %v445_v34 = vcombine.high %v444_v26, %v444_v26  ;;  %v13607_v35 = vrot.slane %v444_v26, %v13557_v8  ;;  %vm1023_vm3 = vsmask.f32 1284  ;;  %s19381_s21 = smov (!%p308_p5, %s13258_s21), 1  ;;  %s12714_s30 = smul.u32 6, %s19379_s22 }
  0xa4   : > { %11829 = vmatpush3.bf16.msra.mxu0 %v12825_v9  ;;  %18575 = vst [vmem:[#allocation16_spill] sm:$0xff] %v13575_v19  ;;  %18577 = vst [vmem:[#allocation18_spill] sm:$0xff] %v13583_v23  ;;  %v3094_v28 = vcombine.low %v13571_v18, %v13575_v19  ;;  %v3096_v33 = vcombine.low %v13579_v22, %v13583_v23  ;;  %v3095_v36 = vcombine.low %v13592_v27, %v13567_v17  ;;  %v334_v22 = vld [vmem:[%s13533_s2 + $0x48] sm:$0xf]  ;;  %v335_v17 = vld [vmem:[%s13533_s2 + $0x4c] sm:$0xf] }
  0xa5   : > { %11830 = vmatprep.subr.bf16.mxu0 %v18189_v0  ;;  %18578 = vst [vmem:[#allocation19_spill] sm:$0xff] %v13586_v24  ;;  %18579 = vst [vmem:[#allocation20_spill] sm:$0xff] %v13592_v27  ;;  %v469_v38 = vcombine.high %v468_v29, %v468_v29  ;;  %v13614_v39 = vrot.slane %v468_v29, %v13557_v8  ;;  %v3097_v40 = vcombine.low %v13602_v32, %v13586_v24  ;;  %v13956_v18 = vld.sshfl [vmem:[%s13533_s2 + $0x44] sm:$0x33 pattern:$0x75316420] }
  0xa6   : > { %18580 = vst [vmem:[#allocation21_spill] sm:$0xff] %v13598_v30  ;;  %18581 = vst [vmem:[#allocation22_spill] sm:$0xff] %v13602_v32  ;;  %v3104_v37 = vrot.slane %v3094_v28, %v13557_v8  ;;  %v3118_v41 = vrot.slane %v3096_v33, %v13557_v8  ;;  %v13620_v42 = vrot.slane %v445_v34, %v13557_v8  ;;  %v8205_v9 = vshrl.u32 %v11140_v45, 16  ;;  %v325_v45 = vld [vmem:[%s13533_s2 + $0x24] sm:$0xf]  ;;  %s12713_s15 = smul.u32 3, %s19381_s21 }
  0xa7   : > { %18582 = vst [vmem:[#allocation23_spill] sm:$0xff] %v13607_v35  ;;  %18583 = vst [vmem:[#allocation24_spill] sm:$0xff] %v13614_v39  ;;  %v3111_v43 = vrot.slane %v3095_v36, %v13557_v8  ;;  %v13624_v44 = vrot.slane %v469_v38, %v13557_v8  ;;  %v3125_v47 = vrot.slane %v3097_v40, %v13557_v8  ;;  %v8209_v11 = vrot.slane %v8207_v60, 1  ;;  %v332_v32 = vld [vmem:[%s13533_s2 + $0x40] sm:$0xf] }
  0xa8   : > { %11831 = vmatpush3.bf16.msra.mxu0 %v12826_v14  ;;  %18584 = vst [vmem:[#allocation25_spill] sm:$0xff] %v13620_v42  ;;  %v3143_v48 = vcombine.low %v13598_v30, %v13620_v42  ;;  %v11045_v49 = vcombine.high %v13607_v35, %v13620_v42  ;;  %v492_v1 = vrot.slane %v321_v53, %v13557_v8  ;;  %vm18551_vm4 = vsmask.f32 2312  ;;  %vm14046_vm5 = vmor %vm1022_vm2, %vm1023_vm3  ;;  %s312_s8 = sadd.s32 %s12714_s30, %s12713_s15 }
  0xa9   : > { %11832 = vmatprep.subr.bf16.mxu0 %v18189_v0  ;;  %18585 = vst [vmem:[#allocation26_spill] sm:$0xff] %v13624_v44  ;;  %v3126_v50 = vcombine.low %v3104_v37, %v3111_v43  ;;  %v3145_v51 = vcombine.low %v13614_v39, %v13624_v44  ;;  %v11046_v52 = vcombine.high %v13614_v39, %v13624_v44  ;;  %vm14138_vm6 = vmor %vm14046_vm5, %vm18551_vm4  ;;  %vm1027_vm7 = vsmask.f32 3340  ;;  %s10934_s21 = sshll.u32 %s312_s8, 2 }
  0xaa   : > { %v3127_v54 = vcombine.low %v3118_v41, %v3125_v47  ;;  %v3153_v55 = vrot.slane %v3143_v48, %v13557_v8  ;;  %v13639_v56 = vrot.slane %v11045_v49, %v13557_v8  ;;  %v506_v4 = vrot.slane %v322_v57, %v13557_v8  ;;  %vm14202_vm8 = vmor %vm14138_vm6, %vm1027_vm7 }
  0xab   : > { %v3167_v62 = vrot.slane %v3145_v51, %v13557_v8  ;;  %v3174_v63 = vrot.slane %v11046_v52, %v13557_v8  ;;  %v3134_v2 = vrot.slane %v3126_v50, %v13557_v8  ;;  %v530_v5 = vrot.slane %v323_v58, %v13557_v8  ;;  %v326_v51 = vld [vmem:[%s13533_s2 + $0x28] sm:$0xf] }
  0xac   : > { %11833 = vmatpush3.bf16.msra.mxu0 %v12827_v31  ;;  %v3141_v3 = vrot.slane %v3127_v54, %v13557_v8  ;;  %v3175_v7 = vcombine.low %v3153_v55, %v13639_v56  ;;  %v13656_v10 = vrot.slane %v492_v1, %v13557_v8  ;;  %v507_v12 = vcombine.high %v506_v4, %v506_v4 }
  0xad   : > { %11834 = vmatprep.subr.bf16.mxu0 %v18189_v0  ;;  %v13659_v14 = vrot.slane %v506_v4, %v13557_v8  ;;  %v3176_v16 = vcombine.low %v3167_v62, %v3174_v63  ;;  %v531_v20 = vcombine.high %v530_v5, %v530_v5  ;;  %v13662_v21 = vrot.slane %v530_v5, %v13557_v8 }
  0xae   : > { %18586 = vst [vmem:[#allocation27_spill] sm:$0xff] %v13656_v10  ;;  %v958_v25 = vcombine.high %v492_v1, %v492_v1  ;;  %v3142_v26 = vcombine.low %v3134_v2, %v3141_v3  ;;  %v13666_v28 = vrot.slane %v507_v12, %v13557_v8  ;;  %v13674_v31 = vrot.slane %v13644_v61, %v13557_v8  ;;  %v12832_v2 = vld [vmem:[#allocation4 + $0xc8] sm:$0xff]  }
  0xaf   : > { %18587 = vst [vmem:[#allocation28_spill] sm:$0xff] %v13659_v14  ;;  %18588 = vst [vmem:[#allocation29_spill] sm:$0xff] %v13662_v21  ;;  %v13670_v29 = vcombine.high %v13659_v14, %v13659_v14  ;;  %v13677_v33 = vrot.slane %v531_v20, %v13557_v8  ;;  %v13681_v34 = vcombine.high %v13662_v21, %v13662_v21  ;;  %vm1029_vm9 = vsmask.f32 4368 }
  0xb0   : > { %11835 = vmatpush3.bf16.msra.mxu0 %v12828_v46  ;;  %18589 = vst [vmem:[#allocation30_spill] sm:$0xff] %v13666_v28  ;;  %18590 = vst [vmem:[#allocation31_spill] sm:$0xff] %v13674_v31  ;;  %v13684_v36 = vrot.slane %v958_v25, %v13557_v8  ;;  %v13686_v37 = vcombine.low %v321_v53, %v321_v53  ;;  %v8210_v38 = vor.u32 %v8209_v11, %v8205_v9  ;;  %v12831_v46 = vld [vmem:[#allocation4 + $0xc0] sm:$0xff]   ;;  %v12834_v11 = vld [vmem:[#allocation4 + $0xd0] sm:$0xff]   ;;  %vm18539_vm11 = vsmask.f32 5396 }
  0xb1   : > { %11836 = vmatprep.subr.bf16.mxu0 %v18189_v0  ;;  %18591 = vst [vmem:[#allocation32_spill] sm:$0xff] %v13677_v33  ;;  %v13690_v40 = vcombine.high %v13666_v28, %v13666_v28  ;;  %v3193_v41 = vcombine.low %v13666_v28, %v13670_v29  ;;  %v13694_v43 = vcombine.low %v322_v57, %v323_v58  ;;  %v327_v9 = vld [vmem:[%s13533_s2 + $0x2c] sm:$0xf]  ;;  %vm14234_vm10 = vmor %vm14202_vm8, %vm1029_vm9  ;;  %vm18537_vm13 = vsmask.f32 6424 }
  0xb2   : > { %18592 = vst [vmem:[#allocation33_spill] sm:$0xff] %v13684_v36  ;;  %18593 = vst [vmem:[#allocation34_spill] sm:$0xff] %v13686_v37  ;;  %v13699_v47 = vcombine.high %v13677_v33, %v13677_v33  ;;  %v3192_v48 = vcombine.low %v13656_v10, %v13684_v36  ;;  %v3195_v49 = vcombine.low %v13677_v33, %v13681_v34  ;;  %v8212_v50 = vshll.u32 %v13686_v37, 16 }
  0xb3   : > { %18594 = vst [vmem:[#allocation35_spill] sm:$0xff] %v13694_v43  ;;  %v3183_v52 = vrot.slane %v3175_v7, %v13557_v8  ;;  %v3194_v53 = vcombine.low %v13690_v40, %v13662_v21  ;;  %v13712_v54 = vrot.slane %v3193_v41, %v13557_v8  ;;  %v13715_v55 = vrot.slane %v3176_v16, %v13557_v8  ;;  %v13078_v16 = vld.sshfl [vmem:[%s13533_s2 + $0x30] sm:$0x33 pattern:$0x75316420]  ;;  %vm14272_vm12 = vmor %vm14234_vm10, %vm18539_vm11 }
  0xb4   : > { %11837 = vmatpush3.bf16.msra.mxu0 %v12829_v59  ;;  %v3202_v57 = vrot.slane %v3192_v48, %v13557_v8  ;;  %v3241_v58 = vcombine.low %v13699_v47, %v13674_v31  ;;  %v13720_v59 = vrot.slane %v8212_v50, 1  ;;  %v13726_v62 = vrot.slane %v3195_v49, %v13557_v8  ;;  %v13754_v41 = vld.sshfl [vmem:[%s13533_s2 + $0x34] sm:$0x33 pattern:$0x75316420]  ;;  %vm14311_vm15 = vmor %vm14272_vm12, %vm18537_vm13 }
  0xb5   : > { %11838 = vmatprep.subr.bf16.mxu0 %v18189_v0  ;;  %18595 = vst [vmem:[#allocation36_spill] sm:$0xff] %v13712_v54  ;;  %v13723_v60 = vrot.slane %v3194_v53, %v13557_v8  ;;  %v568_v63 = vrot.slane %v325_v45, %v13557_v8  ;;  %v592_v1 = vrot.slane %v326_v51, %v13557_v8  ;;  %vm18535_vm14 = vsmask.f32 7452 }
  0xb6   : > { %18596 = vst [vmem:[#allocation37_spill] sm:$0xff] %v13720_v59  ;;  %18598 = vst [vmem:[#allocation39_spill] sm:$0xff] %v13726_v62  ;;  %v13733_v3 = vrot.slane %v3241_v58, %v13557_v8  ;;  %v13737_v4 = vsel %vm18530_vm1, %v8210_v38, %v13720_v59  ;;  %v3224_v5 = vcombine.low %v3202_v57, %v13712_v54  ;;  %vm8014_vm6 = vsmask.f32 770 }
  0xb7   : > { %18597 = vst [vmem:[#allocation38_spill] sm:$0xff] %v13723_v60  ;;  %18600 = vst [vmem:[#allocation41_spill] sm:$0xff] %v13737_v4  ;;  %v3191_v20 = vcombine.low %v3183_v52, %v13715_v55  ;;  %v3225_v25 = vcombine.low %v13723_v60, %v13726_v62  ;;  %v593_v38 = vcombine.high %v592_v1, %v592_v1  ;;  %v12843_v60 = vld [vmem:[#allocation4 + $0xf0] sm:$0xff]   ;;  %vm18533_vm8 = vsmask.f32 1798 }
  0xb8   : > { %11839 = vmatpush3.bf16.msra.mxu0 %v12830_v15  ;;  %18599 = vst [vmem:[#allocation40_spill] sm:$0xff] %v13733_v3  ;;  %v569_v15 = vcombine.high %v568_v63, %v568_v63  ;;  %v13760_v48 = vrot.slane %v592_v1, %v13557_v8  ;;  %v966_v49 = vcombine.high %v13644_v61, %v13644_v61  ;;  %vm14347_vm5 = vmor %vm14311_vm15, %vm18535_vm14  ;;  %vm18550_vm10 = vsmask.f32 2826 }
  0xb9   : > { %11884 = vmatprep.subr.bf16.mxu0 %v18189_v0  ;;  %v3232_v50 = vrot.slane %v3224_v5, %v13557_v8  ;;  %v13767_v52 = vrot.slane %v593_v38, %v13557_v8  ;;  %v11272_v53 = vcombine.low %v325_v45, %v326_v51  ;;  %v616_v57 = vrot.slane %v327_v9, %v13557_v8  ;;  %v12838_v45 = vld [vmem:[#allocation4 + $0xd8] sm:$0xff]  }
  0xba   : > { %18603 = vst [vmem:[#allocation44_spill] sm:$0xff] %v13760_v48  ;;  %v13771_v58 = vrot.slane %v966_v49, %v13557_v8  ;;  %v13776_v1 = vrot.slane %v3225_v25, %v13557_v8  ;;  %v631_v25 = vcombine.high %v13078_v16, %v13078_v16  ;;  %v13799_v12 = vrot.slane %v13754_v41, %v13557_v8 }
  0xbb   : > { %11841 = vmatmul.mubr.bf16.vlgmr.msra.gmra.mrb[0].mxu0 %v3142_v26  ;;  %v13751_v26 = vrot.slane %v568_v63, %v13557_v8  ;;  %18604 = vst [vmem:[#allocation45_spill] sm:$0xff] %v13767_v52  ;;  %v3244_v61 = vcombine.low %v13760_v48, %v13767_v52  ;;  %v13781_v5 = vrot.slane %v616_v57, %v13557_v8  ;;  %vm8029_vm12 = vsmask.f32 3854 }
  0xbc   : > { %11885 = vmatpush3.bf16.msra.mxu0 %v12831_v46  ;;  %11844 = vmatprep.mubr.msk.bf16.mxu0 %vm13283_vm0, %v18189_v0  ;;  %v13757_v46 = vrot.slane %v569_v15, %v13557_v8  ;;  %18605 = vst [vmem:[#allocation46_spill] sm:$0xff] %v13771_v58  ;;  %18610 = vst [vmem:[#allocation51_spill] sm:$0xff] %v13799_v12  ;;  %v974_v43 = vcombine.high %v616_v57, %v616_v57  ;;  %vm18540_vm15 = vsmask.f32 4882 }
  0xbd   : > { %11886 = vmatprep.subr.bf16.mxu0 %v18189_v0  ;;  %18601 = vst [vmem:[#allocation42_spill] sm:$0xff] %v13751_v26  ;;  %18606 = vst [vmem:[#allocation47_spill] sm:$0xff] %v13781_v5  ;;  %v13792_v38 = vrot.slane %v3244_v61, %v13557_v8  ;;  %v11048_v61 = vcombine.high %v13760_v48, %v13767_v52  ;;  %v13948_v27 = vcombine.low %v334_v22, %v335_v17 }
  0xbe   : > { %18602 = vst [vmem:[#allocation43_spill] sm:$0xff] %v13757_v46  ;;  %v11047_v63 = vcombine.high %v13751_v26, %v13757_v46  ;;  %v3242_v51 = vcombine.low %v13771_v58, %v13757_v46  ;;  %v754_v13 = vrot.slane %v334_v22, %v13557_v8 }
  0xbf   : > { %18608 = vst [vmem:[#allocation49_spill] sm:$0xff] %v13792_v38  ;;  %18636 = vst [vmem:[#allocation76_spill] sm:$0xff] %v13948_v27 }
  0xc0   : > { %11887 = vmatpush3.bf16.msra.mxu0 %v12832_v2  ;;  %v10223_v2 = vshll.u32 %v11272_v53, 16  ;;  %v13788_v15 = vrot.slane %v11047_v63, %v13557_v8  ;;  %v13802_v7 = vrot.slane %v3242_v51, %v13557_v8  ;;  %v12840_v63 = vld [vmem:[#allocation4 + $0xe0] sm:$0xff]   ;;  %v13817_v51 = vcombine.low %v327_v9, %v327_v9 }
  0xc1   : > { %11888 = vmatprep.subr.bf16.mxu0 %v18189_v0  ;;  %v755_v22 = vcombine.high %v754_v13, %v754_v13 }
  0xc2   : > { %18607 = vst [vmem:[#allocation48_spill] sm:$0xff] %v13788_v15  ;;  %v10225_v49 = vrot.slane %v10223_v2, 1  ;;  %18611 = vst [vmem:[#allocation52_spill] sm:$0xff] %v13802_v7  ;;  %v3273_v57 = vcombine.low %v13733_v3, %v13802_v7 }
  0xc3   : > { %11845 = vmatmul.mubr.bf16.gmra.mrb[4].mxu0 %v3191_v20  ;;  %v10221_v20 = vshrl.u32 %v11272_v53, 16  ;;  %v13805_v53 = vrot.slane %v631_v25, %v13557_v8  ;;  %v13080_v2 = vld.sshfl [vmem:[%s13533_s2 + $0x38] sm:$0x33 pattern:$0x75316420]  ;;  %18614 = vst [vmem:[#allocation55_spill] sm:$0xff] %v13817_v51 }
  0xc4   : > { %11889 = vmatpush3.bf16.msra.mxu0 %v12834_v11  ;;  %11848 = vmatprep.mubr.msk.bf16.mxu0 %vm13283_vm0, %v18189_v0  ;;  %v13795_v11 = vrot.slane %v13078_v16, %v13557_v8  ;;  %v3240_v16 = vcombine.low %v3232_v50, %v13776_v1  ;;  %v13826_v50 = vrot.slane %v974_v43, %v13557_v8 }
  0xc5   : > { %11890 = vmatprep.subr.bf16.mxu0 %v18189_v0  ;;  %18612 = vst [vmem:[#allocation53_spill] sm:$0xff] %v13805_v53  ;;  %v3274_v0 = vcombine.low %v13788_v15, %v13792_v38  ;;  %v10226_v25 = vor.u32 %v10225_v49, %v10221_v20  ;;  %v13823_v4 = vcombine.high %v13805_v53, %v13805_v53  ;;  %v18617_v38 = vmov 0.0   ;;  %v331_v49 = vld [vmem:[%s13533_s2 + $0x3c] sm:$0xf] }
  0xc6   : > { %18609 = vst [vmem:[#allocation50_spill] sm:$0xff] %v13795_v11  ;;  %v13815_v6 = vcombine.high %v13795_v11, %v13795_v11  ;;  %18616 = vst [vmem:[#allocation57_spill] sm:$0xff] %v13826_v50  ;;  %v10228_v20 = vshll.u32 %v13817_v51, 16  ;;  %v3281_v7 = vrot.slane %v3273_v57, %v13557_v8  ;;  %v3291_v43 = vcombine.low %v13781_v5, %v13826_v50  ;;  %v12841_v57 = vld [vmem:[#allocation4 + $0xe8] sm:$0xff]  }
  0xc7   : > { %18615 = vst [vmem:[#allocation56_spill] sm:$0xff] %v13823_v4  ;;  %v13829_v59 = vrot.slane %v3274_v0, %v13557_v8  ;;  %v3293_v0 = vcombine.low %v13823_v4, %v13799_v12  ;;  %v655_v15 = vcombine.high %v13754_v41, %v13754_v41  ;;  %v13853_v51 = vcombine.high %v13799_v12, %v13799_v12 }
  0xc8   : > { %18613 = vst [vmem:[#allocation54_spill] sm:$0xff] %v13815_v6  ;;  %11891 = vmatpush3.bf16.msra.mxu0 %v12838_v45  ;;  %v3292_v9 = vcombine.low %v13805_v53, %v13815_v6  ;;  %v13835_v45 = vrot.slane %v11048_v61, %v13557_v8  ;;  %v13849_v61 = vrot.slane %v10228_v20, 1  ;;  %v13858_v62 = vrot.slane %v3291_v43, %v13557_v8  ;;  %v343_v53 = vld [vmem:[%s13533_s2 + $0x6c] sm:$0xf] }
  0xc9   : > { %11892 = vmatprep.subr.bf16.mxu0 %v18617_v38  ;;  %18621 = vst [vmem:[#allocation61_spill] sm:$0xff] %v13853_v51  ;;  %v13861_v41 = vrot.slane %v3293_v0, %v13557_v8  ;;  %v13872_v20 = vrot.slane %v13080_v2, %v13557_v8  ;;  %v692_v0 = vrot.slane %v331_v49, %v13557_v8 }
  0xca   : > { %18618 = vst [vmem:[#allocation58_spill] sm:$0xff] %v13835_v45  ;;  %v13847_v37 = vrot.slane %v3292_v9, %v13557_v8  ;;  %18620 = vst [vmem:[#allocation60_spill] sm:$0xff] %v13849_v61  ;;  %v13869_v9 = vrot.slane %v655_v15, %v13557_v8  ;;  %v3322_v43 = vcombine.low %v13835_v45, %v13858_v62 }
  0xcb   : > { %11849 = vmatmul.mubr.bf16.gmra.mrb[8].mxu0 %v3240_v16  ;;  %18622 = vst [vmem:[#allocation62_spill] sm:$0xff] %v13858_v62  ;;  %18623 = vst [vmem:[#allocation63_spill] sm:$0xff] %v13861_v41  ;;  %v13866_v16 = vsel %vm18530_vm1, %v10226_v25, %v13849_v61  ;;  %v982_v15 = vcombine.high %v13080_v2, %v13080_v2  ;;  %v13888_v61 = vrot.slane %v692_v0, %v13557_v8 }
  0xcc   : > { %18619 = vst [vmem:[#allocation59_spill] sm:$0xff] %v13847_v37  ;;  %11852 = vmatprep.mubr.msk.bf16.mxu0 %vm13283_vm0, %v18617_v38  ;;  %11893 = vmatpush3.bf16.msra.mxu0 %v12840_v63  ;;  %18624 = vst [vmem:[#allocation64_spill] sm:$0xff] %v13866_v16  ;;  %v3289_v63 = vcombine.low %v3281_v7, %v13829_v59  ;;  %v3323_v24 = vcombine.low %v13847_v37, %v13861_v41 }
  0xcd   : > { %11894 = vmatprep.subr.bf16.mxu0 %v18617_v38  ;;  %18625 = vst [vmem:[#allocation65_spill] sm:$0xff] %v13869_v9  ;;  %18626 = vst [vmem:[#allocation66_spill] sm:$0xff] %v13872_v20  ;;  %v13883_v25 = vcombine.high %v13869_v9, %v13869_v9  ;;  %v3339_v16 = vcombine.low %v13869_v9, %v13853_v51  ;;  %v693_v7 = vcombine.high %v692_v0, %v692_v0 }
  0xce   : > { %18628 = vst [vmem:[#allocation68_spill] sm:$0xff] %v13888_v61  ;;  %v13892_v62 = vrot.slane %v982_v15, %v13557_v8  ;;  %v13896_v37 = vcombine.low %v331_v49, %v332_v32  ;;  %v13903_v23 = vrot.slane %v3323_v24, %v13557_v8  ;;  %v12845_v24 = vld [vmem:[#allocation4 + $0xf8] sm:$0xff]  }
  0xcf   : > { %18627 = vst [vmem:[#allocation67_spill] sm:$0xff] %v13883_v25  ;;  %v3340_v41 = vcombine.low %v13883_v25, %v13872_v20  ;;  %v13899_v2 = vrot.slane %v693_v7, %v13557_v8  ;;  %v13906_v0 = vrot.slane %v3339_v16, %v13557_v8 }
  0xd0   : > { %11895 = vmatpush3.bf16.msra.mxu0 %v12841_v57  ;;  %18629 = vst [vmem:[#allocation69_spill] sm:$0xff] %v13892_v62  ;;  %18630 = vst [vmem:[#allocation70_spill] sm:$0xff] %v13896_v37  ;;  %v3330_v57 = vrot.slane %v3322_v43, %v13557_v8  ;;  %v3880_v43 = vcombine.low %v13607_v35, %v13620_v42 }
  0xd1   : > { %11896 = vmatprep.subr.bf16.mxu0 %v18617_v38  ;;  %18631 = vst [vmem:[#allocation71_spill] sm:$0xff] %v13899_v2  ;;  %18632 = vst [vmem:[#allocation72_spill] sm:$0xff] %v13906_v0  ;;  %v13909_v15 = vrot.slane %v3340_v41, %v13557_v8  ;;  %v3341_v49 = vcombine.low %v13892_v62, %v13899_v2 }
  0xd3   : > { %11853 = vmatmul.mubr.bf16.gmra.mrb[12].mxu0 %v3289_v63  ;;  %18633 = vst [vmem:[#allocation73_spill] sm:$0xff] %v13909_v15  ;;  %v11049_v63 = vcombine.high %v13888_v61, %v13899_v2  ;;  %v13919_v16 = vrot.slane %v3341_v49, %v13557_v8  ;;  %v3371_v7 = vcombine.low %v13906_v0, %v13909_v15 }
  0xd4   : > { %11856 = vmatprep.mubr.msk.bf16.mxu0 %vm13283_vm0, %v18617_v38  ;;  %11897 = vmatpush3.bf16.msra.mxu0 %v12843_v60  ;;  %v3338_v60 = vcombine.low %v3330_v57, %v13903_v23  ;;  %v3897_v49 = vcombine.low %v13656_v10, %v13659_v14  ;;  %v3887_v57 = vrot.slane %v3880_v43, %v13557_v8 }
  0xd5   : > { %11898 = vmatprep.subr.bf16.mxu0 %v18617_v38  ;;  %18634 = vst [vmem:[#allocation74_spill] sm:$0xff] %v13919_v16  ;;  %v13922_v41 = vrot.slane %v11049_v63, %v13557_v8  ;;  %v3914_v63 = vcombine.low %v13751_v26, %v13757_v46  ;;  %v13940_v15 = vrot.slane %v3371_v7, %v13557_v8 }
  0xd6   : > { %v3904_v0 = vrot.slane %v3897_v49, %v13557_v8  ;;  %v3888_v7 = vcombine.low %v3887_v57, %v13639_v56  ;;  %v3948_v49 = vcombine.low %v13888_v61, %v13899_v2  ;;  %v338_v56 = vld [vmem:[%s13533_s2 + $0x58] sm:$0xf]  ;;  %v12847_v2 = vld [vmem:[#allocation4 + $0x108] sm:$0xff]  }
  0xd7   : > { %18635 = vst [vmem:[#allocation75_spill] sm:$0xff] %v13922_v41  ;;  %v3372_v37 = vcombine.low %v13919_v16, %v13922_v41  ;;  %v3921_v43 = vrot.slane %v3914_v63, %v13557_v8 }
  0xd8   : > { %11899 = vmatpush3.bf16.msra.mxu0 %v12845_v24  ;;  %v3931_v24 = vcombine.low %v13781_v5, %v13795_v11  ;;  %v3905_v62 = vcombine.low %v3904_v0, %v13712_v54  ;;  %v13970_v0 = vrot.slane %v754_v13, %v13557_v8  ;;  %v3807_v11 = vrot.slane %v343_v53, %v13557_v8 }
  0xd9   : > { %11944 = vmatprep.subr.bf16.mxu0 %v18617_v38  ;;  %v3386_v16 = vrot.slane %v3372_v37, %v13557_v8  ;;  %v3922_v27 = vcombine.low %v13733_v3, %v3921_v43  ;;  %v3955_v43 = vrot.slane %v3948_v49, %v13557_v8  ;;  %v778_v3 = vrot.slane %v335_v17, %v13557_v8 }
  0xda   : > { %v3938_v19 = vrot.slane %v3931_v24, %v13557_v8  ;;  %18637 = vst [vmem:[#allocation77_spill] sm:$0xff] %v13970_v0  ;;  %v13973_v24 = vrot.slane %v3905_v62, %v13557_v8  ;;  %v13996_v17 = vrot.slane %v13956_v18, %v13557_v8 }
  0xdb   : > { %11857 = vmatmul.mubr.bf16.gmra.mrb[16].mxu0 %v3338_v60  ;;  %v716_v60 = vrot.slane %v332_v32, %v13557_v8  ;;  %v3387_v37 = vcombine.low %v13940_v15, %v3386_v16  ;;  %v337_v32 = vld [vmem:[%s13533_s2 + $0x54] sm:$0xf]  ;;  %v3895_v16 = vrot.slane %v3888_v7, %v13557_v8  ;;  %v13982_v54 = vrot.slane %v3922_v27, %v13557_v8 }
  0xdc   : > { %11860 = vmatprep.mubr.msk.bf16.mxu0 %vm13283_vm0, %v18617_v38  ;;  %v3939_v57 = vcombine.low %v13835_v45, %v3938_v19  ;;  %v13977_v7 = vcombine.low %v337_v32, %v338_v56  ;;  %v341_v19 = vld [vmem:[%s13533_s2 + $0x64] sm:$0xf]  ;;  %18641 = vst [vmem:[#allocation81_spill] sm:$0xff] %v13996_v17  ;;  %v14003_v27 = vcombine.high %v13970_v0, %v13970_v0 }
  0xdd   : > { %v717_v63 = vcombine.high %v716_v60, %v716_v60  ;;  %v12846_v45 = vld [vmem:[#allocation4 + $0x100] sm:$0xff]   ;;  %v13985_v20 = vrot.slane %v716_v60, %v13557_v8  ;;  %v3896_v62 = vcombine.low %v3895_v16, %v13715_v55  ;;  %v14006_v60 = vld.sshfl [vmem:[%s13533_s2 + $0x50] sm:$0x33 pattern:$0x75316420]  ;;  %v3913_v55 = vcombine.low %v13973_v24, %v13776_v1 }
  0xde   : > { %18638 = vst [vmem:[#allocation78_spill] sm:$0xff] %v13977_v7  ;;  %v13992_v49 = vrot.slane %v3939_v57, %v13557_v8  ;;  %v13999_v7 = vrot.slane %v755_v22, %v13557_v8  ;;  %18643 = vst [vmem:[#allocation83_spill] sm:$0xff] %v14003_v27  ;;  %v779_v16 = vcombine.high %v778_v3, %v778_v3  ;;  %v14027_v22 = vld.sshfl [vmem:[%s13533_s2 + $0x5c] sm:$0x33 pattern:$0x75316420] }
  0xdf   : > { %18639 = vst [vmem:[#allocation79_spill] sm:$0xff] %v13985_v20  ;;  %v13988_v13 = vrot.slane %v717_v63, %v13557_v8  ;;  %18644 = vst [vmem:[#allocation84_spill] sm:$0xff] %v14006_v60  ;;  %v3956_v63 = vcombine.low %v3955_v43, %v13922_v41  ;;  %v816_v57 = vrot.slane %v337_v32, %v13557_v8 }
  0xe0   : > { %18642 = vst [vmem:[#allocation82_spill] sm:$0xff] %v13999_v7  ;;  %v902_v51 = vrot.slane %v341_v19, %v13557_v8  ;;  %v14023_v32 = vrot.slane %v778_v3, %v13557_v8  ;;  %v840_v43 = vrot.slane %v338_v56, %v13557_v8  ;;  %18646 = vst [vmem:[#allocation86_spill] sm:$0xff] %v14027_v22 }
  0xe1   : > { %18640 = vst [vmem:[#allocation80_spill] sm:$0xff] %v13988_v13  ;;  %v3388_v61 = vcombine.low %v13985_v20, %v13988_v13  ;;  %v11050_v24 = vcombine.high %v13985_v20, %v13988_v13  ;;  %v3965_v1 = vcombine.low %v13996_v17, %v13970_v0  ;;  %v14037_v3 = vrot.slane %v779_v16, %v13557_v8 }
  0xe2   : > { %18645 = vst [vmem:[#allocation85_spill] sm:$0xff] %v14023_v32  ;;  %v817_v56 = vcombine.high %v816_v57, %v816_v57  ;;  %v14051_v0 = vrot.slane %v3956_v63, %v13557_v8  ;;  %v14067_v9 = vcombine.high %v14023_v32, %v14023_v32  ;;  %v841_v63 = vcombine.high %v840_v43, %v840_v43 }
  0xe3   : > { %11861 = vmatmul.mubr.bf16.gmra.mrb[20].mxu0 %v3387_v37  ;;  %v340_v37 = vld [vmem:[%s13533_s2 + $0x60] sm:$0xf]  ;;  %18647 = vst [vmem:[#allocation87_spill] sm:$0xff] %v14037_v3  ;;  %v14056_v16 = vrot.slane %v3388_v61, %v13557_v8  ;;  %v14073_v61 = vrot.slane %v3965_v1, %v13557_v8  ;;  %v14085_v12 = vrot.slane %v14006_v60, %v13557_v8 }
  0xe4   : > { %11900 = vmatprep.mubr.msk.bf16.mxu0 %vm13283_vm0, %v18617_v38  ;;  %v878_v25 = vrot.slane %v340_v37, %v13557_v8  ;;  %v14039_v13 = vcombine.low %v340_v37, %v341_v19  ;;  %v903_v37 = vcombine.high %v902_v51, %v902_v51  ;;  %v14059_v19 = vrot.slane %v11050_v24, %v13557_v8  ;;  %v12849_v1 = vld [vmem:[#allocation4 + $0x118] sm:$0xff]  }
  0xe5   : > { %18652 = vst [vmem:[#allocation90_spill] sm:$0xff] %v14056_v16  ;;  %18655 = vst [vmem:[#allocation93_spill] sm:$0xff] %v14067_v9  ;;  %v14097_v4 = vrot.slane %v902_v51, %v13557_v8  ;;  %v14108_v60 = vrot.slane %v840_v43, %v13557_v8  ;;  %v14117_v51 = vrot.slane %v14027_v22, %v13557_v8  ;;  %v344_v43 = vld [vmem:[%s13533_s2 + $0x70] sm:$0xf] }
  0xe6   : > { %v879_v41 = vcombine.high %v878_v25, %v878_v25  ;;  %18648 = vst [vmem:[#allocation88_spill] sm:$0xff] %v14039_v13  ;;  %18653 = vst [vmem:[#allocation91_spill] sm:$0xff] %v14059_v19  ;;  %v14063_v13 = vcombine.high %v13999_v7, %v13999_v7  ;;  %v14100_v6 = vrot.slane %v903_v37, %v13557_v8 }
  0xe7   : > { %18659 = vst [vmem:[#allocation97_spill] sm:$0xff] %v14085_v12  ;;  %18663 = vst [vmem:[#allocation101_spill] sm:$0xff] %v14097_v4  ;;  %v3420_v20 = vcombine.low %v14056_v16, %v14059_v19 }
  0xe8   : > { %18654 = vst [vmem:[#allocation92_spill] sm:$0xff] %v14063_v13  ;;  %v14076_v24 = vrot.slane %v879_v41, %v13557_v8  ;;  %v14094_v41 = vrot.slane %v878_v25, %v13557_v8  ;;  %18664 = vst [vmem:[#allocation102_spill] sm:$0xff] %v14100_v6  ;;  %v14111_v25 = vrot.slane %v841_v63, %v13557_v8 }
  0xe9   : > { %18665 = vst [vmem:[#allocation103_spill] sm:$0xff] %v14108_v60  ;;  %18667 = vst [vmem:[#allocation105_spill] sm:$0xff] %v14117_v51 }
  0xea   : > { %18657 = vst [vmem:[#allocation95_spill] sm:$0xff] %v14076_v24  ;;  %18662 = vst [vmem:[#allocation100_spill] sm:$0xff] %v14094_v41  ;;  %v14125_v37 = vcombine.high %v14076_v24, %v14076_v24 }
  0xeb   : > { %11901 = vmatmul.mubr.bf16.vlgmr.msra.gmra.mrb[0].mxu0 %v3896_v62  ;;  %v3391_v62 = vcombine.low %v13999_v7, %v14003_v27  ;;  %v12848_v27 = vld [vmem:[#allocation4 + $0x110] sm:$0xff]   ;;  %v14081_v7 = vcombine.high %v14037_v3, %v14037_v3  ;;  %18666 = vst [vmem:[#allocation104_spill] sm:$0xff] %v14111_v25 }
  0xec   : > { %11945 = vmatpush3.bf16.msra.mxu0 %v12846_v45  ;;  %11904 = vmatprep.mubr.msk.bf16.mxu0 %vm13283_vm0, %v18617_v38  ;;  %v14042_v45 = vld.sshfl [vmem:[%s13533_s2 + $0x68] sm:$0x33 pattern:$0x75316420]  ;;  %v3536_v19 = vcombine.low %v14125_v37, %v14097_v4 }
  0xed   : > { %11946 = vmatprep.subr.bf16.mxu0 %v18617_v38  ;;  %18649 = vst [vmem:[#allocation89_spill] sm:$0xff] %v14042_v45  ;;  %v14070_v17 = vrot.slane %v3391_v62, %v13557_v8  ;;  %18658 = vst [vmem:[#allocation96_spill] sm:$0xff] %v14081_v7  ;;  %v14091_v62 = vrot.slane %v817_v56, %v13557_v8  ;;  %v3438_v56 = vcombine.low %v14037_v3, %v14067_v9  ;;  %v12851_v3 = vld [vmem:[#allocation4 + $0x120] sm:$0xff]  }
  0xee   : > { %v3439_v63 = vcombine.low %v14081_v7, %v14085_v12  ;;  %v14148_v12 = vcombine.high %v14100_v6, %v14100_v6  ;;  %v14154_v7 = vcombine.low %v343_v53, %v344_v43  ;;  %v18702_v9 = vcombine.low %v13992_v49, %v13903_v23 }
  0xef   : > { %18656 = vst [vmem:[#allocation94_spill] sm:$0xff] %v14070_v17  ;;  %18661 = vst [vmem:[#allocation99_spill] sm:$0xff] %v14091_v62  ;;  %v3973_v50 = vcombine.low %v14073_v61, %v14070_v17  ;;  %v14176_v53 = vrot.slane %v3438_v56, %v13557_v8  ;;  %v3831_v61 = vrot.slane %v344_v43, %v13557_v8 }
  0xf0   : > { %11947 = vmatpush3.bf16.msra.mxu0 %v12847_v2  ;;  %v14088_v2 = vrot.slane %v816_v57, %v13557_v8  ;;  %v3437_v57 = vcombine.low %v14063_v13, %v14023_v32  ;;  %v14144_v32 = vcombine.high %v14097_v4, %v14097_v4  ;;  %18672 = vst [vmem:[#allocation108_spill] sm:$0xff] %v14148_v12  ;;  %18674 = vst [vmem:[#allocation110_spill] sm:$0xff] %v14154_v7 }
  0xf1   : > { %11948 = vmatprep.subr.bf16.mxu0 %v18617_v38  ;;  %v11052_v13 = vcombine.high %v14108_v60, %v14111_v25  ;;  %18676 = vst [vmem:[#allocation112_spill] sm:$0xff] %v14176_v53  ;;  %v18679_v56 = vcombine.low %v13982_v54, %v13829_v59  ;;  %v12855_v59 = vld [vmem:[#allocation4 + $0x128] sm:$0xff]   ;;  %v14306_v49 = vcombine.high %v13620_v42, %v13620_v42 }
  0xf2   : > { %18660 = vst [vmem:[#allocation98_spill] sm:$0xff] %v14088_v2  ;;  %v11051_v22 = vcombine.high %v14088_v2, %v14091_v62  ;;  %18671 = vst [vmem:[#allocation107_spill] sm:$0xff] %v14144_v32  ;;  %v14173_v16 = vrot.slane %v3437_v57, %v13557_v8  ;;  %v3537_v4 = vcombine.low %v14100_v6, %v14144_v32  ;;  %v14229_v32 = vld.sshfl [vmem:[%s13533_s2 + $0x74] sm:$0x33 pattern:$0x75316420] }
  0xf3   : > { %11905 = vmatmul.mubr.bf16.gmra.mrb[4].mxu0 %v3913_v55  ;;  %v14121_v55 = vcombine.high %v14094_v41, %v14094_v41  ;;  %v14197_v43 = vrot.slane %v11052_v13, %v13557_v8  ;;  %18688 = vst [vmem:[#allocation121_spill] sm:$0xff] %v14229_v32  ;;  %18704 = vst [vmem:[#allocation131_spill] sm:$0xff] %v14306_v49 }
  0xf4   : > { %11908 = vmatprep.mubr.msk.bf16.mxu0 %vm13283_vm0, %v18617_v38  ;;  %11949 = vmatpush3.bf16.msra.mxu0 %v12848_v27  ;;  %v3982_v27 = vcombine.low %v14088_v2, %v14091_v62  ;;  %v14152_v62 = vrot.slane %v14042_v45, %v13557_v8  ;;  %v3487_v2 = vcombine.low %v14108_v60, %v14111_v25 }
  0xf5   : > { %18668 = vst [vmem:[#allocation106_spill] sm:$0xff] %v14121_v55  ;;  %11950 = vmatprep.subr.bf16.mxu0 %v18617_v38  ;;  %v3999_v45 = vcombine.low %v14117_v51, %v14094_v41  ;;  %v3535_v7 = vcombine.low %v14076_v24, %v14121_v55  ;;  %18675 = vst [vmem:[#allocation111_spill] sm:$0xff] %v14173_v16  ;;  %v14184_v55 = vrot.slane %v11051_v22, %v13557_v8 }
  0xf6   : > { %18673 = vst [vmem:[#allocation109_spill] sm:$0xff] %v14152_v62  ;;  %v3989_v17 = vrot.slane %v3982_v27, %v13557_v8  ;;  %v3538_v57 = vcombine.low %v14148_v12, %v14152_v62  ;;  %18681 = vst [vmem:[#allocation116_spill] sm:$0xff] %v14197_v43  ;;  %v3808_v27 = vcombine.high %v3807_v11, %v3807_v11  ;;  %v12866_v62 = vld [vmem:[#allocation4 + $0x40] sm:$0xff]  }
  0xf7   : > { %18678 = vst [vmem:[#allocation114_spill] sm:$0xff] %v14184_v55  ;;  %v4006_v54 = vrot.slane %v3999_v45, %v13557_v8  ;;  %v14210_v13 = vrot.slane %v3535_v7, %v13557_v8  ;;  %v3469_v12 = vcombine.low %v14173_v16, %v14176_v53  ;;  %11705 = vmatpush3.bf16.msra.mxu1 %v12866_v62 }
  0xf8   : > { %11951 = vmatpush3.bf16.msra.mxu0 %v12849_v1  ;;  %v14179_v1 = vrot.slane %v3439_v63, %v13557_v8  ;;  %v14194_v63 = vrot.slane %v3487_v2, %v13557_v8  ;;  %v14213_v2 = vrot.slane %v3536_v19, %v13557_v8  ;;  %v14223_v7 = vrot.slane %v3537_v4, %v13557_v8 }
  0xf9   : > { %11952 = vmatprep.subr.bf16.mxu0 %v18617_v38  ;;  %18684 = vst [vmem:[#allocation117_spill] sm:$0xff] %v14210_v13  ;;  %v14226_v19 = vrot.slane %v3538_v57, %v13557_v8  ;;  %11706 = vmatprep.subr.bf16.mxu1 %v18617_v38  ;;  %v18691_v4 = vcombine.high %v13956_v18, %v13956_v18 }
  0xfa   : > { %18677 = vst [vmem:[#allocation113_spill] sm:$0xff] %v14179_v1  ;;  %18680 = vst [vmem:[#allocation115_spill] sm:$0xff] %v14194_v63  ;;  %v3990_v45 = vcombine.low %v14179_v1, %v3989_v17  ;;  %v3518_v62 = vcombine.low %v14184_v55, %v14194_v63  ;;  %v14248_v57 = vrot.slane %v3807_v11, %v13557_v8 }
  0xfb   : > { %11909 = vmatmul.mubr.bf16.gmra.mrb[8].mxu0 %v18679_v56  ;;  %18685 = vst [vmem:[#allocation118_spill] sm:$0xff] %v14213_v2  ;;  %18686 = vst [vmem:[#allocation119_spill] sm:$0xff] %v14223_v7  ;;  %v14243_v17 = vrot.slane %v18691_v4, %v13557_v8  ;;  %v14251_v22 = vrot.slane %v3808_v27, %v13557_v8  ;;  %v14254_v56 = vrot.slane %v3420_v20, %v13557_v8  ;;  %v12856_v4 = vld [vmem:[#allocation4 + $0x130] sm:$0xff]  }
  0xfc   : > { %11912 = vmatprep.mubr.msk.bf16.mxu0 %vm13283_vm0, %v18617_v38  ;;  %11953 = vmatpush3.bf16.msra.mxu0 %v12851_v3  ;;  %v3832_v3 = vcombine.high %v3831_v61, %v3831_v61  ;;  %18687 = vst [vmem:[#allocation120_spill] sm:$0xff] %v14226_v19  ;;  %18693 = vst [vmem:[#allocation123_spill] sm:$0xff] %v14248_v57  ;;  %v14257_v53 = vrot.slane %v3973_v50, %v13557_v8  ;;  %v1116_v50 = vshll.u32 %v13620_v42, 16 }
  0xfd   : > { %11954 = vmatprep.subr.bf16.mxu0 %v18617_v38  ;;  %18692 = vst [vmem:[#allocation122_spill] sm:$0xff] %v14243_v17  ;;  %18694 = vst [vmem:[#allocation124_spill] sm:$0xff] %v14251_v22  ;;  %v4007_v16 = vcombine.low %v14197_v43, %v4006_v54  ;;  %v3567_v18 = vcombine.low %v14210_v13, %v14213_v2  ;;  %v14264_v11 = vrot.slane %v3831_v61, %v13557_v8  ;;  %v12858_v2 = vld [vmem:[#allocation4 + $0x138] sm:$0xff]   ;;  %v12869_v13 = vld [vmem:[#allocation4 + $0x50] sm:$0xff]  }
  0xfe   : > { %18695 = vst [vmem:[#allocation125_spill] sm:$0xff] %v14254_v56  ;;  %v14267_v27 = vrot.slane %v3832_v3, %v13557_v8  ;;  %v14277_v20 = vrot.slane %v3469_v12, %v13557_v8  ;;  %v14280_v54 = vrot.slane %v3990_v45, %v13557_v8  ;;  %v3568_v61 = vcombine.low %v14223_v7, %v14226_v19  ;;  %v12867_v19 = vld [vmem:[#allocation4 + $0x48] sm:$0xff]  }
  0xff   : > { %18696 = vst [vmem:[#allocation126_spill] sm:$0xff] %v14264_v11  ;;  %v14292_v3 = vrot.slane %v3518_v62, %v13557_v8  ;;  %v4016_v12 = vcombine.low %v14248_v57, %v14251_v22  ;;  %v11061_v45 = vcombine.high %v14248_v57, %v14251_v22  ;;  %v14301_v7 = vrot.slane %v4007_v16, %v13557_v8 }
 0x100   : > { %11955 = vmatpush3.bf16.msra.mxu0 %v12855_v59  ;;  %18697 = vst [vmem:[#allocation127_spill] sm:$0xff] %v14267_v27  ;;  %18700 = vst [vmem:[#allocation128_spill] sm:$0xff] %v14277_v20  ;;  %v14286_v59 = vcombine.high %v13607_v35, %v13607_v35  ;;  %v3575_v23 = vrot.slane %v3567_v18, %v13557_v8  ;;  %v4018_v16 = vcombine.low %v14264_v11, %v14267_v27 }
 0x101   : > { %11956 = vmatprep.subr.bf16.mxu0 %v18617_v38  ;;  %18703 = vst [vmem:[#allocation130_spill] sm:$0xff] %v14292_v3  ;;  %v11062_v18 = vcombine.high %v14264_v11, %v14267_v27  ;;  %11707 = vmatpush3.bf16.msra.mxu1 %v12867_v19  ;;  %v3582_v63 = vrot.slane %v3568_v61, %v13557_v8  ;;  %v1119_v43 = vshrl.u32 %v13620_v42, 16  ;;  %v18711_v61 = vmov 0 }
 0x102   : > { %18701 = vst [vmem:[#allocation129_spill] sm:$0xff] %v14286_v59  ;;  %v14329_v55 = vcombine.high %v13614_v39, %v13614_v39  ;;  %v1124_v1 = vshll.u32 %v14286_v59, 16  ;;  %11708 = vmatprep.subr.bf16.mxu1 %v18617_v38  ;;  %v14338_v30 = vrot.slane %v11061_v45, %v13557_v8  ;;  %v14342_v19 = vcombine.high %v13624_v44, %v13624_v44 }
 0x103   : > { %11913 = vmatmul.mubr.bf16.gmra.mrb[12].mxu0 %v18702_v9  ;;  %v1111_v9 = vshrl.u32 %v13607_v35, 16  ;;  %v14335_v35 = vrot.slane %v4016_v12, %v13557_v8  ;;  %v18712_v61 = vsel %vm14347_vm5, 4294967295, %v18711_v61  ;;  %v1127_v42 = vshrl.u32 %v14286_v59, 16 }
 0x104   : > { %11916 = vmatprep.mubr.msk.bf16.mxu0 %vm13283_vm0, %v18617_v38  ;;  %11957 = vmatpush3.bf16.msra.mxu0 %v12856_v4  ;;  %v14323_v4 = vrot.slane %v14229_v32, %v13557_v8  ;;  %18708 = vst [vmem:[#allocation133_spill] sm:$0xff] %v14329_v55  ;;  %18709 = vst [vmem:[#allocation134_spill] sm:$0xff] %v14338_v30  ;;  %v1132_v12 = vshll.u32 %v14306_v49, 16  ;;  %v1135_v32 = vshrl.u32 %v14306_v49, 16  ;;  %v1140_v45 = vshll.u32 %v13614_v39, 16 }
 0x105   : > { %11958 = vmatprep.subr.bf16.mxu0 %v18617_v38  ;;  %18710 = vst [vmem:[#allocation135_spill] sm:$0xff] %v14342_v19  ;;  %18713 = vst [vmem:[#allocation136_spill] sm:$0xff] %v18712_v61  ;;  %v1143_v11 = vshrl.u32 %v13614_v39, 16  ;;  %v14357_v27 = vrot.slane %v4018_v16, %v13557_v8  ;;  %v14360_v62 = vrot.slane %v11062_v18, %v13557_v8  ;;  %v1148_v22 = vshll.u32 %v13624_v44, 16 }
 0x106   : > { %18707 = vst [vmem:[#allocation132_spill] sm:$0xff] %v14323_v4  ;;  %v1151_v57 = vshrl.u32 %v13624_v44, 16  ;;  %11709 = vmatpush3.bf16.msra.mxu1 %v12869_v13  ;;  %v14371_v49 = vsel %vm14347_vm5, %v1119_v43, %v1124_v1  ;;  %v1156_v16 = vshll.u32 %v14329_v55, 16  ;;  %v1159_v18 = vshrl.u32 %v14329_v55, 16  ;;  %v12870_v1 = vld [vmem:[#allocation4 + $0x58] sm:$0xff]  }
 0x107   : > { %18714 = vst [vmem:[#allocation137_spill] sm:$0xff] %v14357_v27  ;;  %18715 = vst [vmem:[#allocation138_spill] sm:$0xff] %v14360_v62  ;;  %11710 = vmatprep.subr.bf16.mxu1 %v18617_v38  ;;  %v18717_v44 = vcombine.low %v13940_v15, %v14051_v0  ;;  %v1164_v13 = vshll.u32 %v14342_v19, 16  ;;  %v1167_v39 = vshrl.u32 %v14342_v19, 16  ;;  %v4071_v43 = vrot.slane %v14323_v4, %v13557_v8  ;;  %v12872_v0 = vld [vmem:[#allocation4 + $0x60] sm:$0xff]  }
 0x108   : > { %11959 = vmatpush3.bf16.msra.mxu0 %v12858_v2  ;;  %v14367_v2 = vsel %vm14347_vm5, %v1111_v9, %v1116_v50  ;;  %v1172_v9 = vshll.u32 %v13656_v10, 16  ;;  %v1175_v50 = vshrl.u32 %v13656_v10, 16  ;;  %v1180_v55 = vshll.u32 %v13684_v36, 16 }
 0x109   : > { %12004 = vmatprep.subr.bf16.mxu0 %v18617_v38  ;;  %18716 = vst [vmem:[#allocation139_spill] sm:$0xff] %v14367_v2  ;;  %v1184_v15 = vshrl.u32 %v13659_v14, 16  ;;  %v3981_v19 = vcombine.low %v14254_v56, %v14257_v53  ;;  %v14398_v6 = vsel %vm14347_vm5, %v1127_v42, %v1132_v12  ;;  %v14402_v36 = vsel %vm14347_vm5, %v1135_v32, %v1140_v45 }
 0x10a   : > { %11711 = vmatpush3.bf16.msra.mxu1 %v12870_v1  ;;  %v14406_v14 = vsel %vm14347_vm5, %v1143_v11, %v1148_v22  ;;  %v14410_v53 = vsel %vm14347_vm5, %v1151_v57, %v1156_v16  ;;  %v4376_v59 = vcombine.low %v14367_v2, %v14371_v49  ;;  %v14415_v42 = vcombine.low %v3575_v23, %v3582_v63 }
 0x10b   : > { %11917 = vmatmul.mubr.bf16.gmra.mrb[16].mxu0 %v18717_v44  ;;  %v1189_v44 = vshll.u32 %v13666_v28, 16  ;;  %18718 = vst [vmem:[#allocation140_spill] sm:$0xff] %v14410_v53  ;;  %11712 = vmatprep.subr.bf16.mxu1 %v18617_v38  ;;  %v14421_v32 = vsel %vm14347_vm5, %v1159_v18, %v1164_v13  ;;  %v14425_v22 = vsel %vm14347_vm5, %v1167_v39, %v1172_v9  ;;  %v1192_v63 = vshrl.u32 %v13666_v28, 16 }
 0x10c   : > { %11920 = vmatprep.mubr.msk.bf16.mxu0 %vm13283_vm0, %v18617_v38  ;;  %18719 = vst [vmem:[#allocation141_spill] sm:$0xff] %v14415_v42  ;;  %18720 = vst [vmem:[#allocation142_spill] sm:$0xff] %v14425_v22  ;;  %v4049_v57 = vcombine.low %v14357_v27, %v14360_v62  ;;  %v14430_v11 = vrot.slane %v4071_v43, %v13557_v8  ;;  %v1197_v23 = vshll.u32 %v13670_v29, 16  ;;  %v1200_v18 = vshrl.u32 %v13670_v29, 16  ;;  %v12873_v62 = vld [vmem:[#allocation4 + $0x68] sm:$0xff]  }
 0x10d   : > { %v4377_v45 = vcombine.low %v14398_v6, %v14402_v36  ;;  %v4378_v16 = vcombine.low %v14406_v14, %v14410_v53  ;;  %v1205_v39 = vshll.u32 %v13690_v40, 16  ;;  %v4379_v13 = vcombine.low %v14421_v32, %v14425_v22 }
 0x10e   : > { %11713 = vmatpush3.bf16.msra.mxu1 %v12872_v0  ;;  %v14443_v9 = vrot.slane %v4376_v59, %v13557_v8  ;;  %v1208_v1 = vshrl.u32 %v13690_v40, 16  ;;  %v1213_v43 = vshll.u32 %v13662_v21, 16  ;;  %v14450_v12 = vsel %vm14347_vm5, %v1175_v50, %v1180_v55 }
 0x10f   : > { %11714 = vmatprep.subr.bf16.mxu1 %v18617_v38  ;;  %18721 = vst [vmem:[#allocation143_spill] sm:$0xff] %v14450_v12  ;;  %v1216_v29 = vshrl.u32 %v13662_v21, 16  ;;  %v1221_v0 = vshll.u32 %v13677_v33, 16  ;;  %v1224_v10 = vshrl.u32 %v13677_v33, 16  ;;  %v14459_v40 = vsel %vm14347_vm5, %v1184_v15, %v1189_v44  ;;  %v12874_v44 = vld [vmem:[#allocation4 + $0x70] sm:$0xff]  }
 0x110   : > { %18722 = vst [vmem:[#allocation144_spill] sm:$0xff] %v14459_v40  ;;  %v14463_v59 = vsel %vm14347_vm5, %v1192_v63, %v1197_v23  ;;  %v1229_v55 = vshll.u32 %v13681_v34, 16  ;;  %v14469_v50 = vsel %vm14347_vm5, %v1200_v18, %v1205_v39  ;;  %v1237_v27 = vshll.u32 %v13699_v47, 16 }
 0x111   : > { %18723 = vst [vmem:[#allocation145_spill] sm:$0xff] %v14463_v59  ;;  %18724 = vst [vmem:[#allocation146_spill] sm:$0xff] %v14469_v50  ;;  %v14474_v56 = vcombine.high %v13751_v26, %v13751_v26  ;;  %v14478_v15 = vcombine.high %v13757_v46, %v13757_v46  ;;  %v1240_v63 = vshrl.u32 %v13699_v47, 16  ;;  %v1248_v23 = vshrl.u32 %v13674_v31, 16 }
 0x112   : > { %11715 = vmatpush3.bf16.msra.mxu1 %v12873_v62  ;;  %v1253_v18 = vshll.u32 %v13771_v58, 16  ;;  %v4393_v39 = vrot.slane %v4377_v45, %v13557_v8  ;;  %v4400_v21 = vrot.slane %v4378_v16, %v13557_v8  ;;  %v1257_v33 = vshrl.u32 %v13751_v26, 16 }
 0x113   : > { %11921 = vmatmul.mubr.bf16.gmra.mrb[20].mxu0 %v3981_v19  ;;  %v1232_v19 = vshrl.u32 %v13681_v34, 16  ;;  %18725 = vst [vmem:[#allocation147_spill] sm:$0xff] %v14474_v56  ;;  %18726 = vst [vmem:[#allocation148_spill] sm:$0xff] %v14478_v15  ;;  %v1245_v34 = vshll.u32 %v13674_v31, 16  ;;  %11716 = vmatprep.subr.bf16.mxu1 %v18617_v38  ;;  %v1262_v28 = vshll.u32 %v13757_v46, 16  ;;  %v4407_v62 = vrot.slane %v4379_v13, %v13557_v8 }
 0x114   : > { %11924 = vmatprep.mubr.msk.bf16.mxu0 %vm13283_vm0, %v18617_v38  ;;  %v14492_v47 = vsel %vm14347_vm5, %v1208_v1, %v1213_v43  ;;  %v14496_v31 = vsel %vm14347_vm5, %v1216_v29, %v1221_v0  ;;  %v14500_v58 = vcombine.high %v13760_v48, %v13760_v48  ;;  %v4425_v45 = vcombine.low %v14450_v12, %v14459_v40 }
 0x115   : > { %18727 = vst [vmem:[#allocation149_spill] sm:$0xff] %v14492_v47  ;;  %18728 = vst [vmem:[#allocation150_spill] sm:$0xff] %v14496_v31  ;;  %v4426_v16 = vcombine.low %v14463_v59, %v14469_v50  ;;  %v1265_v13 = vshrl.u32 %v13757_v46, 16  ;;  %v1270_v26 = vshll.u32 %v14474_v56, 16  ;;  %v14510_v1 = vsel %vm14347_vm5, %v1224_v10, %v1229_v55 }
 0x116   : > { %18729 = vst [vmem:[#allocation151_spill] sm:$0xff] %v14500_v58  ;;  %11717 = vmatpush3.bf16.msra.mxu1 %v12874_v44  ;;  %18730 = vst [vmem:[#allocation152_spill] sm:$0xff] %v14510_v1  ;;  %v14514_v43 = vsel %vm14347_vm5, %v1232_v19, %v1237_v27  ;;  %v1273_v29 = vshrl.u32 %v14474_v56, 16  ;;  %v1278_v0 = vshll.u32 %v14478_v15, 16  ;;  %v18732_v46 = vcombine.low %v14277_v20, %v14280_v54  ;;  %v12876_v27 = vld [vmem:[#allocation4 + $0x78] sm:$0xff]  }
 0x117   : > { %18731 = vst [vmem:[#allocation153_spill] sm:$0xff] %v14514_v43  ;;  %11718 = vmatprep.subr.bf16.mxu1 %v18617_v38  ;;  %v1281_v44 = vshrl.u32 %v14478_v15, 16  ;;  %v1286_v50 = vshll.u32 %v13760_v48, 16  ;;  %v1289_v10 = vshrl.u32 %v13760_v48, 16  ;;  %v1294_v55 = vshll.u32 %v13767_v52, 16 }
 0x118   : > { %v18733_v19 = vcombine.low %v14335_v35, %v14338_v30  ;;  %v1297_v54 = vshrl.u32 %v13767_v52, 16  ;;  %v1302_v20 = vshll.u32 %v14500_v58, 16  ;;  %v4427_v15 = vcombine.low %v14492_v47, %v14496_v31 }
 0x119   : > { %v4428_v48 = vcombine.low %v14510_v1, %v14514_v43  ;;  %v4435_v40 = vrot.slane %v4425_v45, %v13557_v8  ;;  %v4442_v59 = vrot.slane %v4426_v16, %v13557_v8  ;;  %v4408_v35 = vcombine.low %v14443_v9, %v4393_v39 }
 0x11a   : > { %v14532_v56 = vrot.slane %v18733_v19, %v13557_v8  ;;  %11719 = vmatpush3.bf16.msra.mxu1 %v12876_v27  ;;  %v4409_v19 = vcombine.low %v4400_v21, %v4407_v62  ;;  %v14552_v30 = vsel %vm14347_vm5, %v1248_v23, %v1253_v18  ;;  %v14557_v43 = vsel %vm14347_vm5, %v1257_v33, %v1262_v28 }
 0x11b   : > { %11925 = vmatmul.mubr.bf16.gmra.mrb[24].mxu0 %v18732_v46  ;;  %v14535_v46 = vrot.slane %v4049_v57, %v13557_v8  ;;  %v14548_v57 = vsel %vm14347_vm5, %v1240_v63, %v1245_v34  ;;  %18735 = vst [vmem:[#allocation155_spill] sm:$0xff] %v14552_v30  ;;  %11764 = vmatprep.subr.bf16.mxu1 %v18617_v38  ;;  %18736 = vst [vmem:[#allocation156_spill] sm:$0xff] %v14557_v43 }
 0x11c   : > { %11928 = vmatprep.mubr.msk.bf16.mxu0 %vm13283_vm0, %v18617_v38  ;;  %18734 = vst [vmem:[#allocation154_spill] sm:$0xff] %v14548_v57  ;;  %v14561_v45 = vsel %vm14347_vm5, %v1265_v13, %v1270_v26  ;;  %v14565_v21 = vsel %vm14347_vm5, %v1273_v29, %v1278_v0  ;;  %v14569_v9 = vcombine.high %v13767_v52, %v13767_v52  ;;  %v1305_v26 = vshrl.u32 %v14500_v58, 16  ;;  %v18747_v52 = vld [vmem:[#allocation54_spill] sm:$0xff]  ;;  %v18749_v58 = vld [vmem:[#allocation51_spill] sm:$0xff] }
 0x11d   : > { %18737 = vst [vmem:[#allocation157_spill] sm:$0xff] %v14561_v45  ;;  %18738 = vst [vmem:[#allocation158_spill] sm:$0xff] %v14565_v21  ;;  %v14573_v63 = vsel %vm14347_vm5, %v1281_v44, %v1286_v50  ;;  %v14577_v28 = vsel %vm14347_vm5, %v1289_v10, %v1294_v55  ;;  %v14581_v33 = vsel %vm14347_vm5, %v1297_v54, %v1302_v20  ;;  %v1321_v0 = vshrl.u32 %v13781_v5, 16  ;;  %v18744_v44 = vld [vmem:[#allocation57_spill] sm:$0xff]  ;;  %v18745_v10 = vld [vmem:[#allocation50_spill] sm:$0xff] }
 0x11e   : > { %18739 = vst [vmem:[#allocation159_spill] sm:$0xff] %v14569_v9  ;;  %18740 = vst [vmem:[#allocation160_spill] sm:$0xff] %v14573_v63  ;;  %v4449_v23 = vrot.slane %v4427_v15, %v13557_v8  ;;  %v4456_v18 = vrot.slane %v4428_v48, %v13557_v8  ;;  %v4457_v39 = vcombine.low %v4435_v40, %v4442_v59  ;;  %v1310_v59 = vshll.u32 %v14569_v9, 16 }
 0x11f   : > { %18741 = vst [vmem:[#allocation161_spill] sm:$0xff] %v14577_v28  ;;  %18742 = vst [vmem:[#allocation162_spill] sm:$0xff] %v14581_v33  ;;  %v14589_v50 = vrot.slane %v4408_v35, %v13557_v8  ;;  %v14592_v62 = vrot.slane %v4409_v19, %v13557_v8  ;;  %v4474_v20 = vcombine.low %v14548_v57, %v14552_v30  ;;  %v1318_v15 = vshll.u32 %v13781_v5, 16  ;;  %v18746_v35 = vld [vmem:[#allocation53_spill] sm:$0xff]  ;;  %v18753_v30 = vld [vmem:[#allocation68_spill] sm:$0xff] }
 0x120   : > { %v4475_v16 = vcombine.low %v14557_v43, %v14561_v45  ;;  %v18743_v13 = vcombine.low %v14292_v3, %v14301_v7  ;;  %v4476_v48 = vcombine.low %v14565_v21, %v14573_v63  ;;  %v4477_v40 = vcombine.low %v14577_v28, %v14581_v33  ;;  %v18750_v63 = vld [vmem:[#allocation65_spill] sm:$0xff]  ;;  %v18752_v21 = vld [vmem:[#allocation67_spill] sm:$0xff] }
 0x121   : > { %v1313_v29 = vshrl.u32 %v14569_v9, 16  ;;  %v1326_v7 = vshll.u32 %v18744_v44, 16  ;;  %v1330_v55 = vshrl.u32 %v18745_v10, 16  ;;  %v4458_v27 = vcombine.low %v4449_v23, %v4456_v18  ;;  %v18748_v23 = vld [vmem:[#allocation56_spill] sm:$0xff]  ;;  %v18751_v28 = vld [vmem:[#allocation61_spill] sm:$0xff] }
 0x122   : > { %v14614_v54 = vrot.slane %v4457_v39, %v13557_v8  ;;  %v1335_v19 = vshll.u32 %v18746_v35, 16  ;;  %v4484_v34 = vrot.slane %v4474_v20, %v13557_v8  ;;  %v4491_v3 = vrot.slane %v4475_v16, %v13557_v8 }
 0x123   : > { %11929 = vmatmul.mubr.bf16.gmra.mrb[28].mxu0 %v18743_v13  ;;  %v1338_v13 = vshrl.u32 %v18746_v35, 16  ;;  %v1343_v9 = vshll.u32 %v18747_v52, 16  ;;  %v1346_v5 = vshrl.u32 %v18747_v52, 16  ;;  %v4498_v44 = vrot.slane %v4476_v48, %v13557_v8 }
 0x124   : > { %11932 = vmatprep.mubr.msk.bf16.mxu0 %vm13283_vm0, %v18617_v38  ;;  %v4505_v10 = vrot.slane %v4477_v40, %v13557_v8  ;;  %v1351_v18 = vshll.u32 %v18748_v23, 16  ;;  %v1354_v39 = vshrl.u32 %v18748_v23, 16  ;;  %v1359_v33 = vshll.u32 %v18749_v58, 16  ;;  %v18755_v23 = vld [vmem:[#allocation71_spill] sm:$0xff] }
 0x125   : > { %v1362_v35 = vshrl.u32 %v18749_v58, 16  ;;  %v1367_v20 = vshll.u32 %v18750_v63, 16  ;;  %v1370_v16 = vshrl.u32 %v18750_v63, 16  ;;  %v1375_v45 = vshll.u32 %v18751_v28, 16  ;;  %v18757_v58 = vld [vmem:[#allocation66_spill] sm:$0xff] }
 0x126   : > { %v1378_v52 = vshrl.u32 %v18751_v28, 16  ;;  %v1383_v48 = vshll.u32 %v18752_v21, 16  ;;  %v1386_v40 = vshrl.u32 %v18752_v21, 16  ;;  %v14636_v43 = vcombine.high %v18753_v30, %v18753_v30 }
 0x127   : > { %v14640_v57 = vcombine.high %v18755_v23, %v18755_v23  ;;  %v1391_v31 = vshll.u32 %v18757_v58, 16  ;;  %v1394_v63 = vshrl.u32 %v18757_v58, 16  ;;  %v14646_v28 = vrot.slane %v4458_v27, %v13557_v8 }
 0x128   : > { %18754 = vst [vmem:[#allocation54_spill] sm:$0xff] %v14636_v43  ;;  %v4506_v1 = vcombine.low %v4484_v34, %v4491_v3  ;;  %v14650_v21 = vsel %vm14347_vm5, %v1305_v26, %v1310_v59  ;;  %v14654_v47 = vsel %vm14347_vm5, %v1313_v29, %v1318_v15  ;;  %v4507_v22 = vcombine.low %v4498_v44, %v4505_v10  ;;  %v18763_v15 = vld [vmem:[#allocation79_spill] sm:$0xff]  ;;  %v18765_v10 = vld [vmem:[#allocation80_spill] sm:$0xff] }
 0x129   : > { %18756 = vst [vmem:[#allocation56_spill] sm:$0xff] %v14640_v57  ;;  %18758 = vst [vmem:[#allocation61_spill] sm:$0xff] %v14650_v21  ;;  %v14660_v58 = vsel %vm14347_vm5, %v1321_v0, %v1326_v7  ;;  %v1403_v3 = vshrl.u32 %v18753_v30, 16  ;;  %v14666_v26 = vsel %vm14347_vm5, %v1330_v55, %v1335_v19  ;;  %v1408_v34 = vshll.u32 %v18755_v23, 16 }
 0x12a   : > { %18759 = vst [vmem:[#allocation67_spill] sm:$0xff] %v14654_v47  ;;  %18760 = vst [vmem:[#allocation163_spill] sm:$0xff] %v14660_v58  ;;  %v1411_v59 = vshrl.u32 %v18755_v23, 16  ;;  %v14672_v29 = vcombine.high %v18763_v15, %v18763_v15  ;;  %v1416_v44 = vshll.u32 %v14636_v43, 16  ;;  %v1419_v0 = vshrl.u32 %v14636_v43, 16 }
 0x12b   : > { %11933 = vmatmul.mubr.bf16.gmra.mrb[32].mxu0 %v14415_v42  ;;  %v18761_v42 = vld [vmem:[#allocation69_spill] sm:$0xff]  ;;  %18762 = vst [vmem:[#allocation164_spill] sm:$0xff] %v14666_v26  ;;  %v1424_v7 = vshll.u32 %v14640_v57, 16  ;;  %v14679_v30 = vcombine.high %v18765_v10, %v18765_v10  ;;  %v14683_v55 = vsel %vm14347_vm5, %v1338_v13, %v1343_v9  ;;  %v4523_v19 = vcombine.low %v14650_v21, %v14654_v47 }
 0x12c   : > { %11936 = vmatprep.mubr.msk.bf16.mxu0 %vm13283_vm0, %v18617_v38  ;;  %v1399_v27 = vshll.u32 %v18761_v42, 16  ;;  %18764 = vst [vmem:[#allocation165_spill] sm:$0xff] %v14672_v29  ;;  %v1427_v42 = vshrl.u32 %v14640_v57, 16  ;;  %v1432_v23 = vshll.u32 %v18763_v15, 16  ;;  %v14691_v43 = vsel %vm14347_vm5, %v1346_v5, %v1351_v18 }
 0x12d   : > { %18766 = vst [vmem:[#allocation166_spill] sm:$0xff] %v14679_v30  ;;  %v14695_v12 = vsel %vm14347_vm5, %v1354_v39, %v1359_v33  ;;  %v1435_v2 = vshrl.u32 %v18763_v15, 16  ;;  %v1440_v9 = vshll.u32 %v18765_v10, 16  ;;  %v14701_v13 = vsel %vm14347_vm5, %v1362_v35, %v1367_v20  ;;  %v18768_v15 = vld [vmem:[#allocation81_spill] sm:$0xff] }
 0x12e   : > { %18767 = vst [vmem:[#allocation167_spill] sm:$0xff] %v14701_v13  ;;  %v4524_v57 = vcombine.low %v14660_v58, %v14666_v26  ;;  %v1443_v47 = vshrl.u32 %v18765_v10, 16  ;;  %v1448_v5 = vshll.u32 %v14672_v29, 16  ;;  %v1451_v18 = vshrl.u32 %v14672_v29, 16 }
 0x12f   : > { %v1456_v33 = vshll.u32 %v14679_v30, 16  ;;  %v1459_v39 = vshrl.u32 %v14679_v30, 16  ;;  %v1464_v21 = vshll.u32 %v18768_v15, 16  ;;  %v18769_v53 = vcombine.low %v14532_v56, %v14535_v46  ;;  %v18770_v56 = vld [vmem:[#allocation77_spill] sm:$0xff]  ;;  %v18771_v46 = vld [vmem:[#allocation82_spill] sm:$0xff] }
 0x130   : > { %v14715_v35 = vrot.slane %v4506_v1, %v13557_v8  ;;  %v14718_v20 = vrot.slane %v4507_v22, %v13557_v8  ;;  %v1467_v10 = vshrl.u32 %v18768_v15, 16  ;;  %v1472_v29 = vshll.u32 %v14243_v17, 16 }
 0x131   : > { %v4525_v30 = vcombine.low %v14683_v55, %v14691_v43  ;;  %v4533_v26 = vrot.slane %v4523_v19, %v13557_v8  ;;  %v1481_v1 = vshll.u32 %v18771_v46, 16  ;;  %v4526_v22 = vcombine.low %v14695_v12, %v14701_v13 }
 0x132   : > { %v4540_v58 = vrot.slane %v4524_v57, %v13557_v8  ;;  %v14734_v17 = vsel %vm14347_vm5, %v1370_v16, %v1375_v45  ;;  %v14738_v15 = vsel %vm14347_vm5, %v1378_v52, %v1383_v48  ;;  %v14742_v19 = vsel %vm14347_vm5, %v1386_v40, %v1391_v31 }
 0x133   : > { %11937 = vmatmul.mubr.bf16.gmra.mrb[36].mxu0 %v18769_v53  ;;  %v1476_v53 = vshrl.u32 %v18770_v56, 16  ;;  %v14746_v56 = vsel %vm14347_vm5, %v1394_v63, %v1399_v27  ;;  %v14750_v13 = vsel %vm14347_vm5, %v1403_v3, %v1408_v34  ;;  %v14754_v57 = vsel %vm14347_vm5, %v1411_v59, %v1416_v44  ;;  %v18775_v63 = vld [vmem:[#allocation83_spill] sm:$0xff]  ;;  %v18778_v3 = vld [vmem:[#allocation92_spill] sm:$0xff] }
 0x134   : > { %11940 = vmatprep.mubr.msk.bf16.mxu0 %vm13283_vm0, %v18617_v38  ;;  %18772 = vst [vmem:[#allocation168_spill] sm:$0xff] %v14754_v57  ;;  %v14758_v45 = vsel %vm14347_vm5, %v1419_v0, %v1424_v7  ;;  %v14762_v31 = vsel %vm14347_vm5, %v1427_v42, %v1432_v23  ;;  %v1484_v16 = vshrl.u32 %v18771_v46, 16  ;;  %v1489_v52 = vshll.u32 %v18775_v63, 16  ;;  %v18789_v46 = vld [vmem:[#allocation98_spill] sm:$0xff] }
 0x135   : > { %18773 = vst [vmem:[#allocation169_spill] sm:$0xff] %v14758_v45  ;;  %18774 = vst [vmem:[#allocation170_spill] sm:$0xff] %v14762_v31  ;;  %v14768_v48 = vsel %vm14347_vm5, %v1435_v2, %v1440_v9  ;;  %v14772_v40 = vsel %vm14347_vm5, %v1443_v47, %v1448_v5  ;;  %v1492_v27 = vshrl.u32 %v18775_v63, 16  ;;  %v1497_v34 = vshll.u32 %v18778_v3, 16 }
 0x136   : > { %18776 = vst [vmem:[#allocation83_spill] sm:$0xff] %v14768_v48  ;;  %18777 = vst [vmem:[#allocation171_spill] sm:$0xff] %v14772_v40  ;;  %v4572_v42 = vcombine.low %v14734_v17, %v14738_v15  ;;  %v4573_v23 = vcombine.low %v14742_v19, %v14746_v56  ;;  %v14782_v59 = vsel %vm14347_vm5, %v1451_v18, %v1456_v33 }
 0x137   : > { %18779 = vst [vmem:[#allocation92_spill] sm:$0xff] %v14782_v59  ;;  %v14786_v2 = vsel %vm14347_vm5, %v1459_v39, %v1464_v21  ;;  %v4547_v47 = vrot.slane %v4525_v30, %v13557_v8  ;;  %v4554_v44 = vrot.slane %v4526_v22, %v13557_v8  ;;  %v4555_v0 = vcombine.low %v4533_v26, %v4540_v58 }
 0x138   : > { %18780 = vst [vmem:[#allocation172_spill] sm:$0xff] %v14786_v2  ;;  %v4574_v7 = vcombine.low %v14750_v13, %v14754_v57  ;;  %v4575_v9 = vcombine.low %v14758_v45, %v14762_v31  ;;  %v14797_v5 = vsel %vm14347_vm5, %v1467_v10, %v1472_v29  ;;  %v14801_v21 = vsel %vm14347_vm5, %v1476_v53, %v1481_v1  ;;  %v18785_v29 = vld [vmem:[#allocation84_spill] sm:$0xff]  ;;  %v18786_v53 = vld [vmem:[#allocation85_spill] sm:$0xff]  ;;  %v18823_v31 = vld [vmem:[#allocation127_spill] sm:$0xff] }
 0x139   : > { %18781 = vst [vmem:[#allocation173_spill] sm:$0xff] %v14797_v5  ;;  %18782 = vst [vmem:[#allocation174_spill] sm:$0xff] %v14801_v21  ;;  %v4621_v30 = vcombine.low %v14768_v48, %v14772_v40  ;;  %v14809_v58 = vsel %vm14347_vm5, %v1484_v16, %v1489_v52  ;;  %v4622_v26 = vcombine.low %v14782_v59, %v14786_v2  ;;  %v1500_v39 = vshrl.u32 %v18778_v3, 16  ;;  %v12860_v16 = vld [vmem:[#allocation4 + $0x140] sm:$0xff]   ;;  %v12868_v59 = vld [vmem:[#allocation4 + $0x170] sm:$0xff]  }
 0x13a   : > { %18783 = vst [vmem:[#allocation175_spill] sm:$0xff] %v14809_v58  ;;  %v998_v10 = vcombine.high %v18785_v29, %v18785_v29  ;;  %v4582_v18 = vrot.slane %v4572_v42, %v13557_v8  ;;  %v4589_v33 = vrot.slane %v4573_v23, %v13557_v8  ;;  %v1505_v1 = vshll.u32 %v18786_v53, 16  ;;  %v18792_v2 = vld [vmem:[#allocation96_spill] sm:$0xff]  ;;  %v18836_v57 = vld [vmem:[#allocation15_spill] sm:$0xff] }
 0x13b   : > { %11941 = vmatmul.mubr.bf16.gmra.mrb[40].mxu0 %v14430_v11  ;;  %v14813_v11 = vsel %vm14347_vm5, %v1492_v27, %v1497_v34  ;;  %v4424_v22 = vcombine.low %v14589_v50, %v14592_v62  ;;  %v4473_v63 = vcombine.low %v14614_v54, %v14646_v28  ;;  %v1508_v52 = vshrl.u32 %v18786_v53, 16  ;;  %v18787_v27 = vld [vmem:[#allocation87_spill] sm:$0xff] }
 0x13c   : > { %11960 = vmatprep.mubr.msk.bf16.mxu0 %vm13283_vm0, %v18617_v38  ;;  %18784 = vst [vmem:[#allocation176_spill] sm:$0xff] %v14813_v11  ;;  %v1513_v34 = vshll.u32 %v18787_v27, 16  ;;  %v4596_v23 = vrot.slane %v4574_v7, %v13557_v8  ;;  %v4623_v3 = vcombine.low %v14797_v5, %v14801_v21  ;;  %v4624_v29 = vcombine.low %v14809_v58, %v14813_v11  ;;  %v18791_v58 = vld [vmem:[#allocation93_spill] sm:$0xff] }
 0x13d   : > { %v4603_v50 = vrot.slane %v4575_v9, %v13557_v8  ;;  %v4631_v62 = vrot.slane %v4621_v30, %v13557_v8  ;;  %v4638_v54 = vrot.slane %v4622_v26, %v13557_v8  ;;  %v14840_v28 = vrot.slane %v998_v10, %v13557_v8  ;;  %v12861_v10 = vld [vmem:[#allocation4 + $0x148] sm:$0xff]  }
 0x13e   : > { %v4556_v53 = vcombine.low %v4547_v47, %v4554_v44  ;;  %v14843_v42 = vrot.slane %v4555_v0, %v13557_v8  ;;  %v4604_v7 = vcombine.low %v4582_v18, %v4589_v33  ;;  %v14847_v21 = vcombine.high %v18789_v46, %v18789_v46  ;;  %v18793_v18 = vld [vmem:[#allocation97_spill] sm:$0xff] }
 0x13f   : > { %18788 = vst [vmem:[#allocation84_spill] sm:$0xff] %v14840_v28  ;;  %v1516_v11 = vshrl.u32 %v18787_v27, 16  ;;  %v1521_v9 = vshll.u32 %v18791_v58, 16  ;;  %v1524_v30 = vshrl.u32 %v18791_v58, 16  ;;  %v1529_v26 = vshll.u32 %v18792_v2, 16 }
 0x140   : > { %18790 = vst [vmem:[#allocation177_spill] sm:$0xff] %v14847_v21  ;;  %v4645_v47 = vrot.slane %v4623_v3, %v13557_v8  ;;  %v4652_v44 = vrot.slane %v4624_v29, %v13557_v8  ;;  %v1532_v0 = vshrl.u32 %v18792_v2, 16  ;;  %v1537_v33 = vshll.u32 %v18793_v18, 16  ;;  %v18796_v3 = vld [vmem:[#allocation99_spill] sm:$0xff] }
 0x141   : > { %v4605_v27 = vcombine.low %v4596_v23, %v4603_v50  ;;  %v4653_v5 = vcombine.low %v4631_v62, %v4638_v54  ;;  %v1540_v58 = vshrl.u32 %v18793_v18, 16  ;;  %v1545_v40 = vshll.u32 %v14840_v28, 16  ;;  %v12864_v28 = vld [vmem:[#allocation4 + $0x160] sm:$0xff]  }
 0x142   : > { %v14868_v2 = vsel %vm14347_vm5, %v1508_v52, %v1513_v34  ;;  %v1554_v29 = vshll.u32 %v18796_v3, 16  ;;  %v14874_v23 = vsel %vm14347_vm5, %v1516_v11, %v1521_v9  ;;  %v14878_v50 = vsel %vm14347_vm5, %v1524_v30, %v1529_v26  ;;  %v12862_v11 = vld [vmem:[#allocation4 + $0x150] sm:$0xff]  }
 0x143   : > { %11961 = vmatmul.mubr.bf16.vlgmr.msra.gmra.mrb[0].mxu0 %v4424_v22  ;;  %v14864_v22 = vsel %vm14347_vm5, %v1500_v39, %v1505_v1  ;;  %18795 = vst [vmem:[#allocation96_spill] sm:$0xff] %v14868_v2  ;;  %18797 = vst [vmem:[#allocation178_spill] sm:$0xff] %v14874_v23  ;;  %v1557_v62 = vshrl.u32 %v18796_v3, 16  ;;  %v1562_v39 = vshll.u32 %v14847_v21, 16  ;;  %v14883_v1 = vrot.slane %v4556_v53, %v13557_v8 }
 0x144   : > { %12005 = vmatpush3.bf16.msra.mxu0 %v12860_v16  ;;  %11964 = vmatprep.mubr.msk.bf16.mxu0 %vm13283_vm0, %v18617_v38  ;;  %18794 = vst [vmem:[#allocation93_spill] sm:$0xff] %v14864_v22  ;;  %v1549_v16 = vshrl.u32 %v18789_v46, 16  ;;  %18798 = vst [vmem:[#allocation179_spill] sm:$0xff] %v14878_v50  ;;  %v14886_v52 = vrot.slane %v4604_v7, %v13557_v8  ;;  %v4654_v34 = vcombine.low %v4645_v47, %v4652_v44  ;;  %v18802_v7 = vld [vmem:[#allocation86_spill] sm:$0xff] }
 0x145   : > { %12006 = vmatprep.subr.bf16.mxu0 %v18617_v38  ;;  %v14890_v54 = vcombine.high %v18796_v3, %v18796_v3  ;;  %v14894_v9 = vsel %vm14347_vm5, %v1532_v0, %v1537_v33  ;;  %v14898_v30 = vsel %vm14347_vm5, %v1540_v58, %v1545_v40  ;;  %v4670_v53 = vcombine.low %v14864_v22, %v14868_v2  ;;  %v12863_v0 = vld [vmem:[#allocation4 + $0x158] sm:$0xff]  }
 0x146   : > { %18800 = vst [vmem:[#allocation181_spill] sm:$0xff] %v14894_v9  ;;  %18801 = vst [vmem:[#allocation182_spill] sm:$0xff] %v14898_v30  ;;  %v1006_v26 = vcombine.high %v18802_v7, %v18802_v7  ;;  %v14906_v47 = vrot.slane %v4605_v27, %v13557_v8  ;;  %v14913_v44 = vsel %vm14347_vm5, %v1549_v16, %v1554_v29  ;;  %v1565_v27 = vshrl.u32 %v14847_v21, 16 }
 0x147   : > { %18799 = vst [vmem:[#allocation180_spill] sm:$0xff] %v14890_v54  ;;  %18803 = vst [vmem:[#allocation86_spill] sm:$0xff] %v14913_v44  ;;  %v4671_v40 = vcombine.low %v14874_v23, %v14878_v50  ;;  %v14919_v33 = vsel %vm14347_vm5, %v1557_v62, %v1562_v39  ;;  %v14923_v58 = vcombine.high %v14108_v60, %v14108_v60  ;;  %v1570_v62 = vshll.u32 %v14890_v54, 16 }
 0x148   : > { %12007 = vmatpush3.bf16.msra.mxu0 %v12861_v10  ;;  %v14909_v10 = vrot.slane %v4653_v5, %v13557_v8  ;;  %18804 = vst [vmem:[#allocation183_spill] sm:$0xff] %v14919_v33  ;;  %v14927_v5 = vcombine.high %v14111_v25, %v14111_v25  ;;  %v14931_v16 = vrot.slane %v4654_v34, %v13557_v8  ;;  %v1573_v39 = vshrl.u32 %v14890_v54, 16 }
 0x149   : > { %12008 = vmatprep.subr.bf16.mxu0 %v18617_v38  ;;  %18805 = vst [vmem:[#allocation184_spill] sm:$0xff] %v14923_v58  ;;  %v4672_v29 = vcombine.low %v14894_v9, %v14898_v30  ;;  %v14940_v7 = vrot.slane %v4670_v53, %v13557_v8  ;;  %v14943_v46 = vrot.slane %v1006_v26, %v13557_v8  ;;  %v1581_v34 = vshrl.u32 %v14108_v60, 16  ;;  %v18808_v9 = vld [vmem:[#allocation89_spill] sm:$0xff] }
 0x14a   : > { %18806 = vst [vmem:[#allocation185_spill] sm:$0xff] %v14927_v5  ;;  %v4673_v18 = vcombine.low %v14913_v44, %v14919_v33  ;;  %v14951_v54 = vrot.slane %v4671_v40, %v13557_v8  ;;  %v1589_v53 = vshrl.u32 %v14111_v25, 16  ;;  %v1594_v26 = vshll.u32 %v14923_v58, 16 }
 0x14b   : > { %11965 = vmatmul.mubr.bf16.gmra.mrb[4].mxu0 %v4473_v63  ;;  %18807 = vst [vmem:[#allocation186_spill] sm:$0xff] %v14943_v46  ;;  %v1578_v63 = vshll.u32 %v14108_v60, 16  ;;  %v1597_v3 = vshrl.u32 %v14923_v58, 16  ;;  %v1602_v21 = vshll.u32 %v14927_v5, 16  ;;  %v1605_v60 = vshrl.u32 %v14927_v5, 16 }
 0x14c   : > { %11968 = vmatprep.mubr.msk.bf16.mxu0 %vm13283_vm0, %v18617_v38  ;;  %12009 = vmatpush3.bf16.msra.mxu0 %v12862_v11  ;;  %v1586_v11 = vshll.u32 %v14111_v25, 16  ;;  %v4571_v30 = vcombine.low %v14843_v42, %v14883_v1  ;;  %v1610_v33 = vshll.u32 %v14117_v51, 16  ;;  %v1613_v44 = vshrl.u32 %v14117_v51, 16 }
 0x14d   : > { %12010 = vmatprep.subr.bf16.mxu0 %v18617_v38  ;;  %v1618_v58 = vshll.u32 %v14943_v46, 16  ;;  %v1622_v50 = vshrl.u32 %v14094_v41, 16  ;;  %v1014_v5 = vcombine.high %v18808_v9, %v18808_v9  ;;  %v14973_v42 = vrot.slane %v4672_v29, %v13557_v8  ;;  %v12865_v9 = vld [vmem:[#allocation4 + $0x168] sm:$0xff]   ;;  %v18810_v46 = vld [vmem:[#allocation106_spill] sm:$0xff] }
 0x14e   : > { %v4702_v1 = vcombine.low %v14940_v7, %v14951_v54  ;;  %v1630_v40 = vshrl.u32 %v14076_v24, 16  ;;  %v14980_v25 = vrot.slane %v4673_v18, %v13557_v8  ;;  %v14984_v41 = vsel %vm14347_vm5, %v1565_v27, %v1570_v62 }
 0x14f   : > { %18809 = vst [vmem:[#allocation89_spill] sm:$0xff] %v14984_v41  ;;  %v1635_v51 = vshll.u32 %v18810_v46, 16  ;;  %v1638_v29 = vshrl.u32 %v18810_v46, 16  ;;  %v18811_v2 = vcombine.low %v14715_v35, %v14718_v20  ;;  %v1643_v54 = vshll.u32 %v14125_v37, 16  ;;  %v18815_v35 = vld [vmem:[#allocation102_spill] sm:$0xff] }
 0x150   : > { %12011 = vmatpush3.bf16.msra.mxu0 %v12863_v0  ;;  %v1627_v0 = vshll.u32 %v14076_v24, 16  ;;  %v1646_v7 = vshrl.u32 %v14125_v37, 16  ;;  %v18812_v24 = vld [vmem:[#allocation101_spill] sm:$0xff]  ;;  %v14999_v27 = vsel %vm14347_vm5, %v1573_v39, %v1578_v63  ;;  %v15002_v46 = vrot.slane %v1014_v5, %v13557_v8  ;;  %v18818_v63 = vld [vmem:[#allocation107_spill] sm:$0xff] }
 0x151   : > { %12012 = vmatprep.subr.bf16.mxu0 %v18617_v38  ;;  %v1651_v18 = vshll.u32 %v18812_v24, 16  ;;  %v1654_v23 = vshrl.u32 %v18812_v24, 16  ;;  %18813 = vst [vmem:[#allocation106_spill] sm:$0xff] %v14999_v27  ;;  %v1659_v20 = vshll.u32 %v18815_v35, 16  ;;  %v15009_v37 = vsel %vm14347_vm5, %v1581_v34, %v1586_v11  ;;  %v18819_v11 = vld [vmem:[#allocation123_spill] sm:$0xff] }
 0x152   : > { %18814 = vst [vmem:[#allocation187_spill] sm:$0xff] %v15002_v46  ;;  %18816 = vst [vmem:[#allocation188_spill] sm:$0xff] %v15009_v37  ;;  %v15017_v62 = vsel %vm14347_vm5, %v1597_v3, %v1602_v21  ;;  %v15021_v5 = vsel %vm14347_vm5, %v1605_v60, %v1610_v33  ;;  %v15025_v39 = vsel %vm14347_vm5, %v1613_v44, %v1618_v58  ;;  %v1667_v24 = vshll.u32 %v18818_v63, 16  ;;  %v18820_v3 = vld [vmem:[#allocation108_spill] sm:$0xff]  ;;  %v18822_v44 = vld [vmem:[#allocation109_spill] sm:$0xff] }
 0x153   : > { %11969 = vmatmul.mubr.bf16.gmra.mrb[8].mxu0 %v18811_v2  ;;  %v1662_v2 = vshrl.u32 %v18815_v35, 16  ;;  %v1670_v34 = vshrl.u32 %v18818_v63, 16  ;;  %v4719_v21 = vcombine.low %v14984_v41, %v14999_v27  ;;  %v1678_v60 = vshrl.u32 %v18820_v3, 16  ;;  %v18821_v33 = vld [vmem:[#allocation124_spill] sm:$0xff] }
 0x154   : > { %11972 = vmatprep.mubr.msk.bf16.mxu0 %vm13283_vm0, %v18617_v38  ;;  %12013 = vmatpush3.bf16.msra.mxu0 %v12864_v28  ;;  %v15013_v28 = vsel %vm14347_vm5, %v1589_v53, %v1594_v26  ;;  %v15031_v53 = vcombine.high %v18819_v11, %v18819_v11  ;;  %v1675_v26 = vshll.u32 %v18820_v3, 16  ;;  %v15039_v35 = vcombine.high %v18821_v33, %v18821_v33 }
 0x155   : > { %12014 = vmatprep.subr.bf16.mxu0 %v18617_v38  ;;  %18817 = vst [vmem:[#allocation189_spill] sm:$0xff] %v15013_v28  ;;  %v1683_v58 = vshll.u32 %v18822_v44, 16  ;;  %v1686_v63 = vshrl.u32 %v18822_v44, 16  ;;  %v1691_v22 = vshll.u32 %v15002_v46, 16  ;;  %v15046_v48 = vcombine.high %v18823_v31, %v18823_v31  ;;  %v12871_v44 = vld [vmem:[#allocation4 + $0x178] sm:$0xff]  }
 0x156   : > { %v15050_v27 = vsel %vm14347_vm5, %v1622_v50, %v1627_v0  ;;  %v4720_v3 = vcombine.low %v15009_v37, %v15013_v28  ;;  %v4703_v46 = vcombine.low %v14973_v42, %v14980_v25  ;;  %v15060_v41 = vrot.slane %v4702_v1, %v13557_v8 }
 0x157   : > { %18824 = vst [vmem:[#allocation107_spill] sm:$0xff] %v15046_v48  ;;  %v4721_v25 = vcombine.low %v15017_v62, %v15021_v5  ;;  %v4722_v42 = vcombine.low %v15025_v39, %v15050_v27  ;;  %v4343_v1 = vshrl.u32 %v15046_v48, 16  ;;  %v15077_v0 = vrot.slane %v4719_v21, %v13557_v8 }
 0x158   : > { %12015 = vmatpush3.bf16.msra.mxu0 %v12865_v9  ;;  %v18825_v9 = vld [vmem:[#allocation126_spill] sm:$0xff]  ;;  %v15080_v37 = vrot.slane %v4720_v3, %v13557_v8  ;;  %v15084_v45 = vsel %vm14347_vm5, %v1630_v40, %v1635_v51  ;;  %v15088_v28 = vsel %vm14347_vm5, %v1638_v29, %v1643_v54  ;;  %v15097_v21 = vsel %vm14347_vm5, %v1654_v23, %v1659_v20  ;;  %v18829_v51 = vld [vmem:[#allocation121_spill] sm:$0xff] }
 0x159   : > { %12016 = vmatprep.subr.bf16.mxu0 %v18617_v38  ;;  %18826 = vst [vmem:[#allocation123_spill] sm:$0xff] %v15088_v28  ;;  %18827 = vst [vmem:[#allocation108_spill] sm:$0xff] %v15097_v21  ;;  %v15101_v3 = vsel %vm14347_vm5, %v1662_v2, %v1667_v24  ;;  %v4278_v40 = vcombine.high %v18829_v51, %v18829_v51  ;;  %v15107_v29 = vsel %vm14347_vm5, %v1670_v34, %v1675_v26 }
 0x15a   : > { %18828 = vst [vmem:[#allocation124_spill] sm:$0xff] %v15101_v3  ;;  %18830 = vst [vmem:[#allocation127_spill] sm:$0xff] %v15107_v29  ;;  %v15111_v54 = vcombine.high %v18825_v9, %v18825_v9  ;;  %v4351_v23 = vshrl.u32 %v14323_v4, 16  ;;  %v15119_v24 = vrot.slane %v4721_v25, %v13557_v8  ;;  %v15122_v20 = vrot.slane %v4722_v42, %v13557_v8 }
 0x15b   : > { %11973 = vmatmul.mubr.bf16.gmra.mrb[12].mxu0 %v4571_v30  ;;  %v15125_v2 = vrot.slane %v4278_v40, %v13557_v8  ;;  %v4751_v34 = vcombine.low %v15077_v0, %v15080_v37  ;;  %v15131_v26 = vsel %vm14347_vm5, %v1678_v60, %v1683_v58  ;;  %v4770_v42 = vcombine.low %v15101_v3, %v15107_v29  ;;  %v18835_v40 = vld [vmem:[#allocation13_spill] sm:$0xff] }
 0x15c   : > { %11976 = vmatprep.mubr.msk.bf16.mxu0 %vm13283_vm0, %v18617_v38  ;;  %12017 = vmatpush3.bf16.msra.mxu0 %v12868_v59  ;;  %v15093_v59 = vsel %vm14347_vm5, %v1646_v7, %v1651_v18  ;;  %v4348_v7 = vshll.u32 %v14323_v4, 16  ;;  %v15116_v18 = vrot.slane %v4703_v46, %v13557_v8  ;;  %18832 = vst [vmem:[#allocation121_spill] sm:$0xff] %v15131_v26  ;;  %v1038_v30 = vshrl.u32 %v18835_v40, 16  ;;  %v18840_v4 = vld [vmem:[#allocation20_spill] sm:$0xff] }
 0x15d   : > { %12018 = vmatprep.subr.bf16.mxu0 %v18617_v38  ;;  %18831 = vst [vmem:[#allocation126_spill] sm:$0xff] %v15125_v2  ;;  %v4768_v46 = vcombine.low %v15084_v45, %v15088_v28  ;;  %v4769_v25 = vcombine.low %v15093_v59, %v15097_v21  ;;  %v4356_v60 = vshll.u32 %v15125_v2, 16  ;;  %v18834_v58 = vcombine.low %v14886_v52, %v14906_v47  ;;  %v18839_v47 = vld [vmem:[#allocation16_spill] sm:$0xff] }
 0x15e   : > { %v1046_v52 = vshrl.u32 %v18836_v57, 16  ;;  %v4752_v0 = vcombine.low %v15119_v24, %v15122_v20  ;;  %v1054_v2 = vshrl.u32 %v18839_v47, 16  ;;  %v4340_v24 = vshll.u32 %v15046_v48, 16 }
 0x15f   : > { %v15161_v37 = vsel %vm14347_vm5, %v4351_v23, %v4356_v60  ;;  %v15170_v50 = vrot.slane %v4768_v46, %v13557_v8  ;;  %v15178_v23 = vrot.slane %v4770_v42, %v13557_v8  ;;  %v4335_v60 = vshrl.u32 %v15111_v54, 16 }
 0x160   : > { %12019 = vmatpush3.bf16.msra.mxu0 %v12871_v44  ;;  %v15140_v44 = vsel %vm14347_vm5, %v1686_v63, %v1691_v22  ;;  %v1043_v22 = vshll.u32 %v18836_v57, 16  ;;  %v15157_v63 = vsel %vm14347_vm5, %v4343_v1, %v4348_v7  ;;  %18838 = vst [vmem:[#allocation192_spill] sm:$0xff] %v15161_v37  ;;  %v15175_v7 = vrot.slane %v4769_v25, %v13557_v8  ;;  %v18842_v57 = vld [vmem:[#allocation17_spill] sm:$0xff] }
 0x161   : > { %12064 = vmatprep.subr.bf16.mxu0 %v18617_v38  ;;  %18833 = vst [vmem:[#allocation190_spill] sm:$0xff] %v15140_v44  ;;  %18837 = vst [vmem:[#allocation191_spill] sm:$0xff] %v15157_v63  ;;  %v4771_v51 = vcombine.low %v15131_v26, %v15140_v44  ;;  %v1059_v1 = vshll.u32 %v18840_v4, 16  ;;  %v1062_v25 = vshrl.u32 %v18840_v4, 16  ;;  %v18841_v44 = vld [vmem:[#allocation14_spill] sm:$0xff]  ;;  %v1075_v29 = vshll.u32 %v18842_v57, 16 }
 0x162   : > { %v1045_v20 = vsel %vm14347_vm5, %v1038_v30, %v1043_v22  ;;  %v1067_v40 = vshll.u32 %v18841_v44, 16  ;;  %v1070_v42 = vshrl.u32 %v18841_v44, 16  ;;  %v1078_v30 = vshrl.u32 %v18842_v57, 16  ;;  %v18843_v22 = vld [vmem:[#allocation18_spill] sm:$0xff]  ;;  %v18846_v57 = vld [vmem:[#allocation19_spill] sm:$0xff] }
 0x163   : > { %11977 = vmatmul.mubr.bf16.gmra.mrb[16].mxu0 %v18834_v58  ;;  %v1051_v58 = vshll.u32 %v18839_v47, 16  ;;  %v4799_v47 = vrot.slane %v4771_v51, %v13557_v8  ;;  %v1061_v48 = vsel %vm14347_vm5, %v1054_v2, %v1059_v1  ;;  %v1083_v26 = vshll.u32 %v18843_v22, 16  ;;  %v18844_v44 = vld [vmem:[#allocation22_spill] sm:$0xff] }
 0x164   : > { %11980 = vmatprep.mubr.msk.bf16.mxu0 %vm13283_vm0, %v18617_v38  ;;  %v1077_v4 = vsel %vm14347_vm5, %v1070_v42, %v1075_v29  ;;  %v1091_v21 = vshll.u32 %v18844_v44, 16  ;;  %v18845_v51 = vcombine.low %v14909_v10, %v14931_v16  ;;  %v1094_v1 = vshrl.u32 %v18844_v44, 16 }
 0x165   : > { %v1053_v46 = vsel %vm14347_vm5, %v1046_v52, %v1051_v58  ;;  %v1069_v52 = vsel %vm14347_vm5, %v1062_v25, %v1067_v40  ;;  %v1086_v58 = vshrl.u32 %v18843_v22, 16  ;;  %v1085_v2 = vsel %vm14347_vm5, %v1078_v30, %v1083_v26 }
 0x166   : > { %v1099_v3 = vshll.u32 %v18846_v57, 16  ;;  %v1711_v28 = vcombine.low %v1045_v20, %v1053_v46  ;;  %v1712_v40 = vcombine.low %v1061_v48, %v1069_v52  ;;  %v1713_v25 = vcombine.low %v1077_v4, %v1085_v2 }
 0x167   : > { %v1093_v29 = vsel %vm14347_vm5, %v1086_v58, %v1091_v21  ;;  %v4718_v10 = vcombine.low %v15060_v41, %v15116_v18  ;;  %v4759_v44 = vrot.slane %v4751_v34, %v13557_v8  ;;  %v4766_v30 = vrot.slane %v4752_v0, %v13557_v8 }
 0x168   : > { %v1101_v16 = vsel %vm14347_vm5, %v1094_v1, %v1099_v3  ;;  %v1721_v26 = vrot.slane %v1711_v28, %v13557_v8  ;;  %v1728_v20 = vrot.slane %v1712_v40, %v13557_v8  ;;  %v1735_v46 = vrot.slane %v1713_v25, %v13557_v8 }
 0x169   : > { %v1714_v42 = vcombine.low %v1093_v29, %v1101_v16  ;;  %v4800_v48 = vcombine.low %v15170_v50, %v15175_v7  ;;  %v4801_v21 = vcombine.low %v15178_v23, %v4799_v47  ;;  %v18847_v41 = vshll.u32 %v18821_v33, 16  ;;  %v18859_v29 = vld [vmem:[#allocation21_spill] sm:$0xff]  ;;  %v18861_v16 = vld [vmem:[#allocation140_spill] sm:$0xff] }
 0x16a   : > { %v18848_v3 = vshrl.u32 %v18819_v11, 16  ;;  %v1743_v34 = vcombine.low %v1721_v26, %v1728_v20  ;;  %v1102_v22 = vshrl.u32 %v18846_v57, 16  ;;  %v1761_v0 = vcombine.low %v14371_v49, %v14398_v6 }
 0x16b   : > { %11981 = vmatmul.mubr.bf16.gmra.mrb[20].mxu0 %v18845_v51  ;;  %v1742_v18 = vrot.slane %v1714_v42, %v13557_v8  ;;  %v18850_v50 = vshll.u32 %v15031_v53, 16  ;;  %v18851_v7 = vshrl.u32 %v18821_v33, 16  ;;  %v18853_v47 = vshll.u32 %v15039_v35, 16 }
 0x16c   : > { %11984 = vmatprep.mubr.msk.bf16.mxu0 %vm13283_vm0, %v18617_v38  ;;  %v15232_v28 = vsel %vm14347_vm5, %v18848_v3, %v18847_v41  ;;  %v18854_v52 = vshrl.u32 %v15031_v53, 16  ;;  %v18856_v58 = vshll.u32 %v18825_v9, 16  ;;  %v18857_v6 = vshrl.u32 %v15039_v35, 16 }
 0x16d   : > { %18849 = vst [vmem:[#allocation16_spill] sm:$0xff] %v15232_v28  ;;  %v15244_v23 = vsel %vm14347_vm5, %v18851_v7, %v18850_v50  ;;  %v1762_v51 = vcombine.low %v14402_v36, %v14406_v14  ;;  %v1744_v2 = vcombine.low %v1735_v46, %v1742_v18  ;;  %v1751_v1 = vrot.slane %v1743_v34, %v13557_v8 }
 0x16e   : > { %18852 = vst [vmem:[#allocation20_spill] sm:$0xff] %v15244_v23  ;;  %v15252_v4 = vsel %vm14347_vm5, %v18854_v52, %v18853_v47  ;;  %v15260_v49 = vsel %vm14347_vm5, %v18857_v6, %v18856_v58  ;;  %v18860_v40 = vshll.u32 %v18859_v29, 16  ;;  %v1763_v26 = vcombine.low %v18861_v16, %v14421_v32  ;;  %v12882_v6 = vld [vmem:[#allocation4] sm:$0xff]  }
 0x16f   : > { %18855 = vst [vmem:[#allocation18_spill] sm:$0xff] %v15252_v4  ;;  %18858 = vst [vmem:[#allocation22_spill] sm:$0xff] %v15260_v49  ;;  %v18862_v42 = vshll.u32 %v18823_v31, 16  ;;  %v18863_v20 = vshrl.u32 %v18825_v9, 16  ;;  %v18865_v14 = vshll.u32 %v15111_v54, 16  ;;  %v18866_v36 = vshrl.u32 %v18823_v31, 16 }
 0x170   : > { %v1109_v25 = vsel %vm14347_vm5, %v1102_v22, %v18860_v40  ;;  %v15289_v32 = vsel %vm14347_vm5, %v4335_v60, %v4340_v24  ;;  %v1758_v18 = vrot.slane %v1744_v2, %v13557_v8  ;;  %v1777_v34 = vrot.slane %v1761_v0, %v13557_v8 }
 0x171   : > { %v15277_v41 = vsel %vm14347_vm5, %v18863_v20, %v18862_v42  ;;  %v15285_v46 = vsel %vm14347_vm5, %v18866_v36, %v18865_v14  ;;  %18868 = vst [vmem:[#allocation140_spill] sm:$0xff] %v15289_v32  ;;  %v1784_v22 = vrot.slane %v1762_v51, %v13557_v8  ;;  %v1791_v50 = vrot.slane %v1763_v26, %v13557_v8  ;;  %v18871_v26 = vld [vmem:[#allocation142_spill] sm:$0xff]  ;;  %v18874_v14 = vld [vmem:[#allocation149_spill] sm:$0xff] }
 0x172   : > { %18864 = vst [vmem:[#allocation19_spill] sm:$0xff] %v15277_v41  ;;  %18867 = vst [vmem:[#allocation21_spill] sm:$0xff] %v15285_v46  ;;  %v4817_v7 = vcombine.low %v15232_v28, %v15244_v23  ;;  %v4818_v60 = vcombine.low %v15252_v4, %v15260_v49  ;;  %v4819_v24 = vcombine.low %v15277_v41, %v15285_v46  ;;  %v18875_v36 = vld [vmem:[#allocation146_spill] sm:$0xff]  ;;  %v18930_v23 = vld [vmem:[#allocation47_spill] sm:$0xff] }
 0x173   : > { %11985 = vmatmul.mubr.bf16.gmra.mrb[24].mxu0 %v4718_v10  ;;  %v18869_v10 = vld [vmem:[#allocation139_spill] sm:$0xff]  ;;  %v1759_v52 = vcombine.low %v1751_v1, %v1758_v18  ;;  %v1793_v58 = vcombine.low %v1784_v22, %v1791_v50  ;;  %v4767_v2 = vcombine.low %v4759_v44, %v4766_v30  ;;  %v4820_v0 = vcombine.low %v15289_v32, %v15157_v63  ;;  %v18872_v44 = vld [vmem:[#allocation145_spill] sm:$0xff]  ;;  %v18873_v30 = vld [vmem:[#allocation144_spill] sm:$0xff] }
 0x174   : > { %v1760_v3 = vcombine.low %v1109_v25, %v18869_v10  ;;  %11988 = vmatprep.mubr.msk.bf16.mxu0 %vm13283_vm0, %v18617_v38  ;;  %v4808_v29 = vrot.slane %v4800_v48, %v13557_v8  ;;  %v4815_v40 = vrot.slane %v4801_v21, %v13557_v8  ;;  %v18870_v1 = vld [vmem:[#allocation143_spill] sm:$0xff]  ;;  %v1810_v20 = vcombine.low %v18873_v30, %v18872_v44  ;;  %v18876_v18 = vld [vmem:[#allocation152_spill] sm:$0xff]  ;;  %v12883_v50 = vld [vmem:[#allocation4 + $0x8] sm:$0xff]  }
 0x175   : > { %11721 = vmatmul.mubr.bf16.vlgmr.msra.gmra.mrb[0].mxu1 %v1759_v52  ;;  %v1807_v25 = vrot.slane %v1793_v58, %v13557_v8  ;;  %v1809_v42 = vcombine.low %v18871_v26, %v18870_v1  ;;  %v1811_v10 = vcombine.low %v18875_v36, %v18874_v14  ;;  %v4827_v48 = vrot.slane %v4817_v7, %v13557_v8  ;;  %v18879_v1 = vld [vmem:[#allocation25_spill] sm:$0xff]  ;;  %v18881_v44 = vld [vmem:[#allocation131_spill] sm:$0xff]  ;;  %v18882_v36 = vld [vmem:[#allocation154_spill] sm:$0xff] }
 0x176   : > { %v1770_v47 = vrot.slane %v1760_v3, %v13557_v8  ;;  %11724 = vmatprep.mubr.msk.bf16.mxu1 %vm13283_vm0, %v18617_v38  ;;  %v4834_v21 = vrot.slane %v4818_v60, %v13557_v8  ;;  %v4841_v3 = vrot.slane %v4819_v24, %v13557_v8  ;;  %11765 = vmatpush3.bf16.msra.mxu1 %v12882_v6  ;;  %v18926_v32 = vld [vmem:[#allocation151_spill] sm:$0xff] }
 0x177   : > { %v1819_v52 = vrot.slane %v1809_v42, %v13557_v8  ;;  %v15327_v58 = vrot.slane %v1810_v20, %v13557_v8  ;;  %11766 = vmatprep.subr.bf16.mxu1 %v18617_v38  ;;  %v18880_v42 = vld [vmem:[#allocation24_spill] sm:$0xff]  ;;  %v18932_v28 = vld [vmem:[#allocation83_spill] sm:$0xff] }
 0x178   : > { %v1792_v51 = vcombine.low %v1770_v47, %v1777_v34  ;;  %v18877_v34 = vld [vmem:[#allocation150_spill] sm:$0xff]  ;;  %v4848_v47 = vrot.slane %v4820_v0, %v13557_v8  ;;  %v18878_v0 = vld [vmem:[#allocation129_spill] sm:$0xff]  ;;  %v2445_v30 = vcombine.low %v18881_v44, %v18880_v42  ;;  %v4849_v20 = vcombine.low %v4827_v48, %v4834_v21 }
 0x179   : > { %v1812_v22 = vcombine.low %v18877_v34, %v18876_v18  ;;  %v1841_v24 = vcombine.low %v1819_v52, %v15327_v58  ;;  %v2444_v26 = vcombine.low %v18879_v1, %v18878_v0  ;;  %v18884_v34 = vld [vmem:[#allocation156_spill] sm:$0xff]  ;;  %v18886_v0 = vld [vmem:[#allocation158_spill] sm:$0xff]  ;;  %v18887_v1 = vld [vmem:[#allocation157_spill] sm:$0xff] }
 0x17a   : > { %v1800_v16 = vrot.slane %v1792_v51, %v13557_v8  ;;  %v15330_v51 = vrot.slane %v1811_v10, %v13557_v8  ;;  %11767 = vmatpush3.bf16.msra.mxu1 %v12883_v50  ;;  %v4850_v14 = vcombine.low %v4841_v3, %v4848_v47  ;;  %v18883_v10 = vld [vmem:[#allocation153_spill] sm:$0xff]  ;;  %v1860_v42 = vcombine.low %v18887_v1, %v18886_v0  ;;  %v18889_v44 = vld [vmem:[#allocation26_spill] sm:$0xff]  ;;  %v18891_v3 = vld [vmem:[#allocation160_spill] sm:$0xff] }
 0x17b   : > { %11989 = vmatmul.mubr.bf16.gmra.mrb[28].mxu0 %v4767_v2  ;;  %v15335_v60 = vrot.slane %v1812_v22, %v13557_v8  ;;  %v4816_v2 = vcombine.low %v4808_v29, %v4815_v40  ;;  %v1858_v18 = vcombine.low %v18883_v10, %v18882_v36  ;;  %v18885_v22 = vld [vmem:[#allocation155_spill] sm:$0xff]  ;;  %11768 = vmatprep.subr.bf16.mxu1 %v18617_v38  ;;  %v18888_v50 = vld [vmem:[#allocation133_spill] sm:$0xff] }
 0x17c   : > { %11992 = vmatprep.mubr.msk.bf16.mxu0 %vm13283_vm0, %v18617_v38  ;;  %v1808_v7 = vcombine.low %v1800_v16, %v1807_v25  ;;  %v12885_v16 = vld [vmem:[#allocation4 + $0x10] sm:$0xff]   ;;  %v1859_v52 = vcombine.low %v18885_v22, %v18884_v34  ;;  %v1849_v29 = vrot.slane %v1841_v24, %v13557_v8  ;;  %v2446_v48 = vcombine.low %v18889_v44, %v18888_v50  ;;  %v18890_v21 = vld [vmem:[#allocation161_spill] sm:$0xff]  ;;  %v18893_v10 = vld [vmem:[#allocation27_spill] sm:$0xff] }
 0x17d   : > { %v1842_v25 = vcombine.low %v15330_v51, %v15335_v60  ;;  %v1861_v47 = vcombine.low %v18891_v3, %v18890_v21  ;;  %v15363_v36 = vrot.slane %v1858_v18, %v13557_v8  ;;  %v15369_v24 = vrot.slane %v2444_v26, %v13557_v8  ;;  %v18894_v34 = vld [vmem:[#allocation135_spill] sm:$0xff]  ;;  %v18902_v26 = vld [vmem:[#allocation164_spill] sm:$0xff] }
 0x17e   : > { %11725 = vmatmul.mubr.bf16.gmra.mrb[4].mxu1 %v1808_v7  ;;  %v15366_v7 = vrot.slane %v1859_v52, %v13557_v8  ;;  %v2492_v22 = vcombine.low %v18894_v34, %v18893_v10  ;;  %v15377_v0 = vrot.slane %v1860_v42, %v13557_v8  ;;  %v12886_v1 = vld [vmem:[#allocation4 + $0x18] sm:$0xff]   ;;  %v4857_v18 = vrot.slane %v4849_v20, %v13557_v8  ;;  %v18898_v20 = vld [vmem:[#allocation162_spill] sm:$0xff] }
 0x17f   : > { %v1856_v40 = vrot.slane %v1842_v25, %v13557_v8  ;;  %11728 = vmatprep.mubr.msk.bf16.mxu1 %vm13283_vm0, %v18617_v38  ;;  %v15372_v25 = vrot.slane %v2445_v30, %v13557_v8  ;;  %11769 = vmatpush3.bf16.msra.mxu1 %v12885_v16  ;;  %v4864_v52 = vrot.slane %v4850_v14, %v13557_v8  ;;  %v18897_v16 = vld [vmem:[#allocation61_spill] sm:$0xff]  ;;  %v18900_v3 = vld [vmem:[#allocation163_spill] sm:$0xff] }
 0x180   : > { %18892 = vst [vmem:[#allocation139_spill] sm:$0xff] %v15366_v7  ;;  %18895 = vst [vmem:[#allocation143_spill] sm:$0xff] %v15377_v0  ;;  %v15382_v50 = vrot.slane %v1861_v47, %v13557_v8  ;;  %v1890_v42 = vcombine.low %v15363_v36, %v15366_v7  ;;  %v1907_v44 = vcombine.low %v18898_v20, %v18897_v16  ;;  %11770 = vmatprep.subr.bf16.mxu1 %v18617_v38  ;;  %v18901_v47 = vld [vmem:[#allocation67_spill] sm:$0xff]  ;;  %v18939_v7 = vld [vmem:[#allocation92_spill] sm:$0xff] }
 0x181   : > { %v1857_v30 = vcombine.low %v1849_v29, %v1856_v40  ;;  %v15396_v14 = vrot.slane %v2446_v48, %v13557_v8  ;;  %v15399_v21 = vrot.slane %v2492_v22, %v13557_v8  ;;  %v1908_v29 = vcombine.low %v18901_v47, %v18900_v3  ;;  %v12888_v40 = vld [vmem:[#allocation4 + $0x20] sm:$0xff]  }
 0x182   : > { %18896 = vst [vmem:[#allocation142_spill] sm:$0xff] %v15382_v50  ;;  %v4865_v10 = vcombine.low %v4857_v18, %v4864_v52  ;;  %v5097_v34 = vcombine.low %v15369_v24, %v15372_v25  ;;  %v1909_v16 = vcombine.low %v18902_v26, %v14683_v55  ;;  %v1910_v20 = vcombine.low %v14691_v43, %v14695_v12  ;;  %v18905_v52 = vld [vmem:[#allocation30_spill] sm:$0xff]  ;;  %v18906_v3 = vld [vmem:[#allocation28_spill] sm:$0xff]  ;;  %v18907_v55 = vld [vmem:[#allocation33_spill] sm:$0xff] }
 0x183   : > { %11993 = vmatmul.mubr.bf16.gmra.mrb[32].mxu0 %v4816_v2  ;;  %v1891_v2 = vcombine.low %v15377_v0, %v15382_v50  ;;  %18899 = vst [vmem:[#allocation145_spill] sm:$0xff] %v15399_v21  ;;  %11771 = vmatpush3.bf16.msra.mxu1 %v12886_v1  ;;  %v1898_v48 = vrot.slane %v1890_v42, %v13557_v8  ;;  %v18911_v42 = vld [vmem:[#allocation29_spill] sm:$0xff] }
 0x184   : > { %11996 = vmatprep.mubr.msk.bf16.mxu0 %vm13283_vm0, %v18617_v38  ;;  %11772 = vmatprep.subr.bf16.mxu1 %v18617_v38  ;;  %v15413_v1 = vrot.slane %v1907_v44, %v13557_v8  ;;  %v15416_v18 = vrot.slane %v1908_v29, %v13557_v8  ;;  %v11029_v47 = vcombine.high %v18906_v3, %v18905_v52  ;;  %v12889_v29 = vld [vmem:[#allocation4 + $0x28] sm:$0xff]  }
 0x185   : > { %v1905_v22 = vrot.slane %v1891_v2, %v13557_v8  ;;  %v5114_v26 = vcombine.low %v18907_v55, %v18905_v52  ;;  %v15425_v12 = vrot.slane %v1909_v16, %v13557_v8  ;;  %v15428_v43 = vrot.slane %v1910_v20, %v13557_v8  ;;  %v18938_v50 = vld [vmem:[#allocation57_spill] sm:$0xff] }
 0x186   : > { %11729 = vmatmul.mubr.bf16.gmra.mrb[8].mxu1 %v1857_v30  ;;  %18903 = vst [vmem:[#allocation144_spill] sm:$0xff] %v15413_v1  ;;  %18904 = vst [vmem:[#allocation149_spill] sm:$0xff] %v15416_v18  ;;  %v18910_v30 = vld [vmem:[#allocation32_spill] sm:$0xff]  ;;  %v4872_v55 = vrot.slane %v15161_v37, %v13557_v8  ;;  %v5098_v6 = vcombine.low %v15396_v14, %v15399_v21  ;;  %v1939_v16 = vcombine.low %v15413_v1, %v15416_v18  ;;  %v18937_v18 = vld [vmem:[#allocation51_spill] sm:$0xff] }
 0x187   : > { %11732 = vmatprep.mubr.msk.bf16.mxu1 %vm13283_vm0, %v18617_v38  ;;  %18908 = vst [vmem:[#allocation146_spill] sm:$0xff] %v15425_v12  ;;  %18909 = vst [vmem:[#allocation152_spill] sm:$0xff] %v15428_v43  ;;  %v2495_v2 = vcombine.low %v18911_v42, %v18910_v30  ;;  %v11030_v44 = vcombine.high %v18911_v42, %v18910_v30  ;;  %11773 = vmatpush3.bf16.msra.mxu1 %v12888_v40  ;;  %v18912_v40 = vld [vmem:[#allocation167_spill] sm:$0xff] }
 0x188   : > { %v1940_v20 = vcombine.low %v15425_v12, %v15428_v43  ;;  %v1906_v61 = vcombine.low %v1898_v48, %v1905_v22  ;;  %v1956_v30 = vcombine.low %v18912_v40, %v14734_v17  ;;  %v15449_v42 = vrot.slane %v5097_v34, %v13557_v8  ;;  %11774 = vmatprep.subr.bf16.mxu1 %v18617_v38  ;;  %v12890_v22 = vld [vmem:[#allocation4 + $0x30] sm:$0xff]   ;;  %v18936_v43 = vld [vmem:[#allocation65_spill] sm:$0xff] }
 0x189   : > { %v15452_v37 = vrot.slane %v11029_v47, %v13557_v8  ;;  %v5121_v63 = vrot.slane %v5114_v26, %v13557_v8  ;;  %v15457_v46 = vrot.slane %v2495_v2, %v13557_v8  ;;  %v15460_v48 = vrot.slane %v11030_v44, %v13557_v8 }
 0x18a   : > { %v1958_v17 = vcombine.low %v14746_v56, %v14750_v13  ;;  %v4879_v47 = vrot.slane %v4872_v55, %v13557_v8  ;;  %v5112_v26 = vrot.slane %v5098_v6, %v13557_v8  ;;  %v1947_v40 = vrot.slane %v1939_v16, %v13557_v8  ;;  %v18922_v55 = vld [vmem:[#allocation147_spill] sm:$0xff] }
 0x18b   : > { %11997 = vmatmul.mubr.bf16.gmra.mrb[36].mxu0 %v4865_v10  ;;  %v1957_v10 = vcombine.low %v14738_v15, %v14742_v19  ;;  %18913 = vst [vmem:[#allocation150_spill] sm:$0xff] %v15452_v37  ;;  %18914 = vst [vmem:[#allocation129_spill] sm:$0xff] %v15457_v46  ;;  %v18916_v15 = vld [vmem:[#allocation169_spill] sm:$0xff]  ;;  %v18917_v19 = vld [vmem:[#allocation168_spill] sm:$0xff]  ;;  %11775 = vmatpush3.bf16.msra.mxu1 %v12889_v29  ;;  %v1954_v2 = vrot.slane %v1940_v20, %v13557_v8 }
 0x18c   : > { %12000 = vmatprep.mubr.msk.bf16.mxu0 %vm13283_vm0, %v18617_v38  ;;  %18915 = vst [vmem:[#allocation25_spill] sm:$0xff] %v15460_v48  ;;  %v1959_v34 = vcombine.low %v18917_v19, %v18916_v15  ;;  %11776 = vmatprep.subr.bf16.mxu1 %v18617_v38  ;;  %v15472_v44 = vrot.slane %v1956_v30, %v13557_v8  ;;  %v18923_v16 = vld [vmem:[#allocation43_spill] sm:$0xff]  ;;  %v18924_v15 = vld [vmem:[#allocation44_spill] sm:$0xff]  ;;  %v18927_v30 = vld [vmem:[#allocation45_spill] sm:$0xff] }
 0x18d   : > { %v15475_v13 = vrot.slane %v1957_v10, %v13557_v8  ;;  %v15478_v56 = vrot.slane %v1958_v17, %v13557_v8  ;;  %v5122_v6 = vcombine.low %v5121_v63, %v15452_v37  ;;  %v2543_v20 = vcombine.low %v18923_v16, %v18922_v55  ;;  %v18925_v19 = vld [vmem:[#allocation148_spill] sm:$0xff]  ;;  %v18928_v17 = vld [vmem:[#allocation46_spill] sm:$0xff]  ;;  %v18931_v63 = vld [vmem:[#allocation159_spill] sm:$0xff] }
 0x18e   : > { %11733 = vmatmul.mubr.bf16.gmra.mrb[12].mxu1 %v1906_v61  ;;  %18918 = vst [vmem:[#allocation24_spill] sm:$0xff] %v15472_v44  ;;  %v15481_v29 = vrot.slane %v1959_v34, %v13557_v8  ;;  %v2544_v61 = vcombine.low %v18925_v19, %v18924_v15  ;;  %v2590_v49 = vcombine.low %v18927_v30, %v18926_v32  ;;  %v18929_v34 = vld [vmem:[#allocation31_spill] sm:$0xff]  ;;  %v18933_v55 = vld [vmem:[#allocation170_spill] sm:$0xff]  ;;  %v18934_v19 = vld [vmem:[#allocation53_spill] sm:$0xff] }
 0x18f   : > { %18919 = vst [vmem:[#allocation131_spill] sm:$0xff] %v15475_v13  ;;  %18920 = vst [vmem:[#allocation154_spill] sm:$0xff] %v15478_v56  ;;  %11736 = vmatprep.mubr.msk.bf16.mxu1 %vm13283_vm0, %v18617_v38  ;;  %v5123_v10 = vcombine.low %v15457_v46, %v15460_v48  ;;  %v5139_v41 = vcombine.low %v18929_v34, %v18928_v17  ;;  %v2591_v4 = vcombine.low %v18931_v63, %v18930_v23  ;;  %v12892_v15 = vld [vmem:[#allocation4 + $0x38] sm:$0xff]   ;;  %v18935_v32 = vld [vmem:[#allocation50_spill] sm:$0xff] }
 0x190   : > { %18921 = vst [vmem:[#allocation153_spill] sm:$0xff] %v15481_v29  ;;  %v2005_v16 = vcombine.low %v18933_v55, %v18932_v28  ;;  %11777 = vmatpush3.bf16.msra.mxu1 %v12890_v22  ;;  %v11031_v30 = vcombine.high %v18935_v32, %v18934_v19  ;;  %v2639_v12 = vcombine.low %v18937_v18, %v18936_v43  ;;  %v18940_v17 = vld [vmem:[#allocation171_spill] sm:$0xff]  ;;  %v18942_v63 = vld [vmem:[#allocation172_spill] sm:$0xff]  ;;  %v18961_v37 = vld [vmem:[#allocation182_spill] sm:$0xff] }
 0x191   : > { %v5164_v1 = vcombine.low %v18938_v50, %v18934_v19  ;;  %v2006_v0 = vcombine.low %v18940_v17, %v18939_v7  ;;  %v1955_v23 = vcombine.low %v1947_v40, %v1954_v2  ;;  %v1988_v28 = vcombine.low %v15472_v44, %v15475_v13  ;;  %v18945_v17 = vld [vmem:[#allocation175_spill] sm:$0xff]  ;;  %v18946_v40 = vld [vmem:[#allocation174_spill] sm:$0xff]  ;;  %11778 = vmatprep.subr.bf16.mxu1 %v18617_v38 }
 0x192   : > { %v1989_v22 = vcombine.low %v15478_v56, %v15481_v29  ;;  %v15517_v48 = vrot.slane %v2543_v20, %v13557_v8  ;;  %v15520_v50 = vrot.slane %v2544_v61, %v13557_v8  ;;  %v15523_v7 = vrot.slane %v2590_v49, %v13557_v8  ;;  %v18959_v56 = vld [vmem:[#allocation179_spill] sm:$0xff] }
 0x193   : > { %12001 = vmatmul.mubr.bf16.gmra.mrb[40].mxu0 %v4879_v47  ;;  %v18941_v47 = vld [vmem:[#allocation173_spill] sm:$0xff]  ;;  %v2008_v2 = vcombine.low %v18946_v40, %v18945_v17  ;;  %v5146_v13 = vrot.slane %v5139_v41, %v13557_v8  ;;  %v15530_v29 = vrot.slane %v2005_v16, %v13557_v8  ;;  %v5113_v49 = vcombine.low %v15449_v42, %v5112_v26  ;;  %v12875_v16 = vld [vmem:[#allocation4 + $0x180] sm:$0xff]  }
 0x194   : > { %12020 = vmatprep.mubr.msk.bf16.mxu0 %vm13283_vm0, %v18617_v38  ;;  %v2007_v55 = vcombine.low %v18942_v63, %v18941_v47  ;;  %18943 = vst [vmem:[#allocation156_spill] sm:$0xff] %v15520_v50  ;;  %18944 = vst [vmem:[#allocation155_spill] sm:$0xff] %v15523_v7  ;;  %v15533_v47 = vrot.slane %v2006_v0, %v13557_v8  ;;  %11779 = vmatpush3.bf16.msra.mxu1 %v12892_v15  ;;  %v18957_v17 = vld [vmem:[#allocation96_spill] sm:$0xff] }
 0x195   : > { %18947 = vst [vmem:[#allocation158_spill] sm:$0xff] %v15530_v29  ;;  %v15540_v61 = vrot.slane %v2591_v4, %v13557_v8  ;;  %v15543_v63 = vrot.slane %v11031_v30, %v13557_v8  ;;  %v15546_v41 = vrot.slane %v2008_v2, %v13557_v8  ;;  %12364 = vmatprep.subr.bf16.mxu1 %v18617_v38  ;;  %v18958_v2 = vld [vmem:[#allocation181_spill] sm:$0xff] }
 0x196   : > { %18948 = vst [vmem:[#allocation157_spill] sm:$0xff] %v15533_v47  ;;  %v15536_v20 = vrot.slane %v2007_v55, %v13557_v8  ;;  %v15550_v0 = vrot.slane %v2639_v12, %v13557_v8  ;;  %v5171_v55 = vrot.slane %v5164_v1, %v13557_v8  ;;  %11737 = vmatmul.mubr.bf16.gmra.mrb[16].mxu1 %v1955_v23 }
 0x197   : > { %18950 = vst [vmem:[#allocation26_spill] sm:$0xff] %v15543_v63  ;;  %18951 = vst [vmem:[#allocation161_spill] sm:$0xff] %v15546_v41  ;;  %v1996_v42 = vrot.slane %v1988_v28, %v13557_v8  ;;  %v2003_v4 = vrot.slane %v1989_v22, %v13557_v8  ;;  %v5130_v26 = vrot.slane %v5122_v6, %v13557_v8  ;;  %11740 = vmatprep.mubr.msk.bf16.mxu1 %vm13283_vm0, %v18617_v38  ;;  %v18954_v28 = vld [vmem:[#allocation93_spill] sm:$0xff]  ;;  %v18955_v6 = vld [vmem:[#allocation176_spill] sm:$0xff] }
 0x198   : > { %18949 = vst [vmem:[#allocation133_spill] sm:$0xff] %v15536_v20  ;;  %18952 = vst [vmem:[#allocation160_spill] sm:$0xff] %v15550_v0  ;;  %v15557_v15 = vrot.slane %v5123_v10, %v13557_v8  ;;  %v5147_v30 = vcombine.low %v5146_v13, %v15517_v48  ;;  %v5148_v12 = vcombine.low %v15520_v50, %v15523_v7  ;;  %v18956_v10 = vld [vmem:[#allocation178_spill] sm:$0xff]  ;;  %v18980_v7 = vld [vmem:[#allocation89_spill] sm:$0xff] }
 0x199   : > { %v2037_v1 = vcombine.low %v15530_v29, %v15533_v47  ;;  %v2038_v23 = vcombine.low %v15536_v20, %v15546_v41  ;;  %v2054_v22 = vcombine.low %v18955_v6, %v18954_v28  ;;  %v2055_v40 = vcombine.low %v18957_v17, %v18956_v10  ;;  %v18960_v13 = vld [vmem:[#allocation86_spill] sm:$0xff]  ;;  %v12877_v47 = vld [vmem:[#allocation4 + $0x188] sm:$0xff]   ;;  %v18981_v50 = vld [vmem:[#allocation183_spill] sm:$0xff] }
 0x19a   : > { %18953 = vst [vmem:[#allocation27_spill] sm:$0xff] %v15557_v15  ;;  %v2056_v44 = vcombine.low %v18959_v56, %v18958_v2  ;;  %v2057_v46 = vcombine.low %v18961_v37, %v18960_v13  ;;  %v5172_v41 = vcombine.low %v15540_v61, %v5171_v55  ;;  %v2004_v28 = vcombine.low %v1996_v42, %v2003_v4  ;;  %v18972_v13 = vld [vmem:[#allocation66_spill] sm:$0xff] }
 0x19b   : > { %12021 = vmatmul.mubr.bf16.vlgmr.msra.gmra.mrb[0].mxu0 %v5113_v49  ;;  %v5173_v49 = vcombine.low %v15543_v63, %v15550_v0  ;;  %v5138_v6 = vcombine.low %v5130_v26, %v15557_v15  ;;  %v5155_v56 = vrot.slane %v5147_v30, %v13557_v8  ;;  %v15585_v10 = vrot.slane %v5148_v12, %v13557_v8  ;;  %v12878_v26 = vld [vmem:[#allocation4 + $0x190] sm:$0xff]   ;;  %v18975_v15 = vld [vmem:[#allocation81_spill] sm:$0xff] }
 0x19c   : > { %12065 = vmatpush3.bf16.msra.mxu0 %v12875_v16  ;;  %12024 = vmatprep.mubr.msk.bf16.mxu0 %vm13283_vm0, %v18617_v38  ;;  %v2045_v37 = vrot.slane %v2037_v1, %v13557_v8  ;;  %v2052_v16 = vrot.slane %v2038_v23, %v13557_v8  ;;  %v15590_v17 = vrot.slane %v2054_v22, %v13557_v8  ;;  %v18967_v23 = vld [vmem:[#allocation54_spill] sm:$0xff]  ;;  %v18978_v0 = vld [vmem:[#allocation77_spill] sm:$0xff] }
 0x19d   : > { %12066 = vmatprep.subr.bf16.mxu0 %v18617_v38  ;;  %18962 = vst [vmem:[#allocation135_spill] sm:$0xff] %v15585_v10  ;;  %v15593_v55 = vrot.slane %v2055_v40, %v13557_v8  ;;  %v15596_v42 = vrot.slane %v2056_v44, %v13557_v8  ;;  %v15599_v4 = vrot.slane %v2057_v46, %v13557_v8  ;;  %v18968_v44 = vld [vmem:[#allocation71_spill] sm:$0xff]  ;;  %v18970_v46 = vld [vmem:[#allocation56_spill] sm:$0xff] }
 0x19e   : > { %18963 = vst [vmem:[#allocation61_spill] sm:$0xff] %v15590_v17  ;;  %v15602_v30 = vrot.slane %v5172_v41, %v13557_v8  ;;  %v15605_v12 = vrot.slane %v5173_v49, %v13557_v8  ;;  %v11032_v1 = vcombine.high %v18937_v18, %v18936_v43  ;;  %11741 = vmatmul.mubr.bf16.gmra.mrb[20].mxu1 %v2004_v28  ;;  %v18969_v40 = vld [vmem:[#allocation79_spill] sm:$0xff]  ;;  %v18973_v41 = vld [vmem:[#allocation165_spill] sm:$0xff]  ;;  %v18974_v49 = vld [vmem:[#allocation80_spill] sm:$0xff] }
 0x19f   : > { %18964 = vst [vmem:[#allocation162_spill] sm:$0xff] %v15593_v55  ;;  %18965 = vst [vmem:[#allocation163_spill] sm:$0xff] %v15596_v42  ;;  %v2642_v22 = vcombine.low %v18968_v44, %v18967_v23  ;;  %v2688_v2 = vcombine.low %v18970_v46, %v18969_v40  ;;  %11744 = vmatprep.mubr.msk.bf16.mxu1 %vm13283_vm0, %v18617_v38  ;;  %v2689_v29 = vcombine.low %v18974_v49, %v18973_v41  ;;  %v18976_v18 = vld [vmem:[#allocation166_spill] sm:$0xff]  ;;  %v12879_v49 = vld [vmem:[#allocation4 + $0x198] sm:$0xff]  }
 0x1a0   : > { %18966 = vst [vmem:[#allocation67_spill] sm:$0xff] %v15599_v4  ;;  %12067 = vmatpush3.bf16.msra.mxu0 %v12877_v47  ;;  %v18971_v47 = vld [vmem:[#allocation69_spill] sm:$0xff]  ;;  %v2690_v43 = vcombine.low %v18976_v18, %v18975_v15  ;;  %v18977_v28 = vld [vmem:[#allocation82_spill] sm:$0xff]  ;;  %v2053_v40 = vcombine.low %v2045_v37, %v2052_v16  ;;  %v2086_v46 = vcombine.low %v15590_v17, %v15593_v55  ;;  %v18982_v18 = vld [vmem:[#allocation188_spill] sm:$0xff] }
 0x1a1   : > { %12068 = vmatprep.subr.bf16.mxu0 %v18617_v38  ;;  %v5189_v20 = vcombine.low %v18972_v13, %v18971_v47  ;;  %v11033_v63 = vcombine.high %v18978_v0, %v18977_v28  ;;  %v18979_v23 = vld [vmem:[#allocation122_spill] sm:$0xff]  ;;  %v2087_v47 = vcombine.low %v15596_v42, %v15599_v4  ;;  %v2103_v41 = vcombine.low %v18981_v50, %v18980_v7  ;;  %v18996_v17 = vld [vmem:[#allocation121_spill] sm:$0xff] }
 0x1a2   : > { %v5214_v44 = vcombine.low %v18979_v23, %v18977_v28  ;;  %v18983_v15 = vld [vmem:[#allocation106_spill] sm:$0xff]  ;;  %v2106_v16 = vcombine.low %v15021_v5, %v15025_v39  ;;  %v15641_v55 = vrot.slane %v11032_v1, %v13557_v8  ;;  %v15644_v4 = vrot.slane %v2642_v22, %v13557_v8  ;;  %v18997_v23 = vld [vmem:[#allocation127_spill] sm:$0xff] }
 0x1a3   : > { %12025 = vmatmul.mubr.bf16.gmra.mrb[4].mxu0 %v5138_v6  ;;  %v2104_v21 = vcombine.low %v18983_v15, %v18982_v18  ;;  %v18984_v6 = vld [vmem:[#allocation189_spill] sm:$0xff]  ;;  %v15647_v50 = vrot.slane %v2688_v2, %v13557_v8  ;;  %v5196_v7 = vrot.slane %v5189_v20, %v13557_v8  ;;  %v15652_v15 = vrot.slane %v2689_v29, %v13557_v8  ;;  %v12880_v29 = vld [vmem:[#allocation4 + $0x1a0] sm:$0xff]  }
 0x1a4   : > { %12028 = vmatprep.mubr.msk.bf16.mxu0 %vm13283_vm0, %v18617_v38  ;;  %12069 = vmatpush3.bf16.msra.mxu0 %v12878_v26  ;;  %v2105_v37 = vcombine.low %v18984_v6, %v15017_v62  ;;  %v15655_v62 = vrot.slane %v2690_v43, %v13557_v8  ;;  %v15658_v5 = vrot.slane %v11033_v63, %v13557_v8  ;;  %v18993_v6 = vld [vmem:[#allocation123_spill] sm:$0xff] }
 0x1a5   : > { %18985 = vst [vmem:[#allocation164_spill] sm:$0xff] %v15647_v50  ;;  %12070 = vmatprep.subr.bf16.mxu0 %v18617_v38  ;;  %v5221_v39 = vrot.slane %v5214_v44, %v13557_v8  ;;  %v5163_v26 = vcombine.low %v5155_v56, %v15585_v10  ;;  %v2094_v1 = vrot.slane %v2086_v46, %v13557_v8 }
 0x1a6   : > { %18986 = vst [vmem:[#allocation30_spill] sm:$0xff] %v15655_v62  ;;  %v2101_v22 = vrot.slane %v2087_v47, %v13557_v8  ;;  %v15665_v20 = vrot.slane %v2103_v41, %v13557_v8  ;;  %11745 = vmatmul.mubr.bf16.gmra.mrb[24].mxu1 %v2053_v40  ;;  %v15668_v2 = vrot.slane %v2104_v21, %v13557_v8  ;;  %v18991_v47 = vld [vmem:[#allocation87_spill] sm:$0xff]  ;;  %v18992_v41 = vld [vmem:[#allocation85_spill] sm:$0xff] }
 0x1a7   : > { %v15671_v63 = vrot.slane %v2105_v37, %v13557_v8  ;;  %v15674_v43 = vrot.slane %v2106_v16, %v13557_v8  ;;  %v5188_v56 = vcombine.low %v15602_v30, %v15605_v12  ;;  %v5197_v44 = vcombine.low %v15641_v55, %v5196_v7  ;;  %11748 = vmatprep.mubr.msk.bf16.mxu1 %vm13283_vm0, %v18617_v38  ;;  %v18994_v16 = vld [vmem:[#allocation124_spill] sm:$0xff] }
 0x1a8   : > { %18987 = vst [vmem:[#allocation28_spill] sm:$0xff] %v15665_v20  ;;  %12071 = vmatpush3.bf16.msra.mxu0 %v12879_v49  ;;  %18988 = vst [vmem:[#allocation33_spill] sm:$0xff] %v15668_v2  ;;  %v5198_v46 = vcombine.low %v15644_v4, %v15647_v50  ;;  %v5222_v21 = vcombine.low %v15652_v15, %v15655_v62  ;;  %v5223_v40 = vcombine.low %v5221_v39, %v15658_v5  ;;  %v18995_v7 = vld [vmem:[#allocation108_spill] sm:$0xff]  ;;  %v12881_v39 = vld [vmem:[#allocation4 + $0x1a8] sm:$0xff]  }
 0x1a9   : > { %18989 = vst [vmem:[#allocation32_spill] sm:$0xff] %v15671_v63  ;;  %18990 = vst [vmem:[#allocation29_spill] sm:$0xff] %v15674_v43  ;;  %12072 = vmatprep.subr.bf16.mxu0 %v18617_v38  ;;  %v2738_v49 = vcombine.low %v18992_v41, %v18991_v47  ;;  %v11034_v30 = vcombine.high %v18992_v41, %v18991_v47  ;;  %v2152_v18 = vcombine.low %v15050_v27, %v15084_v45  ;;  %v18998_v47 = vld [vmem:[#allocation177_spill] sm:$0xff]  ;;  %v19000_v41 = vld [vmem:[#allocation84_spill] sm:$0xff] }
 0x1aa   : > { %v2153_v37 = vcombine.low %v18993_v6, %v15093_v59  ;;  %v2154_v42 = vcombine.low %v18995_v7, %v18994_v16  ;;  %v2155_v62 = vcombine.low %v18997_v23, %v18996_v17  ;;  %v2102_v50 = vcombine.low %v2094_v1, %v2101_v22  ;;  %v18999_v17 = vld [vmem:[#allocation99_spill] sm:$0xff]  ;;  %v19001_v6 = vld [vmem:[#allocation97_spill] sm:$0xff] }
 0x1ab   : > { %12029 = vmatmul.mubr.bf16.gmra.mrb[8].mxu0 %v5163_v26  ;;  %v2135_v26 = vcombine.low %v15665_v20, %v15668_v2  ;;  %v2136_v45 = vcombine.low %v15671_v63, %v15674_v43  ;;  %v15706_v27 = vrot.slane %v5197_v44, %v13557_v8  ;;  %v15709_v59 = vrot.slane %v5198_v46, %v13557_v8  ;;  %v19008_v43 = vld [vmem:[#allocation42_spill] sm:$0xff]  ;;  %v19010_v63 = vld [vmem:[#allocation180_spill] sm:$0xff] }
 0x1ac   : > { %12032 = vmatprep.mubr.msk.bf16.mxu0 %vm13283_vm0, %v18617_v38  ;;  %12073 = vmatpush3.bf16.msra.mxu0 %v12880_v29  ;;  %v2786_v23 = vcombine.low %v18999_v17, %v18998_v47  ;;  %v5239_v29 = vcombine.low %v19001_v6, %v19000_v41  ;;  %v15717_v1 = vrot.slane %v5222_v21, %v13557_v8 }
 0x1ad   : > { %12074 = vmatprep.subr.bf16.mxu0 %v18617_v38  ;;  %v15720_v22 = vrot.slane %v5223_v40, %v13557_v8  ;;  %v15723_v44 = vrot.slane %v2738_v49, %v13557_v8  ;;  %v15726_v46 = vrot.slane %v11034_v30, %v13557_v8  ;;  %v15729_v16 = vrot.slane %v2152_v18, %v13557_v8  ;;  %v12884_v40 = vld [vmem:[#allocation4 + $0x1b0] sm:$0xff]  }
 0x1ae   : > { %v15732_v7 = vrot.slane %v2153_v37, %v13557_v8  ;;  %v15735_v47 = vrot.slane %v2154_v42, %v13557_v8  ;;  %v15738_v21 = vrot.slane %v2155_v62, %v13557_v8  ;;  %11749 = vmatmul.mubr.bf16.gmra.mrb[28].mxu1 %v2102_v50  ;;  %v2143_v49 = vrot.slane %v2135_v26, %v13557_v8  ;;  %v19009_v42 = vld [vmem:[#allocation103_spill] sm:$0xff]  ;;  %v19011_v50 = vld [vmem:[#allocation184_spill] sm:$0xff] }
 0x1af   : > { %19002 = vst [vmem:[#allocation167_spill] sm:$0xff] %v15723_v44  ;;  %19003 = vst [vmem:[#allocation169_spill] sm:$0xff] %v15726_v46  ;;  %v2150_v30 = vrot.slane %v2136_v45, %v13557_v8  ;;  %v2542_v18 = vcombine.low %v18929_v34, %v19008_v43  ;;  %v15745_v2 = vrot.slane %v2786_v23, %v13557_v8  ;;  %11752 = vmatprep.mubr.msk.bf16.mxu1 %vm13283_vm0, %v18617_v38 }
 0x1b0   : > { %19004 = vst [vmem:[#allocation168_spill] sm:$0xff] %v15729_v16  ;;  %19005 = vst [vmem:[#allocation147_spill] sm:$0xff] %v15732_v7  ;;  %12075 = vmatpush3.bf16.msra.mxu0 %v12881_v39  ;;  %v15748_v37 = vrot.slane %v5239_v29, %v13557_v8  ;;  %v2787_v62 = vcombine.low %v19010_v63, %v19009_v42  ;;  %v19012_v39 = vld [vmem:[#allocation104_spill] sm:$0xff]  ;;  %v2592_v34 = vcombine.low %v18935_v32, %v18934_v19  ;;  %v12887_v42 = vld [vmem:[#allocation4 + $0x1b8] sm:$0xff]  }
 0x1b1   : > { %19006 = vst [vmem:[#allocation43_spill] sm:$0xff] %v15735_v47  ;;  %19007 = vst [vmem:[#allocation44_spill] sm:$0xff] %v15738_v21  ;;  %12076 = vmatprep.subr.bf16.mxu0 %v18617_v38  ;;  %v2788_v26 = vcombine.low %v19012_v39, %v19011_v50  ;;  %v15758_v45 = vrot.slane %v2542_v18, %v13557_v8  ;;  %v5213_v43 = vcombine.low %v15706_v27, %v15709_v59  ;;  %v19013_v50 = vld [vmem:[#allocation105_spill] sm:$0xff] }
 0x1b2   : > { %v5247_v63 = vcombine.low %v15723_v44, %v15726_v46  ;;  %v2184_v23 = vcombine.low %v15729_v16, %v15732_v7  ;;  %v2185_v29 = vcombine.low %v15735_v47, %v15738_v21  ;;  %v2151_v18 = vcombine.low %v2143_v49, %v2150_v30  ;;  %v19014_v39 = vld [vmem:[#allocation185_spill] sm:$0xff]  ;;  %v19026_v44 = vld [vmem:[#allocation14_spill] sm:$0xff] }
 0x1b3   : > { %12033 = vmatmul.mubr.bf16.gmra.mrb[12].mxu0 %v5188_v56  ;;  %v5668_v19 = vcombine.low %v15758_v45, %v15517_v48  ;;  %v15775_v32 = vrot.slane %v2592_v34, %v13557_v8  ;;  %v5248_v27 = vcombine.low %v15748_v37, %v15745_v2  ;;  %v2789_v21 = vcombine.low %v19014_v39, %v19013_v50  ;;  %v19017_v34 = vld [vmem:[#allocation68_spill] sm:$0xff]  ;;  %v19018_v39 = vld [vmem:[#allocation95_spill] sm:$0xff]  ;;  %v19025_v46 = vld [vmem:[#allocation17_spill] sm:$0xff] }
 0x1b4   : > { %12036 = vmatprep.mubr.msk.bf16.mxu0 %vm13283_vm0, %v18617_v38  ;;  %12077 = vmatpush3.bf16.msra.mxu0 %v12884_v40  ;;  %v15784_v7 = vrot.slane %v2787_v62, %v13557_v8  ;;  %v15788_v40 = vrot.slane %v2788_v26, %v13557_v8  ;;  %v2641_v37 = vcombine.low %v18972_v13, %v19017_v34  ;;  %v19019_v62 = vld [vmem:[#allocation186_spill] sm:$0xff]  ;;  %v19020_v34 = vld [vmem:[#allocation100_spill] sm:$0xff] }
 0x1b5   : > { %12078 = vmatprep.subr.bf16.mxu0 %v18617_v38  ;;  %v15791_v49 = vrot.slane %v5668_v19, %v13557_v8  ;;  %v5677_v30 = vcombine.low %v15540_v61, %v15775_v32  ;;  %v15798_v56 = vrot.slane %v5247_v63, %v13557_v8  ;;  %v5264_v47 = vcombine.low %v19019_v62, %v19018_v39  ;;  %v19022_v62 = vld [vmem:[#allocation101_spill] sm:$0xff] }
 0x1b6   : > { %19015 = vst [vmem:[#allocation148_spill] sm:$0xff] %v15784_v7  ;;  %19016 = vst [vmem:[#allocation151_spill] sm:$0xff] %v15788_v40  ;;  %v2192_v16 = vrot.slane %v2184_v23, %v13557_v8  ;;  %v2199_v26 = vrot.slane %v2185_v29, %v13557_v8  ;;  %11753 = vmatmul.mubr.bf16.gmra.mrb[32].mxu1 %v2151_v18  ;;  %v15810_v13 = vrot.slane %v2641_v37, %v13557_v8  ;;  %v19021_v23 = vld [vmem:[#allocation102_spill] sm:$0xff]  ;;  %v19023_v37 = vld [vmem:[#allocation15_spill] sm:$0xff] }
 0x1b7   : > { %v15807_v20 = vrot.slane %v5677_v30, %v13557_v8  ;;  %v15813_v63 = vrot.slane %v2789_v21, %v13557_v8  ;;  %v11035_v50 = vcombine.high %v19020_v34, %v19018_v39  ;;  %v2837_v29 = vcombine.low %v19022_v62, %v19021_v23  ;;  %11756 = vmatprep.mubr.msk.bf16.mxu1 %vm13283_vm0, %v18617_v38  ;;  %v19024_v19 = vld [vmem:[#allocation13_spill] sm:$0xff] }
 0x1b8   : > { %12079 = vmatpush3.bf16.msra.mxu0 %v12887_v42  ;;  %v5272_v18 = vcombine.low %v15784_v7, %v15788_v40  ;;  %v5686_v21 = vcombine.low %v15641_v55, %v15810_v13  ;;  %v2691_v30 = vcombine.low %v18978_v0, %v18977_v28  ;;  %v2394_v41 = vcombine.low %v19024_v19, %v19023_v37  ;;  %v19027_v40 = vld [vmem:[#allocation98_spill] sm:$0xff] }
 0x1b9   : > { %12124 = vmatprep.subr.bf16.mxu0 %v18617_v38  ;;  %v11027_v17 = vcombine.high %v19024_v19, %v19023_v37  ;;  %v2396_v10 = vcombine.low %v19026_v44, %v19025_v46  ;;  %v2740_v7 = vcombine.low %v19001_v6, %v19027_v40  ;;  %v2200_v42 = vcombine.low %v2192_v16, %v2199_v26 }
 0x1ba   : > { %v11028_v0 = vcombine.high %v19026_v44, %v19025_v46  ;;  %v15843_v28 = vrot.slane %v5686_v21, %v13557_v8  ;;  %v11036_v19 = vcombine.high %v19022_v62, %v19021_v23  ;;  %v15851_v37 = vrot.slane %v11035_v50, %v13557_v8  ;;  %v19029_v44 = vld [vmem:[#allocation190_spill] sm:$0xff] }
 0x1bb   : > { %12037 = vmatmul.mubr.bf16.gmra.mrb[16].mxu0 %v5213_v43  ;;  %v15846_v43 = vrot.slane %v2691_v30, %v13557_v8  ;;  %v15854_v6 = vrot.slane %v2837_v29, %v13557_v8  ;;  %v15857_v16 = vrot.slane %v2740_v7, %v13557_v8  ;;  %v2207_v46 = vrot.slane %v19029_v44, %v13557_v8 }
 0x1bc   : > { %12040 = vmatprep.mubr.msk.bf16.mxu0 %vm13283_vm0, %v18617_v38  ;;  %v2835_v62 = vcombine.low %v19020_v34, %v19018_v39  ;;  %v2404_v50 = vrot.slane %v2394_v41, %v13557_v8  ;;  %v2411_v23 = vrot.slane %v11027_v17, %v13557_v8  ;;  %v2418_v29 = vrot.slane %v2396_v10, %v13557_v8  ;;  %v19031_v39 = vld [vmem:[#allocation109_spill] sm:$0xff] }
 0x1bd   : > { %19028 = vst [vmem:[#allocation45_spill] sm:$0xff] %v15854_v6  ;;  %v5695_v26 = vcombine.low %v15846_v43, %v15658_v5  ;;  %v5704_v7 = vcombine.low %v15857_v16, %v15745_v2  ;;  %v2425_v21 = vrot.slane %v11028_v0, %v13557_v8  ;;  %v5722_v34 = vcombine.low %v19031_v39, %v18819_v11 }
 0x1be   : > { %11757 = vmatmul.mubr.bf16.gmra.mrb[36].mxu1 %v2200_v42  ;;  %v15877_v40 = vrot.slane %v2835_v62, %v13557_v8  ;;  %v5262_v41 = vrot.slane %v5248_v27, %v13557_v8  ;;  %v5271_v17 = vrot.slane %v5264_v47, %v13557_v8  ;;  %v15884_v10 = vrot.slane %v11036_v19, %v13557_v8 }
 0x1bf   : > { %v15874_v30 = vrot.slane %v5695_v26, %v13557_v8  ;;  %11760 = vmatprep.mubr.msk.bf16.mxu1 %vm13283_vm0, %v18617_v38  ;;  %v15889_v42 = vrot.slane %v5704_v7, %v13557_v8  ;;  %v5297_v0 = vcombine.low %v15851_v37, %v15854_v6  ;;  %v5729_v47 = vrot.slane %v5722_v34, %v13557_v8 }
 0x1c0   : > { %v5713_v11 = vcombine.low %v15813_v63, %v15877_v40  ;;  %v19032_v27 = vcombine.low %v15717_v1, %v15720_v22  ;;  %v15902_v19 = vrot.slane %v5272_v18, %v13557_v8  ;;  %v2214_v62 = vrot.slane %v2207_v46, %v13557_v8 }
 0x1c1   : > { %19030 = vst [vmem:[#allocation46_spill] sm:$0xff] %v15874_v30  ;;  %v2426_v7 = vcombine.low %v2404_v50, %v2411_v23  ;;  %v5712_v44 = vcombine.low %v15798_v56, %v15889_v42  ;;  %v2427_v26 = vcombine.low %v2418_v29, %v2425_v21  ;;  %v19033_v30 = vld [vmem:[#allocation23_spill] sm:$0xff]  ;;  %v5730_v22 = vcombine.low %v15884_v10, %v5729_v47 }
 0x1c2   : > { %v2443_v34 = vcombine.low %v18846_v57, %v19033_v30  ;;  %v15912_v6 = vrot.slane %v5713_v11, %v13557_v8  ;;  %v5273_v18 = vcombine.low %v15813_v63, %v5271_v17  ;;  %v15919_v50 = vrot.slane %v5297_v0, %v13557_v8 }
 0x1c3   : > { %12041 = vmatmul.mubr.bf16.gmra.mrb[20].mxu0 %v19032_v27  ;;  %v19034_v27 = vld [vmem:[#allocation187_spill] sm:$0xff]  ;;  %v15924_v29 = vrot.slane %v5730_v22, %v13557_v8  ;;  %v5263_v57 = vcombine.low %v15798_v56, %v5262_v41  ;;  %v2434_v21 = vrot.slane %v2426_v7, %v13557_v8  ;;  %v2441_v30 = vrot.slane %v2427_v26, %v13557_v8  ;;  %v19071_v56 = vld [vmem:[#allocation40_spill] sm:$0xff] }
 0x1c4   : > { %12044 = vmatprep.mubr.msk.bf16.mxu0 %vm13283_vm0, %v18617_v38  ;;  %v5289_v46 = vcombine.low %v19031_v39, %v19034_v27  ;;  %v5721_v23 = vcombine.low %v15902_v19, %v15912_v6  ;;  %v2453_v17 = vrot.slane %v2443_v34, %v13557_v8  ;;  %v5287_v0 = vrot.slane %v5273_v18, %v13557_v8  ;;  %v19074_v6 = vld [vmem:[#allocation113_spill] sm:$0xff] }
 0x1c5   : > { %v5738_v11 = vcombine.low %v15919_v50, %v15924_v29  ;;  %v2442_v41 = vcombine.low %v2434_v21, %v2441_v30  ;;  %v2476_v26 = vcombine.low %v15372_v25, %v15396_v14  ;;  %v19035_v7 = vcombine.low %v15327_v58, %v15330_v51  ;;  %v19037_v14 = vld [vmem:[#allocation132_spill] sm:$0xff] }
 0x1c6   : > { %11761 = vmatmul.mubr.bf16.gmra.mrb[40].mxu1 %v2214_v62  ;;  %v5296_v47 = vrot.slane %v5289_v46, %v13557_v8  ;;  %v2475_v62 = vcombine.low %v2453_v17, %v15369_v24  ;;  %v19036_v22 = vcombine.low %v15335_v60, %v15363_v36  ;;  %v2493_v46 = vcombine.low %v18906_v3, %v18905_v52  ;;  %v19038_v60 = vld [vmem:[#allocation107_spill] sm:$0xff] }
 0x1c7   : > { %11780 = vmatprep.mubr.msk.bf16.mxu1 %vm13283_vm0, %v18617_v38  ;;  %v15945_v34 = vrot.slane %v19035_v7, %v13557_v8  ;;  %v5288_v24 = vcombine.low %v15902_v19, %v5287_v0  ;;  %v5314_v25 = vcombine.low %v18821_v33, %v15031_v53  ;;  %v5315_v58 = vcombine.low %v15039_v35, %v18825_v9  ;;  %v13057_v53 = vld [vmem:[#allocation4 + $0x80] sm:$0xff]  }
 0x1c8   : > { %v15951_v18 = vrot.slane %v19036_v22, %v13557_v8  ;;  %v5316_v51 = vcombine.low %v18823_v31, %v15111_v54  ;;  %v5317_v36 = vcombine.low %v19038_v60, %v19037_v14  ;;  %v2483_v52 = vrot.slane %v2475_v62, %v13557_v8  ;;  %v19040_v62 = vld [vmem:[#allocation129_spill] sm:$0xff] }
 0x1c9   : > { %v2490_v3 = vrot.slane %v2476_v26, %v13557_v8  ;;  %v2509_v35 = vrot.slane %v2493_v46, %v13557_v8  ;;  %v5324_v9 = vrot.slane %v5314_v25, %v13557_v8  ;;  %v5331_v54 = vrot.slane %v5315_v58, %v13557_v8  ;;  %v19041_v26 = vld [vmem:[#allocation150_spill] sm:$0xff]  ;;  %v13058_v22 = vld [vmem:[#allocation4 + $0x88] sm:$0xff]  }
 0x1ca   : > { %v6115_v21 = vcombine.low %v15945_v34, %v15951_v18  ;;  %v5338_v30 = vrot.slane %v5316_v51, %v13557_v8  ;;  %v5345_v17 = vrot.slane %v5317_v36, %v13557_v8  ;;  %v2525_v7 = vcombine.low %v19041_v26, %v19040_v62  ;;  %v13059_v51 = vld [vmem:[#allocation4 + $0x90] sm:$0xff]   ;;  %v19045_v62 = vld [vmem:[#allocation155_spill] sm:$0xff] }
 0x1cb   : > { %12045 = vmatmul.mubr.bf16.gmra.mrb[24].mxu0 %v5263_v57  ;;  %v5298_v57 = vcombine.low %v15884_v10, %v5296_v47  ;;  %v2491_v0 = vcombine.low %v2483_v52, %v2490_v3  ;;  %v19039_v47 = vld [vmem:[#allocation145_spill] sm:$0xff]  ;;  %v12902_v34 = vld [vmem:[#allocation4 + $0x210] sm:$0xff]  }
 0x1cc   : > { %12048 = vmatprep.mubr.msk.bf16.mxu0 %vm13283_vm0, %v18617_v38  ;;  %v2539_v58 = vrot.slane %v2525_v7, %v13557_v8  ;;  %v19042_v3 = vld [vmem:[#allocation25_spill] sm:$0xff]  ;;  %v2622_v7 = vcombine.low %v19045_v62, %v15540_v61  ;;  %v13063_v61 = vld [vmem:[#allocation4 + $0xb0] sm:$0xff]  }
 0x1cd   : > { %v5312_v31 = vrot.slane %v5298_v57, %v13557_v8  ;;  %v5347_v57 = vcombine.low %v5338_v30, %v5345_v17 }
 0x1ce   : > { %11781 = vmatmul.mubr.bf16.vlgmr.msra.gmra.mrb[0].mxu1 %v2442_v41  ;;  %v2524_v41 = vcombine.low %v19039_v47, %v2509_v35  ;;  %v13061_v47 = vld [vmem:[#allocation4 + $0xa0] sm:$0xff]  }
 0x1cf   : > { %11784 = vmatprep.mubr.msk.bf16.mxu1 %vm13283_vm0, %v18617_v38  ;;  %12372 = vmatpush3.bf16.msra.mxu1 %v13057_v53  ;;  %v5313_v46 = vcombine.low %v15919_v50, %v5312_v31  ;;  %v5361_v36 = vrot.slane %v5347_v57, %v13557_v8  ;;  %v2573_v53 = vcombine.low %v19042_v3, %v15758_v45  ;;  %v19043_v31 = vld [vmem:[#allocation156_spill] sm:$0xff]  ;;  %v19048_v3 = vld [vmem:[#allocation27_spill] sm:$0xff] }
 0x1d0   : > { %12365 = vmatprep.subr.bf16.mxu1 %v18617_v38  ;;  %v2532_v25 = vrot.slane %v2524_v41, %v13557_v8  ;;  %v5659_v57 = vcombine.low %v2509_v35, %v19041_v26  ;;  %v19047_v26 = vld [vmem:[#allocation160_spill] sm:$0xff] }
 0x1d1   : > { %v2581_v17 = vrot.slane %v2573_v53, %v13557_v8 }
 0x1d2   : > { %v2540_v52 = vcombine.low %v2532_v25, %v2539_v58  ;;  %v2630_v58 = vrot.slane %v2622_v7, %v13557_v8  ;;  %v19051_v7 = vld [vmem:[#allocation135_spill] sm:$0xff] }
 0x1d3   : > { %12049 = vmatmul.mubr.bf16.gmra.mrb[28].mxu0 %v5288_v24  ;;  %12373 = vmatpush3.bf16.msra.mxu1 %v13058_v22  ;;  %v5346_v24 = vcombine.low %v5324_v9, %v5331_v54  ;;  %v2574_v9 = vcombine.low %v15517_v48, %v19043_v31  ;;  %v13060_v54 = vld [vmem:[#allocation4 + $0x98] sm:$0xff]   ;;  %v19044_v48 = vld [vmem:[#allocation126_spill] sm:$0xff]  ;;  %v12891_v31 = vld [vmem:[#allocation4 + $0x1c0] sm:$0xff]  }
 0x1d4   : > { %12052 = vmatprep.mubr.msk.bf16.mxu0 %vm13283_vm0, %v18617_v38  ;;  %12366 = vmatprep.subr.bf16.mxu1 %v18617_v38  ;;  %v5369_v45 = vrot.slane %v19044_v48, %v13557_v8  ;;  %v19046_v22 = vld [vmem:[#allocation26_spill] sm:$0xff] }
 0x1d5   : > { %v5354_v60 = vrot.slane %v5346_v24, %v13557_v8  ;;  %v13062_v24 = vld [vmem:[#allocation4 + $0xa8] sm:$0xff]  }
 0x1d6   : > { %11785 = vmatmul.mubr.bf16.gmra.mrb[4].mxu1 %v2491_v0  ;;  %v2588_v0 = vrot.slane %v2574_v9, %v13557_v8  ;;  %v5376_v25 = vrot.slane %v5369_v45, %v13557_v8  ;;  %v12894_v45 = vld [vmem:[#allocation4 + $0x1d0] sm:$0xff]  }
 0x1d7   : > { %11788 = vmatprep.mubr.msk.bf16.mxu1 %vm13283_vm0, %v18617_v38  ;;  %12374 = vmatpush3.bf16.msra.mxu1 %v13059_v51  ;;  %v15999_v30 = vcombine.low %v5354_v60, %v5361_v36  ;;  %v2671_v60 = vcombine.low %v19047_v26, %v15641_v55  ;;  %v2672_v36 = vcombine.low %v15810_v13, %v15644_v4  ;;  %v12893_v55 = vld [vmem:[#allocation4 + $0x1c8] sm:$0xff]   ;;  %v19049_v13 = vld [vmem:[#allocation164_spill] sm:$0xff]  ;;  %v19057_v26 = vld [vmem:[#allocation151_spill] sm:$0xff] }
 0x1d8   : > { %12367 = vmatprep.subr.bf16.mxu1 %v18617_v38  ;;  %v2589_v41 = vcombine.low %v2581_v17, %v2588_v0  ;;  %v2720_v17 = vcombine.low %v19049_v13, %v15652_v15  ;;  %v19050_v0 = vld [vmem:[#allocation30_spill] sm:$0xff]  ;;  %v19052_v15 = vcombine.low %v15791_v49, %v19051_v7  ;;  %v2890_v13 = vrot.slane %v19031_v39, %v13557_v8  ;;  %v19067_v7 = vld [vmem:[#allocation36_spill] sm:$0xff] }
 0x1d9   : > { %v2679_v9 = vrot.slane %v2671_v60, %v13557_v8  ;;  %v2819_v60 = vcombine.low %v19057_v26, %v15813_v63  ;;  %v19076_v26 = vld [vmem:[#allocation105_spill] sm:$0xff] }
 0x1db   : > { %12053 = vmatmul.mubr.bf16.gmra.mrb[32].mxu0 %v5313_v46  ;;  %12375 = vmatpush3.bf16.msra.mxu1 %v13060_v54  ;;  %v2623_v46 = vcombine.low %v15775_v32, %v19046_v22  ;;  %v5666_v32 = vrot.slane %v5659_v57, %v13557_v8  ;;  %v2686_v54 = vrot.slane %v2672_v36, %v13557_v8  ;;  %v19054_v57 = vld [vmem:[#allocation169_spill] sm:$0xff]  ;;  %v12898_v36 = vld [vmem:[#allocation4 + $0x1f0] sm:$0xff]  }
 0x1dc   : > { %12056 = vmatprep.mubr.msk.bf16.mxu0 %vm13283_vm0, %v18617_v38  ;;  %12368 = vmatprep.subr.bf16.mxu1 %v18617_v38 }
 0x1dd   : > { %v2637_v51 = vrot.slane %v2623_v46, %v13557_v8  ;;  %v5667_v53 = vcombine.low %v5666_v32, %v19048_v3  ;;  %v2687_v4 = vcombine.low %v2679_v9, %v2686_v54  ;;  %v19053_v46 = vld [vmem:[#allocation167_spill] sm:$0xff]  ;;  %v19056_v32 = vld [vmem:[#allocation148_spill] sm:$0xff]  ;;  %v19059_v3 = vld [vmem:[#allocation45_spill] sm:$0xff] }
 0x1de   : > { %11789 = vmatmul.mubr.bf16.gmra.mrb[8].mxu1 %v2540_v52  ;;  %v13064_v52 = vld [vmem:[#allocation4 + $0xb8] sm:$0xff]  }
 0x1df   : > { %11792 = vmatprep.mubr.msk.bf16.mxu1 %vm13283_vm0, %v18617_v38  ;;  %12376 = vmatpush3.bf16.msra.mxu1 %v13061_v47  ;;  %v2638_v35 = vcombine.low %v2630_v58, %v2637_v51  ;;  %v2721_v47 = vcombine.low %v19050_v0, %v15846_v43  ;;  %v12895_v43 = vld [vmem:[#allocation4 + $0x1d8] sm:$0xff]   ;;  %v12896_v58 = vld [vmem:[#allocation4 + $0x1e0] sm:$0xff]  }
 0x1e0   : > { %12369 = vmatprep.subr.bf16.mxu1 %v18617_v38 }
 0x1e1   : > { %v2735_v62 = vrot.slane %v2721_v47, %v13557_v8  ;;  %v11097_v47 = vld.sshfl [vmem:[%s13533_s2 + $0x7c] sm:$0x33 pattern:$0x75316420] }
 0x1e3   : > { %12057 = vmatmul.mubr.bf16.gmra.mrb[36].mxu0 %v15999_v30  ;;  %12377 = vmatpush3.bf16.msra.mxu1 %v13062_v24  ;;  %v2769_v24 = vcombine.low %v15658_v5, %v19053_v46  ;;  %v19055_v5 = vcombine.low %v15807_v20, %v15605_v12  ;;  %v2833_v20 = vrot.slane %v2819_v60, %v13557_v8  ;;  %v19070_v46 = vld [vmem:[#allocation39_spill] sm:$0xff] }
 0x1e4   : > { %12060 = vmatprep.mubr.msk.bf16.mxu0 %vm13283_vm0, %v18617_v38  ;;  %12370 = vmatprep.subr.bf16.mxu1 %v18617_v38 }
 0x1e5   : > { %v2777_v49 = vrot.slane %v2769_v24, %v13557_v8 }
 0x1e6   : > { %11793 = vmatmul.mubr.bf16.gmra.mrb[12].mxu1 %v2589_v41  ;;  %v2728_v41 = vrot.slane %v2720_v17, %v13557_v8  ;;  %v19064_v17 = vld [vmem:[#allocation94_spill] sm:$0xff] }
 0x1e7   : > { %11796 = vmatprep.mubr.msk.bf16.mxu1 %vm13283_vm0, %v18617_v38  ;;  %12378 = vmatpush3.bf16.msra.mxu1 %v13063_v61 }
 0x1e8   : > { %12371 = vmatprep.subr.bf16.mxu1 %v18617_v38  ;;  %v2736_v22 = vcombine.low %v2728_v41, %v2735_v62  ;;  %v19065_v41 = vld [vmem:[#allocation99_spill] sm:$0xff]  ;;  %v19066_v62 = vld [vmem:[#allocation84_spill] sm:$0xff] }
 0x1e9   : > { %v3440_v39 = vcombine.low %v19066_v62, %v19065_v41  ;;  %v19080_v41 = vld [vmem:[#allocation141_spill] sm:$0xff]  ;;  %v3590_v62 = vrot.slane %v19034_v27, %v13557_v8 }
 0x1eb   : > { %12061 = vmatmul.mubr.bf16.gmra.mrb[40].mxu0 %v5376_v25  ;;  %12379 = vmatpush3.bf16.msra.mxu1 %v13064_v52  ;;  %v2770_v25 = vcombine.low %v19054_v57, %v15857_v16  ;;  %v12897_v16 = vld [vmem:[#allocation4 + $0x1e8] sm:$0xff]   ;;  %v2867_v52 = vcombine.low %v15877_v40, %v15851_v37 }
 0x1ec   : > { %12080 = vmatprep.mubr.msk.bf16.mxu0 %vm13283_vm0, %v18617_v38  ;;  %v19061_v37 = vld [vmem:[#allocation81_spill] sm:$0xff] }
 0x1ed   : > { %v2784_v51 = vrot.slane %v2770_v25, %v13557_v8  ;;  %v2875_v9 = vrot.slane %v2867_v52, %v13557_v8  ;;  %v5611_v25 = vcombine.high %v11097_v47, %v11097_v47 }
 0x1ee   : > { %11797 = vmatmul.mubr.bf16.gmra.mrb[16].mxu1 %v2638_v35  ;;  %v2818_v35 = vcombine.low %v15745_v2, %v19056_v32  ;;  %v19058_v2 = vcombine.low %v15843_v28, %v15709_v59  ;;  %v19060_v28 = vld [vmem:[#allocation122_spill] sm:$0xff]  ;;  %v19073_v32 = vld [vmem:[#allocation125_spill] sm:$0xff] }
 0x1ef   : > { %11800 = vmatprep.mubr.msk.bf16.mxu1 %vm13283_vm0, %v18617_v38  ;;  %v2785_v61 = vcombine.low %v2777_v49, %v2784_v51  ;;  %v3390_v40 = vcombine.low %v19061_v37, %v19060_v28  ;;  %v16134_v49 = vrot.slane %v3440_v39, %v13557_v8  ;;  %v19078_v37 = vld [vmem:[#allocation116_spill] sm:$0xff]  ;;  %v3597_v39 = vrot.slane %v3590_v62, %v13557_v8 }
 0x1f0   : > { %v2826_v12 = vrot.slane %v2818_v35, %v13557_v8 }
 0x1f1   : > { %v3470_v19 = vcombine.low %v19074_v6, %v16134_v49 }
 0x1f2   : > { %v2834_v63 = vcombine.low %v2826_v12, %v2833_v20 }
 0x1f3   : > { %12081 = vmatmul.mubr.bf16.vlgmr.msra.gmra.mrb[0].mxu0 %v5667_v53  ;;  %v2868_v53 = vcombine.low %v19059_v3, %v15884_v10  ;;  %v19062_v10 = vld [vmem:[#allocation46_spill] sm:$0xff] }
 0x1f4   : > { %12125 = vmatpush3.bf16.msra.mxu0 %v12891_v31  ;;  %12084 = vmatprep.mubr.msk.bf16.mxu0 %vm13283_vm0, %v18617_v38  ;;  %v12899_v31 = vld [vmem:[#allocation4 + $0x1f8] sm:$0xff]   ;;  %v19063_v54 = vcombine.low %v15717_v1, %v19062_v10  ;;  %v11096_v1 = vld.sshfl [vmem:[%s13533_s2 + $0x78] sm:$0x33 pattern:$0x75316420] }
 0x1f5   : > { %12126 = vmatprep.subr.bf16.mxu0 %v18617_v38  ;;  %v2882_v59 = vrot.slane %v2868_v53, %v13557_v8  ;;  %v5587_v57 = vcombine.high %v11096_v1, %v11096_v1  ;;  %v16142_v51 = vrot.slane %v11096_v1, %v13557_v8 }
 0x1f6   : > { %11801 = vmatmul.mubr.bf16.gmra.mrb[20].mxu1 %v2687_v4  ;;  %v16100_v4 = vrot.slane %v3390_v40, %v13557_v8 }
 0x1f7   : > { %11804 = vmatprep.mubr.msk.bf16.mxu1 %vm13283_vm0, %v18617_v38 }
 0x1f8   : > { %12127 = vmatpush3.bf16.msra.mxu0 %v12893_v55  ;;  %v2883_v55 = vcombine.low %v2875_v9, %v2882_v59  ;;  %v3421_v0 = vcombine.low %v16100_v4, %v19064_v17  ;;  %v19077_v59 = vld [vmem:[#allocation128_spill] sm:$0xff] }
 0x1f9   : > { %12128 = vmatprep.subr.bf16.mxu0 %v18617_v38 }
 0x1fb   : > { %12085 = vmatmul.mubr.bf16.gmra.mrb[4].mxu0 %v19052_v15  ;;  %v19068_v15 = vld [vmem:[#allocation38_spill] sm:$0xff] }
 0x1fc   : > { %12088 = vmatprep.mubr.msk.bf16.mxu0 %vm13283_vm0, %v18617_v38  ;;  %12129 = vmatpush3.bf16.msra.mxu0 %v12894_v45  ;;  %v2897_v45 = vrot.slane %v2890_v13, %v13557_v8  ;;  %v19079_v13 = vld [vmem:[#allocation130_spill] sm:$0xff] }
 0x1fd   : > { %12130 = vmatprep.subr.bf16.mxu0 %v18617_v38 }
 0x1fe   : > { %11805 = vmatmul.mubr.bf16.gmra.mrb[24].mxu1 %v2736_v22 }
 0x1ff   : > { %11808 = vmatprep.mubr.msk.bf16.mxu1 %vm13283_vm0, %v18617_v38 }
 0x200   : > { %12131 = vmatpush3.bf16.msra.mxu0 %v12895_v43  ;;  %v19069_v43 = vcombine.low %v19067_v7, %v19068_v15  ;;  %v19081_v7 = vld [vmem:[#allocation143_spill] sm:$0xff] }
 0x201   : > { %12132 = vmatprep.subr.bf16.mxu0 %v18617_v38  ;;  %v19082_v15 = vld [vmem:[#allocation139_spill] sm:$0xff] }
 0x202   : > { %v16122_v22 = vrot.slane %v19069_v43, %v13557_v8  ;;  %v6116_v43 = vcombine.low %v19082_v15, %v19081_v7  ;;  %v19097_v7 = vld [vmem:[#allocation163_spill] sm:$0xff]  ;;  %v19098_v15 = vld [vmem:[#allocation162_spill] sm:$0xff] }
 0x203   : > { %12089 = vmatmul.mubr.bf16.gmra.mrb[8].mxu0 %v19055_v5  ;;  %v16145_v5 = vrot.slane %v5587_v57, %v13557_v8  ;;  %v12900_v57 = vld [vmem:[#allocation4 + $0x200] sm:$0xff]  }
 0x204   : > { %12092 = vmatprep.mubr.msk.bf16.mxu0 %vm13283_vm0, %v18617_v38  ;;  %12133 = vmatpush3.bf16.msra.mxu0 %v12896_v58  ;;  %v3435_v58 = vrot.slane %v3421_v0, %v13557_v8 }
 0x205   : > { %12134 = vmatprep.subr.bf16.mxu0 %v18617_v38  ;;  %v11099_v12 = vcombine.high %v16142_v51, %v16145_v5 }
 0x206   : > { %11809 = vmatmul.mubr.bf16.gmra.mrb[28].mxu1 %v2785_v61  ;;  %v16151_v61 = vrot.slane %v5611_v25, %v13557_v8  ;;  %v3436_v35 = vcombine.low %v19073_v32, %v3435_v58  ;;  %v6124_v25 = vrot.slane %v6116_v43, %v13557_v8  ;;  %v12901_v32 = vld [vmem:[#allocation4 + $0x208] sm:$0xff]   ;;  %v6184_v43 = vcombine.low %v19098_v15, %v19097_v7 }
 0x207   : > { %11812 = vmatprep.mubr.msk.bf16.mxu1 %vm13283_vm0, %v18617_v38  ;;  %v5756_v53 = vrot.slane %v11099_v12, %v13557_v8  ;;  %v6018_v7 = vshrl.u32 %v16145_v5, 16 }
 0x208   : > { %12135 = vmatpush3.bf16.msra.mxu0 %v12897_v16  ;;  %v16148_v16 = vrot.slane %v11097_v47, %v13557_v8 }
 0x209   : > { %12136 = vmatprep.subr.bf16.mxu0 %v18617_v38 }
 0x20a   : > { %v5741_v20 = vcombine.low %v16148_v16, %v16151_v61 }
 0x20b   : > { %12093 = vmatmul.mubr.bf16.gmra.mrb[12].mxu0 %v19058_v2  ;;  %v11100_v2 = vcombine.high %v16148_v16, %v16151_v61 }
 0x20c   : > { %12096 = vmatprep.mubr.msk.bf16.mxu0 %vm13283_vm0, %v18617_v38  ;;  %12137 = vmatpush3.bf16.msra.mxu0 %v12898_v36  ;;  %v5739_v36 = vcombine.low %v16142_v51, %v16145_v5 }
 0x20d   : > { %12138 = vmatprep.subr.bf16.mxu0 %v18617_v38  ;;  %v5770_v9 = vrot.slane %v11100_v2, %v13557_v8 }
 0x20e   : > { %11813 = vmatmul.mubr.bf16.gmra.mrb[32].mxu1 %v2834_v63  ;;  %v3484_v63 = vrot.slane %v3470_v19, %v13557_v8  ;;  %v5749_v3 = vrot.slane %v5739_v36, %v13557_v8  ;;  %v19085_v19 = vld [vmem:[#allocation146_spill] sm:$0xff]  ;;  %v19088_v36 = vld [vmem:[#allocation152_spill] sm:$0xff] }
 0x20f   : > { %11816 = vmatprep.mubr.msk.bf16.mxu1 %vm13283_vm0, %v18617_v38 }
 0x210   : > { %12139 = vmatpush3.bf16.msra.mxu0 %v12899_v31  ;;  %v5763_v31 = vrot.slane %v5741_v20, %v13557_v8  ;;  %v3485_v28 = vcombine.low %v19077_v59, %v3484_v63  ;;  %v5771_v10 = vcombine.low %v5749_v3, %v5756_v53  ;;  %v12903_v20 = vld [vmem:[#allocation4 + $0x218] sm:$0xff]   ;;  %v19089_v63 = vld [vmem:[#allocation154_spill] sm:$0xff] }
 0x211   : > { %12184 = vmatprep.subr.bf16.mxu0 %v18617_v38  ;;  %v19090_v3 = vld [vmem:[#allocation131_spill] sm:$0xff] }
 0x212   : > { %v5772_v50 = vcombine.low %v5763_v31, %v5770_v9  ;;  %v6150_v53 = vcombine.low %v19090_v3, %v19089_v63  ;;  %v19091_v31 = vld [vmem:[#allocation158_spill] sm:$0xff]  ;;  %v19092_v9 = vld [vmem:[#allocation153_spill] sm:$0xff]  ;;  %v16278_v63 = vcombine.high %v16142_v51, %v16142_v51  ;;  %v16282_v3 = vcombine.high %v16145_v5, %v16145_v5 }
 0x213   : > { %12097 = vmatmul.mubr.bf16.gmra.mrb[16].mxu0 %v19063_v54  ;;  %v6151_v59 = vcombine.low %v19092_v9, %v19091_v31  ;;  %v19107_v31 = vld [vmem:[#allocation43_spill] sm:$0xff] }
 0x214   : > { %12100 = vmatprep.mubr.msk.bf16.mxu0 %vm13283_vm0, %v18617_v38  ;;  %v5786_v54 = vrot.slane %v5772_v50, %v13557_v8  ;;  %v12905_v50 = vld [vmem:[#allocation4 + $0x228] sm:$0xff]   ;;  %v19108_v9 = vld [vmem:[#allocation147_spill] sm:$0xff]  ;;  %v6023_v15 = vshll.u32 %v16278_v63, 16 }
 0x216   : > { %11817 = vmatmul.mubr.bf16.gmra.mrb[36].mxu1 %v2883_v55  ;;  %v16195_v55 = vld.sshfl [vmem:[%s13533_s2 + $0x80] sm:$0x33 pattern:$0x75316420] }
 0x217   : > { %11820 = vmatprep.mubr.msk.bf16.mxu1 %vm13283_vm0, %v18617_v38  ;;  %v16200_v47 = vrot.slane %v16195_v55, %v13557_v8 }
 0x21b   : > { %12101 = vmatmul.mubr.bf16.gmra.mrb[20].mxu0 %v5712_v44  ;;  %v19072_v44 = vcombine.low %v19070_v46, %v19071_v56  ;;  %v19083_v46 = vld [vmem:[#allocation144_spill] sm:$0xff]  ;;  %v19084_v56 = vld [vmem:[#allocation142_spill] sm:$0xff] }
 0x21c   : > { %12104 = vmatprep.mubr.msk.bf16.mxu0 %vm13283_vm0, %v18617_v38 }
 0x21d   : > { %v16128_v42 = vrot.slane %v19072_v44, %v13557_v8  ;;  %v6117_v44 = vcombine.low %v19084_v56, %v19083_v46  ;;  %v19099_v56 = vld [vmem:[#allocation28_spill] sm:$0xff] }
 0x21e   : > { %11821 = vmatmul.mubr.bf16.gmra.mrb[40].mxu1 %v2897_v45 }
 0x21f   : > { %v6588_v24 = vcombine.low %v16122_v22, %v16128_v42  ;;  %11864 = vmatprep.mubr.msk.bf16.mxu1 %vm13283_vm0, %v18617_v38  ;;  %v6131_v58 = vrot.slane %v6117_v44, %v13557_v8  ;;  %v19100_v44 = vld [vmem:[#allocation67_spill] sm:$0xff] }
 0x223   : > { %12105 = vmatmul.mubr.bf16.gmra.mrb[24].mxu0 %v5721_v23  ;;  %v19075_v23 = vld [vmem:[#allocation186_spill] sm:$0xff] }
 0x224   : > { %12108 = vmatprep.mubr.msk.bf16.mxu0 %vm13283_vm0, %v18617_v38  ;;  %v3489_v60 = vcombine.low %v19076_v26, %v19075_v23  ;;  %v19086_v23 = vld [vmem:[#allocation149_spill] sm:$0xff] }
 0x225   : > { %v6133_v26 = vcombine.low %v19086_v23, %v19085_v19  ;;  %v19103_v23 = vld [vmem:[#allocation168_spill] sm:$0xff] }
 0x226   : > { %11865 = vmatmul.mubr.bf16.vlgmr.msra.gmra.mrb[24].mxu1 %v3436_v35  ;;  %v16170_v52 = vrot.slane %v3489_v60, %v13557_v8  ;;  %v6132_v35 = vcombine.low %v6124_v25, %v6131_v58  ;;  %v19087_v60 = vld [vmem:[#allocation24_spill] sm:$0xff]  ;;  %v6192_v25 = vrot.slane %v6184_v43, %v13557_v8  ;;  %v6026_v43 = vshrl.u32 %v16278_v63, 16 }
 0x227   : > { %11868 = vmatprep.mubr.msk.bf16.mxu1 %vm13283_vm0, %v18617_v38  ;;  %v6134_v12 = vcombine.low %v19088_v36, %v19087_v60  ;;  %v6141_v18 = vrot.slane %v6133_v26, %v13557_v8  ;;  %v19104_v26 = vld [vmem:[#allocation29_spill] sm:$0xff]  ;;  %v19105_v36 = vld [vmem:[#allocation16_spill] sm:$0xff] }
 0x228   : > { %v3519_v40 = vcombine.low %v19078_v37, %v16170_v52  ;;  %v6202_v60 = vcombine.low %v19104_v26, %v19103_v23  ;;  %v6071_v23 = vshll.u32 %v16200_v47, 16 }
 0x22a   : > { %v3533_v29 = vrot.slane %v3519_v40, %v13557_v8  ;;  %v6158_v40 = vrot.slane %v6150_v53, %v13557_v8 }
 0x22b   : > { %12109 = vmatmul.mubr.bf16.gmra.mrb[28].mxu0 %v5738_v11  ;;  %v5779_v11 = vrot.slane %v5771_v10, %v13557_v8  ;;  %v6165_v10 = vrot.slane %v6151_v59, %v13557_v8  ;;  %v6226_v59 = vcombine.low %v19108_v9, %v19107_v31  ;;  %v19125_v31 = vld [vmem:[#allocation59_spill] sm:$0xff] }
 0x22c   : > { %12112 = vmatprep.mubr.msk.bf16.mxu0 %vm13283_vm0, %v18617_v38  ;;  %v3534_v0 = vcombine.low %v19079_v13, %v3533_v29 }
 0x22d   : > { %v5787_v1 = vcombine.low %v5779_v11, %v5786_v54  ;;  %v6166_v29 = vcombine.low %v6158_v40, %v6165_v10  ;;  %v19093_v11 = vld [vmem:[#allocation133_spill] sm:$0xff]  ;;  %v16289_v10 = vcombine.high %v16148_v16, %v16148_v16  ;;  %v6234_v26 = vrot.slane %v6226_v59, %v13557_v8 }
 0x22e   : > { %11869 = vmatmul.mubr.bf16.gmra.mrb[28].mxu1 %v3485_v28  ;;  %v12904_v28 = vld [vmem:[#allocation4 + $0x220] sm:$0xff]   ;;  %v19094_v54 = vld [vmem:[#allocation157_spill] sm:$0xff]  ;;  %v6025_v59 = vsel %vm14347_vm5, %v6018_v7, %v6023_v15 }
 0x22f   : > { %11872 = vmatprep.mubr.msk.bf16.mxu1 %vm13283_vm0, %v18617_v38  ;;  %v6167_v13 = vcombine.low %v19094_v54, %v19093_v11  ;;  %v19112_v54 = vld [vmem:[#allocation19_spill] sm:$0xff] }
 0x233   : > { %12113 = vmatmul.mubr.bf16.gmra.mrb[32].mxu0 %v15999_v30  ;;  %v5794_v30 = vrot.slane %v16200_v47, %v13557_v8 }
 0x234   : > { %12116 = vmatprep.mubr.msk.bf16.mxu0 %vm13283_vm0, %v18617_v38 }
 0x235   : > { %v5801_v45 = vrot.slane %v5794_v30, %v13557_v8 }
 0x236   : > { %11873 = vmatmul.mubr.bf16.gmra.mrb[32].mxu1 %v3534_v0  ;;  %v19095_v0 = vld [vmem:[#allocation61_spill] sm:$0xff] }
 0x237   : > { %11876 = vmatprep.mubr.msk.bf16.mxu1 %vm13283_vm0, %v18617_v38 }
 0x23b   : > { %12117 = vmatmul.mubr.bf16.gmra.mrb[36].mxu0 %v5787_v1  ;;  %v19096_v1 = vld [vmem:[#allocation161_spill] sm:$0xff] }
 0x23c   : > { %12120 = vmatprep.mubr.msk.bf16.mxu0 %vm13283_vm0, %v18617_v38  ;;  %v6168_v30 = vcombine.low %v19096_v1, %v19095_v0  ;;  %v19114_v1 = vld [vmem:[#allocation140_spill] sm:$0xff] }
 0x23e   : > { %11877 = vmatmul.mubr.bf16.gmra.mrb[36].mxu1 %v19080_v41  ;;  %v6175_v41 = vrot.slane %v6167_v13, %v13557_v8  ;;  %v6182_v62 = vrot.slane %v6168_v30, %v13557_v8  ;;  %v19113_v13 = vld [vmem:[#allocation22_spill] sm:$0xff]  ;;  %v19115_v30 = vld [vmem:[#allocation21_spill] sm:$0xff] }
 0x23f   : > { %11880 = vmatprep.mubr.msk.bf16.mxu1 %vm13283_vm0, %v18617_v38  ;;  %v6244_v0 = vcombine.low %v19113_v13, %v19112_v54 }
 0x240   : > { %v6183_v46 = vcombine.low %v6175_v41, %v6182_v62  ;;  %v16301_v41 = vcombine.high %v16151_v61, %v16151_v61  ;;  %v6010_v62 = vshrl.u32 %v16142_v51, 16  ;;  %v6050_v51 = vshrl.u32 %v16151_v61, 16 }
 0x243   : > { %12121 = vmatmul.mubr.bf16.gmra.mrb[40].mxu0 %v5801_v45  ;;  %v12906_v45 = vld [vmem:[#allocation4 + $0x230] sm:$0xff]  }
 0x244   : > { %12140 = vmatprep.mubr.msk.bf16.mxu0 %vm13283_vm0, %v18617_v38 }
 0x246   : > { %11881 = vmatmul.mubr.bf16.gmra.mrb[40].mxu1 %v3597_v39  ;;  %v12907_v39 = vld [vmem:[#allocation4 + $0x238] sm:$0xff]  }
 0x24b   : > { %12141 = vmatmul.mubr.bf16.vlgmr.msra.gmra.mrb[0].mxu0 %v6115_v21  ;;  %v6148_v21 = vrot.slane %v6134_v12, %v13557_v8  ;;  %v19106_v12 = vld [vmem:[#allocation190_spill] sm:$0xff] }
 0x24c   : > { %12185 = vmatpush3.bf16.msra.mxu0 %v12900_v57  ;;  %12144 = vmatprep.mubr.msk.bf16.mxu0 %vm13283_vm0, %v18617_v38  ;;  %v6185_v57 = vcombine.low %v19100_v44, %v19099_v56  ;;  %v6034_v56 = vshrl.u32 %v16282_v3, 16  ;;  %v6039_v44 = vshll.u32 %v16148_v16, 16 }
 0x24d   : > { %12186 = vmatprep.subr.bf16.mxu0 %v18617_v38  ;;  %v6149_v2 = vcombine.low %v6141_v18, %v6148_v21 }
 0x24e   : > { %v6199_v58 = vrot.slane %v6185_v57, %v13557_v8  ;;  %v6042_v57 = vshrl.u32 %v16148_v16, 16 }
 0x250   : > { %12187 = vmatpush3.bf16.msra.mxu0 %v12901_v32  ;;  %v19101_v32 = vld [vmem:[#allocation32_spill] sm:$0xff]  ;;  %v6200_v18 = vcombine.low %v6192_v25, %v6199_v58  ;;  %v6047_v25 = vshll.u32 %v16151_v61, 16  ;;  %v6055_v58 = vshll.u32 %v16289_v10, 16 }
 0x251   : > { %12188 = vmatprep.subr.bf16.mxu0 %v18617_v38 }
 0x253   : > { %12145 = vmatmul.mubr.bf16.gmra.mrb[4].mxu0 %v6132_v35  ;;  %v19102_v35 = vld [vmem:[#allocation33_spill] sm:$0xff] }
 0x254   : > { %12148 = vmatprep.mubr.msk.bf16.mxu0 %vm13283_vm0, %v18617_v38  ;;  %12189 = vmatpush3.bf16.msra.mxu0 %v12902_v34  ;;  %v6201_v19 = vcombine.low %v19102_v35, %v19101_v32  ;;  %v6218_v34 = vcombine.low %v19106_v12, %v19105_v36  ;;  %v6058_v32 = vshrl.u32 %v16289_v10, 16  ;;  %v6063_v35 = vshll.u32 %v16301_v41, 16 }
 0x255   : > { %12190 = vmatprep.subr.bf16.mxu0 %v18617_v38  ;;  %v6260_v12 = vrot.slane %v6244_v0, %v13557_v8 }
 0x256   : > { %v6209_v21 = vrot.slane %v6201_v19, %v13557_v8  ;;  %v6066_v19 = vshrl.u32 %v16301_v41, 16 }
 0x258   : > { %12191 = vmatpush3.bf16.msra.mxu0 %v12903_v20  ;;  %v6216_v20 = vrot.slane %v6202_v60, %v13557_v8 }
 0x259   : > { %12192 = vmatprep.subr.bf16.mxu0 %v18617_v38 }
 0x25a   : > { %v6217_v53 = vcombine.low %v6209_v21, %v6216_v20  ;;  %v19117_v21 = vld [vmem:[#allocation192_spill] sm:$0xff] }
 0x25b   : > { %12149 = vmatmul.mubr.bf16.gmra.mrb[8].mxu0 %v6149_v2  ;;  %v6225_v2 = vrot.slane %v6218_v34, %v13557_v8 }
 0x25c   : > { %12152 = vmatprep.mubr.msk.bf16.mxu0 %vm13283_vm0, %v18617_v38  ;;  %12193 = vmatpush3.bf16.msra.mxu0 %v12904_v28  ;;  %v19109_v28 = vld [vmem:[#allocation44_spill] sm:$0xff] }
 0x25d   : > { %12194 = vmatprep.subr.bf16.mxu0 %v18617_v38  ;;  %v6227_v40 = vcombine.low %v19109_v28, %v6225_v2 }
 0x25f   : > { %v6241_v60 = vrot.slane %v6227_v40, %v13557_v8  ;;  %v6041_v40 = vsel %vm14347_vm5, %v6034_v56, %v6039_v44  ;;  %v6001_v44 = vcombine.high %v16195_v55, %v16195_v55 }
 0x260   : > { %12195 = vmatpush3.bf16.msra.mxu0 %v12905_v50  ;;  %v19110_v50 = vld [vmem:[#allocation18_spill] sm:$0xff] }
 0x261   : > { %12196 = vmatprep.subr.bf16.mxu0 %v18617_v38  ;;  %v6242_v54 = vcombine.low %v6234_v26, %v6241_v60 }
 0x263   : > { %12153 = vmatmul.mubr.bf16.gmra.mrb[12].mxu0 %v6166_v29  ;;  %v19111_v29 = vld [vmem:[#allocation20_spill] sm:$0xff] }
 0x264   : > { %12156 = vmatprep.mubr.msk.bf16.mxu0 %vm13283_vm0, %v18617_v38  ;;  %12197 = vmatpush3.bf16.msra.mxu0 %v12906_v45  ;;  %v6243_v11 = vcombine.low %v19111_v29, %v19110_v50  ;;  %v6245_v45 = vcombine.low %v19115_v30, %v19114_v1  ;;  %v6049_v50 = vsel %vm14347_vm5, %v6042_v57, %v6047_v25 }
 0x265   : > { %12198 = vmatprep.subr.bf16.mxu0 %v18617_v38  ;;  %v6065_v29 = vsel %vm14347_vm5, %v6058_v32, %v6063_v35 }
 0x266   : > { %v6253_v36 = vrot.slane %v6243_v11, %v13557_v8  ;;  %v6267_v34 = vrot.slane %v6245_v45, %v13557_v8  ;;  %v6073_v11 = vsel %vm14347_vm5, %v6066_v19, %v6071_v23  ;;  %v6074_v19 = vshrl.u32 %v16200_v47, 16 }
 0x268   : > { %12199 = vmatpush3.bf16.msra.mxu0 %v12907_v39  ;;  %v6015_v39 = vshll.u32 %v16145_v5, 16  ;;  %v6275_v13 = vcombine.low %v6253_v36, %v6260_v12  ;;  %v19120_v12 = vld [vmem:[#allocation34_spill] sm:$0xff] }
 0x26a   : > { %v6017_v9 = vsel %vm14347_vm5, %v6010_v62, %v6015_v39  ;;  %v6295_v62 = vcombine.low %v6065_v29, %v6073_v11  ;;  %v6283_v39 = vrot.slane %v6275_v13, %v13557_v8  ;;  %v19129_v11 = vld [vmem:[#allocation37_spill] sm:$0xff] }
 0x26b   : > { %12157 = vmatmul.mubr.bf16.gmra.mrb[16].mxu0 %v6183_v46  ;;  %v6031_v46 = vshll.u32 %v16282_v3, 16  ;;  %v6292_v1 = vcombine.low %v6017_v9, %v6025_v59  ;;  %v19124_v9 = vld [vmem:[#allocation49_spill] sm:$0xff] }
 0x26c   : > { %12160 = vmatprep.mubr.msk.bf16.mxu0 %vm13283_vm0, %v18617_v38  ;;  %v6323_v56 = vrot.slane %v6295_v62, %v13557_v8  ;;  %v12909_v62 = vld [vmem:[#allocation7] sm:$0xff]  }
 0x26d   : > { %v6033_v28 = vsel %vm14347_vm5, %v6026_v43, %v6031_v46  ;;  %v6302_v15 = vrot.slane %v6292_v1, %v13557_v8 }
 0x26e   : > { %v6293_v30 = vcombine.low %v6033_v28, %v6041_v40  ;;  %v19126_v28 = vld [vmem:[#allocation62_spill] sm:$0xff] }
 0x26f   : > { %v6606_v40 = vcombine.low %v19126_v28, %v19125_v31 }
 0x270   : > { %v6309_v43 = vrot.slane %v6293_v30, %v13557_v8 }
 0x271   : > { %v16392_v1 = vrot.slane %v6606_v40, %v13557_v8 }
 0x272   : > { %v6324_v25 = vcombine.low %v6302_v15, %v6309_v43  ;;  %v13066_v15 = vld [vmem:[%s13533_s2 + $0x34] sm:$0xf] }
 0x273   : > { %12161 = vmatmul.mubr.bf16.gmra.mrb[20].mxu0 %v6200_v18  ;;  %v19116_v18 = vld [vmem:[#allocation191_spill] sm:$0xff] }
 0x274   : > { %12164 = vmatprep.mubr.msk.bf16.mxu0 %vm13283_vm0, %v18617_v38  ;;  %v19118_v20 = vcombine.low %v19116_v18, %v19117_v21  ;;  %v6332_v32 = vrot.slane %v6324_v25, %v13557_v8  ;;  %v19121_v18 = vld [vmem:[#allocation48_spill] sm:$0xff] }
 0x275   : > { %v19122_v21 = vld [vmem:[#allocation52_spill] sm:$0xff] }
 0x276   : > { %v6274_v2 = vrot.slane %v19118_v20, %v13557_v8  ;;  %v6589_v20 = vcombine.low %v19122_v21, %v19121_v18  ;;  %v12912_v18 = vld [vmem:[#allocation7 + $0x50] sm:$0xff]  }
 0x278   : > { %v6276_v0 = vcombine.low %v6267_v34, %v6274_v2  ;;  %v8216_v34 = vshrl.u32 %v19120_v12, 16  ;;  %v19123_v2 = vld [vmem:[#allocation58_spill] sm:$0xff]  ;;  %v16386_v13 = vrot.slane %v6589_v20, %v13557_v8 }
 0x279   : > { %v6590_v59 = vcombine.low %v19124_v9, %v19123_v2  ;;  %v19134_v2 = vld [vmem:[#allocation90_spill] sm:$0xff]  ;;  %v19135_v9 = vld [vmem:[#allocation75_spill] sm:$0xff] }
 0x27a   : > { %v6290_v7 = vrot.slane %v6276_v0, %v13557_v8 }
 0x27b   : > { %12165 = vmatmul.mubr.bf16.gmra.mrb[24].mxu0 %v6217_v53  ;;  %v6057_v53 = vsel %vm14347_vm5, %v6050_v51, %v6055_v58  ;;  %v16357_v58 = vrot.slane %v6001_v44, %v13557_v8  ;;  %v16389_v0 = vrot.slane %v6590_v59, %v13557_v8  ;;  %v19130_v44 = vld [vmem:[#allocation74_spill] sm:$0xff]  ;;  %v6624_v59 = vcombine.low %v19135_v9, %v19134_v2 }
 0x27c   : > { %12168 = vmatprep.mubr.msk.bf16.mxu0 %vm13283_vm0, %v18617_v38  ;;  %v6294_v45 = vcombine.low %v6049_v50, %v6057_v53  ;;  %v6291_v57 = vcombine.low %v6283_v39, %v6290_v7  ;;  %v19127_v50 = vld [vmem:[#allocation72_spill] sm:$0xff]  ;;  %v19128_v53 = vld [vmem:[#allocation63_spill] sm:$0xff]  ;;  %v12910_v39 = vld [vmem:[#allocation7 + $0x48] sm:$0xff]  }
 0x27d   : > { %v6079_v23 = vshll.u32 %v16357_v58, 16  ;;  %v6607_v29 = vcombine.low %v19128_v53, %v19127_v50  ;;  %v13065_v7 = vld [vmem:[%s13533_s2 + $0x30] sm:$0xf]  ;;  %v6605_v12 = vcombine.low %v16386_v13, %v16389_v0  ;;  %v16461_v9 = vrot.slane %v6624_v59, %v13557_v8 }
 0x27e   : > { %v6316_v46 = vrot.slane %v6294_v45, %v13557_v8  ;;  %v12908_v45 = vld [vmem:[#allocation7 + $0x40] sm:$0xff]   ;;  %v11142_v43 = vcombine.low %v13065_v7, %v13066_v15 }
 0x27f   : > { %v6081_v55 = vsel %vm14347_vm5, %v6074_v19, %v6079_v23  ;;  %v16395_v30 = vrot.slane %v6607_v29, %v13557_v8  ;;  %11476 = vmatprep.subr.bf16.mxu1 %v12908_v45  ;;  %v13068_v19 = vld [vmem:[%s13533_s2 + $0x5c] sm:$0xf]  ;;  %vm18538_vm5 = vsmask.f32 5910 }
 0x280   : > { %v6325_v51 = vcombine.low %v6316_v46, %v6323_v56  ;;  %v6347_v60 = vrot.slane %v6081_v55, %v13557_v8  ;;  %v13067_v46 = vld [vmem:[%s13533_s2 + $0x38] sm:$0xf]  ;;  %v16407_v23 = vcombine.low %v13068_v19, %v13068_v19  ;;  %11477 = vmatpush3.bf16.msra.mxu1 %v12909_v62  ;;  %v8222_v55 = vshll.u32 %v11142_v43, 16 }
 0x281   : > { %v11143_v56 = vcombine.low %v13067_v46, %v13067_v46  ;;  %11478 = vmatprep.subr.bf16.mxu1 %v12910_v39  ;;  %v8220_v21 = vshrl.u32 %v11142_v43, 16  ;;  %v12914_v39 = vld [vmem:[#allocation7 + $0x58] sm:$0xff]  }
 0x282   : > { %v6339_v35 = vrot.slane %v6325_v51, %v13557_v8  ;;  %v6354_v36 = vrot.slane %v6347_v60, %v13557_v8  ;;  %v19132_v51 = vld [vmem:[#allocation41_spill] sm:$0xff]  ;;  %v19133_v60 = vld [vmem:[#allocation78_spill] sm:$0xff]  ;;  %v8224_v53 = vrot.slane %v8222_v55, 1  ;;  %v8242_v13 = vshll.u32 %v16407_v23, 16 }
 0x283   : > { %12169 = vmatmul.mubr.bf16.gmra.mrb[28].mxu0 %v6242_v54  ;;  %v16383_v54 = vor.u32 %v8216_v34, %v19129_v11  ;;  %v6622_v34 = vcombine.low %v16392_v1, %v16395_v30  ;;  %v8227_v20 = vshll.u32 %v11143_v56, 16  ;;  %v8235_v40 = vshrl.u32 %v19133_v60, 16 }
 0x284   : > { %12172 = vmatprep.mubr.msk.bf16.mxu0 %vm13283_vm0, %v18617_v38  ;;  %v6340_v26 = vcombine.low %v6332_v32, %v6339_v35  ;;  %v16403_v32 = vrot.slane %v19132_v51, 2  ;;  %v8231_v22 = vshrl.u32 %v11143_v56, 16  ;;  %v16431_v0 = vrot.slane %v19132_v51, 4 }
 0x285   : > { %v18532_v35 = vrot.slane %v16383_v54, 6  ;;  %v8229_v29 = vrot.slane %v8227_v20, 1  ;;  %v8286_v45 = vshrl.u32 %v19132_v51, 16  ;;  %v8225_v7 = vor.u32 %v8224_v53, %v8220_v21 }
 0x286   : > { %v8290_v43 = vshll.u32 %v16403_v32, 16  ;;  %v8293_v46 = vshrl.u32 %v16403_v32, 16  ;;  %v8300_v55 = vshrl.u32 %v16431_v0, 16 }
 0x287   : > { %v16434_v15 = vor.u32 %v8231_v22, %v8229_v29  ;;  %v16443_v19 = vsel %vm18530_vm1, %v8225_v7, %v8229_v29 }
 0x288   : > { %v8266_v21 = vrot.slane %v16443_v19, 5  ;;  %v16455_v20 = vrot.slane %v16443_v19, 7  ;;  %v16458_v2 = vrot.slane %v16443_v19, 1 }
 0x28a   : > { %v8309_v22 = vshrl.u32 %v8266_v21, 16 }
 0x28b   : > { %12173 = vmatmul.mubr.bf16.gmra.mrb[32].mxu0 %v6291_v57  ;;  %v19131_v57 = vld [vmem:[#allocation73_spill] sm:$0xff] }
 0x28c   : > { %12176 = vmatprep.mubr.msk.bf16.mxu0 %vm13283_vm0, %v18617_v38  ;;  %v6623_v25 = vcombine.low %v19131_v57, %v19130_v44  ;;  %v16438_v44 = vrot.slane %v8242_v13, 1  ;;  %v8288_v57 = vsel %vm1022_vm2, %v8286_v45, 0  ;;  %v8316_v45 = vshrl.u32 %v16455_v20, 16 }
 0x28e   : > { %v16420_v31 = vrot.slane %v6623_v25, %v13557_v8  ;;  %v8297_v25 = vshll.u32 %v16431_v0, 16 }
 0x293   : > { %12177 = vmatmul.mubr.bf16.gmra.mrb[36].mxu0 %v6340_v26  ;;  %v12911_v26 = vld [vmem:[#allocation7 + $0x8] sm:$0xff]  }
 0x294   : > { %12180 = vmatprep.mubr.msk.bf16.mxu0 %vm13283_vm0, %v18617_v38  ;;  %11479 = vmatpush3.bf16.msra.mxu1 %v12911_v26  ;;  %v8292_v26 = vsel %vm8014_vm6, %v8290_v43, %v8288_v57  ;;  %v12918_v57 = vld [vmem:[#allocation7 + $0x68] sm:$0xff]  }
 0x295   : > { %11480 = vmatprep.subr.bf16.mxu1 %v12912_v18 }
 0x29b   : > { %12181 = vmatmul.mubr.bf16.gmra.mrb[40].mxu0 %v6354_v36  ;;  %v8237_v36 = vshll.u32 %v19133_v60, 16  ;;  %v8305_v60 = vshll.u32 %v18532_v35, 16 }
 0x29c   : > { %12200 = vmatprep.mubr.msk.bf16.mxu0 %vm13283_vm0, %v18617_v38 }
 0x29d   : > { %v8239_v11 = vrot.slane %v8237_v36, 1  ;;  %v12915_v36 = vld [vmem:[#allocation7 + $0x18] sm:$0xff]  }
 0x29f   : > { %v8240_v56 = vor.u32 %v8239_v11, %v8235_v40  ;;  %v12916_v40 = vld [vmem:[#allocation7 + $0x60] sm:$0xff]   ;;  %v18531_v11 = vrot.slane %v16434_v15, 3 }
 0x2a1   : > { %v16422_v28 = vpop.f32.mrb[0].mxu1  ;;  %v16451_v18 = vsel %vm18530_vm1, %v8240_v56, %v16438_v44  ;;  %vm18536_vm1 = vsmask.f32 6938 }
 0x2a2   : > { %v11782_v50 = vpop.f32.mrb[1].mxu1  ;;  %v8277_v13 = vrot.slane %v16451_v18, 2  ;;  %v16479_v7 = vrot.slane %v16451_v18, 4 }
 0x2a3   : > { %12201 = vmatmul.mubr.bf16.vlgmr.msra.gmra.mrb[0].mxu0 %v6588_v24  ;;  %v16427_v42 = vpop.f32.mrb[2].mxu1  ;;  %v12913_v24 = vld [vmem:[#allocation7 + $0x10] sm:$0xff]   ;;  %v8295_v50 = vsel %vm1023_vm3, %v8293_v46, %v8292_v26  ;;  %v8320_v46 = vshll.u32 %v16458_v2, 16  ;;  %v8323_v26 = vshrl.u32 %v16458_v2, 16 }
 0x2a4   : > { %12204 = vmatprep.mubr.msk.bf16.mxu0 %vm13283_vm0, %v18617_v38  ;;  %v11783_v62 = vpop.f32.mrb[3].mxu1  ;;  %11481 = vmatpush3.bf16.msra.mxu1 %v12913_v24  ;;  %v8299_v29 = vsel %vm18533_vm8, %v8297_v25, %v8295_v50  ;;  %v8313_v24 = vshll.u32 %v16455_v20, 16  ;;  %v8339_v35 = vshrl.u32 %v16479_v7, 16 }
 0x2a5   : > { %11482 = vmatprep.subr.bf16.mxu1 %v12914_v39  ;;  %v12917_v39 = vld [vmem:[#allocation7 + $0x20] sm:$0xff]  }
 0x2a8   : > { %11483 = vmatpush3.bf16.msra.mxu1 %v12915_v36  ;;  %v8256_v36 = vrot.slane %v19132_v51, 1 }
 0x2a9   : > { %v16464_v53 = vpop.f32.mrb[4].mxu1  ;;  %11484 = vmatprep.subr.bf16.mxu1 %v12916_v40  ;;  %v8260_v40 = vrot.slane %v19132_v51, 3 }
 0x2aa   : > { %v11786_v59 = vpop.f32.mrb[5].mxu1 }
 0x2ab   : > { %12205 = vmatmul.mubr.bf16.gmra.mrb[4].mxu0 %v6605_v12  ;;  %v8302_v12 = vsel %vm18551_vm4, %v8300_v55, %v8299_v29  ;;  %v16476_v62 = vpop.f32.mrb[6].mxu1  ;;  %v8255_v55 = vsel %vm1022_vm2, %v19132_v51, 0  ;;  %v8328_v29 = vshll.u32 %v18531_v11, 16 }
 0x2ac   : > { %12208 = vmatprep.mubr.msk.bf16.mxu0 %vm13283_vm0, %v18617_v38  ;;  %v8307_v43 = vsel %vm18550_vm10, %v8305_v60, %v8302_v12  ;;  %v11787_v56 = vpop.f32.mrb[7].mxu1  ;;  %v16492_v60 = vrot.slane %v16451_v18, 6  ;;  %v8257_v12 = vsel %vm8014_vm6, %v8256_v36, %v8255_v55  ;;  %11485 = vmatpush3.bf16.msra.mxu1 %v12917_v39  ;;  %v8268_v39 = vrot.slane %v16443_v19, 6 }
 0x2ad   : > { %v8311_v25 = vsel %vm1027_vm7, %v8309_v22, %v8307_v43  ;;  %v8332_v22 = vshrl.u32 %v8277_v13, 16  ;;  %v8264_v43 = vrot.slane %v19132_v51, 5  ;;  %v8259_v11 = vsel %vm1023_vm3, %v16403_v32, %v8257_v12  ;;  %11486 = vmatprep.subr.bf16.mxu1 %v12918_v57 }
 0x2ae   : > { %v8315_v50 = vsel %vm8029_vm12, %v8313_v24, %v8311_v25  ;;  %v12919_v24 = vld [vmem:[#allocation7 + $0x28] sm:$0xff]   ;;  %v8336_v25 = vshll.u32 %v16479_v7, 16  ;;  %v8261_v55 = vsel %vm18533_vm8, %v8260_v40, %v8259_v11  ;;  %v8344_v57 = vshll.u32 %v16492_v60, 16 }
 0x2af   : > { %v8318_v59 = vsel %vm1029_vm9, %v8316_v45, %v8315_v50  ;;  %v12920_v45 = vld [vmem:[#allocation7 + $0x70] sm:$0xff]   ;;  %vm18534_vm8 = vsmask.f32 7966 }
 0x2b0   : > { %v8322_v56 = vsel %vm18540_vm15, %v8320_v46, %v8318_v59  ;;  %11487 = vmatpush3.bf16.msra.mxu1 %v12919_v24  ;;  %v8275_v24 = vrot.slane %v16443_v19, 2 }
 0x2b1   : > { %v8325_v50 = vsel %vm18539_vm11, %v8323_v26, %v8322_v56  ;;  %v16515_v46 = vpop.f32.mrb[8].mxu1  ;;  %v8263_v26 = vsel %vm18551_vm4, %v16431_v0, %v8261_v55  ;;  %11488 = vmatprep.subr.bf16.mxu1 %v12920_v45  ;;  %v12923_v45 = vld [vmem:[#allocation7 + $0x38] sm:$0xff]  }
 0x2b2   : > { %v8330_v59 = vsel %vm18538_vm5, %v8328_v29, %v8325_v50  ;;  %v11790_v12 = vpop.f32.mrb[9].mxu1  ;;  %v8265_v1 = vsel %vm18550_vm10, %v8264_v43, %v8263_v26  ;;  %v6639_v50 = vcombine.low %v16420_v31, %v16461_v9  ;;  %v8279_v9 = vrot.slane %v16451_v18, 3 }
 0x2b3   : > { %12209 = vmatmul.mubr.bf16.gmra.mrb[8].mxu0 %v6622_v34  ;;  %v8334_v11 = vsel %vm18537_vm13, %v8332_v22, %v8330_v59  ;;  %v16527_v30 = vpop.f32.mrb[10].mxu1  ;;  %v12921_v34 = vld [vmem:[#allocation7 + $0x30] sm:$0xff]   ;;  %v8267_v56 = vsel %vm1027_vm7, %v8266_v21, %v8265_v1  ;;  %v12922_v22 = vld [vmem:[#allocation7 + $0x78] sm:$0xff]  }
 0x2b4   : > { %12212 = vmatprep.mubr.msk.bf16.mxu0 %vm13283_vm0, %v18617_v38  ;;  %v8338_v29 = vsel %vm18536_vm1, %v8336_v25, %v8334_v11  ;;  %v11791_v55 = vpop.f32.mrb[11].mxu1  ;;  %v8269_v26 = vsel %vm8029_vm12, %v8268_v39, %v8267_v56  ;;  %v19136_v25 = vld [vmem:[#allocation91_spill] sm:$0xff]  ;;  %11489 = vmatpush3.bf16.msra.mxu1 %v12921_v34 }
 0x2b5   : > { %v8341_v59 = vsel %vm18535_vm14, %v8339_v35, %v8338_v29  ;;  %v6640_v12 = vcombine.low %v19136_v25, %v16100_v4  ;;  %v19137_v11 = vld [vmem:[#allocation111_spill] sm:$0xff]  ;;  %v8271_v31 = vsel %vm1029_vm9, %v16455_v20, %v8269_v26  ;;  %11490 = vmatprep.subr.bf16.mxu1 %v12922_v22  ;;  %v12926_v4 = vld [vmem:[#allocation7 + $0x80] sm:$0xff]  }
 0x2b6   : > { %v6641_v21 = vcombine.low %v19064_v17, %v19137_v11  ;;  %v8346_v1 = vsel %vm18534_vm8, %v8344_v57, %v8341_v59  ;;  %v8272_v35 = vsel %vm18540_vm15, %v16443_v19, %v8271_v31  ;;  %v8283_v57 = vrot.slane %v16451_v18, 5  ;;  %v12927_v11 = vld [vmem:[#allocation7 + $0x88] sm:$0xff]  }
 0x2b7   : > { %8599 = vmatprep.mubr.bf16.mxu1 %v8346_v1  ;;  %v8274_v29 = vsel %vm18539_vm11, %v16458_v2, %v8272_v35  ;;  %v6648_v56 = vrot.slane %v6640_v12, %v13557_v8  ;;  %v19138_v1 = vld [vmem:[#allocation112_spill] sm:$0xff]  ;;  %v19139_v35 = vld [vmem:[#allocation114_spill] sm:$0xff] }
 0x2b8   : > { %v8276_v17 = vsel %vm18538_vm5, %v8275_v24, %v8274_v29  ;;  %v6655_v55 = vrot.slane %v6641_v21, %v13557_v8  ;;  %11491 = vmatpush3.bf16.msra.mxu1 %v12923_v45  ;;  %v6657_v31 = vcombine.low %v19138_v1, %v19074_v6  ;;  %v6658_v29 = vcombine.low %v16134_v49, %v19139_v35 }
 0x2b9   : > { %v16558_v59 = vpop.f32.mrb[12].mxu1  ;;  %v8278_v34 = vsel %vm18537_vm13, %v8277_v13, %v8276_v17  ;;  %12244 = vmatprep.subr.bf16.mxu1 %v12926_v4  ;;  %v6691_v49 = vcombine.low %v19034_v27, %v18821_v33 }
 0x2ba   : > { %v11794_v22 = vpop.f32.mrb[13].mxu1  ;;  %v8280_v26 = vsel %vm18536_vm1, %v8279_v9, %v8278_v34  ;;  %v6656_v21 = vcombine.low %v6648_v56, %v6655_v55  ;;  %v6665_v45 = vrot.slane %v6657_v31, %v13557_v8  ;;  %v6672_v17 = vrot.slane %v6658_v29, %v13557_v8  ;;  %v19144_v29 = vld [vmem:[#allocation120_spill] sm:$0xff] }
 0x2bb   : > { %12213 = vmatmul.mubr.bf16.gmra.mrb[12].mxu0 %v6639_v50  ;;  %v16568_v25 = vpop.f32.mrb[14].mxu1  ;;  %v8282_v50 = vsel %vm18535_vm14, %v16479_v7, %v8280_v26  ;;  %v19140_v22 = vld [vmem:[#allocation115_spill] sm:$0xff] }
 0x2bc   : > { %12216 = vmatprep.mubr.msk.bf16.mxu0 %vm13283_vm0, %v18617_v38  ;;  %v11795_v12 = vpop.f32.mrb[15].mxu1  ;;  %v8284_v13 = vsel %vm18534_vm8, %v8283_v57, %v8282_v50  ;;  %v6674_v26 = vcombine.low %v19140_v22, %v19078_v37  ;;  %v19141_v50 = vld [vmem:[#allocation117_spill] sm:$0xff]  ;;  %v19143_v37 = vld [vmem:[#allocation118_spill] sm:$0xff] }
 0x2bd   : > { %8600 = vmatmul.mubr.bf16.vlgmr.msra.gmra.mrb[44].mxu1 %v8284_v13  ;;  %v6675_v12 = vcombine.low %v16170_v52, %v19141_v50  ;;  %v6698_v13 = vrot.slane %v6691_v49, %v13557_v8  ;;  %v19146_v50 = vld [vmem:[#allocation134_spill] sm:$0xff] }
 0x2be   : > { %12245 = vmatpush3.bf16.msra.mxu1 %v12926_v4  ;;  %v6673_v4 = vcombine.low %v6665_v45, %v6672_v17  ;;  %v6716_v45 = vcombine.low %v19037_v14, %v19044_v48  ;;  %v6741_v14 = vcombine.low %v16145_v5, %v16278_v63  ;;  %v6742_v48 = vcombine.low %v16282_v3, %v16148_v16 }
 0x2bf   : > { %12246 = vmatprep.subr.bf16.mxu1 %v12927_v11  ;;  %v6689_v1 = vrot.slane %v6675_v12, %v13557_v8  ;;  %v6700_v52 = vcombine.low %v19144_v29, %v6698_v13  ;;  %v19147_v13 = vld [vmem:[#allocation138_spill] sm:$0xff] }
 0x2c0   : > { %v6758_v29 = vrot.slane %v6742_v48, %v13557_v8  ;;  %v8366_v48 = vshrl.u32 %v16492_v60, 16 }
 0x2c1   : > { %v16581_v34 = vpop.f32.mrb[16].mxu1 }
 0x2c2   : > { %v11798_v56 = vpop.f32.mrb[17].mxu1  ;;  %12247 = vmatpush3.bf16.msra.mxu1 %v12927_v11  ;;  %v19142_v11 = vld [vmem:[#allocation119_spill] sm:$0xff] }
 0x2c3   : > { %12217 = vmatmul.mubr.bf16.gmra.mrb[16].mxu0 %v6656_v21  ;;  %v16585_v55 = vpop.f32.mrb[18].mxu1  ;;  %v6682_v21 = vrot.slane %v6674_v26, %v13557_v8  ;;  %v6699_v35 = vcombine.low %v19143_v37, %v19142_v11  ;;  %v19145_v26 = vld [vmem:[#allocation137_spill] sm:$0xff] }
 0x2c4   : > { %12220 = vmatprep.mubr.msk.bf16.mxu0 %vm13283_vm0, %v18617_v38  ;;  %v11799_v6 = vpop.f32.mrb[19].mxu1  ;;  %v6724_v12 = vcombine.low %v19146_v50, %v19145_v26  ;;  %v12930_v26 = vld [vmem:[#allocation7 + $0xa0] sm:$0xff]  }
 0x2c5   : > { %v6690_v56 = vcombine.low %v6682_v21, %v6689_v1  ;;  %v6707_v49 = vrot.slane %v6699_v35, %v13557_v8  ;;  %v6714_v6 = vrot.slane %v6700_v52, %v13557_v8  ;;  %v6743_v21 = vcombine.low %v16151_v61, %v16289_v10 }
 0x2c6   : > { %v6744_v1 = vcombine.low %v16301_v41, %v16200_v47  ;;  %v6732_v11 = vrot.slane %v6724_v12, %v13557_v8  ;;  %v6751_v35 = vrot.slane %v6741_v14, %v13557_v8  ;;  %v6796_v52 = vrot.slane %v16357_v58, %v13557_v8  ;;  %v12931_v12 = vld [vmem:[#allocation7 + $0xa8] sm:$0xff]  }
 0x2c7   : > { %v6715_v22 = vcombine.low %v6707_v49, %v6714_v6  ;;  %v6765_v5 = vrot.slane %v6743_v21, %v13557_v8 }
 0x2c8   : > { %v6772_v63 = vrot.slane %v6744_v1, %v13557_v8  ;;  %v6773_v61 = vcombine.low %v6751_v35, %v6758_v29  ;;  %v8364_v35 = vrot.slane %v16451_v18, 7  ;;  %v12938_v18 = vld [vmem:[#allocation6 + $0x50] sm:$0xff]  }
 0x2c9   : > { %v16596_v31 = vpop.f32.mrb[20].mxu1 }
 0x2ca   : > { %v11802_v33 = vpop.f32.mrb[21].mxu1  ;;  %v6774_v3 = vcombine.low %v6765_v5, %v6772_v63  ;;  %v6781_v47 = vrot.slane %v6773_v61, %v13557_v8  ;;  %v12932_v63 = vld [vmem:[#allocation7 + $0xb0] sm:$0xff]  }
 0x2cb   : > { %12221 = vmatmul.mubr.bf16.gmra.mrb[20].mxu0 %v6673_v4  ;;  %v16600_v27 = vpop.f32.mrb[22].mxu1  ;;  %v6723_v4 = vrot.slane %v6716_v45, %v13557_v8  ;;  %v6803_v45 = vrot.slane %v6796_v52, %v13557_v8 }
 0x2cc   : > { %12224 = vmatprep.mubr.msk.bf16.mxu0 %vm13283_vm0, %v18617_v38  ;;  %v11803_v17 = vpop.f32.mrb[23].mxu1  ;;  %v6788_v10 = vrot.slane %v6774_v3, %v13557_v8  ;;  %v12933_v3 = vld [vmem:[#allocation7 + $0xb8] sm:$0xff]  }
 0x2cd   : > { %v6725_v33 = vcombine.low %v19147_v13, %v6723_v4  ;;  %v12928_v17 = vld [vmem:[#allocation7 + $0x90] sm:$0xff]   ;;  %v8246_v13 = vshrl.u32 %v16407_v23, 16  ;;  %v8363_v23 = vsel %vm1022_vm2, %v16492_v60, 0 }
 0x2ce   : > { %v6789_v41 = vcombine.low %v6781_v47, %v6788_v10  ;;  %12248 = vmatprep.subr.bf16.mxu1 %v12928_v17 }
 0x2cf   : > { %v6739_v37 = vrot.slane %v6725_v33, %v13557_v8  ;;  %12249 = vmatpush3.bf16.msra.mxu1 %v12928_v17  ;;  %v8248_v33 = vor.u32 %v8246_v13, %v16438_v44  ;;  %v8365_v44 = vsel %vm8014_vm6, %v8364_v35, %v8363_v23  ;;  %v12934_v13 = vld [vmem:[#allocation6 + $0x40] sm:$0xff]   ;;  %v12948_v23 = vld [vmem:[#allocation6 + $0x78] sm:$0xff]  }
 0x2d1   : > { %v6740_v16 = vcombine.low %v6732_v11, %v6739_v37  ;;  %v8370_v1 = vshll.u32 %v8248_v33, 16  ;;  %v8368_v37 = vsel %vm1022_vm2, %v8366_v48, 0  ;;  %v12936_v48 = vld [vmem:[#allocation6 + $0x48] sm:$0xff]  }
 0x2d3   : > { %12225 = vmatmul.mubr.bf16.gmra.mrb[24].mxu0 %v6690_v56  ;;  %v12929_v56 = vld [vmem:[#allocation7 + $0x98] sm:$0xff]   ;;  %v8372_v5 = vsel %vm8014_vm6, %v8370_v1, %v8368_v37  ;;  %v12942_v1 = vld [vmem:[#allocation6 + $0x60] sm:$0xff]  }
 0x2d4   : > { %12228 = vmatprep.mubr.msk.bf16.mxu0 %vm13283_vm0, %v18617_v38  ;;  %12250 = vmatprep.subr.bf16.mxu1 %v12929_v56  ;;  %v12943_v37 = vld [vmem:[#allocation6 + $0x20] sm:$0xff]  }
 0x2d5   : > { %12251 = vmatpush3.bf16.msra.mxu1 %v12929_v56  ;;  %8607 = vmatprep.mubr.bf16.mxu1 %v8372_v5  ;;  %v12947_v5 = vld [vmem:[#allocation6 + $0x30] sm:$0xff]  }
 0x2d6   : > { %12252 = vmatprep.subr.bf16.mxu1 %v12930_v26  ;;  %8608 = vmatmul.mubr.bf16.gmra.mrb[48].mxu1 %v8365_v44  ;;  %v12950_v44 = vld [vmem:[#allocation6 + $0x80] sm:$0xff]  }
 0x2d9   : > { %12253 = vmatpush3.bf16.msra.mxu1 %v12930_v26 }
 0x2da   : > { %12254 = vmatprep.subr.bf16.mxu1 %v12931_v12 }
 0x2db   : > { %12229 = vmatmul.mubr.bf16.gmra.mrb[28].mxu0 %v6715_v22 }
 0x2dc   : > { %12232 = vmatprep.mubr.msk.bf16.mxu0 %vm13283_vm0, %v18617_v38 }
 0x2dd   : > { %12255 = vmatpush3.bf16.msra.mxu1 %v12931_v12 }
 0x2de   : > { %12256 = vmatprep.subr.bf16.mxu1 %v12932_v63 }
 0x2e1   : > { %12257 = vmatpush3.bf16.msra.mxu1 %v12932_v63  ;;  %v12949_v63 = vld [vmem:[#allocation6 + $0x38] sm:$0xff]  }
 0x2e2   : > { %12258 = vmatprep.subr.bf16.mxu1 %v12933_v3 }
 0x2e3   : > { %12233 = vmatmul.mubr.bf16.gmra.mrb[32].mxu0 %v6740_v16  ;;  %v8347_v16 = vsel %vm1022_vm2, %v8256_v36, 0 }
 0x2e4   : > { %12236 = vmatprep.mubr.msk.bf16.mxu0 %vm13283_vm0, %v18617_v38  ;;  %v8348_v61 = vsel %vm8014_vm6, %v16403_v32, %v8347_v16  ;;  %v19149_v32 = vrot.slane %v16383_v54, 6  ;;  %v13285_v16 = vmov 1983009808  }
 0x2e5   : > { %v8349_v47 = vsel %vm1023_vm3, %v8260_v40, %v8348_v61  ;;  %12259 = vmatpush3.bf16.msra.mxu1 %v12933_v3  ;;  %v7121_v61 = vunpack.c.l.s4 %v13285_v16 }
 0x2e6   : > { %11514 = vmatprep.subr.bf16.mxu1 %v12934_v13 }
 0x2eb   : > { %12237 = vmatmul.mubr.bf16.gmra.mrb[36].mxu0 %v6789_v41 }
 0x2ec   : > { %12240 = vmatprep.mubr.msk.bf16.mxu0 %vm13283_vm0, %v18617_v38  ;;  %vm19148_vm0 = vsmask.f32 1798 }
 0x2ed   : > { %v8350_v41 = vsel %vm19148_vm0, %v16431_v0, %v8349_v47  ;;  %v16713_v47 = vld [vmem:[%s18180_s4] ss:$0 sm:$0xff] }
 0x2ee   : > { %v8351_v36 = vsel %vm18551_vm4, %v8264_v43, %v8350_v41 }
 0x2ef   : > { %v8352_v17 = vsel %vm18550_vm10, %v19149_v32, %v8351_v36  ;;  %v16719_v36 = vld [vmem:[%s18180_s4 + $0x1] ss:$0 sm:$0xff] }
 0x2f0   : > { %v8353_v40 = vsel %vm1027_vm7, %v8268_v39, %v8352_v17 }
 0x2f1   : > { %v8354_v0 = vsel %vm8029_vm12, %v16455_v20, %v8353_v40 }
 0x2f2   : > { %v8355_v51 = vsel %vm1029_vm9, %v16443_v19, %v8354_v0 }
 0x2f3   : > { %12241 = vmatmul.mubr.bf16.gmra.mrb[40].mxu0 %v6803_v45  ;;  %v8356_v43 = vsel %vm18540_vm15, %v16458_v2, %v8355_v51 }
 0x2f4   : > { %v8357_v54 = vsel %vm18539_vm11, %v8275_v24, %v8356_v43 }
 0x2f9   : > { %v16640_v49 = vpop.f32.mrb[24].mxu1 }
 0x2fa   : > { %v11866_v6 = vpop.f32.mrb[25].mxu1 }
 0x2fb   : > { %v16642_v4 = vpop.f32.mrb[26].mxu1 }
 0x2fc   : > { %v11867_v22 = vpop.f32.mrb[27].mxu1 }
 0x2fd   : > { %v19150_v22 = vrot.slane %v16434_v15, 3  ;;  %v8373_v15 = vsel %vm1022_vm2, %v8364_v35, 0  ;;  %v12945_v35 = vld [vmem:[#allocation6 + $0x28] sm:$0xff]  }
 0x2fe   : > { %v8374_v12 = vsel %vm8014_vm6, %v8248_v33, %v8373_v15  ;;  %v12944_v33 = vld [vmem:[#allocation6 + $0x68] sm:$0xff]  }
 0x2ff   : > { %v8358_v26 = vsel %vm18538_vm5, %v19150_v22, %v8357_v54  ;;  %v19151_v54 = vld [vmem:[#allocation12_spill] sm:$0xff] }
 0x300   : > { %v8359_v20 = vsel %vm18537_vm13, %v8279_v9, %v8358_v26  ;;  %v12935_v9 = vld [vmem:[#allocation6] sm:$0xff]  }
 0x301   : > { %v16644_v58 = vpop.f32.mrb[28].mxu1 }
 0x302   : > { %v11870_v50 = vpop.f32.mrb[29].mxu1 }
 0x303   : > { %v16646_v38 = vpop.f32.mrb[30].mxu1 }
 0x304   : > { %v11871_v8 = vpop.f32.mrb[31].mxu1 }
 0x305   : > { %v8360_v8 = vsel %vm18536_vm1, %v16479_v7, %v8359_v20  ;;  %v12937_v7 = vld [vmem:[#allocation6 + $0x8] sm:$0xff]   ;;  %v7480_v20 = vadd.s32 16, %v19151_v54 }
 0x306   : > { %v8361_v19 = vsel %vm18535_vm14, %v8283_v57, %v8360_v8  ;;  %v12940_v57 = vld [vmem:[#allocation6 + $0x58] sm:$0xff]  }
 0x307   : > { %v8362_v24 = vsel %vm18534_vm8, %v16492_v60, %v8361_v19  ;;  %v12941_v60 = vld [vmem:[#allocation6 + $0x18] sm:$0xff]  }
 0x308   : > { %12260 = vmatprep.mubr.bf16.mxu1 %v8362_v24  ;;  %v13069_v24 = vld [vmem:[%s13533_s2 + $0x20] sm:$0xf] }
 0x309   : > { %v16650_v14 = vpop.f32.mrb[32].mxu1  ;;  %12261 = vmatmul.mubr.bf16.vlgmr.msra.gmra.mrb[52].mxu1 %v8374_v12  ;;  %v16735_v15 = vcombine.low %v13069_v24, %v13069_v24  ;;  %v19153_v12 = vld [vmem:[#allocation35_spill] sm:$0xff] }
 0x30a   : > { %v11874_v21 = vpop.f32.mrb[33].mxu1  ;;  %11515 = vmatpush3.bf16.msra.mxu1 %v12935_v9  ;;  %v9333_v13 = vshll.u32 %v19153_v12, 16  ;;  %v16739_v9 = vadd.s32 4294967295, %v19151_v54 }
 0x30b   : > { %v16653_v11 = vpop.f32.mrb[34].mxu1  ;;  %11516 = vmatprep.subr.bf16.mxu1 %v12936_v48  ;;  %v12939_v21 = vld [vmem:[#allocation6 + $0x10] sm:$0xff]   ;;  %19152 = vst [vmem:[#allocation31_spill] sm:$0xff] %v16735_v15 }
 0x30c   : > { %v11875_v29 = vpop.f32.mrb[35].mxu1  ;;  %vm7511_vm14 = vcmp.ge.s32.totalorder %v16739_v9, 0 }
 0x30d   : > { %v12946_v29 = vld [vmem:[#allocation6 + $0x70] sm:$0xff]  }
 0x30e   : > { %11517 = vmatpush3.bf16.msra.mxu1 %v12937_v7 }
 0x30f   : > { %11518 = vmatprep.subr.bf16.mxu1 %v12938_v18 }
 0x311   : > { %v16669_v10 = vpop.f32.mrb[36].mxu1 }
 0x312   : > { %v11878_v52 = vpop.f32.mrb[37].mxu1  ;;  %11519 = vmatpush3.bf16.msra.mxu1 %v12939_v21 }
 0x313   : > { %v16676_v45 = vpop.f32.mrb[38].mxu1  ;;  %11520 = vmatprep.subr.bf16.mxu1 %v12940_v57 }
 0x314   : > { %v11879_v56 = vpop.f32.mrb[39].mxu1 }
 0x315   : > { %v7122_v56 = vunpack.c.0.s8 %v7121_v61 }
 0x316   : > { %11521 = vmatpush3.bf16.msra.mxu1 %v12941_v60 }
 0x317   : > { %11522 = vmatprep.subr.bf16.mxu1 %v12942_v1  ;;  %v16727_v22 = vsub.s32 %v7122_v56, %v19151_v54 }
 0x319   : > { %v16693_v6 = vpop.f32.mrb[40].mxu1 }
 0x31a   : > { %v11882_v39 = vpop.f32.mrb[41].mxu1  ;;  %11523 = vmatpush3.bf16.msra.mxu1 %v12943_v37 }
 0x31b   : > { %v3774_v50 = vpop.f32.mrb[42].mxu1  ;;  %11524 = vmatprep.subr.bf16.mxu1 %v12944_v33 }
 0x31c   : > { %v11883_v2 = vpop.f32.mrb[43].mxu1 }
 0x31e   : > { %11525 = vmatpush3.bf16.msra.mxu1 %v12945_v35 }
 0x31f   : > { %11526 = vmatprep.subr.bf16.mxu1 %v12946_v29 }
 0x322   : > { %11527 = vmatpush3.bf16.msra.mxu1 %v12947_v5 }
 0x323   : > { %11528 = vmatprep.subr.bf16.mxu1 %v12948_v23 }
 0x326   : > { %11529 = vmatpush3.bf16.msra.mxu1 %v12949_v63 }
 0x327   : > { %12264 = vmatprep.subr.bf16.mxu1 %v12950_v44 }
 0x376   : > { %v6897_v3 = vpop.f32.mrb[0].mxu0 }
 0x377   : > { %v12380_v41 = vadd.f32 %v6897_v3, %v16422_v28  ;;  %v12202_v52 = vpop.f32.mrb[1].mxu0 }
 0x378   : > { %v6900_v32 = vpop.f32.mrb[2].mxu0 }
 0x379   : > { %v7009_v17 = vmul.f32 %v12380_v41, %v16713_v47  ;;  %v12381_v40 = vadd.f32 %v6900_v32, %v16427_v42  ;;  %v12203_v0 = vpop.f32.mrb[3].mxu0  ;;  %v16732_v42 = vstv %s11136_s13 }
 0x37a   : > { %vm7484_vm0 = vcmp.ge.s32.totalorder %v16732_v42, 0  ;;  %v16748_v37 = vadd.s32 1, %v16732_v42  ;;  %vm7493_vm8 = vcmp.lt.s32.totalorder %v16732_v42, 16 }
 0x37b   : > { %v7035_v51 = vadd.f32 %v16719_v36, %v7009_v17  ;;  %v7010_v43 = vmul.f32 %v12381_v40, %v16713_v47  ;;  %vm16764_vm5 = vmand %vm7484_vm0, %vm7493_vm8 }
 0x37c   : > { %vm7485_vm13 = vcmp.ge.s32.totalorder %v16748_v37, 0  ;;  %vm7494_vm11 = vcmp.lt.s32.totalorder %v16748_v37, 16  ;;  %vm16781_vm8 = vmand %vm16764_vm5, %vm7511_vm14 }
 0x37d   : > { %v7056_v28 = vmul.f32 0.01, %v7035_v51  ;;  %v7036_v26 = vadd.f32 %v16719_v36, %v7010_v43 }
 0x37e   : > { %v6905_v39 = vpop.f32.mrb[4].mxu0 }
 0x37f   : > { %v7077_v50 = vmax.f32 %v7035_v51, %v7056_v28  ;;  %v7057_v8 = vmul.f32 0.01, %v7036_v26  ;;  %v12382_v2 = vadd.f32 %v6905_v39, %v16464_v53  ;;  %v12206_v19 = vpop.f32.mrb[5].mxu0  ;;  %v16743_v53 = vadd.s32 4294967295, %v7480_v20 }
 0x380   : > { %v6908_v48 = vpop.f32.mrb[6].mxu0 }
 0x381   : > { %v7119_v7 = vcombine.high %v7077_v50, %v7077_v50  ;;  %v7126_v18 = vrot.slane %v7077_v50, %v16727_v22  ;;  %v7078_v21 = vmax.f32 %v7036_v26, %v7057_v8  ;;  %v7011_v57 = vmul.f32 %v12382_v2, %v16713_v47  ;;  %v12207_v60 = vpop.f32.mrb[7].mxu0 }
 0x382   : > { %v12383_v1 = vadd.f32 %v6908_v48, %v16476_v62  ;;  %vm7543_vm1 = vcmp.lt.s32.totalorder %v16743_v53, 16  ;;  %v16771_v26 = vadd.s32 2, %v16732_v42 }
 0x383   : > { %v7133_v33 = vrot.slane %v7119_v7, %v16727_v22  ;;  %v7134_v35 = vcombine.high %v7126_v18, %v7126_v18  ;;  %v7136_v29 = vcombine.high %v7078_v21, %v7078_v21  ;;  %v7143_v5 = vrot.slane %v7078_v21, %v16727_v22  ;;  %vm7546_vm0 = vmand %vm16764_vm5, %vm7543_vm1 }
 0x384   : > { %v7037_v23 = vadd.f32 %v16719_v36, %v7011_v57  ;;  %v7012_v63 = vmul.f32 %v12383_v1, %v16713_v47 }
 0x385   : > { %v7135_v44 = vcombine.high %v7133_v33, %v7133_v33  ;;  %v7571_v16 = vcombine.low %v7126_v18, %v7134_v35  ;;  %v7150_v62 = vrot.slane %v7136_v29, %v16727_v22  ;;  %v7151_v61 = vcombine.high %v7143_v5, %v7143_v5 }
 0x386   : > { %v7058_v3 = vmul.f32 0.01, %v7037_v23  ;;  %v7038_v41 = vadd.f32 %v16719_v36, %v7012_v63  ;;  %v6913_v52 = vpop.f32.mrb[8].mxu0 }
 0x387   : > { %v7572_v32 = vcombine.low %v7133_v33, %v7135_v44  ;;  %v7152_v17 = vcombine.high %v7150_v62, %v7150_v62  ;;  %v7588_v56 = vcombine.low %v7143_v5, %v7151_v61  ;;  %v12210_v0 = vpop.f32.mrb[9].mxu0  ;;  %v12384_v28 = vadd.f32 %v6913_v52, %v16515_v46 }
 0x388   : > { %v7079_v51 = vmax.f32 %v7037_v23, %v7058_v3  ;;  %v7059_v43 = vmul.f32 0.01, %v7038_v41  ;;  %v6916_v54 = vpop.f32.mrb[10].mxu0  ;;  %v7579_v39 = vrot.slane %v7571_v16, %v16727_v22 }
 0x389   : > { %v7586_v20 = vrot.slane %v7572_v32, %v16727_v22  ;;  %v7589_v50 = vcombine.low %v7150_v62, %v7152_v17  ;;  %v12385_v8 = vadd.f32 %v6916_v54, %v16527_v30  ;;  %v12211_v2 = vpop.f32.mrb[11].mxu0  ;;  %v7013_v7 = vmul.f32 %v12384_v28, %v16713_v47 }
 0x38a   : > { %v7153_v19 = vcombine.high %v7079_v51, %v7079_v51  ;;  %v7160_v24 = vrot.slane %v7079_v51, %v16727_v22  ;;  %v7080_v48 = vmax.f32 %v7038_v41, %v7059_v43  ;;  %v7596_v21 = vrot.slane %v7588_v56, %v16727_v22 }
 0x38b   : > { %v7587_v18 = vcombine.low %v7579_v39, %v7586_v20  ;;  %v7603_v30 = vrot.slane %v7589_v50, %v16727_v22  ;;  %v7014_v57 = vmul.f32 %v12385_v8, %v16713_v47  ;;  %v7039_v63 = vadd.f32 %v16719_v36, %v7013_v7 }
 0x38c   : > { %v7167_v60 = vrot.slane %v7153_v19, %v16727_v22  ;;  %v7168_v1 = vcombine.high %v7160_v24, %v7160_v24  ;;  %v7611_v33 = vrot.slane %v7160_v24, %v16727_v22  ;;  %v7170_v35 = vcombine.high %v7080_v48, %v7080_v48 }
 0x38d   : > { %v7604_v29 = vcombine.low %v7596_v21, %v7603_v30  ;;  %v7967_v5 = vsel %vm16781_vm8, %v7587_v18, 0.0  ;;  %v7177_v23 = vrot.slane %v7080_v48, %v16727_v22  ;;  %v7060_v17 = vmul.f32 0.01, %v7039_v63  ;;  %vm16809_vm8 = vmand %vm7485_vm13, %vm7494_vm11 }
 0x38e   : > { %v7612_v44 = vcombine.low %v7168_v1, %v7167_v60  ;;  %v7969_v16 = vsel %vm7546_vm0, %v7611_v33, 0.0  ;;  %v7169_v62 = vcombine.high %v7167_v60, %v7167_v60  ;;  %v7184_v61 = vrot.slane %v7170_v35, %v16727_v22  ;;  %v6921_v3 = vpop.f32.mrb[12].mxu0  ;;  %vm16833_vm11 = vmand %vm16809_vm8, %vm7511_vm14 }
 0x38f   : > { %v7968_v41 = vsel %vm16764_vm5, %v7604_v29, 0.0  ;;  %v7995_v52 = vpack.c.bf16 %v7969_v16, %v7969_v16  ;;  %v7185_v32 = vcombine.high %v7177_v23, %v7177_v23  ;;  %v12214_v56 = vpop.f32.mrb[13].mxu0  ;;  %v7081_v50 = vmax.f32 %v7039_v63, %v7060_v17  ;;  %vm7549_vm0 = vmand %vm16809_vm8, %vm7543_vm1 }
 0x390   : > { %v7620_v0 = vrot.slane %v7612_v44, %v16727_v22  ;;  %v16803_v51 = vpack.c.bf16 %v7968_v41, %v7967_v5  ;;  %v7613_v43 = vcombine.low %v7169_v62, %v7177_v23  ;;  %v7186_v28 = vcombine.high %v7184_v61, %v7184_v61  ;;  %v6924_v54 = vpop.f32.mrb[14].mxu0 }
 0x391   : > { %v8068_v39 = vrot.slane %v7995_v52, 6  ;;  %v7629_v40 = vcombine.low %v7185_v32, %v7184_v61  ;;  %v7040_v8 = vadd.f32 %v16719_v36, %v7014_v57  ;;  %v12215_v2 = vpop.f32.mrb[15].mxu0  ;;  %v7187_v16 = vcombine.high %v7081_v50, %v7081_v50 }
 0x392   : > { %v18546_v19 = vrot.slane %v16803_v51, 1  ;;  %v16816_v24 = vrot.slane %v16803_v51, 2  ;;  %v18545_v46 = vrot.slane %v16803_v51, 3  ;;  %v16820_v48 = vrot.slane %v16803_v51, 4 }
 0x393   : > { %v18542_v37 = vrot.slane %v16803_v51, 5  ;;  %v8051_v7 = vshrl.u32 %v16803_v51, 16  ;;  %v8070_v18 = vshll.u32 %v8068_v39, 16  ;;  %v7627_v21 = vrot.slane %v7613_v43, %v16727_v22 }
 0x394   : > { %v8055_v30 = vshll.u32 %v16816_v24, 16  ;;  %v8058_v57 = vshrl.u32 %v16816_v24, 16  ;;  %v8062_v60 = vshll.u32 %v16820_v48, 16  ;;  %v8065_v1 = vshrl.u32 %v16820_v48, 16 }
 0x395   : > { %v8053_v35 = vsel %vm1022_vm2, %v8051_v7, 0  ;;  %v8112_v29 = vsel %vm1022_vm2, %v18546_v19, 0  ;;  %v7628_v5 = vcombine.low %v7620_v0, %v7627_v21  ;;  %v7637_v23 = vrot.slane %v7629_v40, %v16727_v22 }
 0x396   : > { %v8057_v63 = vsel %vm8014_vm6, %v8055_v30, %v8053_v35  ;;  %v8113_v44 = vsel %vm8014_vm6, %v16816_v24, %v8112_v29  ;;  %v7194_v62 = vrot.slane %v7081_v50, %v16727_v22  ;;  %v6929_v61 = vpop.f32.mrb[16].mxu0  ;;  %v7061_v17 = vmul.f32 0.01, %v7040_v8 }
 0x397   : > { %v8060_v41 = vsel %vm1023_vm3, %v8058_v57, %v8057_v63  ;;  %v8114_v52 = vsel %vm1023_vm3, %v18545_v46, %v8113_v44  ;;  %v7970_v32 = vsel %vm16833_vm11, %v7628_v5, 0.0  ;;  %v12218_v56 = vpop.f32.mrb[17].mxu0  ;;  %vm19162_vm13 = vsmask.f32 1798 }
 0x398   : > { %v8064_v0 = vsel %vm19162_vm13, %v8062_v60, %v8060_v41  ;;  %vm19163_vm5 = vmmov %vm19162_vm13  ;;  %v7201_v40 = vrot.slane %v7187_v16, %v16727_v22  ;;  %v7202_v50 = vcombine.high %v7194_v62, %v7194_v62  ;;  %v6932_v2 = vpop.f32.mrb[18].mxu0  ;;  %v7630_v30 = vcombine.low %v7186_v28, %v7194_v62 }
 0x399   : > { %v8115_v43 = vsel %vm19163_vm5, %v16820_v48, %v8114_v52  ;;  %v8067_v7 = vsel %vm18551_vm4, %v8065_v1, %v8064_v0  ;;  %v7082_v57 = vmax.f32 %v7040_v8, %v7061_v17  ;;  %v12219_v60 = vpop.f32.mrb[19].mxu0  ;;  %v12386_v16 = vadd.f32 %v6921_v3, %v16558_v59 }
 0x39a   : > { %v8116_v21 = vsel %vm18551_vm4, %v18542_v37, %v8115_v43  ;;  %v16865_v33 = vsel %vm18550_vm10, %v8070_v18, %v8067_v7  ;;  %v7203_v29 = vcombine.high %v7201_v40, %v7201_v40  ;;  %v7652_v1 = vrot.slane %v7202_v50, %v16727_v22 }
 0x39b   : > { %v16868_v35 = vsel %vm18550_vm10, %v8068_v39, %v8116_v21  ;;  %v7644_v5 = vrot.slane %v7630_v30, %v16727_v22  ;;  %v7204_v63 = vcombine.high %v7082_v57, %v7082_v57  ;;  %v7211_v44 = vrot.slane %v7082_v57, %v16727_v22 }
 0x39c   : > { %v7653_v41 = vcombine.low %v7201_v40, %v7203_v29  ;;  %v7972_v28 = vsel %vm7549_vm0, %v7652_v1, 0.0  ;;  %v12387_v8 = vadd.f32 %v6924_v54, %v16568_v25  ;;  %v12388_v18 = vadd.f32 %v6929_v61, %v16581_v34 }
 0x39d   : > { %v7645_v62 = vcombine.low %v7637_v23, %v7644_v5  ;;  %v7997_v52 = vpack.c.bf16 %v7972_v28, %v7972_v28  ;;  %v7218_v39 = vrot.slane %v7204_v63, %v16727_v22  ;;  %v7219_v17 = vcombine.high %v7211_v44, %v7211_v44 }
 0x39e   : > { %v7661_v56 = vrot.slane %v7653_v41, %v16727_v22  ;;  %v7015_v0 = vmul.f32 %v12386_v16, %v16713_v47  ;;  %v7016_v43 = vmul.f32 %v12387_v8, %v16713_v47  ;;  %v7017_v50 = vmul.f32 %v12388_v18, %v16713_v47  ;;  %v16881_v59 = vpop.f32.mrb[20].mxu0 }
 0x39f   : > { %v7971_v25 = vsel %vm16809_vm8, %v7645_v62, 0.0  ;;  %v8951_v3 = vrot.slane %v7997_v52, 6  ;;  %v7220_v34 = vcombine.high %v7218_v39, %v7218_v39  ;;  %v7654_v54 = vcombine.low %v7211_v44, %v7219_v17  ;;  %v12222_v23 = vpop.f32.mrb[21].mxu0 }
 0x3a0   : > { %v16885_v61 = vpack.c.bf16 %v7971_v25, %v7970_v32  ;;  %vm7486_vm11 = vcmp.ge.s32.totalorder %v16771_v26, 0  ;;  %vm7495_vm13 = vcmp.lt.s32.totalorder %v16771_v26, 16  ;;  %v7041_v40 = vadd.f32 %v16719_v36, %v7015_v0  ;;  %v16893_v21 = vpop.f32.mrb[22].mxu0 }
 0x3a1   : > { %v16891_v7 = vadd.s32 3, %v16732_v42  ;;  %v7668_v20 = vrot.slane %v7654_v54, %v16727_v22  ;;  %v7042_v30 = vadd.f32 %v16719_v36, %v7016_v43  ;;  %v7043_v57 = vadd.f32 %v16719_v36, %v7017_v50  ;;  %v12223_v60 = vpop.f32.mrb[23].mxu0 }
 0x3a2   : > { %v12389_v32 = vadd.f32 %v6932_v2, %v16585_v55  ;;  %v18541_v29 = vrot.slane %v16885_v61, 1  ;;  %v16901_v1 = vrot.slane %v16885_v61, 2  ;;  %v16904_v5 = vrot.slane %v16885_v61, 4 }
 0x3a3   : > { %v8953_v63 = vshll.u32 %v8951_v3, 16  ;;  %v18544_v44 = vrot.slane %v16885_v61, 3  ;;  %v8934_v16 = vshrl.u32 %v16885_v61, 16  ;;  %v16908_v41 = vcombine.low %v7661_v56, %v7668_v20 }
 0x3a4   : > { %19164 = vst [vmem:[#allocation47_spill] sm:$0xff] %v16904_v5  ;;  %v16910_v28 = vcombine.low %v7218_v39, %v7220_v34  ;;  %v18543_v55 = vrot.slane %v16885_v61, 5  ;;  %v8938_v2 = vshll.u32 %v16901_v1, 16  ;;  %v8941_v8 = vshrl.u32 %v16901_v1, 16 }
 0x3a5   : > { %v8945_v18 = vshll.u32 %v16904_v5, 16  ;;  %vm7487_vm8 = vcmp.ge.s32.totalorder %v16891_v7, 0  ;;  %vm7496_vm5 = vcmp.lt.s32.totalorder %v16891_v7, 16  ;;  %v8936_v62 = vsel %vm1022_vm2, %v8934_v16, 0 }
 0x3a6   : > { %v8948_v52 = vshrl.u32 %v16904_v5, 16  ;;  %v8995_v39 = vsel %vm1022_vm2, %v18541_v29, 0  ;;  %v7062_v17 = vmul.f32 0.01, %v7041_v40  ;;  %v8940_v56 = vsel %vm8014_vm6, %v8938_v2, %v8936_v62  ;;  %v16926_v25 = vpop.f32.mrb[24].mxu0 }
 0x3a7   : > { %v8996_v0 = vsel %vm8014_vm6, %v16901_v1, %v8995_v39  ;;  %v7063_v43 = vmul.f32 0.01, %v7042_v30  ;;  %v7064_v50 = vmul.f32 0.01, %v7043_v57  ;;  %v8943_v34 = vsel %vm1023_vm3, %v8941_v8, %v8940_v56  ;;  %v12226_v60 = vpop.f32.mrb[25].mxu0 }
 0x3a8   : > { %v8997_v54 = vsel %vm1023_vm3, %v18544_v44, %v8996_v0  ;;  %v7083_v23 = vmax.f32 %v7041_v40, %v7062_v17  ;;  %v7018_v20 = vmul.f32 %v12389_v32, %v16713_v47  ;;  %vm19165_vm0 = vsmask.f32 1798  ;;  %v16936_v29 = vpop.f32.mrb[26].mxu0 }
 0x3a9   : > { %v8947_v16 = vsel %vm19165_vm0, %v8945_v18, %v8943_v34  ;;  %vm19166_vm15 = vmmov %vm19165_vm0  ;;  %v7084_v62 = vmax.f32 %v7042_v30, %v7063_v43  ;;  %v7085_v39 = vmax.f32 %v7043_v57, %v7064_v50  ;;  %v12227_v32 = vpop.f32.mrb[27].mxu0 }
 0x3aa   : > { %v8998_v2 = vsel %vm19166_vm15, %v16904_v5, %v8997_v54  ;;  %v8950_v37 = vsel %vm18551_vm4, %v8948_v52, %v8947_v16  ;;  %v7221_v56 = vcombine.high %v7083_v23, %v7083_v23  ;;  %v7228_v40 = vrot.slane %v7083_v23, %v16727_v22  ;;  %vm16954_vm15 = vmand %vm7486_vm11, %vm7495_vm13 }
 0x3ab   : > { %v8999_v8 = vsel %vm18551_vm4, %v18543_v55, %v8998_v2  ;;  %v16944_v17 = vsel %vm18550_vm10, %v8953_v63, %v8950_v37  ;;  %v7238_v30 = vcombine.high %v7084_v62, %v7084_v62  ;;  %v7245_v57 = vrot.slane %v7084_v62, %v16727_v22  ;;  %vm16964_vm0 = vmand %vm16954_vm15, %vm7543_vm1 }
 0x3ac   : > { %v16947_v18 = vsel %vm18550_vm10, %v8951_v3, %v8999_v8  ;;  %v7235_v0 = vrot.slane %v7221_v56, %v16727_v22  ;;  %v7236_v43 = vcombine.high %v7228_v40, %v7228_v40  ;;  %v7255_v50 = vcombine.high %v7085_v39, %v7085_v39  ;;  %vm16987_vm11 = vmand %vm7487_vm8, %vm7496_vm5 }
 0x3ad   : > { %19167 = vst [vmem:[#allocation159_spill] sm:$0xff] %v16947_v18  ;;  %v7262_v37 = vrot.slane %v7085_v39, %v16727_v22  ;;  %v7252_v26 = vrot.slane %v7238_v30, %v16727_v22  ;;  %v7253_v63 = vcombine.high %v7245_v57, %v7245_v57  ;;  %v7044_v34 = vadd.f32 %v16719_v36, %v7018_v20  ;;  %vm16996_vm13 = vmand %vm16954_vm15, %vm7511_vm14 }
 0x3ae   : > { %v12390_v54 = vadd.f32 %v16881_v59, %v16596_v31  ;;  %v7671_v23 = vcombine.low %v7228_v40, %v7236_v43  ;;  %v7693_v60 = vrot.slane %v7235_v0, %v16727_v22  ;;  %v7237_v16 = vcombine.high %v7235_v0, %v7235_v0  ;;  %v16976_v32 = vpop.f32.mrb[28].mxu0  ;;  %vm17013_vm8 = vmand %vm16987_vm11, %vm7511_vm14 }
 0x3af   : > { %v16974_v2 = vrot.slane %v7255_v50, %v16727_v22  ;;  %v7695_v62 = vcombine.low %v7253_v63, %v7252_v26  ;;  %v7254_v39 = vcombine.high %v7252_v26, %v7252_v26  ;;  %v7270_v8 = vcombine.high %v7262_v37, %v7262_v37  ;;  %v12230_v0 = vpop.f32.mrb[29].mxu0 }
 0x3b0   : > { %v7065_v56 = vmul.f32 0.01, %v7044_v34  ;;  %v7678_v30 = vrot.slane %v16910_v28, %v16727_v22  ;;  %v7685_v20 = vrot.slane %v7671_v23, %v16727_v22  ;;  %v7975_v31 = vsel %vm16964_vm0, %v7693_v60, 0.0  ;;  %v17002_v26 = vpop.f32.mrb[30].mxu0 }
 0x3b1   : > { %v7694_v40 = vcombine.low %v7237_v16, %v7245_v57  ;;  %v7709_v50 = vrot.slane %v7695_v62, %v16727_v22  ;;  %v7711_v3 = vcombine.low %v7254_v39, %v7262_v37  ;;  %v7712_v7 = vcombine.low %v7270_v8, %v16974_v2  ;;  %v12231_v16 = vpop.f32.mrb[31].mxu0 }
 0x3b2   : > { %v7686_v63 = vcombine.low %v7678_v30, %v7685_v20  ;;  %v7999_v57 = vpack.c.bf16 %v7975_v31, %v7975_v31  ;;  %v7086_v60 = vmax.f32 %v7044_v34, %v7065_v56  ;;  %v17007_v0 = vrot.slane %v9333_v13, 1 }
 0x3b3   : > { %v7702_v23 = vrot.slane %v7694_v40, %v16727_v22  ;;  %v7719_v62 = vrot.slane %v7711_v3, %v16727_v22  ;;  %v7726_v39 = vrot.slane %v7712_v7, %v16727_v22  ;;  %v7019_v8 = vmul.f32 %v12390_v54, %v16713_v47 }
 0x3b4   : > { %v7973_v34 = vsel %vm16996_vm13, %v16908_v41, 0.0  ;;  %v7974_v13 = vsel %vm16954_vm15, %v7686_v63, 0.0  ;;  %v7272_v30 = vcombine.high %v7086_v60, %v7086_v60  ;;  %v17028_v40 = vadd.s32 4, %v16732_v42 }
 0x3b5   : > { %v7710_v56 = vcombine.low %v7702_v23, %v7709_v50  ;;  %v17025_v20 = vpack.c.bf16 %v7974_v13, %v7973_v34  ;;  %v7727_v31 = vcombine.low %v7719_v62, %v7726_v39  ;;  %v17031_v3 = vadd.s32 5, %v16732_v42 }
 0x3b6   : > { %v9841_v7 = vrot.slane %v7999_v57, 6  ;;  %v7279_v41 = vrot.slane %v7086_v60, %v16727_v22  ;;  %v7286_v52 = vrot.slane %v7272_v30, %v16727_v22  ;;  %v7045_v23 = vadd.f32 %v16719_v36, %v7019_v8  ;;  %v6961_v16 = vpop.f32.mrb[32].mxu0 }
 0x3b7   : > { %v7976_v54 = vsel %vm17013_vm8, %v7710_v56, 0.0  ;;  %v18549_v28 = vrot.slane %v17025_v20, 1  ;;  %v17039_v50 = vrot.slane %v17025_v20, 2  ;;  %v17042_v63 = vrot.slane %v17025_v20, 4  ;;  %v12234_v39 = vpop.f32.mrb[33].mxu0 }
 0x3b8   : > { %v9824_v62 = vshrl.u32 %v17025_v20, 16  ;;  %v7977_v60 = vsel %vm16987_vm11, %v7727_v31, 0.0  ;;  %v7287_v30 = vcombine.high %v7279_v41, %v7279_v41  ;;  %vm7488_vm5 = vcmp.ge.s32.totalorder %v17028_v40, 0  ;;  %v17055_v8 = vpop.f32.mrb[34].mxu0 }
 0x3b9   : > { %v9828_v34 = vshll.u32 %v17039_v50, 16  ;;  %v9831_v13 = vshrl.u32 %v17039_v50, 16  ;;  %v9835_v56 = vshll.u32 %v17042_v63, 16  ;;  %vm7497_vm15 = vcmp.lt.s32.totalorder %v17028_v40, 16  ;;  %v12235_v46 = vpop.f32.mrb[35].mxu0 }
 0x3ba   : > { %v9826_v55 = vsel %vm1022_vm2, %v9824_v62, 0  ;;  %v9885_v31 = vsel %vm1022_vm2, %v18549_v28, 0  ;;  %v17061_v39 = vpack.c.bf16 %v7977_v60, %v7976_v54  ;;  %v7288_v44 = vcombine.high %v7286_v52, %v7286_v52  ;;  %vm17112_vm8 = vmand %vm7488_vm5, %vm7497_vm15 }
 0x3bb   : > { %v9830_v19 = vsel %vm8014_vm6, %v9828_v34, %v9826_v55  ;;  %v9838_v43 = vshrl.u32 %v17042_v63, 16  ;;  %v9886_v37 = vsel %vm8014_vm6, %v17039_v50, %v9885_v31  ;;  %v7066_v57 = vmul.f32 0.01, %v7045_v23  ;;  %vm17135_vm5 = vmand %vm17112_vm8, %vm7511_vm14 }
 0x3bc   : > { %v9833_v15 = vsel %vm1023_vm3, %v9831_v13, %v9830_v19  ;;  %v19178_v62 = vrot.slane %v17025_v20, 3  ;;  %v7736_v5 = vcombine.low %v7286_v52, %v7288_v44  ;;  %v12391_v54 = vadd.f32 %v16893_v21, %v16600_v27 }
 0x3bd   : > { %vm19179_vm0 = vsmask.f32 1798  ;;  %v9843_v60 = vshll.u32 %v9841_v7, 16  ;;  %v7087_v34 = vmax.f32 %v7045_v23, %v7066_v57  ;;  %v19181_v28 = vrot.slane %v17025_v20, 5 }
 0x3be   : > { %v9887_v18 = vsel %vm1023_vm3, %v19178_v62, %v9886_v37  ;;  %v9837_v46 = vsel %vm19179_vm0, %v9835_v56, %v9833_v15  ;;  %vm19180_vm13 = vmmov %vm19179_vm0  ;;  %v7735_v13 = vcombine.low %v7279_v41, %v7287_v30  ;;  %v7020_v37 = vmul.f32 %v12391_v54, %v16713_v47 }
 0x3bf   : > { %v9888_v55 = vsel %vm19180_vm13, %v17042_v63, %v9887_v18  ;;  %v9840_v31 = vsel %vm18551_vm4, %v9838_v43, %v9837_v46  ;;  %v7289_v15 = vcombine.high %v7087_v34, %v7087_v34  ;;  %v7296_v21 = vrot.slane %v7087_v34, %v16727_v22  ;;  %v17088_v18 = vpop.f32.mrb[36].mxu0 }
 0x3c0   : > { %v9889_v19 = vsel %vm18551_vm4, %v19181_v28, %v9888_v55  ;;  %v17082_v44 = vsel %vm18550_vm10, %v9843_v60, %v9840_v31  ;;  %v7750_v43 = vrot.slane %v7736_v5, %v16727_v22  ;;  %v7046_v52 = vadd.f32 %v16719_v36, %v7020_v37  ;;  %v12238_v23 = vpop.f32.mrb[37].mxu0 }
 0x3c1   : > { %v17085_v27 = vsel %vm18550_vm10, %v9841_v7, %v9889_v19  ;;  %v12392_v41 = vadd.f32 %v16926_v25, %v16640_v49  ;;  %v12393_v28 = vadd.f32 %v16936_v29, %v16642_v4  ;;  %v7303_v57 = vrot.slane %v7289_v15, %v16727_v22  ;;  %v17101_v62 = vpop.f32.mrb[38].mxu0 }
 0x3c2   : > { %v7304_v7 = vcombine.high %v7296_v21, %v7296_v21  ;;  %v12394_v56 = vadd.f32 %v16976_v32, %v16644_v58  ;;  %v12395_v30 = vadd.f32 %v17002_v26, %v16646_v38  ;;  %v7743_v5 = vrot.slane %v7735_v13, %v16727_v22  ;;  %v12239_v4 = vpop.f32.mrb[39].mxu0 }
 0x3c3   : > { %v7067_v54 = vmul.f32 0.01, %v7046_v52  ;;  %v7021_v49 = vmul.f32 %v12392_v41, %v16713_v47  ;;  %v7022_v25 = vmul.f32 %v12393_v28, %v16713_v47  ;;  %v7305_v29 = vcombine.high %v7303_v57, %v7303_v57 }
 0x3c4   : > { %v7752_v46 = vcombine.low %v7296_v21, %v7304_v7  ;;  %v7023_v60 = vmul.f32 %v12394_v56, %v16713_v47  ;;  %v7024_v55 = vmul.f32 %v12395_v30, %v16713_v47  ;;  %v12396_v34 = vadd.f32 %v6961_v16, %v16650_v14 }
 0x3c5   : > { %v7088_v58 = vmax.f32 %v7046_v52, %v7067_v54  ;;  %v7047_v32 = vadd.f32 %v16719_v36, %v7021_v49  ;;  %v7048_v26 = vadd.f32 %v16719_v36, %v7022_v25  ;;  %v7751_v31 = vcombine.low %v7743_v5, %v7750_v43 }
 0x3c6   : > { %v7753_v19 = vcombine.low %v7303_v57, %v7305_v29  ;;  %v7049_v13 = vadd.f32 %v16719_v36, %v7023_v60  ;;  %v7050_v37 = vadd.f32 %v16719_v36, %v7024_v55  ;;  %v19184_v41 = vshrl.u32 %v19153_v12, 16  ;;  %v17139_v57 = vpop.f32.mrb[40].mxu0 }
 0x3c7   : > { %v7306_v15 = vcombine.high %v7088_v58, %v7088_v58  ;;  %v17122_v21 = vrot.slane %v7088_v58, %v16727_v22  ;;  %v7068_v40 = vmul.f32 0.01, %v7047_v32  ;;  %v7069_v52 = vmul.f32 0.01, %v7048_v26  ;;  %v12242_v56 = vpop.f32.mrb[41].mxu0 }
 0x3c8   : > { %v17127_v28 = vor.u32 %v17007_v0, %v19184_v41  ;;  %v7760_v23 = vrot.slane %v7752_v46, %v16727_v22  ;;  %v7767_v14 = vrot.slane %v7753_v19, %v16727_v22  ;;  %v7070_v43 = vmul.f32 0.01, %v7049_v13  ;;  %v6980_v25 = vpop.f32.mrb[42].mxu0 }
 0x3c9   : > { %v7320_v12 = vrot.slane %v7306_v15, %v16727_v22  ;;  %v7321_v0 = vcombine.high %v17122_v21, %v17122_v21  ;;  %v7089_v7 = vmax.f32 %v7047_v32, %v7068_v40  ;;  %vm7489_vm15 = vcmp.ge.s32.totalorder %v17031_v3, 0  ;;  %v12243_v55 = vpop.f32.mrb[43].mxu0 }
 0x3ca   : > { %v7768_v30 = vcombine.low %v7760_v23, %v7767_v14  ;;  %v7090_v5 = vmax.f32 %v7048_v26, %v7069_v52  ;;  %v17146_v54 = vadd.s32 6, %v16732_v42  ;;  %v7071_v49 = vmul.f32 0.01, %v7050_v37 }
 0x3cb   : > { %v7776_v4 = vcombine.low %v7321_v0, %v7320_v12  ;;  %v7979_v29 = vsel %vm17135_vm5, %v7751_v31, 0.0  ;;  %v7323_v46 = vcombine.high %v7089_v7, %v7089_v7  ;;  %v7091_v60 = vmax.f32 %v7049_v13, %v7070_v43 }
 0x3cc   : > { %v7980_v58 = vsel %vm17112_vm8, %v7768_v30, 0.0  ;;  %v7322_v32 = vcombine.high %v7320_v12, %v7320_v12  ;;  %v7330_v19 = vrot.slane %v7089_v7, %v16727_v22  ;;  %v7340_v15 = vcombine.high %v7090_v5, %v7090_v5 }
 0x3cd   : > { %v7271_v26 = vcombine.high %v16974_v2, %v16974_v2  ;;  %v17155_v40 = vpack.c.bf16 %v7980_v58, %v7979_v29  ;;  %v7337_v52 = vrot.slane %v7323_v46, %v16727_v22  ;;  %vm7498_vm0 = vcmp.lt.s32.totalorder %v17031_v3, 16 }
 0x3ce   : > { %v7338_v31 = vcombine.high %v7330_v19, %v7330_v19  ;;  %v7777_v41 = vcombine.low %v7322_v32, %v7330_v19  ;;  %v7354_v13 = vrot.slane %v7340_v15, %v16727_v22  ;;  %vm7490_vm13 = vcmp.ge.s32.totalorder %v17146_v54, 0  ;;  %vm17169_vm10 = vmand %vm7489_vm15, %vm7498_vm0 }
 0x3cf   : > { %vm7499_vm5 = vcmp.lt.s32.totalorder %v17146_v54, 16  ;;  %v7092_v23 = vmax.f32 %v7050_v37, %v7071_v49  ;;  %v7339_v14 = vcombine.high %v7337_v52, %v7337_v52  ;;  %v17163_v16 = vrot.slane %v7090_v5, %v16727_v22  ;;  %vm17182_vm15 = vmand %vm17169_vm10, %vm7511_vm14 }
 0x3d0   : > { %v7357_v2 = vcombine.high %v7091_v60, %v7091_v60  ;;  %v7364_v43 = vrot.slane %v7091_v60, %v16727_v22  ;;  %v7784_v12 = vrot.slane %v7776_v4, %v16727_v22  ;;  %v7791_v7 = vrot.slane %v7777_v41, %v16727_v22  ;;  %vm17208_vm0 = vmand %vm16987_vm11, %vm7543_vm1 }
 0x3d1   : > { %v7793_v56 = vcombine.low %v7338_v31, %v7337_v52  ;;  %v7356_v30 = vcombine.high %v7354_v13, %v7354_v13  ;;  %v7794_v37 = vcombine.low %v7339_v14, %v17163_v16  ;;  %v7025_v25 = vmul.f32 %v12396_v34, %v16713_v47  ;;  %vm17232_vm11 = vmand %vm7490_vm13, %vm7499_vm5 }
 0x3d2   : > { %v7371_v5 = vrot.slane %v7357_v2, %v16727_v22  ;;  %v7372_v49 = vcombine.high %v7364_v43, %v7364_v43  ;;  %v7792_v29 = vcombine.low %v7784_v12, %v7791_v7  ;;  %v7374_v4 = vcombine.high %v7092_v23, %v7092_v23  ;;  %vm17256_vm13 = vmand %vm17232_vm11, %vm7511_vm14 }
 0x3d3   : > { %v7817_v46 = vcombine.low %v7354_v13, %v7356_v30  ;;  %v7381_v3 = vrot.slane %v7092_v23, %v16727_v22  ;;  %v7801_v55 = vrot.slane %v7793_v56, %v16727_v22  ;;  %v7808_v58 = vrot.slane %v7794_v37, %v16727_v22 }
 0x3d4   : > { %v7373_v32 = vcombine.high %v7371_v5, %v7371_v5  ;;  %v7818_v19 = vcombine.low %v7364_v43, %v7372_v49  ;;  %v7734_v34 = vrot.slane %v7271_v26, %v16727_v22  ;;  %v7775_v15 = vrot.slane %v17122_v21, %v16727_v22 }
 0x3d5   : > { %v7825_v52 = vrot.slane %v7817_v46, %v16727_v22  ;;  %v17193_v31 = vadd.s32 7, %v16732_v42  ;;  %v7809_v41 = vcombine.low %v7801_v55, %v7808_v58  ;;  %v7389_v14 = vcombine.high %v7381_v3, %v7381_v3 }
 0x3d6   : > { %v7832_v13 = vrot.slane %v7818_v19, %v16727_v22  ;;  %v7834_v23 = vcombine.low %v7371_v5, %v7373_v32  ;;  %v7982_v2 = vsel %vm17182_vm15, %v7792_v29, 0.0  ;;  %v17199_v43 = vrot.slane %v7374_v4, %v16727_v22  ;;  %vm17219_vm15 = vmand %vm17112_vm8, %vm7543_vm1 }
 0x3d7   : > { %v7051_v26 = vadd.f32 %v16719_v36, %v7025_v25  ;;  %v12397_v21 = vadd.f32 %v17055_v8, %v16653_v11  ;;  %v7983_v7 = vsel %vm17169_vm10, %v7809_v41, 0.0  ;;  %v7835_v37 = vcombine.low %v7381_v3, %v7389_v14 }
 0x3d8   : > { %v7833_v56 = vcombine.low %v7825_v52, %v7832_v13  ;;  %v7842_v30 = vrot.slane %v7834_v23, %v16727_v22  ;;  %v17223_v59 = vpack.c.bf16 %v7983_v7, %v7982_v2  ;;  %v12398_v49 = vadd.f32 %v17088_v18, %v16669_v10 }
 0x3d9   : > { %v7072_v8 = vmul.f32 0.01, %v7051_v26  ;;  %v7026_v5 = vmul.f32 %v12397_v21, %v16713_v47  ;;  %v7849_v38 = vrot.slane %v7835_v37, %v16727_v22  ;;  %vm7491_vm8 = vcmp.ge.s32.totalorder %v17193_v31, 0 }
 0x3da   : > { %vm7500_vm4 = vcmp.lt.s32.totalorder %v17193_v31, 16  ;;  %v17240_v29 = vadd.s32 8, %v16732_v42  ;;  %v12399_v10 = vadd.f32 %v17101_v62, %v16676_v45  ;;  %v17246_v18 = vadd.f32 %v17139_v57, %v16693_v6 }
 0x3db   : > { %v17250_v54 = vsel %vm17208_vm0, %v7734_v34, 0.0  ;;  %v7093_v42 = vmax.f32 %v7051_v26, %v7072_v8  ;;  %v7052_v4 = vadd.f32 %v16719_v36, %v7026_v5  ;;  %v7027_v45 = vmul.f32 %v12398_v49, %v16713_v47 }
 0x3dc   : > { %v17264_v6 = vsel %vm17219_vm15, %v7775_v15, 0.0  ;;  %v7850_v62 = vcombine.low %v7842_v30, %v7849_v38  ;;  %v7390_v57 = vcombine.high %v17199_v43, %v17199_v43  ;;  %v7028_v3 = vmul.f32 %v12399_v10, %v16713_v47  ;;  %vm17304_vm15 = vmand %vm7491_vm8, %vm7500_vm4 }
 0x3dd   : > { %v7391_v60 = vcombine.high %v7093_v42, %v7093_v42  ;;  %v7398_v55 = vrot.slane %v7093_v42, %v16727_v22  ;;  %v7073_v58 = vmul.f32 0.01, %v7052_v4  ;;  %v7053_v32 = vadd.f32 %v16719_v36, %v7027_v45  ;;  %vm17322_vm4 = vmand %vm17304_vm15, %vm7511_vm14 }
 0x3de   : > { %v7985_v19 = vsel %vm17256_vm13, %v7833_v56, 0.0  ;;  %v7986_v34 = vsel %vm17232_vm11, %v7850_v62, 0.0  ;;  %v7054_v15 = vadd.f32 %v16719_v36, %v7028_v3  ;;  %v8026_v52 = vrot.slane %v17061_v39, 5 }
 0x3df   : > { %v17277_v41 = vpack.c.bf16 %v7986_v34, %v7985_v19  ;;  %v7405_v47 = vrot.slane %v7391_v60, %v16727_v22  ;;  %v7406_v13 = vcombine.high %v7398_v55, %v7398_v55  ;;  %v7858_v23 = vcombine.low %v7390_v57, %v7398_v55 }
 0x3e0   : > { %vm7492_vm5 = vcmp.ge.s32.totalorder %v17240_v29, 0  ;;  %vm7501_vm0 = vcmp.lt.s32.totalorder %v17240_v29, 16  ;;  %v8001_v14 = vpack.c.bf16 %v17250_v54, %v17250_v54  ;;  %v7094_v2 = vmax.f32 %v7052_v4, %v7073_v58 }
 0x3e1   : > { %v7074_v26 = vmul.f32 0.01, %v7053_v32  ;;  %v7075_v21 = vmul.f32 0.01, %v7054_v15  ;;  %v8003_v36 = vpack.c.bf16 %v17264_v6, %v17264_v6  ;;  %v7859_v12 = vcombine.low %v7406_v13, %v7405_v47  ;;  %vm17335_vm8 = vmand %vm7492_vm5, %vm7501_vm0 }
 0x3e2   : > { %v7407_v7 = vcombine.high %v7405_v47, %v7405_v47  ;;  %v17287_v56 = vrot.slane %v17061_v39, 7  ;;  %v7408_v30 = vcombine.high %v7094_v2, %v7094_v2  ;;  %v7415_v37 = vrot.slane %v7094_v2, %v16727_v22  ;;  %vm17356_vm5 = vmand %vm17335_vm8, %vm7511_vm14 }
 0x3e3   : > { %v7095_v11 = vmax.f32 %v7053_v32, %v7074_v26  ;;  %v7096_v8 = vmax.f32 %v7054_v15, %v7075_v21  ;;  %v7866_v5 = vrot.slane %v7858_v23, %v16727_v22  ;;  %v7873_v49 = vrot.slane %v7859_v12, %v16727_v22 }
 0x3e4   : > { %v17293_v38 = vrot.slane %v17061_v39, 1  ;;  %v8074_v10 = vshrl.u32 %v8026_v52, 16  ;;  %v17298_v54 = vrot.slane %v7408_v30, %v16727_v22  ;;  %v7423_v46 = vcombine.high %v7415_v37, %v7415_v37 }
 0x3e5   : > { %v7875_v42 = vcombine.low %v7407_v7, %v7415_v37  ;;  %v7425_v4 = vcombine.high %v7095_v11, %v7095_v11  ;;  %v7874_v62 = vcombine.low %v7866_v5, %v7873_v49  ;;  %v7432_v57 = vrot.slane %v7095_v11, %v16727_v22 }
 0x3e6   : > { %v7442_v3 = vcombine.high %v7096_v8, %v7096_v8  ;;  %v7449_v60 = vrot.slane %v7096_v8, %v16727_v22  ;;  %v7876_v55 = vcombine.low %v7423_v46, %v17298_v54  ;;  %v8040_v19 = vrot.slane %v17277_v41, 2 }
 0x3e7   : > { %v7883_v58 = vrot.slane %v7875_v42, %v16727_v22  ;;  %v7439_v32 = vrot.slane %v7425_v4, %v16727_v22  ;;  %v7440_v34 = vcombine.high %v7432_v57, %v7432_v57  ;;  %v17316_v47 = vrot.slane %v17277_v41, 4 }
 0x3e8   : > { %v7456_v31 = vrot.slane %v7442_v3, %v16727_v22  ;;  %v7457_v15 = vcombine.high %v7449_v60, %v7449_v60  ;;  %v7890_v23 = vrot.slane %v7876_v55, %v16727_v22  ;;  %v8076_v26 = vsel %vm1027_vm7, %v8074_v10, %v16865_v33 }
 0x3e9   : > { %v7441_v2 = vcombine.high %v7439_v32, %v7439_v32  ;;  %v8078_v21 = vshll.u32 %v17287_v56, 16  ;;  %v7899_v12 = vcombine.low %v7432_v57, %v7440_v34  ;;  %v8081_v37 = vshrl.u32 %v17287_v56, 16 }
 0x3ea   : > { %v7458_v7 = vcombine.high %v7456_v31, %v7456_v31  ;;  %v7916_v30 = vcombine.low %v7449_v60, %v7457_v15  ;;  %v7891_v11 = vcombine.low %v7883_v58, %v7890_v23  ;;  %v8085_v33 = vshll.u32 %v17293_v38, 16 }
 0x3eb   : > { %v7900_v5 = vcombine.low %v7439_v32, %v7441_v2  ;;  %v8080_v49 = vsel %vm8029_vm12, %v8078_v21, %v8076_v26  ;;  %v7988_v10 = vsel %vm17322_vm4, %v7874_v62, 0.0  ;;  %v7907_v46 = vrot.slane %v7899_v12, %v16727_v22 }
 0x3ec   : > { %v7917_v42 = vcombine.low %v7456_v31, %v7458_v7  ;;  %v8083_v4 = vsel %vm1029_vm9, %v8081_v37, %v8080_v49  ;;  %v7989_v29 = vsel %vm17304_vm15, %v7891_v11, 0.0  ;;  %vm19205_vm13 = vsmask.f32 4882 }
 0x3ed   : > { %v7914_v57 = vrot.slane %v7900_v5, %v16727_v22  ;;  %v8087_v3 = vsel %vm19205_vm13, %v8085_v33, %v8083_v4  ;;  %v8088_v60 = vshrl.u32 %v17293_v38, 16  ;;  %v17350_v55 = vpack.c.bf16 %v7989_v29, %v7988_v10 }
 0x3ee   : > { %v7924_v58 = vrot.slane %v7916_v30, %v16727_v22  ;;  %v7931_v32 = vrot.slane %v7917_v42, %v16727_v22  ;;  %v8091_v34 = vrot.slane %v8001_v14, 3  ;;  %vm19208_vm0 = vsmask.f32 5396 }
 0x3ef   : > { %v7915_v31 = vcombine.low %v7907_v46, %v7914_v57  ;;  %v8090_v15 = vsel %vm19208_vm0, %v8088_v60, %v8087_v3  ;;  %v8097_v13 = vshrl.u32 %v8040_v19, 16  ;;  %v8101_v23 = vshll.u32 %v17316_v47, 16 }
 0x3f0   : > { %v7932_v9 = vcombine.low %v7924_v58, %v7931_v32  ;;  %v8093_v2 = vshll.u32 %v8091_v34, 16  ;;  %v17367_v26 = vrot.slane %v17277_v41, 6  ;;  %v8012_v21 = vsel %vm1022_vm2, %v16803_v51, 0 }
 0x3f1   : > { %v17374_v14 = vrot.slane %v8003_v36, 3  ;;  %v7991_v12 = vsel %vm17356_vm5, %v7915_v31, 0.0  ;;  %v8104_v7 = vshrl.u32 %v17316_v47, 16  ;;  %v19209_v30 = vrot.slane %v16803_v51, 1  ;;  %vm7564_vm5 = vmand %vm17232_vm11, %vm7543_vm1 }
 0x3f2   : > { %v7992_v11 = vsel %vm17335_vm8, %v7932_v9, 0.0  ;;  %vm19210_vm14 = vsmask.f32 5910  ;;  %v8028_v6 = vrot.slane %v17061_v39, 6  ;;  %vm19211_vm4 = vsmask.f32 6424 }
 0x3f3   : > { %v8015_v37 = vsel %vm8014_vm6, %v19209_v30, %v8012_v21  ;;  %v8095_v5 = vsel %vm19210_vm14, %v8093_v2, %v8090_v15  ;;  %v17388_v36 = vpack.c.bf16 %v7992_v11, %v7991_v12  ;;  %v19212_v10 = vrot.slane %v16803_v51, 3 }
 0x3f4   : > { %v8017_v49 = vsel %vm1023_vm3, %v16816_v24, %v8015_v37  ;;  %v8099_v33 = vsel %vm19211_vm4, %v8097_v13, %v8095_v5  ;;  %vm19213_vm13 = vsmask.f32 1798  ;;  %v8037_v42 = vrot.slane %v17061_v39, 2 }
 0x3f5   : > { %v8020_v46 = vsel %vm19213_vm13, %v19212_v10, %v8017_v49  ;;  %vm19214_vm0 = vsmask.f32 6938  ;;  %v8109_v24 = vshll.u32 %v17367_v26, 16  ;;  %vm19215_vm14 = vsmask.f32 2312 }
 0x3f6   : > { %v8103_v4 = vsel %vm19214_vm0, %v8101_v23, %v8099_v33  ;;  %v8022_v29 = vsel %vm19215_vm14, %v16820_v48, %v8020_v46  ;;  %v7857_v57 = vrot.slane %v17199_v43, %v16727_v22  ;;  %vm19216_vm4 = vsmask.f32 7452 }
 0x3f7   : > { %v8106_v3 = vsel %vm19216_vm4, %v8104_v7, %v8103_v4  ;;  %v19217_v60 = vrot.slane %v16803_v51, 5  ;;  %vm19218_vm13 = vsmask.f32 2826  ;;  %v8042_v58 = vrot.slane %v17277_v41, 3 }
 0x3f8   : > { %v8131_v25 = vshrl.u32 %v17367_v26, 16  ;;  %vm19219_vm11 = vsmask.f32 7966  ;;  %v7987_v48 = vsel %vm7564_vm5, %v7857_v57, 0.0  ;;  %v8129_v15 = vrot.slane %v17277_v41, 7 }
 0x3f9   : > { %v8025_v62 = vsel %vm19218_vm13, %v19217_v60, %v8022_v29  ;;  %v8111_v32 = vsel %vm19219_vm11, %v8109_v24, %v8106_v3  ;;  %v8047_v51 = vrot.slane %v17277_v41, 5  ;;  %v8007_v13 = vpack.c.bf16 %v7987_v48, %v7987_v48 }
 0x3fa   : > { %v8027_v31 = vsel %vm1027_vm7, %v8026_v52, %v8025_v62  ;;  %8839 = vmatprep.mubr.bf16.mxu1 %v8111_v32  ;;  %v8118_v23 = vsel %vm1027_vm7, %v8028_v6, %v16868_v35  ;;  %v8133_v2 = vsel %vm1022_vm2, %v8131_v25, 0  ;;  %v8138_v21 = vsel %vm1022_vm2, %v8129_v15, 0 }
 0x3fb   : > { %v8030_v43 = vsel %vm8029_vm12, %v8028_v6, %v8027_v31  ;;  %v8119_v52 = vsel %vm8029_vm12, %v17287_v56, %v8118_v23  ;;  %vm19220_vm5 = vsmask.f32 4882  ;;  %v8135_v7 = vshll.u32 %v8007_v13, 16 }
 0x3fc   : > { %v8032_v9 = vsel %vm1029_vm9, %v17287_v56, %v8030_v43  ;;  %v8120_v30 = vsel %vm1029_vm9, %v17061_v39, %v8119_v52  ;;  %v17431_v37 = vsel %vm8014_vm6, %v8007_v13, %v8138_v21  ;;  %vm19221_vm0 = vsmask.f32 5396  ;;  %vm19222_vm14 = vmmov %vm19220_vm5  ;;  %v13070_v43 = vld [vmem:[#allocation6 + $0x80] sm:$0xff]  }
 0x3fd   : > { %v8034_v12 = vsel %vm19220_vm5, %v17061_v39, %v8032_v9  ;;  %v8121_v11 = vsel %vm19222_vm14, %v17293_v38, %v8120_v30  ;;  %v8914_v56 = vrot.slane %v17155_v40, 5  ;;  %v17439_v5 = vrot.slane %v17155_v40, 7  ;;  %vm19224_vm13 = vmmov %vm19221_vm0 }
 0x3fe   : > { %v8036_v35 = vsel %vm19221_vm0, %v17293_v38, %v8034_v12  ;;  %vm19223_vm4 = vsmask.f32 5910  ;;  %v8137_v6 = vsel %vm8014_vm6, %v8135_v7, %v8133_v2  ;;  %v8128_v39 = vsel %vm1022_vm2, %v17367_v26, 0 }
 0x3ff   : > { %v8039_v49 = vsel %vm19223_vm4, %v8037_v42, %v8036_v35  ;;  %v8122_v33 = vsel %vm19224_vm13, %v8037_v42, %v8121_v11  ;;  %vm19225_vm11 = vsmask.f32 6424  ;;  %vm19226_vm5 = vmmov %vm19223_vm4  ;;  %v17451_v46 = vrot.slane %v17155_v40, 1 }
 0x400   : > { %v8041_v10 = vsel %vm19225_vm11, %v8040_v19, %v8039_v49  ;;  %v8123_v38 = vsel %vm19226_vm5, %v8091_v34, %v8122_v33  ;;  %v8925_v4 = vrot.slane %v17350_v55, 2  ;;  %vm19227_vm0 = vsmask.f32 6938  ;;  %vm19228_vm14 = vmmov %vm19225_vm11  ;;  %v12951_v19 = vld [vmem:[#allocation6 + $0x88] sm:$0xff]  }
 0x401   : > { %v8044_v24 = vsel %vm19227_vm0, %v8042_v58, %v8041_v10  ;;  %v8124_v29 = vsel %vm19228_vm14, %v8042_v58, %v8123_v38  ;;  %v8957_v57 = vshrl.u32 %v8914_v56, 16  ;;  %v8961_v42 = vshll.u32 %v17439_v5, 16  ;;  %vm19230_vm13 = vmmov %vm19227_vm0 }
 0x402   : > { %vm19229_vm4 = vsmask.f32 7452  ;;  %v8130_v34 = vsel %vm8014_vm6, %v8129_v15, %v8128_v39  ;;  %v8125_v3 = vsel %vm19230_vm13, %v17316_v47, %v8124_v29  ;;  %v17465_v60 = vrot.slane %v17350_v55, 4 }
 0x403   : > { %v8046_v41 = vsel %vm19229_vm4, %v17316_v47, %v8044_v24  ;;  %vm19231_vm11 = vsmask.f32 7966  ;;  %vm19232_vm5 = vmmov %vm19229_vm4  ;;  %v8959_v25 = vsel %vm1027_vm7, %v8957_v57, %v16944_v17  ;;  %v8964_v32 = vshrl.u32 %v17439_v5, 16 }
 0x404   : > { %v8049_v62 = vsel %vm19231_vm11, %v8047_v51, %v8046_v41  ;;  %v8126_v58 = vsel %vm19232_vm5, %v8047_v51, %v8125_v3  ;;  %vm19233_vm0 = vmmov %vm19231_vm11  ;;  %v8963_v48 = vsel %vm8029_vm12, %v8961_v42, %v8959_v25  ;;  %v8968_v47 = vshll.u32 %v17451_v46, 16  ;;  %v19242_v42 = vld [vmem:[#allocation47_spill] sm:$0xff] }
 0x405   : > { %8840 = vmatmul.mubr.bf16.vlgmr.msra.gmra.mrb[56].mxu1 %v8049_v62  ;;  %v8127_v31 = vsel %vm19233_vm0, %v17367_v26, %v8126_v58  ;;  %v8971_v15 = vshrl.u32 %v17451_v46, 16  ;;  %v8966_v51 = vsel %vm1029_vm9, %v8964_v32, %v8963_v48  ;;  %v8976_v13 = vshll.u32 %v17374_v14, 16  ;;  %v12952_v26 = vld [vmem:[#allocation6 + $0x90] sm:$0xff]   ;;  %vm7567_vm0 = vmand %vm17304_vm15, %vm7543_vm1  ;;  %v19247_v32 = vld [vmem:[#allocation159_spill] sm:$0xff] }
 0x406   : > { %12265 = vmatpush3.bf16.msra.mxu1 %v13070_v43  ;;  %8847 = vmatprep.mubr.bf16.mxu1 %v8137_v6  ;;  %v8980_v17 = vshrl.u32 %v8925_v4, 16  ;;  %v17482_v23 = vrot.slane %v17350_v55, 6  ;;  %vm19234_vm14 = vsmask.f32 4882  ;;  %v8984_v2 = vshll.u32 %v17465_v60, 16 }
 0x407   : > { %12266 = vmatprep.subr.bf16.mxu1 %v12951_v19  ;;  %v8970_v9 = vsel %vm19234_vm14, %v8968_v47, %v8966_v51  ;;  %v8987_v52 = vshrl.u32 %v17465_v60, 16  ;;  %v8903_v21 = vsel %vm1022_vm2, %v16885_v61, 0  ;;  %vm19235_vm4 = vsmask.f32 5396 }
 0x408   : > { %v8973_v12 = vsel %vm19235_vm4, %v8971_v15, %v8970_v9  ;;  %v19236_v7 = vrot.slane %v16885_v61, 1  ;;  %v8916_v35 = vrot.slane %v17155_v40, 6  ;;  %v8923_v11 = vrot.slane %v17155_v40, 2  ;;  %v17536_v9 = vpop.f32.mrb[44].mxu1 }
 0x409   : > { %vm19237_vm13 = vsmask.f32 5910  ;;  %v8992_v6 = vshll.u32 %v17482_v23, 16  ;;  %v7424_v33 = vcombine.high %v17298_v54, %v17298_v54  ;;  %vm19238_vm11 = vsmask.f32 6424 }
 0x40a   : > { %v8905_v30 = vsel %vm8014_vm6, %v19236_v7, %v8903_v21  ;;  %v8978_v49 = vsel %vm19237_vm13, %v8976_v13, %v8973_v12  ;;  %12267 = vmatpush3.bf16.msra.mxu1 %v12951_v19  ;;  %v19239_v38 = vrot.slane %v16885_v61, 3  ;;  %vm19240_vm5 = vsmask.f32 1798  ;;  %v13072_v21 = vld [vmem:[%s13533_s2 + $0x68] sm:$0xf]  ;;  %v17546_v7 = vpop.f32.mrb[45].mxu1 }
 0x40b   : > { %v8907_v39 = vsel %vm1023_vm3, %v16901_v1, %v8905_v30  ;;  %v8982_v10 = vsel %vm19238_vm11, %v8980_v17, %v8978_v49  ;;  %v8927_v29 = vrot.slane %v17350_v55, 3  ;;  %v9014_v57 = vshrl.u32 %v17482_v23, 16  ;;  %12268 = vmatprep.subr.bf16.mxu1 %v12952_v26  ;;  %v12953_v1 = vld [vmem:[#allocation6 + $0x98] sm:$0xff]  }
 0x40c   : > { %v8909_v24 = vsel %vm19240_vm5, %v19239_v38, %v8907_v39  ;;  %vm19241_vm14 = vsmask.f32 6938  ;;  %vm19243_vm4 = vsmask.f32 2312  ;;  %v7898_v19 = vrot.slane %v7424_v33, %v16727_v22  ;;  %v19253_v33 = vld [vmem:[#allocation31_spill] sm:$0xff] }
 0x40d   : > { %v8986_v54 = vsel %vm19241_vm14, %v8984_v2, %v8982_v10  ;;  %v8911_v41 = vsel %vm19243_vm4, %v19242_v42, %v8909_v24  ;;  %v18552_v3 = vrot.slane %v17350_v55, 7  ;;  %vm19244_vm13 = vsmask.f32 7452  ;;  %8848 = vmatmul.mubr.bf16.gmra.mrb[60].mxu1 %v8130_v34 }
 0x40e   : > { %v8989_v62 = vsel %vm19244_vm13, %v8987_v52, %v8986_v54  ;;  %v19245_v58 = vrot.slane %v16885_v61, 5  ;;  %vm19246_vm11 = vsmask.f32 2826  ;;  %v8931_v25 = vrot.slane %v17350_v55, 5  ;;  %12269 = vmatpush3.bf16.msra.mxu1 %v12952_v26  ;;  %12280 = vmatprep.mubr.bf16.mxu1 %v8127_v31  ;;  %v13071_v26 = vld [vmem:[%s13533_s2 + $0x44] sm:$0xf] }
 0x40f   : > { %v9001_v48 = vsel %vm1027_vm7, %v8916_v35, %v19247_v32  ;;  %vm19248_vm15 = vsmask.f32 7966  ;;  %v7990_v43 = vsel %vm7567_vm0, %v7898_v19, 0.0  ;;  %v9016_v61 = vsel %vm1022_vm2, %v9014_v57, 0  ;;  %12270 = vmatprep.subr.bf16.mxu1 %v12953_v1  ;;  %v19256_v54 = vld [vmem:[#allocation70_spill] sm:$0xff] }
 0x410   : > { %v8913_v45 = vsel %vm19246_vm11, %v19245_v58, %v8911_v41  ;;  %v17524_v47 = vsel %vm19248_vm15, %v8992_v6, %v8989_v62  ;;  %v8009_v13 = vpack.c.bf16 %v7990_v43, %v7990_v43  ;;  %v9002_v34 = vsel %vm8029_vm12, %v17439_v5, %v9001_v48  ;;  %v17567_v41 = vpop.f32.mrb[46].mxu1 }
 0x411   : > { %v8915_v15 = vsel %vm1027_vm7, %v8914_v56, %v8913_v45  ;;  %v9021_v17 = vsel %vm1022_vm2, %v18552_v3, 0  ;;  %v12954_v56 = vld [vmem:[#allocation6 + $0xa0] sm:$0xff]   ;;  %v9003_v31 = vsel %vm1029_vm9, %v17155_v40, %v9002_v34  ;;  %v11221_v52 = vcombine.low %v13071_v26, %v13071_v26  ;;  %v17574_v58 = vpop.f32.mrb[47].mxu1 }
 0x412   : > { %v8917_v51 = vsel %vm8029_vm12, %v8916_v35, %v8915_v15  ;;  %v17544_v12 = vcombine.low %v13072_v21, %v13072_v21  ;;  %vm19249_vm5 = vsmask.f32 4882  ;;  %v9018_v35 = vshll.u32 %v8009_v13, 16  ;;  %12271 = vmatpush3.bf16.msra.mxu1 %v12953_v1  ;;  %v17579_v15 = vpop.f32.mrb[48].mxu1  ;;  %v19266_v26 = vld [vmem:[#allocation88_spill] sm:$0xff] }
 0x413   : > { %v8919_v2 = vsel %vm1029_vm9, %v17439_v5, %v8917_v51  ;;  %vm19250_vm0 = vmmov %vm19249_vm5  ;;  %v17553_v6 = vsel %vm8014_vm6, %v8009_v13, %v9021_v17  ;;  %vm19251_vm14 = vsmask.f32 5396  ;;  %v9338_v10 = vshll.u32 %v19253_v33, 16  ;;  %12272 = vmatprep.subr.bf16.mxu1 %v12954_v56  ;;  %v17590_v13 = vpop.f32.mrb[49].mxu1 }
 0x414   : > { %v8920_v30 = vsel %vm19249_vm5, %v17155_v40, %v8919_v2  ;;  %v9004_v49 = vsel %vm19250_vm0, %v17451_v46, %v9003_v31  ;;  %vm19252_vm4 = vmmov %vm19251_vm14  ;;  %v9342_v38 = vshrl.u32 %v19253_v33, 16  ;;  %vm19254_vm13 = vsmask.f32 5910  ;;  %v11501_v2 = vpop.f32.mrb[50].mxu1  ;;  %v12956_v31 = vld [vmem:[#allocation6 + $0xb0] sm:$0xff]  }
 0x415   : > { %v8922_v5 = vsel %vm19251_vm14, %v17451_v46, %v8920_v30  ;;  %v9005_v39 = vsel %vm19252_vm4, %v8923_v11, %v9004_v49  ;;  %v17562_v40 = vsel %vm8014_vm6, %v9018_v35, %v9016_v61  ;;  %vm19255_vm11 = vmmov %vm19254_vm13  ;;  %v9346_v42 = vshrl.u32 %v19256_v54, 16  ;;  %v12955_v46 = vld [vmem:[#allocation6 + $0xa8] sm:$0xff]  }
 0x416   : > { %v8924_v24 = vsel %vm19254_vm13, %v8923_v11, %v8922_v5  ;;  %v9006_v57 = vsel %vm19255_vm11, %v17374_v14, %v9005_v39  ;;  %vm19257_vm15 = vsmask.f32 6424  ;;  %v9340_v62 = vrot.slane %v9338_v10, 1  ;;  %12273 = vmatpush3.bf16.msra.mxu1 %v12954_v56 }
 0x417   : > { %v8926_v19 = vsel %vm19257_vm15, %v8925_v4, %v8924_v24  ;;  %vm19258_vm5 = vmmov %vm19257_vm15  ;;  %v9348_v11 = vshll.u32 %v19256_v54, 16  ;;  %vm19259_vm0 = vsmask.f32 6938  ;;  %v9353_v32 = vshll.u32 %v11221_v52, 16  ;;  %12274 = vmatprep.subr.bf16.mxu1 %v12955_v46 }
 0x418   : > { %v9007_v1 = vsel %vm19258_vm5, %v8927_v29, %v9006_v57  ;;  %v8928_v45 = vsel %vm19259_vm0, %v8927_v29, %v8926_v19  ;;  %vm19260_vm14 = vmmov %vm19259_vm0  ;;  %v9357_v48 = vshrl.u32 %v11221_v52, 16  ;;  %vm19261_vm4 = vsmask.f32 7452 }
 0x419   : > { %v9008_v14 = vsel %vm19260_vm14, %v17465_v60, %v9007_v1  ;;  %v8930_v43 = vsel %vm19261_vm4, %v17465_v60, %v8928_v45  ;;  %vm19262_vm13 = vmmov %vm19261_vm4  ;;  %vm19263_vm11 = vsmask.f32 7424  ;;  %v17588_v51 = vor.u32 %v9342_v38, %v9340_v62 }
 0x41a   : > { %v9009_v4 = vsel %vm19262_vm13, %v8931_v25, %v9008_v14  ;;  %v17586_v61 = vsel %vm19263_vm11, %v17127_v28, %v9340_v62  ;;  %vm19264_vm15 = vsmask.f32 7966  ;;  %v9350_v17 = vrot.slane %v9348_v11, 1  ;;  %12275 = vmatpush3.bf16.msra.mxu1 %v12955_v46  ;;  %vm19267_vm0 = vmmov %vm19263_vm11  ;;  %v12957_v11 = vld [vmem:[#allocation6 + $0xb8] sm:$0xff]  }
 0x41b   : > { %v17593_v29 = vsel %vm19264_vm15, %v8931_v25, %v8930_v43  ;;  %vm19265_vm5 = vmmov %vm19264_vm15  ;;  %v9355_v60 = vrot.slane %v9353_v32, 1  ;;  %v9361_v28 = vshrl.u32 %v19266_v26, 16  ;;  %v9363_v52 = vshll.u32 %v19266_v26, 16  ;;  %v11502_v25 = vpop.f32.mrb[51].mxu1  ;;  %12276 = vmatprep.subr.bf16.mxu1 %v12956_v31 }
 0x41c   : > { %v17597_v34 = vsel %vm19265_vm5, %v17482_v23, %v9009_v4  ;;  %v9368_v21 = vshll.u32 %v17544_v12, 16  ;;  %v17603_v56 = vrot.slane %v17586_v61, 2  ;;  %v9351_v30 = vor.u32 %v9350_v17, %v9346_v42  ;;  %v17611_v39 = vpop.f32.mrb[52].mxu1  ;;  %vm19268_vm14 = vmmov %vm19267_vm0 }
 0x41d   : > { %v17605_v35 = vor.u32 %v9357_v48, %v9355_v60  ;;  %v17608_v49 = vrot.slane %v17586_v61, 4  ;;  %v9412_v5 = vshrl.u32 %v17586_v61, 16  ;;  %v9365_v33 = vrot.slane %v9363_v52, 1  ;;  %v17617_v57 = vpop.f32.mrb[53].mxu1  ;;  %vm17685_vm15 = vmand %vm17169_vm10, %vm7543_vm1 }
 0x41e   : > { %v17613_v10 = vrot.slane %v9368_v21, 1  ;;  %v9416_v38 = vshll.u32 %v17603_v56, 16  ;;  %v9419_v24 = vshrl.u32 %v17603_v56, 16  ;;  %v7355_v54 = vcombine.high %v17163_v16, %v17163_v16  ;;  %v12263_v62 = vpop.f32.mrb[54].mxu1  ;;  %12277 = vmatpush3.bf16.msra.mxu1 %v12956_v31 }
 0x41f   : > { %v17622_v42 = vsel %vm19267_vm0, %v9351_v30, %v9355_v60  ;;  %v9414_v19 = vsel %vm1022_vm2, %v9412_v5, 0  ;;  %v9423_v1 = vshll.u32 %v17608_v49, 16  ;;  %v9366_v45 = vor.u32 %v9365_v33, %v9361_v28  ;;  %v17631_v16 = vpop.f32.mrb[55].mxu1  ;;  %12278 = vmatprep.subr.bf16.mxu1 %v12957_v11  ;;  %v12958_v5 = vld [vmem:[#allocation6 + $0x100] sm:$0xff]  }
 0x420   : > { %v9392_v14 = vrot.slane %v17622_v42, 5  ;;  %v17628_v32 = vrot.slane %v17622_v42, 7  ;;  %v9426_v48 = vshrl.u32 %v17608_v49, 16  ;;  %v17634_v46 = vrot.slane %v17622_v42, 1 }
 0x421   : > { %v9418_v43 = vsel %vm8014_vm6, %v9416_v38, %v9414_v19  ;;  %v18554_v4 = vrot.slane %v17588_v51, 6  ;;  %v17640_v17 = vsel %vm19268_vm14, %v9366_v45, %v17613_v10  ;;  %v18553_v26 = vrot.slane %v17605_v35, 3 }
 0x422   : > { %v9421_v60 = vsel %vm1023_vm3, %v9419_v24, %v9418_v43  ;;  %v9435_v2 = vshrl.u32 %v9392_v14, 16  ;;  %v9403_v28 = vrot.slane %v17640_v17, 2  ;;  %vm19269_vm4 = vsmask.f32 1798  ;;  %v13073_v24 = vld [vmem:[%s18180_s4] ss:$0 sm:$0xff]  ;;  %12279 = vmatpush3.bf16.msra.mxu1 %v12957_v11 }
 0x423   : > { %v9425_v52 = vsel %vm19269_vm4, %v9423_v1, %v9421_v60  ;;  %v9431_v21 = vshll.u32 %v18554_v4, 16  ;;  %v9439_v25 = vshll.u32 %v17628_v32, 16  ;;  %v7816_v30 = vrot.slane %v7355_v54, %v16727_v22  ;;  %11552 = vmatprep.subr.bf16.mxu1 %v12958_v5  ;;  %vm19276_vm14 = vmmov %vm19269_vm4 }
 0x424   : > { %v17653_v33 = vrot.slane %v17640_v17, 4  ;;  %vm19270_vm13 = vsmask.f32 2312  ;;  %v9442_v31 = vshrl.u32 %v17628_v32, 16  ;;  %v7029_v19 = vmul.f32 %v13073_v24, %v17246_v18 }
 0x425   : > { %v9428_v38 = vsel %vm19270_vm13, %v9426_v48, %v9425_v52  ;;  %vm19271_vm11 = vsmask.f32 2826  ;;  %v9446_v62 = vshll.u32 %v17634_v46, 16  ;;  %v9381_v54 = vsel %vm1022_vm2, %v17586_v61, 0  ;;  %v12959_v52 = vld [vmem:[#allocation6 + $0xc0] sm:$0xff]   ;;  %12281 = vmatmul.mubr.bf16.vlgmr.msra.gmra.mrb[64].mxu1 %v17431_v37  ;;  %vm19278_vm4 = vmmov %vm19270_vm13 }
 0x426   : > { %v9433_v1 = vsel %vm19271_vm11, %v9431_v21, %v9428_v38  ;;  %v9449_v43 = vshrl.u32 %v17634_v46, 16  ;;  %v9454_v48 = vshll.u32 %v18553_v26, 16  ;;  %v9382_v60 = vrot.slane %v17586_v61, 1  ;;  %11553 = vmatpush3.bf16.msra.mxu1 %v12959_v52  ;;  %9248 = vmatprep.mubr.bf16.mxu1 %v17524_v47 }
 0x427   : > { %v9437_v45 = vsel %vm1027_vm7, %v9435_v2, %v9433_v1  ;;  %v9458_v21 = vshrl.u32 %v9403_v28, 16  ;;  %v17674_v38 = vrot.slane %v17640_v17, 6  ;;  %v9386_v24 = vrot.slane %v17586_v61, 3  ;;  %v12960_v2 = vld [vmem:[#allocation6 + $0x108] sm:$0xff]  }
 0x428   : > { %v9441_v18 = vsel %vm8029_vm12, %v9439_v25, %v9437_v45  ;;  %v9462_v3 = vshll.u32 %v17653_v33, 16  ;;  %v9383_v26 = vsel %vm8014_vm6, %v9382_v60, %v9381_v54  ;;  %v9390_v11 = vrot.slane %v17586_v61, 5  ;;  %11554 = vmatprep.subr.bf16.mxu1 %v12960_v2 }
 0x429   : > { %v9444_v1 = vsel %vm1029_vm9, %v9442_v31, %v9441_v18  ;;  %vm19274_vm5 = vsmask.f32 4882  ;;  %v9465_v5 = vshrl.u32 %v17653_v33, 16  ;;  %v9385_v31 = vsel %vm1023_vm3, %v17603_v56, %v9383_v26 }
 0x42a   : > { %v9448_v45 = vsel %vm19274_vm5, %v9446_v62, %v9444_v1  ;;  %v9394_v18 = vrot.slane %v17622_v42, 6  ;;  %vm19275_vm0 = vsmask.f32 5396  ;;  %v9387_v54 = vsel %vm19276_vm14, %v9386_v24, %v9385_v31  ;;  %v12961_v62 = vld [vmem:[#allocation6 + $0xc8] sm:$0xff]  }
 0x42b   : > { %v9451_v61 = vsel %vm19275_vm0, %v9449_v43, %v9448_v45  ;;  %v11494_v0 = vadd.f32 %v17546_v7, %v17536_v9  ;;  %v11497_v4 = vadd.f32 %v17574_v58, %v17567_v41  ;;  %vm19277_vm10 = vsmask.f32 5910  ;;  %v12962_v7 = vld [vmem:[#allocation6 + $0x110] sm:$0xff]   ;;  %11555 = vmatpush3.bf16.msra.mxu1 %v12961_v62 }
 0x42c   : > { %v9456_v26 = vsel %vm19277_vm10, %v9454_v48, %v9451_v61  ;;  %v9470_v1 = vshll.u32 %v17674_v38, 16  ;;  %v9389_v37 = vsel %vm19278_vm4, %v17608_v49, %v9387_v54  ;;  %v11500_v43 = vadd.f32 %v17590_v13, %v17579_v15  ;;  %v13074_v48 = vld [vmem:[%s18180_s4 + $0x1] ss:$0 sm:$0xff]  ;;  %11556 = vmatprep.subr.bf16.mxu1 %v12962_v7 }
 0x42d   : > { %v7984_v9 = vsel %vm17685_vm15, %v7816_v30, 0.0  ;;  %vm19279_vm13 = vsmask.f32 6424  ;;  %v9391_v47 = vsel %vm19271_vm11, %v9390_v11, %v9389_v37  ;;  %v17713_v58 = vadd.f32 %v11494_v0, %v17617_v57 }
 0x42e   : > { %v9460_v41 = vsel %vm19279_vm13, %v9458_v21, %v9456_v26  ;;  %v17718_v52 = vadd.f32 %v13074_v48, %v7029_v19  ;;  %vm19280_vm5 = vsmask.f32 6938  ;;  %v9393_v13 = vsel %vm1027_vm7, %v9392_v14, %v9391_v47  ;;  %v12964_v14 = vld [vmem:[#allocation6 + $0x118] sm:$0xff]  }
 0x42f   : > { %v9464_v15 = vsel %vm19280_vm5, %v9462_v3, %v9460_v41  ;;  %v17725_v30 = vadd.f32 %v17611_v39, %v11500_v43  ;;  %vm19281_vm15 = vsmask.f32 7452  ;;  %v9395_v57 = vsel %vm8029_vm12, %v9394_v18, %v9393_v13  ;;  %v12963_v3 = vld [vmem:[#allocation6 + $0xd0] sm:$0xff]   ;;  %v12965_v43 = vld [vmem:[#allocation6 + $0xd8] sm:$0xff]   ;;  %v12966_v41 = vld [vmem:[#allocation6 + $0x120] sm:$0xff]  }
 0x430   : > { %v9467_v21 = vsel %vm19281_vm15, %v9465_v5, %v9464_v15  ;;  %v9401_v2 = vrot.slane %v17622_v42, 2  ;;  %v17733_v19 = vadd.f32 %v11497_v4, %v17631_v16  ;;  %v8005_v25 = vpack.c.bf16 %v7984_v9, %v7984_v9  ;;  %11557 = vmatpush3.bf16.msra.mxu1 %v12963_v3 }
 0x431   : > { %vm19282_vm0 = vsmask.f32 7966  ;;  %v9397_v39 = vsel %vm1029_vm9, %v17628_v32, %v9395_v57  ;;  %vm19283_vm14 = vsmask.f32 4882  ;;  %v9405_v31 = vrot.slane %v17640_v17, 3  ;;  %11558 = vmatprep.subr.bf16.mxu1 %v12964_v14 }
 0x432   : > { %v17736_v45 = vsel %vm19282_vm0, %v9470_v1, %v9467_v21  ;;  %v9398_v5 = vsel %vm19283_vm14, %v17622_v42, %v9397_v39  ;;  %v9473_v61 = vsel %vm1022_vm2, %v9382_v60, 0  ;;  %vm19284_vm10 = vsmask.f32 5396  ;;  %v12967_v39 = vld [vmem:[#allocation6 + $0xe0] sm:$0xff]  }
 0x433   : > { %v9400_v16 = vsel %vm19284_vm10, %v17634_v46, %v9398_v5  ;;  %v9474_v4 = vsel %vm8014_vm6, %v17603_v56, %v9473_v61  ;;  %v9804_v54 = vrot.slane %v17223_v59, 5  ;;  %v17750_v0 = vrot.slane %v17223_v59, 7 }
 0x434   : > { %v7076_v62 = vmul.f32 0.01, %v17718_v52  ;;  %vm19285_vm4 = vsmask.f32 5910  ;;  %v9409_v1 = vrot.slane %v17640_v17, 5  ;;  %v9475_v37 = vsel %vm1023_vm3, %v9386_v24, %v9474_v4  ;;  %11559 = vmatpush3.bf16.msra.mxu1 %v12965_v43 }
 0x435   : > { %v9402_v26 = vsel %vm19285_vm4, %v9401_v2, %v9400_v16  ;;  %v17756_v60 = vrot.slane %v8005_v25, 3  ;;  %vm19286_vm11 = vsmask.f32 1798  ;;  %v17764_v7 = vrot.slane %v17223_v59, 1  ;;  %11560 = vmatprep.subr.bf16.mxu1 %v12966_v41 }
 0x436   : > { %v9404_v56 = vsel %vm19279_vm13, %v9403_v28, %v9402_v26  ;;  %v9476_v9 = vsel %vm19286_vm11, %v17608_v49, %v9475_v37  ;;  %vm19287_vm15 = vsmask.f32 2312  ;;  %v9815_v48 = vrot.slane %v17388_v36, 2 }
 0x437   : > { %v9406_v47 = vsel %vm19280_vm5, %v9405_v31, %v9404_v56  ;;  %v9477_v24 = vsel %vm19287_vm15, %v9390_v11, %v9476_v9  ;;  %v17770_v15 = vrot.slane %v17388_v36, 4  ;;  %vm19288_vm0 = vsmask.f32 7452 }
 0x438   : > { %v9408_v28 = vsel %vm19288_vm0, %v17653_v33, %v9406_v47  ;;  %v19289_v13 = vrot.slane %v17588_v51, 6  ;;  %vm19290_vm14 = vsmask.f32 2826  ;;  %v9847_v21 = vshrl.u32 %v9804_v54, 16  ;;  %11561 = vmatpush3.bf16.msra.mxu1 %v12967_v39 }
 0x439   : > { %v9851_v57 = vshll.u32 %v17750_v0, 16  ;;  %v7097_v25 = vmax.f32 %v17718_v52, %v7076_v62  ;;  %vm19291_vm10 = vsmask.f32 7966  ;;  %v9854_v5 = vshrl.u32 %v17750_v0, 16  ;;  %v12968_v52 = vld [vmem:[#allocation6 + $0x128] sm:$0xff]  }
 0x43a   : > { %v9478_v49 = vsel %vm19290_vm14, %v19289_v13, %v9477_v24  ;;  %v17782_v11 = vsel %vm19291_vm10, %v9409_v1, %v9408_v28  ;;  %v9849_v14 = vsel %vm1027_vm7, %v9847_v21, %v17082_v44  ;;  %v9858_v61 = vshll.u32 %v17764_v7, 16  ;;  %11562 = vmatprep.subr.bf16.mxu1 %v12968_v52 }
 0x43b   : > { %v9479_v3 = vsel %vm1027_vm7, %v9394_v18, %v9478_v49  ;;  %v9853_v4 = vsel %vm8029_vm12, %v9851_v57, %v9849_v14  ;;  %v9861_v18 = vshrl.u32 %v17764_v7, 16  ;;  %v9866_v62 = vshll.u32 %v17756_v60, 16  ;;  %v12970_v49 = vld [vmem:[#allocation6 + $0x130] sm:$0xff]  }
 0x43c   : > { %v9480_v51 = vsel %vm8029_vm12, %v17628_v32, %v9479_v3  ;;  %vm19292_vm4 = vsmask.f32 4882  ;;  %v9856_v44 = vsel %vm1029_vm9, %v9854_v5, %v9853_v4  ;;  %v9870_v26 = vshrl.u32 %v9815_v48, 16 }
 0x43d   : > { %v9481_v16 = vsel %vm1029_vm9, %v17622_v42, %v9480_v51  ;;  %v9874_v37 = vshll.u32 %v17770_v15, 16  ;;  %vm19293_vm13 = vsmask.f32 5396  ;;  %vm19294_vm11 = vmmov %vm19292_vm4  ;;  %v17807_v56 = vrot.slane %v17388_v36, 6 }
 0x43e   : > { %v9482_v32 = vsel %vm19292_vm4, %v17634_v46, %v9481_v16  ;;  %v9860_v42 = vsel %vm19294_vm11, %v9858_v61, %v9856_v44  ;;  %v9793_v9 = vsel %vm1022_vm2, %v17025_v20, 0  ;;  %v7465_v41 = vrot.slane %v7097_v25, %v16727_v22  ;;  %v12969_v46 = vld [vmem:[#allocation6 + $0xe8] sm:$0xff]   ;;  %vm19297_vm15 = vmmov %vm19293_vm13 }
 0x43f   : > { %v9483_v43 = vsel %vm19293_vm13, %v9401_v2, %v9482_v32  ;;  %v19295_v47 = vrot.slane %v17605_v35, 3  ;;  %vm19296_vm5 = vsmask.f32 5910  ;;  %v9863_v28 = vsel %vm19297_vm15, %v9861_v18, %v9860_v42  ;;  %11563 = vmatpush3.bf16.msra.mxu1 %v12969_v46  ;;  %v12973_v46 = vld [vmem:[#allocation6 + $0xf8] sm:$0xff]  }
 0x440   : > { %v19298_v2 = vrot.slane %v17025_v20, 1  ;;  %vm19299_vm0 = vsmask.f32 6424  ;;  %vm19300_vm14 = vmmov %vm19296_vm5  ;;  %v9877_v25 = vshrl.u32 %v17770_v15, 16  ;;  %vm19301_vm10 = vsmask.f32 6938  ;;  %11564 = vmatprep.subr.bf16.mxu1 %v12970_v49 }
 0x441   : > { %v9484_v24 = vsel %vm19296_vm5, %v19295_v47, %v9483_v43  ;;  %v9868_v57 = vsel %vm19300_vm14, %v9866_v62, %v9863_v28  ;;  %vm19302_vm4 = vmmov %vm19299_vm0  ;;  %v19303_v51 = vrot.slane %v17025_v20, 3  ;;  %vm19304_vm13 = vsmask.f32 1798 }
 0x442   : > { %v9795_v13 = vsel %vm8014_vm6, %v19298_v2, %v9793_v9  ;;  %v9485_v21 = vsel %vm19299_vm0, %v9405_v31, %v9484_v24  ;;  %v9872_v39 = vsel %vm19302_vm4, %v9870_v26, %v9868_v57  ;;  %v9806_v5 = vrot.slane %v17223_v59, 6  ;;  %vm19306_vm5 = vmmov %vm19301_vm10  ;;  %v12974_v2 = vld [vmem:[#allocation6 + $0x140] sm:$0xff]  }
 0x443   : > { %v9797_v3 = vsel %vm1023_vm3, %v17039_v50, %v9795_v13  ;;  %v9486_v35 = vsel %vm19301_vm10, %v17653_v33, %v9485_v21  ;;  %vm19305_vm11 = vsmask.f32 7452  ;;  %v9876_v61 = vsel %vm19306_vm5, %v9874_v37, %v9872_v39  ;;  %vm7570_vm0 = vmand %vm17335_vm8, %vm7543_vm1  ;;  %v12971_v33 = vld [vmem:[#allocation6 + $0xf0] sm:$0xff]  }
 0x444   : > { %v9799_v14 = vsel %vm19304_vm13, %v19303_v51, %v9797_v3  ;;  %v9487_v31 = vsel %vm19305_vm11, %v9409_v1, %v9486_v35  ;;  %v9882_v52 = vshll.u32 %v17807_v56, 16  ;;  %vm19307_vm15 = vsmask.f32 2312  ;;  %vm19309_vm10 = vmmov %vm19305_vm11  ;;  %11565 = vmatpush3.bf16.msra.mxu1 %v12971_v33 }
 0x445   : > { %v9801_v50 = vsel %vm19307_vm15, %v17042_v63, %v9799_v14  ;;  %vm19308_vm14 = vsmask.f32 7966  ;;  %v9879_v1 = vsel %vm19309_vm10, %v9877_v25, %v9876_v61  ;;  %v19310_v4 = vrot.slane %v17025_v20, 5  ;;  %v12972_v63 = vld [vmem:[#allocation6 + $0x138] sm:$0xff]   ;;  %v12975_v14 = vld [vmem:[#allocation6 + $0x148] sm:$0xff]  }
 0x446   : > { %v17842_v16 = vsel %vm19308_vm14, %v17674_v38, %v9487_v31  ;;  %vm19311_vm4 = vsmask.f32 2826  ;;  %v7939_v62 = vrot.slane %v7465_v41, %v16727_v22  ;;  %vm19312_vm13 = vmmov %vm19308_vm14  ;;  %v9813_v32 = vrot.slane %v17223_v59, 2  ;;  %11566 = vmatprep.subr.bf16.mxu1 %v12972_v63  ;;  %v12986_v63 = vld [vmem:[#allocation7 + $0x110] sm:$0xff]  }
 0x447   : > { %v9803_v18 = vsel %vm19311_vm4, %v19310_v4, %v9801_v50  ;;  %v17850_v53 = vsel %vm19312_vm13, %v9882_v52, %v9879_v1  ;;  %v9904_v44 = vshrl.u32 %v17807_v56, 16  ;;  %v9902_v37 = vrot.slane %v17388_v36, 7  ;;  %v12976_v52 = vld [vmem:[#allocation6 + $0x150] sm:$0xff]  }
 0x448   : > { %v9805_v8 = vsel %vm1027_vm7, %v9804_v54, %v9803_v18  ;;  %v7993_v20 = vsel %vm7570_vm0, %v7939_v62, 0.0  ;;  %v9891_v43 = vsel %vm1027_vm7, %v9806_v5, %v17085_v27  ;;  %v9817_v9 = vrot.slane %v17388_v36, 3  ;;  %11567 = vmatpush3.bf16.msra.mxu1 %v12973_v46  ;;  %v12980_v4 = vld [vmem:[#allocation6 + $0x170] sm:$0xff]   ;;  %v12983_v18 = vld [vmem:[#allocation7 + $0xc0] sm:$0xff]   ;;  %v12984_v62 = vld [vmem:[#allocation7 + $0x108] sm:$0xff]  }
 0x449   : > { %v9807_v26 = vsel %vm8029_vm12, %v9806_v5, %v9805_v8  ;;  %v8011_v41 = vpack.c.bf16 %v7993_v20, %v7993_v20  ;;  %v9892_v54 = vsel %vm8029_vm12, %v17750_v0, %v9891_v43  ;;  %vm19313_vm1 = vsmask.f32 4882  ;;  %12284 = vmatprep.subr.bf16.mxu1 %v12974_v2  ;;  %v12987_v8 = vld [vmem:[#allocation7 + $0xd0] sm:$0xff]   ;;  %v12991_v20 = vld [vmem:[#allocation7 + $0xe0] sm:$0xff]   ;;  %v12992_v43 = vld [vmem:[#allocation7 + $0x128] sm:$0xff]  }
 0x44a   : > { %v9809_v42 = vsel %vm1029_vm9, %v17750_v0, %v9807_v26  ;;  %v9906_v24 = vsel %vm1022_vm2, %v9904_v44, 0  ;;  %v9893_v28 = vsel %vm1029_vm9, %v17223_v59, %v9892_v54  ;;  %v9911_v27 = vsel %vm1022_vm2, %v9902_v37, 0  ;;  %vm19315_vm11 = vmmov %vm19313_vm1  ;;  %v12989_v44 = vld [vmem:[#allocation7 + $0xd8] sm:$0xff]   ;;  %v12990_v26 = vld [vmem:[#allocation7 + $0x120] sm:$0xff]  }
 0x44b   : > { %v9810_v47 = vsel %vm19313_vm1, %v17223_v59, %v9809_v42  ;;  %vm19314_vm8 = vsmask.f32 5396  ;;  %v9908_v0 = vshll.u32 %v8011_v41, 16  ;;  %v9894_v49 = vsel %vm19315_vm11, %v17764_v7, %v9893_v28  ;;  %9249 = vmatmul.mubr.bf16.vlgmr.msra.gmra.mrb[68].mxu1 %v17593_v29  ;;  %v12978_v29 = vld [vmem:[#allocation6 + $0x160] sm:$0xff]   ;;  %v12993_v42 = vld [vmem:[#allocation7 + $0xe8] sm:$0xff]  }
 0x44c   : > { %v9812_v13 = vsel %vm19314_vm8, %v17764_v7, %v9810_v47  ;;  %v17879_v21 = vsel %vm8014_vm6, %v8011_v41, %v9911_v27  ;;  %vm19316_vm5 = vsmask.f32 5910  ;;  %vm19317_vm15 = vmmov %vm19314_vm8  ;;  %vm19318_vm0 = vsmask.f32 6424  ;;  %9256 = vmatprep.mubr.bf16.mxu1 %v17562_v40  ;;  %12285 = vmatpush3.bf16.msra.mxu1 %v12974_v2  ;;  %v12979_v40 = vld [vmem:[#allocation6 + $0x168] sm:$0xff]   ;;  %v12996_v27 = vld [vmem:[#allocation7 + $0x138] sm:$0xff]  }
 0x44d   : > { %v9814_v57 = vsel %vm19316_vm5, %v9813_v32, %v9812_v13  ;;  %v9895_v59 = vsel %vm19317_vm15, %v9813_v32, %v9894_v49  ;;  %v17887_v3 = vsel %vm8014_vm6, %v9908_v0, %v9906_v24  ;;  %vm19319_vm14 = vmmov %vm19316_vm5  ;;  %vm19320_vm10 = vsmask.f32 6938  ;;  %12286 = vmatprep.subr.bf16.mxu1 %v12975_v14  ;;  %v12988_v32 = vld [vmem:[#allocation7 + $0x118] sm:$0xff]   ;;  %v13075_v54 = vld [vmem:[%s13533_s2 + $0x74] sm:$0xf] }
 0x44e   : > { %v9816_v25 = vsel %vm19318_vm0, %v9815_v48, %v9814_v57  ;;  %v9896_v35 = vsel %vm19319_vm14, %v17756_v60, %v9895_v59  ;;  %v9821_v39 = vrot.slane %v17388_v36, 5  ;;  %vm19321_vm4 = vmmov %vm19318_vm0  ;;  %vm19322_vm13 = vsmask.f32 7452  ;;  %v12995_v24 = vld [vmem:[#allocation7 + $0xf0] sm:$0xff]   ;;  %v19329_v2 = vld [vmem:[#allocation60_spill] sm:$0xff] }
 0x44f   : > { %v9818_v7 = vsel %vm19320_vm10, %v9817_v9, %v9816_v25  ;;  %v9897_v51 = vsel %vm19321_vm4, %v9817_v9, %v9896_v35  ;;  %vm19323_vm1 = vmmov %vm19320_vm10  ;;  %vm19324_vm8 = vsmask.f32 7966  ;;  %v9011_v50 = vsel %vm1022_vm2, %v17482_v23, 0  ;;  %v12981_v23 = vld [vmem:[#allocation6 + $0x178] sm:$0xff]   ;;  %v19330_v49 = vld [vmem:[#allocation76_spill] sm:$0xff] }
 0x450   : > { %v9820_v5 = vsel %vm19322_vm13, %v17770_v15, %v9818_v7  ;;  %v9898_v48 = vsel %vm19323_vm1, %v17770_v15, %v9897_v51  ;;  %vm19325_vm11 = vmmov %vm19322_vm13  ;;  %12287 = vmatpush3.bf16.msra.mxu1 %v12975_v14  ;;  %v12977_v15 = vld [vmem:[#allocation6 + $0x158] sm:$0xff]   ;;  %v19327_v33 = vrot.slane %v17350_v55, 7  ;;  %v12982_v55 = vld [vmem:[#allocation7 + $0x100] sm:$0xff]   ;;  %v17919_v46 = vcombine.low %v13075_v54, %v13075_v54 }
 0x451   : > { %v17899_v31 = vsel %vm19324_vm8, %v9821_v39, %v9820_v5  ;;  %v9899_v60 = vsel %vm19325_vm11, %v9821_v39, %v9898_v48  ;;  %vm19326_vm5 = vmmov %vm19324_vm8  ;;  %12288 = vmatprep.subr.bf16.mxu1 %v12976_v52  ;;  %v19328_v9 = vld [vmem:[#allocation55_spill] sm:$0xff]  ;;  %v9492_v28 = vshrl.u32 %v17674_v38, 16  ;;  %v10238_v57 = vshll.u32 %v19330_v49, 16  ;;  %v19331_v25 = vld [vmem:[#allocation64_spill] sm:$0xff] }
 0x452   : > { %v17905_v61 = vsel %vm19326_vm5, %v17807_v56, %v9899_v60  ;;  %v9013_v1 = vsel %vm8014_vm6, %v19327_v33, %v9011_v50  ;;  %v10232_v41 = vshrl.u32 %v19328_v9, 16  ;;  %v10258_v13 = vshll.u32 %v17919_v46, 16  ;;  %v12997_v59 = vld [vmem:[#allocation7 + $0xf8] sm:$0xff]   ;;  %v13000_v7 = vld [vmem:[#allocation7 + $0x140] sm:$0xff]   ;;  %v19332_v33 = vld [vmem:[#allocation110_spill] sm:$0xff] }
 0x453   : > { %9257 = vmatmul.mubr.bf16.gmra.mrb[72].mxu1 %v9013_v1  ;;  %v17933_v35 = vrot.slane %v19331_v25, 2  ;;  %v10236_v51 = vshrl.u32 %v19330_v49, 16  ;;  %v9489_v48 = vsel %vm1022_vm2, %v17674_v38, 0  ;;  %v9490_v60 = vrot.slane %v17640_v17, 7 }
 0x454   : > { %12289 = vmatpush3.bf16.msra.mxu1 %v12976_v52  ;;  %12300 = vmatprep.mubr.bf16.mxu1 %v17597_v34  ;;  %v12985_v34 = vld [vmem:[#allocation7 + $0xc8] sm:$0xff]   ;;  %v17937_v14 = vrot.slane %v10258_v13, 1  ;;  %v10251_v1 = vshrl.u32 %v19332_v33, 16  ;;  %vm19333_vm15 = vsmask.f32 7424  ;;  %v10271_v13 = vsel %vm1022_vm2, %v19331_v25, 0 }
 0x455   : > { %12290 = vmatprep.subr.bf16.mxu1 %v12977_v15  ;;  %v13076_v52 = vld [vmem:[%s13533_s2 + $0x50] sm:$0xf]  ;;  %v10309_v38 = vshrl.u32 %v17933_v35, 16  ;;  %vm19334_vm0 = vmmov %vm19333_vm15  ;;  %vm19335_vm14 = vsmask.f32 1798  ;;  %s314_s2 = scalar_lea.vmem %s19364_s1, %s10934_s21 }
 0x456   : > { %v11275_v50 = vcombine.low %v13076_v52, %v13076_v52  ;;  %vm19336_vm10 = vsmask.f32 2312  ;;  %vm19337_vm4 = vsmask.f32 2826  ;;  %vm19338_vm13 = vsmask.f32 4882  ;;  %vm19339_vm1 = vmmov %vm19335_vm14 }
 0x457   : > { %vm19340_vm8 = vsmask.f32 5396  ;;  %vm19341_vm11 = vmmov %vm19336_vm10  ;;  %vm19342_vm5 = vsmask.f32 5910 }
 0x458   : > { %12291 = vmatpush3.bf16.msra.mxu1 %v12977_v15  ;;  %v10240_v15 = vrot.slane %v10238_v57, 1 }
 0x459   : > { %12292 = vmatprep.subr.bf16.mxu1 %v12978_v29 }
 0x45c   : > { %12293 = vmatpush3.bf16.msra.mxu1 %v12978_v29  ;;  %v10253_v29 = vshll.u32 %v19332_v33, 16 }
 0x45d   : > { %12294 = vmatprep.subr.bf16.mxu1 %v12979_v40 }
 0x460   : > { %12295 = vmatpush3.bf16.msra.mxu1 %v12979_v40  ;;  %v13001_v40 = vld [vmem:[#allocation7 + $0x148] sm:$0xff]  }
 0x461   : > { %12296 = vmatprep.subr.bf16.mxu1 %v12980_v4 }
 0x464   : > { %12297 = vmatpush3.bf16.msra.mxu1 %v12980_v4  ;;  %v17947_v4 = vrot.slane %v19331_v25, 4 }
 0x465   : > { %12298 = vmatprep.subr.bf16.mxu1 %v12981_v23 }
 0x468   : > { %12299 = vmatpush3.bf16.msra.mxu1 %v12981_v23  ;;  %v10302_v23 = vshrl.u32 %v19331_v25, 16 }
 0x469   : > { %11590 = vmatprep.subr.bf16.mxu1 %v12982_v55  ;;  %v10306_v55 = vshll.u32 %v17933_v35, 16 }
 0x46b   : > { %12301 = vmatmul.mubr.bf16.vlgmr.msra.gmra.mrb[76].mxu1 %v17553_v6  ;;  %v9372_v6 = vshrl.u32 %v17544_v12, 16  ;;  %v17926_v12 = vor.u32 %v10232_v41, %v19329_v2 }
 0x46c   : > { %11591 = vmatpush3.bf16.msra.mxu1 %v12983_v18  ;;  %9726 = vmatprep.mubr.bf16.mxu1 %v17736_v45  ;;  %v12994_v45 = vld [vmem:[#allocation7 + $0x130] sm:$0xff]   ;;  %v10241_v18 = vor.u32 %v10240_v15, %v10236_v51  ;;  %v10276_v15 = vrot.slane %v19331_v25, 3 }
 0x46d   : > { %11592 = vmatprep.subr.bf16.mxu1 %v12984_v62  ;;  %v17922_v47 = vor.u32 %v9372_v6, %v17613_v10  ;;  %v9494_v10 = vsel %vm1022_vm2, %v9492_v28, 0  ;;  %v10319_v39 = vrot.slane %v17926_v12, 6  ;;  %v10243_v62 = vshll.u32 %v11275_v50, 16  ;;  %v13002_v6 = vld [vmem:[#allocation7 + $0x150] sm:$0xff]  }
 0x46f   : > { %v9496_v0 = vshll.u32 %v17922_v47, 16 }
 0x470   : > { %11593 = vmatpush3.bf16.msra.mxu1 %v12985_v34  ;;  %v10247_v34 = vshrl.u32 %v11275_v50, 16 }
 0x471   : > { %11594 = vmatprep.subr.bf16.mxu1 %v12986_v63  ;;  %v9498_v5 = vsel %vm8014_vm6, %v9496_v0, %v9494_v10  ;;  %v10255_v63 = vrot.slane %v10253_v29, 1  ;;  %v13003_v10 = vld [vmem:[#allocation7 + $0x158] sm:$0xff]   ;;  %v10280_v29 = vrot.slane %v19331_v25, 5 }
 0x474   : > { %11595 = vmatpush3.bf16.msra.mxu1 %v12987_v8  ;;  %v10304_v8 = vsel %vm1022_vm2, %v10302_v23, 0 }
 0x475   : > { %11596 = vmatprep.subr.bf16.mxu1 %v12988_v32  ;;  %v10313_v32 = vshll.u32 %v17947_v4, 16 }
 0x478   : > { %11597 = vmatpush3.bf16.msra.mxu1 %v12989_v44  ;;  %v10245_v44 = vrot.slane %v10243_v62, 1 }
 0x479   : > { %11598 = vmatprep.subr.bf16.mxu1 %v12990_v26  ;;  %v10256_v26 = vor.u32 %v10255_v63, %v10251_v1 }
 0x47a   : > { %v17964_v9 = vsel %vm19333_vm15, %v10241_v18, %v10245_v44  ;;  %v17966_v41 = vor.u32 %v10247_v34, %v10245_v44  ;;  %v13004_v18 = vld [vmem:[#allocation7 + $0x160] sm:$0xff]   ;;  %vm19343_vm15 = vmmov %vm19337_vm4 }
 0x47b   : > { %v17970_v54 = vsel %vm19334_vm0, %v10256_v26, %v17937_v14  ;;  %v10282_v28 = vrot.slane %v17964_v9, 5  ;;  %v17978_v2 = vrot.slane %v17964_v9, 1  ;;  %v10284_v44 = vrot.slane %v17964_v9, 6 }
 0x47c   : > { %11599 = vmatpush3.bf16.msra.mxu1 %v12991_v20  ;;  %v10308_v20 = vsel %vm8014_vm6, %v10306_v55, %v10304_v8  ;;  %v10293_v0 = vrot.slane %v17970_v54, 2  ;;  %v10342_v57 = vrot.slane %v17966_v41, 3  ;;  %v17990_v52 = vrot.slane %v17970_v54, 4  ;;  %v13019_v41 = vld [vmem:[#allocation6 + $0x1a8] sm:$0xff]  }
 0x47d   : > { %11600 = vmatprep.subr.bf16.mxu1 %v12992_v43  ;;  %v10316_v43 = vshrl.u32 %v17947_v4, 16  ;;  %v10325_v51 = vshrl.u32 %v10282_v28, 16  ;;  %v10336_v50 = vshll.u32 %v17978_v2, 16  ;;  %v10339_v1 = vshrl.u32 %v17978_v2, 16 }
 0x47e   : > { %v10344_v23 = vshll.u32 %v10342_v57, 16  ;;  %v18002_v55 = vrot.slane %v17970_v54, 6  ;;  %v10348_v34 = vshrl.u32 %v10293_v0, 16  ;;  %v10352_v8 = vshll.u32 %v17990_v52, 16 }
 0x47f   : > { %vm19344_vm0 = vsmask.f32 6424 }
 0x480   : > { %11601 = vmatpush3.bf16.msra.mxu1 %v12993_v42  ;;  %v9491_v42 = vsel %vm8014_vm6, %v9490_v60, %v9489_v48 }
 0x481   : > { %11602 = vmatprep.subr.bf16.mxu1 %v12994_v45  ;;  %v10321_v45 = vshll.u32 %v10319_v39, 16 }
 0x484   : > { %11603 = vmatpush3.bf16.msra.mxu1 %v12995_v24 }
 0x485   : > { %11604 = vmatprep.subr.bf16.mxu1 %v12996_v27  ;;  %v17975_v27 = vrot.slane %v17964_v9, 7 }
 0x487   : > { %v10332_v48 = vshrl.u32 %v17975_v27, 16 }
 0x488   : > { %11605 = vmatpush3.bf16.msra.mxu1 %v12997_v59  ;;  %v10272_v59 = vrot.slane %v19331_v25, 1 }
 0x489   : > { %12304 = vmatprep.subr.bf16.mxu1 %v13000_v7 }
 0x48b   : > { %9727 = vmatmul.mubr.bf16.vlgmr.msra.gmra.mrb[80].mxu1 %v17782_v11  ;;  %v10311_v11 = vsel %vm1023_vm3, %v10309_v38, %v10308_v20  ;;  %v10273_v38 = vsel %vm8014_vm6, %v10272_v59, %v10271_v13  ;;  %v10355_v20 = vshrl.u32 %v17990_v52, 16 }
 0x48c   : > { %12305 = vmatpush3.bf16.msra.mxu1 %v13000_v7  ;;  %9734 = vmatprep.mubr.bf16.mxu1 %v9498_v5  ;;  %v10315_v24 = vsel %vm19335_vm14, %v10313_v32, %v10311_v11  ;;  %v10329_v5 = vshll.u32 %v17975_v27, 16  ;;  %vm19345_vm14 = vsmask.f32 6938 }
 0x48d   : > { %12306 = vmatprep.subr.bf16.mxu1 %v13001_v40  ;;  %v10318_v49 = vsel %vm19336_vm10, %v10316_v43, %v10315_v24  ;;  %vm19346_vm10 = vsmask.f32 7452 }
 0x48e   : > { %v10323_v7 = vsel %vm19337_vm4, %v10321_v45, %v10318_v49  ;;  %v13005_v45 = vld [vmem:[#allocation7 + $0x168] sm:$0xff]   ;;  %vm19347_vm4 = vsmask.f32 7966 }
 0x48f   : > { %v10327_v33 = vsel %vm1027_vm7, %v10325_v51, %v10323_v7  ;;  %v10291_v7 = vrot.slane %v17964_v9, 2 }
 0x490   : > { %12307 = vmatpush3.bf16.msra.mxu1 %v13001_v40  ;;  %v10331_v40 = vsel %vm8029_vm12, %v10329_v5, %v10327_v33  ;;  %v13006_v33 = vld [vmem:[#allocation7 + $0x170] sm:$0xff]  }
 0x491   : > { %12308 = vmatprep.subr.bf16.mxu1 %v13002_v6  ;;  %v10334_v62 = vsel %vm1029_vm9, %v10332_v48, %v10331_v40 }
 0x492   : > { %v10338_v63 = vsel %vm19338_vm13, %v10336_v50, %v10334_v62  ;;  %v10295_v50 = vrot.slane %v17970_v54, 3  ;;  %v10262_v62 = vshrl.u32 %v17919_v46, 16  ;;  %v9499_v46 = vsel %vm1022_vm2, %v9490_v60, 0 }
 0x493   : > { %9735 = vmatmul.mubr.bf16.gmra.mrb[84].mxu1 %v9491_v42  ;;  %v10341_v26 = vsel %vm19340_vm8, %v10339_v1, %v10338_v63  ;;  %v10360_v42 = vshll.u32 %v18002_v55, 16 }
 0x494   : > { %12309 = vmatpush3.bf16.msra.mxu1 %v13002_v6  ;;  %12320 = vmatprep.mubr.bf16.mxu1 %v17842_v16  ;;  %v10275_v16 = vsel %vm1023_vm3, %v17933_v35, %v10273_v38  ;;  %v10346_v6 = vsel %vm19342_vm5, %v10344_v23, %v10341_v26  ;;  %v10299_v23 = vrot.slane %v17970_v54, 5 }
 0x495   : > { %12310 = vmatprep.subr.bf16.mxu1 %v13003_v10  ;;  %v10277_v32 = vsel %vm19339_vm1, %v10276_v15, %v10275_v16  ;;  %v10350_v24 = vsel %vm19344_vm0, %v10348_v34, %v10346_v6  ;;  %vm19348_vm1 = vmmov %vm19340_vm8  ;;  %v10382_v34 = vshrl.u32 %v18002_v55, 16  ;;  %v13007_v16 = vld [vmem:[#allocation7 + $0x178] sm:$0xff]   ;;  %v10380_v6 = vrot.slane %v17970_v54, 7 }
 0x496   : > { %v10279_v43 = vsel %vm19341_vm11, %v17947_v4, %v10277_v32  ;;  %v10354_v49 = vsel %vm19345_vm14, %v10352_v8, %v10350_v24  ;;  %vm19349_vm8 = vmmov %vm19342_vm5  ;;  %v10264_v32 = vor.u32 %v10262_v62, %v17937_v14  ;;  %v13009_v14 = vld [vmem:[#allocation6 + $0x180] sm:$0xff]   ;;  %v13027_v62 = vld [vmem:[#allocation6 + $0x218] sm:$0xff]  }
 0x497   : > { %v10281_v11 = vsel %vm19343_vm15, %v10280_v29, %v10279_v43  ;;  %v10357_v51 = vsel %vm19346_vm10, %v10355_v20, %v10354_v49  ;;  %vm19350_vm11 = vmmov %vm19344_vm0  ;;  %v10384_v26 = vsel %vm1022_vm2, %v10382_v34, 0  ;;  %v13008_v20 = vld [vmem:[#allocation6 + $0x1c0] sm:$0xff]   ;;  %v10389_v17 = vsel %vm1022_vm2, %v10380_v6, 0  ;;  %v13012_v49 = vld [vmem:[#allocation6 + $0x1d0] sm:$0xff]  }
 0x498   : > { %12311 = vmatpush3.bf16.msra.mxu1 %v13003_v10  ;;  %v10283_v13 = vsel %vm1027_vm7, %v10282_v28, %v10281_v11  ;;  %v18036_v48 = vsel %vm19347_vm4, %v10360_v42, %v10357_v51  ;;  %vm19351_vm5 = vmmov %vm19345_vm14  ;;  %v9500_v42 = vsel %vm8014_vm6, %v17922_v47, %v9499_v46  ;;  %v13010_v11 = vld [vmem:[#allocation6 + $0x1c8] sm:$0xff]   ;;  %v18074_v24 = vsel %vm8014_vm6, %v10264_v32, %v10389_v17  ;;  %v13033_v17 = vld [vmem:[#allocation7 + $0x180] sm:$0xff]  }
 0x499   : > { %12312 = vmatprep.subr.bf16.mxu1 %v13004_v18  ;;  %v10285_v10 = vsel %vm8029_vm12, %v10284_v44, %v10283_v13  ;;  %vm19352_vm15 = vmmov %vm19346_vm10  ;;  %v13011_v13 = vld [vmem:[#allocation6 + $0x188] sm:$0xff]   ;;  %vm19354_vm14 = vsmask.f32 1798  ;;  %vm19355_vm10 = vsmask.f32 2312 }
 0x49a   : > { %v10287_v5 = vsel %vm1029_vm9, %v17975_v27, %v10285_v10  ;;  %vm19353_vm0 = vmmov %vm19347_vm4  ;;  %vm19356_vm4 = vsmask.f32 2826 }
 0x49b   : > { %v10288_v28 = vsel %vm19338_vm13, %v17964_v9, %v10287_v5  ;;  %v13016_v5 = vld [vmem:[#allocation6 + $0x1e0] sm:$0xff]  }
 0x49c   : > { %12313 = vmatpush3.bf16.msra.mxu1 %v13004_v18  ;;  %v10290_v1 = vsel %vm19348_vm1, %v17978_v2, %v10288_v28 }
 0x49d   : > { %12314 = vmatprep.subr.bf16.mxu1 %v13005_v45  ;;  %v10292_v40 = vsel %vm19349_vm8, %v10291_v7, %v10290_v1  ;;  %v13021_v1 = vld [vmem:[#allocation6 + $0x1b0] sm:$0xff]  }
 0x49e   : > { %v10294_v38 = vsel %vm19350_vm11, %v10293_v0, %v10292_v40  ;;  %v10386_v0 = vshll.u32 %v10264_v32, 16  ;;  %v13024_v40 = vld [vmem:[#allocation6 + $0x200] sm:$0xff]  }
 0x49f   : > { %v10296_v18 = vsel %vm19351_vm5, %v10295_v50, %v10294_v38  ;;  %v13026_v38 = vld [vmem:[#allocation6 + $0x210] sm:$0xff]  }
 0x4a0   : > { %12315 = vmatpush3.bf16.msra.mxu1 %v13005_v45  ;;  %v10298_v63 = vsel %vm19352_vm15, %v17990_v52, %v10296_v18  ;;  %v18060_v43 = vsel %vm8014_vm6, %v10386_v0, %v10384_v26  ;;  %v10363_v45 = vsel %vm1022_vm2, %v10272_v59, 0  ;;  %v9901_v18 = vsel %vm1022_vm2, %v17807_v56, 0 }
 0x4a1   : > { %12316 = vmatprep.subr.bf16.mxu1 %v13006_v33  ;;  %v18052_v8 = vsel %vm19353_vm0, %v10299_v23, %v10298_v63  ;;  %v10364_v60 = vsel %vm8014_vm6, %v17933_v35, %v10363_v45  ;;  %v9903_v34 = vsel %vm8014_vm6, %v9902_v37, %v9901_v18  ;;  %v13031_v37 = vld [vmem:[#allocation6 + $0x238] sm:$0xff]  }
 0x4a2   : > { %v10365_v47 = vsel %vm1023_vm3, %v10276_v15, %v10364_v60  ;;  %vm19357_vm3 = vmmov %vm19338_vm13 }
 0x4a3   : > { %v10366_v59 = vsel %vm19354_vm14, %v17947_v4, %v10365_v47  ;;  %v13014_v4 = vld [vmem:[#allocation6 + $0x1d8] sm:$0xff]   ;;  %vm19358_vm13 = vmmov %vm19348_vm1  ;;  %v13034_v47 = vld [vmem:[#allocation7 + $0x1c8] sm:$0xff]  }
 0x4a4   : > { %12317 = vmatpush3.bf16.msra.mxu1 %v13006_v33  ;;  %v10367_v35 = vsel %vm19355_vm10, %v10280_v29, %v10366_v59  ;;  %vm19360_vm1 = vmmov %vm19350_vm11  ;;  %v13017_v33 = vld [vmem:[#allocation6 + $0x1a0] sm:$0xff]   ;;  %v13037_v59 = vld [vmem:[#allocation7 + $0x190] sm:$0xff]  }
 0x4a5   : > { %12318 = vmatprep.subr.bf16.mxu1 %v13007_v16  ;;  %v10368_v10 = vsel %vm19356_vm4, %v10319_v39, %v10367_v35  ;;  %v13015_v39 = vld [vmem:[#allocation6 + $0x198] sm:$0xff]  }
 0x4a6   : > { %v10369_v15 = vsel %vm1027_vm7, %v10284_v44, %v10368_v10  ;;  %vm19359_vm7 = vmmov %vm19349_vm8  ;;  %v13039_v35 = vld [vmem:[#allocation7 + $0x198] sm:$0xff]   ;;  %v13040_v10 = vld [vmem:[#allocation7 + $0x1e0] sm:$0xff]  }
 0x4a7   : > { %v10370_v51 = vsel %vm8029_vm12, %v17975_v27, %v10369_v15  ;;  %vm19361_vm12 = vmmov %vm19351_vm5  ;;  %v13041_v15 = vld [vmem:[#allocation7 + $0x1a0] sm:$0xff]  }
 0x4a8   : > { %12319 = vmatpush3.bf16.msra.mxu1 %v13007_v16  ;;  %v10371_v25 = vsel %vm1029_vm9, %v17964_v9, %v10370_v51  ;;  %vm19362_vm8 = vmmov %vm19352_vm15  ;;  %v13030_v16 = vld [vmem:[#allocation6 + $0x230] sm:$0xff]  }
 0x4a9   : > { %11628 = vmatprep.subr.bf16.mxu1 %v13008_v20  ;;  %v10372_v29 = vsel %vm19357_vm3, %v17978_v2, %v10371_v25  ;;  %vm19363_vm9 = vmmov %vm19353_vm0  ;;  %v13032_v20 = vld [vmem:[#allocation7 + $0x1c0] sm:$0xff]  }
 0x4aa   : > { %v10373_v12 = vsel %vm19358_vm13, %v10291_v7, %v10372_v29  ;;  %v13018_v7 = vld [vmem:[#allocation6 + $0x1e8] sm:$0xff]  }
 0x4ab   : > { %12321 = vmatmul.mubr.bf16.vlgmr.msra.gmra.mrb[88].mxu1 %v9500_v42  ;;  %v10374_v44 = vsel %vm19359_vm7, %v10342_v57, %v10373_v12  ;;  %v13020_v57 = vld [vmem:[#allocation6 + $0x1f0] sm:$0xff]  }
 0x4ac   : > { %11629 = vmatpush3.bf16.msra.mxu1 %v13009_v14  ;;  %10138 = vmatprep.mubr.bf16.mxu1 %v17850_v53  ;;  %v13013_v53 = vld [vmem:[#allocation6 + $0x190] sm:$0xff]   ;;  %v10375_v27 = vsel %vm19360_vm1, %v10295_v50, %v10374_v44  ;;  %v13022_v50 = vld [vmem:[#allocation6 + $0x1f8] sm:$0xff]  }
 0x4ad   : > { %11630 = vmatprep.subr.bf16.mxu1 %v13010_v11  ;;  %v10376_v28 = vsel %vm19361_vm12, %v17990_v52, %v10375_v27  ;;  %v13023_v52 = vld [vmem:[#allocation6 + $0x1b8] sm:$0xff]   ;;  %v13045_v12 = vld [vmem:[#allocation7 + $0x1b0] sm:$0xff]  }
 0x4ae   : > { %v10377_v9 = vsel %vm19362_vm8, %v10299_v23, %v10376_v28  ;;  %v13025_v23 = vld [vmem:[#allocation6 + $0x208] sm:$0xff]   ;;  %v13046_v44 = vld [vmem:[#allocation7 + $0x1f8] sm:$0xff]   ;;  %v13049_v28 = vld [vmem:[#allocation7 + $0x200] sm:$0xff]  }
 0x4af   : > { %v18107_v2 = vsel %vm19363_vm9, %v18002_v55, %v10377_v9  ;;  %v13047_v27 = vld [vmem:[#allocation7 + $0x1b8] sm:$0xff]   ;;  %v13050_v9 = vld [vmem:[#allocation7 + $0x208] sm:$0xff]  }
 0x4b0   : > { %11631 = vmatpush3.bf16.msra.mxu1 %v13011_v13 }
 0x4b1   : > { %11632 = vmatprep.subr.bf16.mxu1 %v13012_v49  ;;  %v13038_v49 = vld [vmem:[#allocation7 + $0x1d8] sm:$0xff]  }
 0x4b4   : > { %11633 = vmatpush3.bf16.msra.mxu1 %v13013_v53  ;;  %v13044_v53 = vld [vmem:[#allocation7 + $0x1f0] sm:$0xff]  }
 0x4b5   : > { %11634 = vmatprep.subr.bf16.mxu1 %v13014_v4 }
 0x4b8   : > { %11635 = vmatpush3.bf16.msra.mxu1 %v13015_v39 }
 0x4b9   : > { %11636 = vmatprep.subr.bf16.mxu1 %v13016_v5 }
 0x4bc   : > { %11637 = vmatpush3.bf16.msra.mxu1 %v13017_v33  ;;  %v13051_v33 = vld [vmem:[#allocation7 + $0x210] sm:$0xff]  }
 0x4bd   : > { %11638 = vmatprep.subr.bf16.mxu1 %v13018_v7  ;;  %v10379_v7 = vsel %vm1022_vm2, %v18002_v55, 0 }
 0x4c0   : > { %11639 = vmatpush3.bf16.msra.mxu1 %v13019_v41  ;;  %v10381_v41 = vsel %vm8014_vm6, %v10380_v6, %v10379_v7 }
 0x4c1   : > { %11640 = vmatprep.subr.bf16.mxu1 %v13020_v57  ;;  %v13052_v57 = vld [vmem:[#allocation7 + $0x218] sm:$0xff]  }
 0x4c4   : > { %11641 = vmatpush3.bf16.msra.mxu1 %v13021_v1  ;;  %v13055_v1 = vld [vmem:[#allocation7 + $0x230] sm:$0xff]  }
 0x4c5   : > { %11642 = vmatprep.subr.bf16.mxu1 %v13022_v50 }
 0x4c8   : > { %11643 = vmatpush3.bf16.msra.mxu1 %v13023_v52 }
 0x4c9   : > { %12324 = vmatprep.subr.bf16.mxu1 %v13024_v40 }
 0x4cb   : > { %10139 = vmatmul.mubr.bf16.vlgmr.msra.gmra.mrb[92].mxu1 %v17899_v31  ;;  %v13028_v31 = vld [vmem:[#allocation6 + $0x220] sm:$0xff]  }
 0x4cc   : > { %10146 = vmatprep.mubr.bf16.mxu1 %v17887_v3  ;;  %12325 = vmatpush3.bf16.msra.mxu1 %v13024_v40  ;;  %v13029_v3 = vld [vmem:[#allocation6 + $0x228] sm:$0xff]   ;;  %v13056_v40 = vld [vmem:[#allocation7 + $0x238] sm:$0xff]  }
 0x4cd   : > { %12326 = vmatprep.subr.bf16.mxu1 %v13025_v23 }
 0x4d0   : > { %12327 = vmatpush3.bf16.msra.mxu1 %v13025_v23 }
 0x4d1   : > { %12328 = vmatprep.subr.bf16.mxu1 %v13026_v38 }
 0x4d3   : > { %10147 = vmatmul.mubr.bf16.gmra.mrb[96].mxu1 %v9903_v34 }
 0x4d4   : > { %12329 = vmatpush3.bf16.msra.mxu1 %v13026_v38  ;;  %12340 = vmatprep.mubr.bf16.mxu1 %v17905_v61 }
 0x4d5   : > { %12330 = vmatprep.subr.bf16.mxu1 %v13027_v62 }
 0x4d8   : > { %12331 = vmatpush3.bf16.msra.mxu1 %v13027_v62  ;;  %v11530_v56 = vpop.f32.mrb[56].mxu1 }
 0x4d9   : > { %12332 = vmatprep.subr.bf16.mxu1 %v13028_v31  ;;  %v11531_v63 = vpop.f32.mrb[57].mxu1 }
 0x4da   : > { %v11532_v32 = vadd.f32 %v11531_v63, %v11530_v56  ;;  %v11533_v26 = vpop.f32.mrb[58].mxu1 }
 0x4db   : > { %v11534_v36 = vpop.f32.mrb[59].mxu1 }
 0x4dc   : > { %12333 = vmatpush3.bf16.msra.mxu1 %v13028_v31  ;;  %v11535_v0 = vadd.f32 %v11534_v36, %v11533_v26  ;;  %v8842_v46 = vadd.f32 %v11532_v32, %v17713_v58  ;;  %v13035_v58 = vld [vmem:[#allocation7 + $0x188] sm:$0xff]  }
 0x4dd   : > { %12334 = vmatprep.subr.bf16.mxu1 %v13029_v3 }
 0x4de   : > { %v8845_v61 = vadd.f32 %v11535_v0, %v17733_v19  ;;  %v13036_v19 = vld [vmem:[#allocation7 + $0x1d0] sm:$0xff]  }
 0x4e0   : > { %12335 = vmatpush3.bf16.msra.mxu1 %v13029_v3  ;;  %v11536_v42 = vpop.f32.mrb[60].mxu1 }
 0x4e1   : > { %12336 = vmatprep.subr.bf16.mxu1 %v13030_v16  ;;  %v11537_v14 = vpop.f32.mrb[61].mxu1 }
 0x4e2   : > { %v11538_v11 = vadd.f32 %v11537_v14, %v11536_v42  ;;  %v11539_v45 = vpop.f32.mrb[62].mxu1 }
 0x4e3   : > { %v11540_v60 = vpop.f32.mrb[63].mxu1 }
 0x4e4   : > { %12337 = vmatpush3.bf16.msra.mxu1 %v13030_v16  ;;  %v8850_v13 = vadd.f32 %v11538_v11, %v17725_v30  ;;  %v13042_v30 = vld [vmem:[#allocation7 + $0x1e8] sm:$0xff]  }
 0x4e5   : > { %12338 = vmatprep.subr.bf16.mxu1 %v13031_v37 }
 0x4e8   : > { %12339 = vmatpush3.bf16.msra.mxu1 %v13031_v37 }
 0x4e9   : > { %11666 = vmatprep.subr.bf16.mxu1 %v13032_v20 }
 0x4eb   : > { %12341 = vmatmul.mubr.bf16.vlgmr.msra.gmra.mrb[100].mxu1 %v17879_v21  ;;  %v13043_v21 = vld [vmem:[#allocation7 + $0x1a8] sm:$0xff]  }
 0x4ec   : > { %11667 = vmatpush3.bf16.msra.mxu1 %v13033_v17  ;;  %10616 = vmatprep.mubr.bf16.mxu1 %v18036_v48 }
 0x4ed   : > { %11668 = vmatprep.subr.bf16.mxu1 %v13034_v47 }
 0x4f0   : > { %11669 = vmatpush3.bf16.msra.mxu1 %v13035_v58 }
 0x4f1   : > { %11670 = vmatprep.subr.bf16.mxu1 %v13036_v19 }
 0x4f4   : > { %11671 = vmatpush3.bf16.msra.mxu1 %v13037_v59 }
 0x4f5   : > { %11672 = vmatprep.subr.bf16.mxu1 %v13038_v49 }
 0x4f8   : > { %11673 = vmatpush3.bf16.msra.mxu1 %v13039_v35  ;;  %v12282_v51 = vpop.f32.mrb[64].mxu1 }
 0x4f9   : > { %11674 = vmatprep.subr.bf16.mxu1 %v13040_v10  ;;  %v8898_v48 = vadd.f32 %v12282_v51, %v8850_v13  ;;  %v8889_v4 = vpop.f32.mrb[65].mxu1 }
 0x4fa   : > { %v8890_v25 = vadd.f32 %v8889_v4, %v8842_v46  ;;  %v12283_v29 = vpop.f32.mrb[66].mxu1 }
 0x4fb   : > { %v8892_v39 = vpop.f32.mrb[67].mxu1 }
 0x4fc   : > { %11675 = vmatpush3.bf16.msra.mxu1 %v13041_v15  ;;  %v8893_v5 = vadd.f32 %v8892_v39, %v8845_v61 }
 0x4fd   : > { %11676 = vmatprep.subr.bf16.mxu1 %v13042_v30 }
 0x500   : > { %11677 = vmatpush3.bf16.msra.mxu1 %v13043_v21 }
 0x501   : > { %11678 = vmatprep.subr.bf16.mxu1 %v13044_v53 }
 0x504   : > { %11679 = vmatpush3.bf16.msra.mxu1 %v13045_v12 }
 0x505   : > { %11680 = vmatprep.subr.bf16.mxu1 %v13046_v44 }
 0x508   : > { %11681 = vmatpush3.bf16.msra.mxu1 %v13047_v27 }
 0x509   : > { %12344 = vmatprep.subr.bf16.mxu1 %v13049_v28 }
 0x50b   : > { %10617 = vmatmul.mubr.bf16.vlgmr.msra.gmra.mrb[104].mxu1 %v18052_v8  ;;  %v13053_v8 = vld [vmem:[#allocation7 + $0x220] sm:$0xff]  }
 0x50c   : > { %12345 = vmatpush3.bf16.msra.mxu1 %v13049_v28  ;;  %10624 = vmatprep.mubr.bf16.mxu1 %v18060_v43  ;;  %v13054_v43 = vld [vmem:[#allocation7 + $0x228] sm:$0xff]  }
 0x50d   : > { %12346 = vmatprep.subr.bf16.mxu1 %v13050_v9 }
 0x510   : > { %12347 = vmatpush3.bf16.msra.mxu1 %v13050_v9 }
 0x511   : > { %12348 = vmatprep.subr.bf16.mxu1 %v13051_v33 }
 0x513   : > { %10625 = vmatmul.mubr.bf16.gmra.mrb[108].mxu1 %v10381_v41 }
 0x514   : > { %12349 = vmatpush3.bf16.msra.mxu1 %v13051_v33  ;;  %12360 = vmatprep.mubr.bf16.mxu1 %v18107_v2 }
 0x515   : > { %12350 = vmatprep.subr.bf16.mxu1 %v13052_v57 }
 0x518   : > { %12351 = vmatpush3.bf16.msra.mxu1 %v13052_v57 }
 0x519   : > { %12352 = vmatprep.subr.bf16.mxu1 %v13053_v8 }
 0x51c   : > { %12353 = vmatpush3.bf16.msra.mxu1 %v13053_v8 }
 0x51d   : > { %12354 = vmatprep.subr.bf16.mxu1 %v13054_v43 }
 0x51e   : > { %v11568_v55 = vpop.f32.mrb[68].mxu1 }
 0x51f   : > { %v11569_v50 = vpop.f32.mrb[69].mxu1 }
 0x520   : > { %v11570_v52 = vadd.f32 %v11569_v50, %v11568_v55  ;;  %v11571_v54 = vpop.f32.mrb[70].mxu1  ;;  %12355 = vmatpush3.bf16.msra.mxu1 %v13054_v43 }
 0x521   : > { %v11572_v6 = vpop.f32.mrb[71].mxu1  ;;  %12356 = vmatprep.subr.bf16.mxu1 %v13055_v1 }
 0x522   : > { %v11573_v23 = vadd.f32 %v11572_v6, %v11571_v54 }
 0x524   : > { %12357 = vmatpush3.bf16.msra.mxu1 %v13055_v1 }
 0x525   : > { %12358 = vmatprep.subr.bf16.mxu1 %v13056_v40 }
 0x526   : > { %v11574_v2 = vpop.f32.mrb[72].mxu1 }
 0x527   : > { %v11575_v38 = vpop.f32.mrb[73].mxu1 }
 0x528   : > { %v11576_v18 = vadd.f32 %v11575_v38, %v11574_v2  ;;  %v11577_v62 = vpop.f32.mrb[74].mxu1  ;;  %12359 = vmatpush3.bf16.msra.mxu1 %v13056_v40 }
 0x529   : > { %v11578_v34 = vpop.f32.mrb[75].mxu1 }
 0x52b   : > { %12361 = vmatmul.mubr.bf16.vlgmr.msra.gmra.mrb[112].mxu1 %v18074_v24 }
 0x53e   : > { %v12302_v31 = vpop.f32.mrb[76].mxu1 }
 0x53f   : > { %v9307_v3 = vadd.f32 %v12302_v31, %v11576_v18  ;;  %v9298_v16 = vpop.f32.mrb[77].mxu1 }
 0x540   : > { %v9299_v56 = vadd.f32 %v11570_v52, %v9298_v16  ;;  %v12303_v63 = vpop.f32.mrb[78].mxu1 }
 0x541   : > { %v9314_v32 = vadd.f32 %v9307_v3, %v8898_v48  ;;  %v9301_v26 = vpop.f32.mrb[79].mxu1 }
 0x542   : > { %v9312_v36 = vadd.f32 %v9299_v56, %v8890_v25  ;;  %v9302_v37 = vadd.f32 %v11573_v23, %v9301_v26  ;;  %v11302_v26 = vld [vmem:[%s18180_s4 + $0x2] ss:$0 sm:$0xff] }
 0x544   : > { %v9313_v0 = vadd.f32 %v9302_v37, %v8893_v5 }
 0x55e   : > { %v11606_v46 = vpop.f32.mrb[80].mxu1 }
 0x55f   : > { %v11607_v61 = vpop.f32.mrb[81].mxu1 }
 0x560   : > { %v11608_v20 = vadd.f32 %v11607_v61, %v11606_v46  ;;  %v11609_v42 = vpop.f32.mrb[82].mxu1 }
 0x561   : > { %v11610_v14 = vpop.f32.mrb[83].mxu1 }
 0x562   : > { %v11611_v11 = vadd.f32 %v11610_v14, %v11609_v42 }
 0x566   : > { %v11612_v45 = vpop.f32.mrb[84].mxu1 }
 0x567   : > { %v11613_v17 = vpop.f32.mrb[85].mxu1 }
 0x568   : > { %v11614_v60 = vadd.f32 %v11613_v17, %v11612_v45  ;;  %v11615_v24 = vpop.f32.mrb[86].mxu1 }
 0x569   : > { %v11616_v47 = vpop.f32.mrb[87].mxu1 }
 0x57e   : > { %v12322_v13 = vpop.f32.mrb[88].mxu1 }
 0x57f   : > { %v9785_v58 = vadd.f32 %v12322_v13, %v11614_v60  ;;  %v9776_v19 = vpop.f32.mrb[89].mxu1 }
 0x580   : > { %v9777_v59 = vadd.f32 %v11608_v20, %v9776_v19  ;;  %v12323_v49 = vpop.f32.mrb[90].mxu1 }
 0x581   : > { %v9792_v35 = vadd.f32 %v9785_v58, %v9314_v32  ;;  %v9779_v10 = vpop.f32.mrb[91].mxu1 }
 0x582   : > { %v9790_v15 = vadd.f32 %v9777_v59, %v9312_v36  ;;  %v9780_v30 = vadd.f32 %v11611_v11, %v9779_v10 }
 0x584   : > { %v9791_v21 = vadd.f32 %v9780_v30, %v9313_v0 }
 0x59e   : > { %v11644_v53 = vpop.f32.mrb[92].mxu1 }
 0x59f   : > { %v11645_v51 = vpop.f32.mrb[93].mxu1 }
 0x5a0   : > { %v11646_v48 = vadd.f32 %v11645_v51, %v11644_v53  ;;  %v11647_v4 = vpop.f32.mrb[94].mxu1 }
 0x5a1   : > { %v11648_v25 = vpop.f32.mrb[95].mxu1 }
 0x5a2   : > { %v11649_v29 = vadd.f32 %v11648_v25, %v11647_v4 }
 0x5a6   : > { %v11650_v12 = vpop.f32.mrb[96].mxu1 }
 0x5a7   : > { %v11651_v39 = vpop.f32.mrb[97].mxu1 }
 0x5a8   : > { %v11652_v44 = vadd.f32 %v11651_v39, %v11650_v12  ;;  %v11653_v5 = vpop.f32.mrb[98].mxu1 }
 0x5a9   : > { %v11654_v27 = vpop.f32.mrb[99].mxu1 }
 0x5be   : > { %v12342_v28 = vpop.f32.mrb[100].mxu1 }
 0x5bf   : > { %v10197_v9 = vadd.f32 %v12342_v28, %v11652_v44  ;;  %v10188_v33 = vpop.f32.mrb[101].mxu1 }
 0x5c0   : > { %v10189_v7 = vadd.f32 %v11646_v48, %v10188_v33  ;;  %v12343_v41 = vpop.f32.mrb[102].mxu1 }
 0x5c1   : > { %v10204_v57 = vadd.f32 %v10197_v9, %v9792_v35  ;;  %v10191_v8 = vpop.f32.mrb[103].mxu1 }
 0x5c2   : > { %v10202_v43 = vadd.f32 %v10189_v7, %v9790_v15  ;;  %v10192_v1 = vadd.f32 %v11649_v29, %v10191_v8 }
 0x5c4   : > { %v10203_v55 = vadd.f32 %v10192_v1, %v9791_v21 }
 0x5de   : > { %v11682_v50 = vpop.f32.mrb[104].mxu1 }
 0x5df   : > { %v11683_v52 = vpop.f32.mrb[105].mxu1 }
 0x5e0   : > { %v11684_v54 = vadd.f32 %v11683_v52, %v11682_v50  ;;  %v11685_v6 = vpop.f32.mrb[106].mxu1 }
 0x5e1   : > { %v11686_v40 = vpop.f32.mrb[107].mxu1 }
 0x5e2   : > { %v11687_v23 = vadd.f32 %v11686_v40, %v11685_v6 }
 0x5e6   : > { %v11688_v2 = vpop.f32.mrb[108].mxu1 }
 0x5e7   : > { %v11689_v38 = vpop.f32.mrb[109].mxu1 }
 0x5e8   : > { %v11690_v18 = vadd.f32 %v11689_v38, %v11688_v2  ;;  %v11691_v62 = vpop.f32.mrb[110].mxu1 }
 0x5e9   : > { %v11692_v34 = vpop.f32.mrb[111].mxu1 }
 0x5fe   : > { %v12362_v31 = vpop.f32.mrb[112].mxu1 }
 0x5ff   : > { %v10675_v3 = vadd.f32 %v12362_v31, %v11690_v18  ;;  %v10666_v16 = vpop.f32.mrb[113].mxu1 }
 0x600   : > { %v10667_v56 = vadd.f32 %v11684_v54, %v10666_v16  ;;  %v12363_v63 = vpop.f32.mrb[114].mxu1 }
 0x601   : > { %v10682_v32 = vadd.f32 %v10675_v3, %v10204_v57  ;;  %v10669_v36 = vpop.f32.mrb[115].mxu1 }
 0x602   : > { %v10680_v37 = vadd.f32 %v10667_v56, %v10202_v43  ;;  %v10670_v0 = vadd.f32 %v11687_v23, %v10669_v36 }
 0x603   : > { %v10690_v11 = vadd.f32 %v11302_v26, %v10682_v32 }
 0x604   : > { %v10688_v46 = vadd.f32 %v11302_v26, %v10680_v37  ;;  %v10681_v61 = vadd.f32 %v10670_v0, %v10203_v55 }
 0x605   : > { %v10734_v19 = vrot.slane %v10690_v11, %v16727_v22 }
 0x606   : > { %v10694_v20 = vcombine.high %v10688_v46, %v10688_v46  ;;  %v10701_v42 = vrot.slane %v10688_v46, %v16727_v22  ;;  %v10689_v14 = vadd.f32 %v11302_v26, %v10681_v61 }
 0x607   : > { %v10781_v48 = vrot.slane %v10734_v19, %v16727_v22 }
 0x608   : > { %v10708_v45 = vrot.slane %v10694_v20, %v16727_v22  ;;  %v10709_v17 = vcombine.high %v10701_v42, %v10701_v42  ;;  %v10711_v60 = vcombine.high %v10689_v14, %v10689_v14  ;;  %v10718_v24 = vrot.slane %v10689_v14, %v16727_v22 }
 0x60a   : > { %v10735_v47 = vcombine.low %v10701_v42, %v10709_v17  ;;  %v10710_v13 = vcombine.high %v10708_v45, %v10708_v45  ;;  %v10725_v58 = vrot.slane %v10711_v60, %v16727_v22  ;;  %v10726_v59 = vcombine.high %v10718_v24, %v10718_v24 }
 0x60b   : > { %v10749_v35 = vrot.slane %v10708_v45, %v16727_v22 }
 0x60c   : > { %v10742_v49 = vrot.slane %v10735_v47, %v16727_v22  ;;  %v10727_v10 = vcombine.high %v10725_v58, %v10725_v58  ;;  %v10751_v15 = vcombine.low %v10710_v13, %v10718_v24  ;;  %v10765_v53 = vrot.slane %v10726_v59, %v16727_v22 }
 0x60e   : > { %v10750_v30 = vcombine.low %v10742_v49, %v10749_v35  ;;  %v10758_v21 = vrot.slane %v10751_v15, %v16727_v22  ;;  %v10767_v51 = vcombine.low %v10725_v58, %v10727_v10 }
 0x610   : > { %v10786_v4 = vpack.c.bf16 %v10750_v30, %v10750_v30  ;;  %v10766_v25 = vcombine.low %v10758_v21, %v10765_v53  ;;  %v10774_v29 = vrot.slane %v10767_v51, %v16727_v22 }
 0x612   : > { %10789 = vst [vmem:[%s314_s2] sm:$0x7] %v10786_v4  ;;  %v10782_v12 = vcombine.low %v10774_v29, %v10781_v48  ;;  %v10787_v39 = vpack.c.bf16 %v10766_v25, %v10766_v25 }
 0x614   : > { %v10788_v44 = vpack.c.bf16 %v10782_v12, %v10782_v12  ;;  %10790 = vst [vmem:[%s314_s2 + $0x4] sm:$0x7] %v10787_v39 }
 0x616   : > { %10791 = vst [vmem:[%s314_s2 + $0x8] sm:$0x7] %v10788_v44 }
 0x617 PF: > { %s20_s25 = sadd.s32 1, %s13274_s25   ;;  %s19365_s18 = smov %s13250_s19 }
 0x618   : > { %p17_p9 = scmp.ge.s32.totalorder %s20_s25, 6   ;;  %s19366_s19 = smov %s13254_s20 }
 0x619   : > { %s19367_s20 = smov %s13490_s5  ;;  %s19368_s21 = smov %s13266_s23 }
 0x61a   : > { %s19369_s22 = smov %s13270_s24  ;;  %s19370_s23 = smov %s19373_s17 }
 0x61b   : > { %s19371_s24 = smov %s19377_s7  ;;  %19 = sbr.rel (!%p17_p9) target bundleno = 11 (0xb), region = 104 }
 0x622   :  { %10821 = vsyncpa [#allocation3], 1 }
 0x623   :  { %10823 = vsyncpa [#allocation3 + $0x1], 1 }
 0x624   :  { %10824 = vsyncpa [#allocation5], 1 }
 0x625   :  { %10825 = vsyncpa [#allocation8], 1 }

</bundles_post_ra>
